<compile_context>
chip_gen: v7x
topology: tpu7x:2x2x1
jax: 0.10.0
libtpu: 0.0.40
codegen_flags: <defaults>
</compile_context>

<pallas_src>
import functools
import math

import jax
import jax.numpy as jnp
from jax.experimental import pallas as pl
from jax.experimental.pallas import tpu as pltpu


# ----------------------------------------------------------------------------
# Fused ResBlock kernel: conv3x3+bias+ReLU -> conv3x3+bias -> +x, all in VMEM
# ----------------------------------------------------------------------------
def _resblock_kernel(x_ref, w1_ref, b1_ref, w2_ref, b2_ref, out_ref,
                     padbuf, slab, *, imgs, H, W, C):
    M = imgs * H * W
    bf16 = jnp.bfloat16

    # ---- stage the bf16 input with a zero halo in VMEM ----------------------
    # Zero only the 1-wide border (interior is fully overwritten below, and
    # again with the intermediate y, so no stale data can leak between steps).
    padbuf[:, 0:1, :, :] = jnp.zeros((imgs, 1, W + 2, C), bf16)
    padbuf[:, H + 1:H + 2, :, :] = jnp.zeros((imgs, 1, W + 2, C), bf16)
    padbuf[:, :, 0:1, :] = jnp.zeros((imgs, H + 2, 1, C), bf16)
    padbuf[:, :, W + 1:W + 2, :] = jnp.zeros((imgs, H + 2, 1, C), bf16)
    padbuf[:, 1:H + 1, 1:W + 1, :] = x_ref[...].astype(bf16)

    def build_im2col_slab():
        # slab[:, g*C:(g+1)*C] = shifted tap g=(ki,kj) of the padded image,
        # flattened to (M, C).  One wide K=9*C dot then replaces nine K=C dots.
        for ki in range(3):
            rows = padbuf[:, ki:ki + H, :, :]              # (imgs, H, W+2, C)
            for kj in range(3):
                g = ki * 3 + kj
                tap = rows[:, :, kj:kj + W, :]             # (imgs, H, W, C)
                slab[:, g * C:(g + 1) * C] = tap.reshape(M, C)

    # ---- conv1: single (M, 9C) x (9C, C) MXU dot + bias + ReLU --------------
    build_im2col_slab()
    y = jnp.dot(slab[...], w1_ref[...], preferred_element_type=jnp.float32)
    y = jnp.maximum(y + b1_ref[...], 0.0)                  # (M, C) f32 epilogue

    # ---- stage the padded intermediate (reuse padbuf; border still zero) ----
    padbuf[:, 1:H + 1, 1:W + 1, :] = y.reshape(imgs, H, W, C).astype(bf16)

    # ---- conv2: single dot + bias, fused residual add (f32) ------------------
    build_im2col_slab()
    z = jnp.dot(slab[...], w2_ref[...], preferred_element_type=jnp.float32)
    z = z + b2_ref[...] + x_ref[...].reshape(M, C)

    # ---- lane-dense store: (imgs, H, W*C) with W*C a multiple of 128 ---------
    # Explicit slice+concat relayout (instead of a minor-dim-changing reshape)
    # so the final stores are full-lane vst rather than 32-lane masked stores.
    z4 = z.reshape(imgs, H, W, C)
    out_ref[...] = jnp.concatenate([z4[:, :, w, :] for w in range(W)], axis=-1)


# ----------------------------------------------------------------------------
# Parameter prep (done ONCE): PyTorch layout -> kernel layout, bf16 weights
# ----------------------------------------------------------------------------
def prepare_resblock_params(w1, b1, w2, b2):
    """w*: (Cout, Cin, 3, 3) f32, b*: (Cout,) f32  (PyTorch Conv2d layout)."""
    def prep_w(w):
        cout, cin, kh, kw = w.shape
        assert kh == 3 and kw == 3
        # (Cout, Cin, ki, kj) -> (ki, kj, Cin, Cout) -> (9*Cin, Cout), bf16.
        # Row order (ki*3+kj)*Cin + cin matches the im2col slab column order.
        return jnp.transpose(w, (2, 3, 1, 0)).reshape(9 * cin, cout).astype(
            jnp.bfloat16)

    return dict(
        w1=prep_w(w1), b1=b1.reshape(1, -1).astype(jnp.float32),
        w2=prep_w(w2), b2=b2.reshape(1, -1).astype(jnp.float32),
    )


# ----------------------------------------------------------------------------
# Forward wrapper (NCHW external interface, NHWC inside the kernel)
# ----------------------------------------------------------------------------
@jax.jit
def resblock_forward(x_nchw, params):
    N, C, H, W = x_nchw.shape

    # Batch folding: fold images into the matmul M dimension, but keep >=2
    # grid steps when possible so both v7x TensorCores get work; on single-TC
    # v5e/v6e the fold amortizes the ~0.35us per-step overhead.
    if N % 2 == 0:
        steps, imgs = 2, N // 2
    else:
        steps, imgs = N, 1

    x_nhwc = jnp.transpose(x_nchw, (0, 2, 3, 1))   # one transpose at boundary

    out_flat = pl.pallas_call(
        functools.partial(_resblock_kernel, imgs=imgs, H=H, W=W, C=C),
        out_shape=jax.ShapeDtypeStruct((N, H, W * C), jnp.float32),
        grid=(steps,),
        in_specs=[
            pl.BlockSpec((imgs, H, W, C), lambda n: (n, 0, 0, 0)),
            pl.BlockSpec((9 * C, C), lambda n: (0, 0)),
            pl.BlockSpec((1, C), lambda n: (0, 0)),
            pl.BlockSpec((9 * C, C), lambda n: (0, 0)),
            pl.BlockSpec((1, C), lambda n: (0, 0)),
        ],
        out_specs=pl.BlockSpec((imgs, H, W * C), lambda n: (n, 0, 0)),
        scratch_shapes=[
            pltpu.VMEM((imgs, H + 2, W + 2, C), jnp.bfloat16),  # padded x / y
            pltpu.VMEM((imgs * H * W, 9 * C), jnp.bfloat16),    # im2col slab
        ],
        compiler_params=pltpu.CompilerParams(
            dimension_semantics=("parallel",)),
    )(x_nhwc, params["w1"], params["b1"], params["w2"], params["b2"])

    out = out_flat.reshape(N, H, W, C)              # free reinterpretation
    return jnp.transpose(out, (0, 3, 1, 2))         # back to NCHW


# ----------------------------------------------------------------------------
# Pure-JAX f32 reference (for correctness check)
# ----------------------------------------------------------------------------
def _conv3x3_ref(x, w, b):
    y = jax.lax.conv_general_dilated(
        x, w, window_strides=(1, 1), padding=((1, 1), (1, 1)),
        dimension_numbers=("NCHW", "OIHW", "NCHW"),
        precision=jax.lax.Precision.HIGHEST)
    return y + b[None, :, None, None]


def resblock_reference(x, w1, b1, w2, b2):
    y = jnp.maximum(_conv3x3_ref(x, w1, b1), 0.0)
    y = _conv3x3_ref(y, w2, b2)
    return y + x


# ----------------------------------------------------------------------------
if __name__ == "__main__":
    N, C, H, W = 2, 32, 16, 16    # small shapes consistent with ResBlock(C, C)

    key = jax.random.PRNGKey(0)
    kx, k1, k2, k3, k4 = jax.random.split(key, 5)
    wstd = 1.0 / math.sqrt(9 * C)
    x = jax.random.normal(kx, (N, C, H, W), jnp.float32)
    w1 = jax.random.normal(k1, (C, C, 3, 3), jnp.float32) * wstd
    b1 = jax.random.normal(k2, (C,), jnp.float32) * 0.1
    w2 = jax.random.normal(k3, (C, C, 3, 3), jnp.float32) * wstd
    b2 = jax.random.normal(k4, (C,), jnp.float32) * 0.1

    params = prepare_resblock_params(w1, b1, w2, b2)

    out = resblock_forward(x, params)
    out = jax.block_until_ready(out)

    ref = resblock_reference(x, w1, b1, w2, b2)
    ref = jax.block_until_ready(ref)

    assert out.shape == (N, C, H, W)
    assert bool(jnp.isfinite(out).all())
    # bf16 MXU operands (f32 accumulation/epilogue) => small deviation vs the
    # f32 PyTorch reference is expected and bounded.
    max_err = float(jnp.max(jnp.abs(out - ref)))
    assert max_err < 1e-1, f"max abs error vs f32 reference: {max_err}"

    print("KERNEL_OK")
</pallas_src>

<mosaic_0001>
module attributes {stable_mosaic.version = 11 : i64} {
  func.func @_resblock_kernel(%arg0: i32, %arg1: memref<1x16x16x32xf32, #tpu.memory_space<vmem>>, %arg2: memref<288x32xbf16, #tpu.memory_space<vmem>>, %arg3: memref<1x32xf32, #tpu.memory_space<vmem>>, %arg4: memref<288x32xbf16, #tpu.memory_space<vmem>>, %arg5: memref<1x32xf32, #tpu.memory_space<vmem>>, %arg6: memref<1x16x512xf32, #tpu.memory_space<vmem>>, %arg7: memref<1x18x18x32xbf16, #tpu.memory_space<vmem>>, %arg8: memref<256x288xbf16, #tpu.memory_space<vmem>>) attributes {dimension_semantics = [#tpu.dimension_semantics<parallel>], iteration_bounds = array<i64: 2>, scalar_prefetch = 0 : i64, scratch_operands = 2 : i64, tpu.core_type = #tpu.core_type<tc>, window_params = [{transform_indices = @transform_0, window_bounds = array<i64: 1, 16, 16, 32>}, {pipeline_mode = #tpu.pipeline_mode<synchronous>, transform_indices = @transform_1, window_bounds = array<i64: 288, 32>}, {pipeline_mode = #tpu.pipeline_mode<synchronous>, transform_indices = @transform_2, window_bounds = array<i64: 1, 32>}, {pipeline_mode = #tpu.pipeline_mode<synchronous>, transform_indices = @transform_3, window_bounds = array<i64: 288, 32>}, {pipeline_mode = #tpu.pipeline_mode<synchronous>, transform_indices = @transform_4, window_bounds = array<i64: 1, 32>}, {transform_indices = @transform_5, window_bounds = array<i64: 1, 16, 512>}]} {
    %cst = arith.constant 0.000000e+00 : bf16
    %0 = vector.broadcast %cst : bf16 to vector<1x1x18x32xbf16>
    %c0 = arith.constant 0 : index
    %c0_0 = arith.constant 0 : index
    %c0_1 = arith.constant 0 : index
    %c0_2 = arith.constant 0 : index
    %1 = vector.load %arg7[%c0, %c0_0, %c0_1, %c0_2] : memref<1x18x18x32xbf16, #tpu.memory_space<vmem>>, vector<1x1x18x32xbf16>
    tpu.vector_store %arg7[%c0, %c0_0, %c0_1, %c0_2], %0 {strides = array<i32>} : memref<1x18x18x32xbf16, #tpu.memory_space<vmem>>, vector<1x1x18x32xbf16>,
    %cst_3 = arith.constant 0.000000e+00 : bf16
    %2 = vector.broadcast %cst_3 : bf16 to vector<1x1x18x32xbf16>
    %c0_4 = arith.constant 0 : index
    %c17 = arith.constant 17 : index
    %c0_5 = arith.constant 0 : index
    %c0_6 = arith.constant 0 : index
    %3 = vector.load %arg7[%c0_4, %c17, %c0_5, %c0_6] : memref<1x18x18x32xbf16, #tpu.memory_space<vmem>>, vector<1x1x18x32xbf16>
    tpu.vector_store %arg7[%c0_4, %c17, %c0_5, %c0_6], %2 {strides = array<i32>} : memref<1x18x18x32xbf16, #tpu.memory_space<vmem>>, vector<1x1x18x32xbf16>,
    %cst_7 = arith.constant 0.000000e+00 : bf16
    %4 = vector.broadcast %cst_7 : bf16 to vector<1x18x1x32xbf16>
    %c0_8 = arith.constant 0 : index
    %c0_9 = arith.constant 0 : index
    %c0_10 = arith.constant 0 : index
    %c0_11 = arith.constant 0 : index
    %5 = vector.load %arg7[%c0_8, %c0_9, %c0_10, %c0_11] : memref<1x18x18x32xbf16, #tpu.memory_space<vmem>>, vector<1x18x1x32xbf16>
    tpu.vector_store %arg7[%c0_8, %c0_9, %c0_10, %c0_11], %4 {strides = array<i32>} : memref<1x18x18x32xbf16, #tpu.memory_space<vmem>>, vector<1x18x1x32xbf16>,
    %cst_12 = arith.constant 0.000000e+00 : bf16
    %6 = vector.broadcast %cst_12 : bf16 to vector<1x18x1x32xbf16>
    %c0_13 = arith.constant 0 : index
    %c0_14 = arith.constant 0 : index
    %c17_15 = arith.constant 17 : index
    %c0_16 = arith.constant 0 : index
    %7 = vector.load %arg7[%c0_13, %c0_14, %c17_15, %c0_16] : memref<1x18x18x32xbf16, #tpu.memory_space<vmem>>, vector<1x18x1x32xbf16>
    tpu.vector_store %arg7[%c0_13, %c0_14, %c17_15, %c0_16], %6 {strides = array<i32>} : memref<1x18x18x32xbf16, #tpu.memory_space<vmem>>, vector<1x18x1x32xbf16>,
    %c0_17 = arith.constant 0 : index
    %c0_18 = arith.constant 0 : index
    %c0_19 = arith.constant 0 : index
    %c0_20 = arith.constant 0 : index
    %8 = vector.load %arg1[%c0_17, %c0_18, %c0_19, %c0_20] : memref<1x16x16x32xf32, #tpu.memory_space<vmem>>, vector<1x16x16x32xf32>
    %9 = arith.truncf %8 : vector<1x16x16x32xf32> to vector<1x16x16x32xbf16>
    %c0_21 = arith.constant 0 : index
    %c1 = arith.constant 1 : index
    %c1_22 = arith.constant 1 : index
    %c0_23 = arith.constant 0 : index
    %10 = vector.load %arg7[%c0_21, %c1, %c1_22, %c0_23] : memref<1x18x18x32xbf16, #tpu.memory_space<vmem>>, vector<1x16x16x32xbf16>
    tpu.vector_store %arg7[%c0_21, %c1, %c1_22, %c0_23], %9 {strides = array<i32>} : memref<1x18x18x32xbf16, #tpu.memory_space<vmem>>, vector<1x16x16x32xbf16>,
    %c0_24 = arith.constant 0 : index
    %c0_25 = arith.constant 0 : index
    %c0_26 = arith.constant 0 : index
    %c0_27 = arith.constant 0 : index
    %11 = vector.load %arg7[%c0_24, %c0_25, %c0_26, %c0_27] : memref<1x18x18x32xbf16, #tpu.memory_space<vmem>>, vector<1x16x18x32xbf16>
    %12 = vector.extract_strided_slice %11 {offsets = [0, 0, 0, 0], sizes = [1, 16, 16, 32], strides = [1, 1, 1, 1]} : vector<1x16x18x32xbf16> to vector<1x16x16x32xbf16>
    %13 = vector.shape_cast %12 : vector<1x16x16x32xbf16> to vector<256x32xbf16>
    %c0_28 = arith.constant 0 : index
    %c0_29 = arith.constant 0 : index
    %14 = vector.load %arg8[%c0_28, %c0_29] : memref<256x288xbf16, #tpu.memory_space<vmem>>, vector<256x32xbf16>
    tpu.vector_store %arg8[%c0_28, %c0_29], %13 {strides = array<i32>} : memref<256x288xbf16, #tpu.memory_space<vmem>>, vector<256x32xbf16>,
    %15 = vector.extract_strided_slice %11 {offsets = [0, 0, 1, 0], sizes = [1, 16, 16, 32], strides = [1, 1, 1, 1]} : vector<1x16x18x32xbf16> to vector<1x16x16x32xbf16>
    %16 = vector.shape_cast %15 : vector<1x16x16x32xbf16> to vector<256x32xbf16>
    %c0_30 = arith.constant 0 : index
    %c32 = arith.constant 32 : index
    %17 = vector.load %arg8[%c0_30, %c32] : memref<256x288xbf16, #tpu.memory_space<vmem>>, vector<256x32xbf16>
    tpu.vector_store %arg8[%c0_30, %c32], %16 {strides = array<i32>} : memref<256x288xbf16, #tpu.memory_space<vmem>>, vector<256x32xbf16>,
    %18 = vector.extract_strided_slice %11 {offsets = [0, 0, 2, 0], sizes = [1, 16, 16, 32], strides = [1, 1, 1, 1]} : vector<1x16x18x32xbf16> to vector<1x16x16x32xbf16>
    %19 = vector.shape_cast %18 : vector<1x16x16x32xbf16> to vector<256x32xbf16>
    %c0_31 = arith.constant 0 : index
    %c64 = arith.constant 64 : index
    %20 = vector.load %arg8[%c0_31, %c64] : memref<256x288xbf16, #tpu.memory_space<vmem>>, vector<256x32xbf16>
    tpu.vector_store %arg8[%c0_31, %c64], %19 {strides = array<i32>} : memref<256x288xbf16, #tpu.memory_space<vmem>>, vector<256x32xbf16>,
    %c0_32 = arith.constant 0 : index
    %c1_33 = arith.constant 1 : index
    %c0_34 = arith.constant 0 : index
    %c0_35 = arith.constant 0 : index
    %21 = vector.load %arg7[%c0_32, %c1_33, %c0_34, %c0_35] : memref<1x18x18x32xbf16, #tpu.memory_space<vmem>>, vector<1x16x18x32xbf16>
    %22 = vector.extract_strided_slice %21 {offsets = [0, 0, 0, 0], sizes = [1, 16, 16, 32], strides = [1, 1, 1, 1]} : vector<1x16x18x32xbf16> to vector<1x16x16x32xbf16>
    %23 = vector.shape_cast %22 : vector<1x16x16x32xbf16> to vector<256x32xbf16>
    %c0_36 = arith.constant 0 : index
    %c96 = arith.constant 96 : index
    %24 = vector.load %arg8[%c0_36, %c96] : memref<256x288xbf16, #tpu.memory_space<vmem>>, vector<256x32xbf16>
    tpu.vector_store %arg8[%c0_36, %c96], %23 {strides = array<i32>} : memref<256x288xbf16, #tpu.memory_space<vmem>>, vector<256x32xbf16>,
    %25 = vector.extract_strided_slice %21 {offsets = [0, 0, 1, 0], sizes = [1, 16, 16, 32], strides = [1, 1, 1, 1]} : vector<1x16x18x32xbf16> to vector<1x16x16x32xbf16>
    %26 = vector.shape_cast %25 : vector<1x16x16x32xbf16> to vector<256x32xbf16>
    %c0_37 = arith.constant 0 : index
    %c128 = arith.constant 128 : index
    %27 = vector.load %arg8[%c0_37, %c128] : memref<256x288xbf16, #tpu.memory_space<vmem>>, vector<256x32xbf16>
    tpu.vector_store %arg8[%c0_37, %c128], %26 {strides = array<i32>} : memref<256x288xbf16, #tpu.memory_space<vmem>>, vector<256x32xbf16>,
    %28 = vector.extract_strided_slice %21 {offsets = [0, 0, 2, 0], sizes = [1, 16, 16, 32], strides = [1, 1, 1, 1]} : vector<1x16x18x32xbf16> to vector<1x16x16x32xbf16>
    %29 = vector.shape_cast %28 : vector<1x16x16x32xbf16> to vector<256x32xbf16>
    %c0_38 = arith.constant 0 : index
    %c160 = arith.constant 160 : index
    %30 = vector.load %arg8[%c0_38, %c160] : memref<256x288xbf16, #tpu.memory_space<vmem>>, vector<256x32xbf16>
    tpu.vector_store %arg8[%c0_38, %c160], %29 {strides = array<i32>} : memref<256x288xbf16, #tpu.memory_space<vmem>>, vector<256x32xbf16>,
    %c0_39 = arith.constant 0 : index
    %c2 = arith.constant 2 : index
    %c0_40 = arith.constant 0 : index
    %c0_41 = arith.constant 0 : index
    %31 = vector.load %arg7[%c0_39, %c2, %c0_40, %c0_41] : memref<1x18x18x32xbf16, #tpu.memory_space<vmem>>, vector<1x16x18x32xbf16>
    %32 = vector.extract_strided_slice %31 {offsets = [0, 0, 0, 0], sizes = [1, 16, 16, 32], strides = [1, 1, 1, 1]} : vector<1x16x18x32xbf16> to vector<1x16x16x32xbf16>
    %33 = vector.shape_cast %32 : vector<1x16x16x32xbf16> to vector<256x32xbf16>
    %c0_42 = arith.constant 0 : index
    %c192 = arith.constant 192 : index
    %34 = vector.load %arg8[%c0_42, %c192] : memref<256x288xbf16, #tpu.memory_space<vmem>>, vector<256x32xbf16>
    tpu.vector_store %arg8[%c0_42, %c192], %33 {strides = array<i32>} : memref<256x288xbf16, #tpu.memory_space<vmem>>, vector<256x32xbf16>,
    %35 = vector.extract_strided_slice %31 {offsets = [0, 0, 1, 0], sizes = [1, 16, 16, 32], strides = [1, 1, 1, 1]} : vector<1x16x18x32xbf16> to vector<1x16x16x32xbf16>
    %36 = vector.shape_cast %35 : vector<1x16x16x32xbf16> to vector<256x32xbf16>
    %c0_43 = arith.constant 0 : index
    %c224 = arith.constant 224 : index
    %37 = vector.load %arg8[%c0_43, %c224] : memref<256x288xbf16, #tpu.memory_space<vmem>>, vector<256x32xbf16>
    tpu.vector_store %arg8[%c0_43, %c224], %36 {strides = array<i32>} : memref<256x288xbf16, #tpu.memory_space<vmem>>, vector<256x32xbf16>,
    %38 = vector.extract_strided_slice %31 {offsets = [0, 0, 2, 0], sizes = [1, 16, 16, 32], strides = [1, 1, 1, 1]} : vector<1x16x18x32xbf16> to vector<1x16x16x32xbf16>
    %39 = vector.shape_cast %38 : vector<1x16x16x32xbf16> to vector<256x32xbf16>
    %c0_44 = arith.constant 0 : index
    %c256 = arith.constant 256 : index
    %40 = vector.load %arg8[%c0_44, %c256] : memref<256x288xbf16, #tpu.memory_space<vmem>>, vector<256x32xbf16>
    tpu.vector_store %arg8[%c0_44, %c256], %39 {strides = array<i32>} : memref<256x288xbf16, #tpu.memory_space<vmem>>, vector<256x32xbf16>,
    %c0_45 = arith.constant 0 : index
    %c0_46 = arith.constant 0 : index
    %41 = vector.load %arg8[%c0_45, %c0_46] : memref<256x288xbf16, #tpu.memory_space<vmem>>, vector<256x288xbf16>
    %c0_47 = arith.constant 0 : index
    %c0_48 = arith.constant 0 : index
    %42 = vector.load %arg2[%c0_47, %c0_48] : memref<288x32xbf16, #tpu.memory_space<vmem>>, vector<288x32xbf16>
    %cst_49 = arith.constant dense<0.000000e+00> : vector<256x32xf32>
    %43 = tpu.matmul %41, %42, %cst_49 {dimension_numbers = #tpu.dot_dimension_numbers<[1], [0], [0], [1], [0, 0, 1, 1], [], []>} : vector<256x288xbf16>, vector<288x32xbf16>, vector<256x32xf32> -> vector<256x32xf32>
    %c0_50 = arith.constant 0 : index
    %c0_51 = arith.constant 0 : index
    %44 = vector.load %arg3[%c0_50, %c0_51] : memref<1x32xf32, #tpu.memory_space<vmem>>, vector<1x32xf32>
    %45 = vector.broadcast %44 : vector<1x32xf32> to vector<256x32xf32>
    %46 = arith.addf %43, %45 : vector<256x32xf32>
    %cst_52 = arith.constant 0.000000e+00 : f32
    %47 = vector.broadcast %cst_52 : f32 to vector<256x32xf32>
    %48 = arith.maximumf %46, %47 : vector<256x32xf32>
    %49 = vector.shape_cast %48 : vector<256x32xf32> to vector<1x16x16x32xf32>
    %50 = arith.truncf %49 : vector<1x16x16x32xf32> to vector<1x16x16x32xbf16>
    %c0_53 = arith.constant 0 : index
    %c1_54 = arith.constant 1 : index
    %c1_55 = arith.constant 1 : index
    %c0_56 = arith.constant 0 : index
    %51 = vector.load %arg7[%c0_53, %c1_54, %c1_55, %c0_56] : memref<1x18x18x32xbf16, #tpu.memory_space<vmem>>, vector<1x16x16x32xbf16>
    tpu.vector_store %arg7[%c0_53, %c1_54, %c1_55, %c0_56], %50 {strides = array<i32>} : memref<1x18x18x32xbf16, #tpu.memory_space<vmem>>, vector<1x16x16x32xbf16>,
    %c0_57 = arith.constant 0 : index
    %c0_58 = arith.constant 0 : index
    %c0_59 = arith.constant 0 : index
    %c0_60 = arith.constant 0 : index
    %52 = vector.load %arg7[%c0_57, %c0_58, %c0_59, %c0_60] : memref<1x18x18x32xbf16, #tpu.memory_space<vmem>>, vector<1x16x18x32xbf16>
    %53 = vector.extract_strided_slice %52 {offsets = [0, 0, 0, 0], sizes = [1, 16, 16, 32], strides = [1, 1, 1, 1]} : vector<1x16x18x32xbf16> to vector<1x16x16x32xbf16>
    %54 = vector.shape_cast %53 : vector<1x16x16x32xbf16> to vector<256x32xbf16>
    %c0_61 = arith.constant 0 : index
    %c0_62 = arith.constant 0 : index
    %55 = vector.load %arg8[%c0_61, %c0_62] : memref<256x288xbf16, #tpu.memory_space<vmem>>, vector<256x32xbf16>
    tpu.vector_store %arg8[%c0_61, %c0_62], %54 {strides = array<i32>} : memref<256x288xbf16, #tpu.memory_space<vmem>>, vector<256x32xbf16>,
    %56 = vector.extract_strided_slice %52 {offsets = [0, 0, 1, 0], sizes = [1, 16, 16, 32], strides = [1, 1, 1, 1]} : vector<1x16x18x32xbf16> to vector<1x16x16x32xbf16>
    %57 = vector.shape_cast %56 : vector<1x16x16x32xbf16> to vector<256x32xbf16>
    %c0_63 = arith.constant 0 : index
    %c32_64 = arith.constant 32 : index
    %58 = vector.load %arg8[%c0_63, %c32_64] : memref<256x288xbf16, #tpu.memory_space<vmem>>, vector<256x32xbf16>
    tpu.vector_store %arg8[%c0_63, %c32_64], %57 {strides = array<i32>} : memref<256x288xbf16, #tpu.memory_space<vmem>>, vector<256x32xbf16>,
    %59 = vector.extract_strided_slice %52 {offsets = [0, 0, 2, 0], sizes = [1, 16, 16, 32], strides = [1, 1, 1, 1]} : vector<1x16x18x32xbf16> to vector<1x16x16x32xbf16>
    %60 = vector.shape_cast %59 : vector<1x16x16x32xbf16> to vector<256x32xbf16>
    %c0_65 = arith.constant 0 : index
    %c64_66 = arith.constant 64 : index
    %61 = vector.load %arg8[%c0_65, %c64_66] : memref<256x288xbf16, #tpu.memory_space<vmem>>, vector<256x32xbf16>
    tpu.vector_store %arg8[%c0_65, %c64_66], %60 {strides = array<i32>} : memref<256x288xbf16, #tpu.memory_space<vmem>>, vector<256x32xbf16>,
    %c0_67 = arith.constant 0 : index
    %c1_68 = arith.constant 1 : index
    %c0_69 = arith.constant 0 : index
    %c0_70 = arith.constant 0 : index
    %62 = vector.load %arg7[%c0_67, %c1_68, %c0_69, %c0_70] : memref<1x18x18x32xbf16, #tpu.memory_space<vmem>>, vector<1x16x18x32xbf16>
    %63 = vector.extract_strided_slice %62 {offsets = [0, 0, 0, 0], sizes = [1, 16, 16, 32], strides = [1, 1, 1, 1]} : vector<1x16x18x32xbf16> to vector<1x16x16x32xbf16>
    %64 = vector.shape_cast %63 : vector<1x16x16x32xbf16> to vector<256x32xbf16>
    %c0_71 = arith.constant 0 : index
    %c96_72 = arith.constant 96 : index
    %65 = vector.load %arg8[%c0_71, %c96_72] : memref<256x288xbf16, #tpu.memory_space<vmem>>, vector<256x32xbf16>
    tpu.vector_store %arg8[%c0_71, %c96_72], %64 {strides = array<i32>} : memref<256x288xbf16, #tpu.memory_space<vmem>>, vector<256x32xbf16>,
    %66 = vector.extract_strided_slice %62 {offsets = [0, 0, 1, 0], sizes = [1, 16, 16, 32], strides = [1, 1, 1, 1]} : vector<1x16x18x32xbf16> to vector<1x16x16x32xbf16>
    %67 = vector.shape_cast %66 : vector<1x16x16x32xbf16> to vector<256x32xbf16>
    %c0_73 = arith.constant 0 : index
    %c128_74 = arith.constant 128 : index
    %68 = vector.load %arg8[%c0_73, %c128_74] : memref<256x288xbf16, #tpu.memory_space<vmem>>, vector<256x32xbf16>
    tpu.vector_store %arg8[%c0_73, %c128_74], %67 {strides = array<i32>} : memref<256x288xbf16, #tpu.memory_space<vmem>>, vector<256x32xbf16>,
    %69 = vector.extract_strided_slice %62 {offsets = [0, 0, 2, 0], sizes = [1, 16, 16, 32], strides = [1, 1, 1, 1]} : vector<1x16x18x32xbf16> to vector<1x16x16x32xbf16>
    %70 = vector.shape_cast %69 : vector<1x16x16x32xbf16> to vector<256x32xbf16>
    %c0_75 = arith.constant 0 : index
    %c160_76 = arith.constant 160 : index
    %71 = vector.load %arg8[%c0_75, %c160_76] : memref<256x288xbf16, #tpu.memory_space<vmem>>, vector<256x32xbf16>
    tpu.vector_store %arg8[%c0_75, %c160_76], %70 {strides = array<i32>} : memref<256x288xbf16, #tpu.memory_space<vmem>>, vector<256x32xbf16>,
    %c0_77 = arith.constant 0 : index
    %c2_78 = arith.constant 2 : index
    %c0_79 = arith.constant 0 : index
    %c0_80 = arith.constant 0 : index
    %72 = vector.load %arg7[%c0_77, %c2_78, %c0_79, %c0_80] : memref<1x18x18x32xbf16, #tpu.memory_space<vmem>>, vector<1x16x18x32xbf16>
    %73 = vector.extract_strided_slice %72 {offsets = [0, 0, 0, 0], sizes = [1, 16, 16, 32], strides = [1, 1, 1, 1]} : vector<1x16x18x32xbf16> to vector<1x16x16x32xbf16>
    %74 = vector.shape_cast %73 : vector<1x16x16x32xbf16> to vector<256x32xbf16>
    %c0_81 = arith.constant 0 : index
    %c192_82 = arith.constant 192 : index
    %75 = vector.load %arg8[%c0_81, %c192_82] : memref<256x288xbf16, #tpu.memory_space<vmem>>, vector<256x32xbf16>
    tpu.vector_store %arg8[%c0_81, %c192_82], %74 {strides = array<i32>} : memref<256x288xbf16, #tpu.memory_space<vmem>>, vector<256x32xbf16>,
    %76 = vector.extract_strided_slice %72 {offsets = [0, 0, 1, 0], sizes = [1, 16, 16, 32], strides = [1, 1, 1, 1]} : vector<1x16x18x32xbf16> to vector<1x16x16x32xbf16>
    %77 = vector.shape_cast %76 : vector<1x16x16x32xbf16> to vector<256x32xbf16>
    %c0_83 = arith.constant 0 : index
    %c224_84 = arith.constant 224 : index
    %78 = vector.load %arg8[%c0_83, %c224_84] : memref<256x288xbf16, #tpu.memory_space<vmem>>, vector<256x32xbf16>
    tpu.vector_store %arg8[%c0_83, %c224_84], %77 {strides = array<i32>} : memref<256x288xbf16, #tpu.memory_space<vmem>>, vector<256x32xbf16>,
    %79 = vector.extract_strided_slice %72 {offsets = [0, 0, 2, 0], sizes = [1, 16, 16, 32], strides = [1, 1, 1, 1]} : vector<1x16x18x32xbf16> to vector<1x16x16x32xbf16>
    %80 = vector.shape_cast %79 : vector<1x16x16x32xbf16> to vector<256x32xbf16>
    %c0_85 = arith.constant 0 : index
    %c256_86 = arith.constant 256 : index
    %81 = vector.load %arg8[%c0_85, %c256_86] : memref<256x288xbf16, #tpu.memory_space<vmem>>, vector<256x32xbf16>
    tpu.vector_store %arg8[%c0_85, %c256_86], %80 {strides = array<i32>} : memref<256x288xbf16, #tpu.memory_space<vmem>>, vector<256x32xbf16>,
    %c0_87 = arith.constant 0 : index
    %c0_88 = arith.constant 0 : index
    %82 = vector.load %arg8[%c0_87, %c0_88] : memref<256x288xbf16, #tpu.memory_space<vmem>>, vector<256x288xbf16>
    %c0_89 = arith.constant 0 : index
    %c0_90 = arith.constant 0 : index
    %83 = vector.load %arg4[%c0_89, %c0_90] : memref<288x32xbf16, #tpu.memory_space<vmem>>, vector<288x32xbf16>
    %cst_91 = arith.constant dense<0.000000e+00> : vector<256x32xf32>
    %84 = tpu.matmul %82, %83, %cst_91 {dimension_numbers = #tpu.dot_dimension_numbers<[1], [0], [0], [1], [0, 0, 1, 1], [], []>} : vector<256x288xbf16>, vector<288x32xbf16>, vector<256x32xf32> -> vector<256x32xf32>
    %c0_92 = arith.constant 0 : index
    %c0_93 = arith.constant 0 : index
    %85 = vector.load %arg5[%c0_92, %c0_93] : memref<1x32xf32, #tpu.memory_space<vmem>>, vector<1x32xf32>
    %86 = vector.broadcast %85 : vector<1x32xf32> to vector<256x32xf32>
    %87 = arith.addf %84, %86 : vector<256x32xf32>
    %c0_94 = arith.constant 0 : index
    %c0_95 = arith.constant 0 : index
    %c0_96 = arith.constant 0 : index
    %c0_97 = arith.constant 0 : index
    %88 = vector.load %arg1[%c0_94, %c0_95, %c0_96, %c0_97] : memref<1x16x16x32xf32, #tpu.memory_space<vmem>>, vector<1x16x16x32xf32>
    %89 = vector.shape_cast %88 : vector<1x16x16x32xf32> to vector<256x32xf32>
    %90 = arith.addf %87, %89 : vector<256x32xf32>
    %91 = vector.shape_cast %90 : vector<256x32xf32> to vector<1x16x16x32xf32>
    %92 = vector.extract_strided_slice %91 {offsets = [0, 0, 0, 0], sizes = [1, 16, 1, 32], strides = [1, 1, 1, 1]} : vector<1x16x16x32xf32> to vector<1x16x1x32xf32>
    %93 = vector.shape_cast %92 : vector<1x16x1x32xf32> to vector<1x16x32xf32>
    %94 = vector.extract_strided_slice %91 {offsets = [0, 0, 1, 0], sizes = [1, 16, 1, 32], strides = [1, 1, 1, 1]} : vector<1x16x16x32xf32> to vector<1x16x1x32xf32>
    %95 = vector.shape_cast %94 : vector<1x16x1x32xf32> to vector<1x16x32xf32>
    %96 = vector.extract_strided_slice %91 {offsets = [0, 0, 2, 0], sizes = [1, 16, 1, 32], strides = [1, 1, 1, 1]} : vector<1x16x16x32xf32> to vector<1x16x1x32xf32>
    %97 = vector.shape_cast %96 : vector<1x16x1x32xf32> to vector<1x16x32xf32>
    %98 = vector.extract_strided_slice %91 {offsets = [0, 0, 3, 0], sizes = [1, 16, 1, 32], strides = [1, 1, 1, 1]} : vector<1x16x16x32xf32> to vector<1x16x1x32xf32>
    %99 = vector.shape_cast %98 : vector<1x16x1x32xf32> to vector<1x16x32xf32>
    %100 = vector.extract_strided_slice %91 {offsets = [0, 0, 4, 0], sizes = [1, 16, 1, 32], strides = [1, 1, 1, 1]} : vector<1x16x16x32xf32> to vector<1x16x1x32xf32>
    %101 = vector.shape_cast %100 : vector<1x16x1x32xf32> to vector<1x16x32xf32>
    %102 = vector.extract_strided_slice %91 {offsets = [0, 0, 5, 0], sizes = [1, 16, 1, 32], strides = [1, 1, 1, 1]} : vector<1x16x16x32xf32> to vector<1x16x1x32xf32>
    %103 = vector.shape_cast %102 : vector<1x16x1x32xf32> to vector<1x16x32xf32>
    %104 = vector.extract_strided_slice %91 {offsets = [0, 0, 6, 0], sizes = [1, 16, 1, 32], strides = [1, 1, 1, 1]} : vector<1x16x16x32xf32> to vector<1x16x1x32xf32>
    %105 = vector.shape_cast %104 : vector<1x16x1x32xf32> to vector<1x16x32xf32>
    %106 = vector.extract_strided_slice %91 {offsets = [0, 0, 7, 0], sizes = [1, 16, 1, 32], strides = [1, 1, 1, 1]} : vector<1x16x16x32xf32> to vector<1x16x1x32xf32>
    %107 = vector.shape_cast %106 : vector<1x16x1x32xf32> to vector<1x16x32xf32>
    %108 = vector.extract_strided_slice %91 {offsets = [0, 0, 8, 0], sizes = [1, 16, 1, 32], strides = [1, 1, 1, 1]} : vector<1x16x16x32xf32> to vector<1x16x1x32xf32>
    %109 = vector.shape_cast %108 : vector<1x16x1x32xf32> to vector<1x16x32xf32>
    %110 = vector.extract_strided_slice %91 {offsets = [0, 0, 9, 0], sizes = [1, 16, 1, 32], strides = [1, 1, 1, 1]} : vector<1x16x16x32xf32> to vector<1x16x1x32xf32>
    %111 = vector.shape_cast %110 : vector<1x16x1x32xf32> to vector<1x16x32xf32>
    %112 = vector.extract_strided_slice %91 {offsets = [0, 0, 10, 0], sizes = [1, 16, 1, 32], strides = [1, 1, 1, 1]} : vector<1x16x16x32xf32> to vector<1x16x1x32xf32>
    %113 = vector.shape_cast %112 : vector<1x16x1x32xf32> to vector<1x16x32xf32>
    %114 = vector.extract_strided_slice %91 {offsets = [0, 0, 11, 0], sizes = [1, 16, 1, 32], strides = [1, 1, 1, 1]} : vector<1x16x16x32xf32> to vector<1x16x1x32xf32>
    %115 = vector.shape_cast %114 : vector<1x16x1x32xf32> to vector<1x16x32xf32>
    %116 = vector.extract_strided_slice %91 {offsets = [0, 0, 12, 0], sizes = [1, 16, 1, 32], strides = [1, 1, 1, 1]} : vector<1x16x16x32xf32> to vector<1x16x1x32xf32>
    %117 = vector.shape_cast %116 : vector<1x16x1x32xf32> to vector<1x16x32xf32>
    %118 = vector.extract_strided_slice %91 {offsets = [0, 0, 13, 0], sizes = [1, 16, 1, 32], strides = [1, 1, 1, 1]} : vector<1x16x16x32xf32> to vector<1x16x1x32xf32>
    %119 = vector.shape_cast %118 : vector<1x16x1x32xf32> to vector<1x16x32xf32>
    %120 = vector.extract_strided_slice %91 {offsets = [0, 0, 14, 0], sizes = [1, 16, 1, 32], strides = [1, 1, 1, 1]} : vector<1x16x16x32xf32> to vector<1x16x1x32xf32>
    %121 = vector.shape_cast %120 : vector<1x16x1x32xf32> to vector<1x16x32xf32>
    %122 = vector.extract_strided_slice %91 {offsets = [0, 0, 15, 0], sizes = [1, 16, 1, 32], strides = [1, 1, 1, 1]} : vector<1x16x16x32xf32> to vector<1x16x1x32xf32>
    %123 = vector.shape_cast %122 : vector<1x16x1x32xf32> to vector<1x16x32xf32>
    %124 = tpu.concatenate %93, %95, %97, %99, %101, %103, %105, %107, %109, %111, %113, %115, %117, %119, %121, %123 in 2 : vector<1x16x32xf32>, vector<1x16x32xf32>, vector<1x16x32xf32>, vector<1x16x32xf32>, vector<1x16x32xf32>, vector<1x16x32xf32>, vector<1x16x32xf32>, vector<1x16x32xf32>, vector<1x16x32xf32>, vector<1x16x32xf32>, vector<1x16x32xf32>, vector<1x16x32xf32>, vector<1x16x32xf32>, vector<1x16x32xf32>, vector<1x16x32xf32>, vector<1x16x32xf32> -> vector<1x16x512xf32>
    %c0_98 = arith.constant 0 : index
    %c0_99 = arith.constant 0 : index
    %c0_100 = arith.constant 0 : index
    %125 = vector.load %arg6[%c0_98, %c0_99, %c0_100] : memref<1x16x512xf32, #tpu.memory_space<vmem>>, vector<1x16x512xf32>
    tpu.vector_store %arg6[%c0_98, %c0_99, %c0_100], %124 {strides = array<i32>} : memref<1x16x512xf32, #tpu.memory_space<vmem>>, vector<1x16x512xf32>,
    return
  }
  func.func @transform_0(%arg0: i32) -> (i32, i32, i32, i32) {
    %c0_i32 = arith.constant 0 : i32
    %c0_i32_0 = arith.constant 0 : i32
    %c0_i32_1 = arith.constant 0 : i32
    %c0_i32_2 = arith.constant 0 : i32
    return %arg0, %c0_i32, %c0_i32_0, %c0_i32_1 : i32, i32, i32, i32
  }
  func.func @transform_1(%arg0: i32) -> (i32, i32) {
    %c0_i32 = arith.constant 0 : i32
    %c0_i32_0 = arith.constant 0 : i32
    %c0_i32_1 = arith.constant 0 : i32
    return %c0_i32, %c0_i32_0 : i32, i32
  }
  func.func @transform_2(%arg0: i32) -> (i32, i32) {
    %c0_i32 = arith.constant 0 : i32
    %c0_i32_0 = arith.constant 0 : i32
    %c0_i32_1 = arith.constant 0 : i32
    return %c0_i32, %c0_i32_0 : i32, i32
  }
  func.func @transform_3(%arg0: i32) -> (i32, i32) {
    %c0_i32 = arith.constant 0 : i32
    %c0_i32_0 = arith.constant 0 : i32
    %c0_i32_1 = arith.constant 0 : i32
    return %c0_i32, %c0_i32_0 : i32, i32
  }
  func.func @transform_4(%arg0: i32) -> (i32, i32) {
    %c0_i32 = arith.constant 0 : i32
    %c0_i32_0 = arith.constant 0 : i32
    %c0_i32_1 = arith.constant 0 : i32
    return %c0_i32, %c0_i32_0 : i32, i32
  }
  func.func @transform_5(%arg0: i32) -> (i32, i32, i32) {
    %c0_i32 = arith.constant 0 : i32
    %c0_i32_0 = arith.constant 0 : i32
    %c0_i32_1 = arith.constant 0 : i32
    return %arg0, %c0_i32, %c0_i32_0 : i32, i32, i32
  }
}

</mosaic_0001>

<bundles_post_ra>
// kernel: resblock_forward.1
= control target key start
LH: loop header
LB: loop body
LE: loop exit
PB: predicated region body
PF: predicated region fallthrough
CT: control target
= control target key end

     0   :  { %10 = vsyncpa [#allocation5], 0  ;;  %s15288_s0 = inlined_call_operand.hbm [shape: f32[2,16,16,32], index: 0, kind: input, shape index: {}]   ;;  %s15289_s1 = inlined_call_operand.vmem [shape: bf16[288,32], index: 1, kind: input, shape index: {}]   ;;  %s15290_s2 = inlined_call_operand.vmem [shape: f32[1,32], index: 2, kind: input, shape index: {}]   ;;  %s15291_s3 = inlined_call_operand.vmem [shape: bf16[288,32], index: 3, kind: input, shape index: {}]   ;;  %s15292_s4 = inlined_call_operand.vmem [shape: f32[1,32], index: 4, kind: input, shape index: {}]   ;;  %s15293_s5 = inlined_call_operand.vmem [shape: f32[2,16,512], index: 5, kind: output, shape index: {}]  }
   0x1   :  { %12 = vsyncpa [#allocation5 + $0x1], 0  ;;  %s9994_s18 = smov 0   ;;  %s9996_s19 = smov 0  }
   0x2   :  { %s9998_s20 = smov 0   ;;  %s10000_s21 = smov 0  }
   0x3 LB: > { %s10013_s22 = sadd.s32 4294967295, %s9955_s21   ;;  %s10016_s23 = sadd.s32 1, %s9955_s21   ;;  %s9955_s21 = sphi %s10000_s21, %s15626_s21   ;;  %s9951_s20 = sphi %s9998_s20, %s15625_s20   ;;  %s9947_s19 = sphi %s9996_s19, %s15624_s19   ;;  %s9943_s18 = sphi %s9994_s18, %s15623_s18  }
   0x4   : > { %s22_s24 = ssub.s32 %s9955_s21, %s10016_s23  ;;  %s25_s25 = sadd.s32 1, %s9951_s20 }
   0x5   : > { %p23_p0 = scmp.eq.s32.totalorder %s22_s24, 0  ;;  %p32_p1 = scmp.ne.s32.totalorder %s9951_s20, %s9947_s19 }
   0x6   : > { %p33_p2 = scmp.eq.s32.totalorder %s9955_s21, 0  ;;  %p38_p3 = scmp.ne.s32.totalorder %s9947_s19, %s9943_s18 }
   0x7   : > { %s10026_s26 = scalar_select %p23_p0, %s9951_s20, %s25_s25  }
   0x8   : > { %p34_p4 = por %p33_p2, %p32_p1  ;;  %p39_p5 = scmp.eq.s32.totalorder %s10013_s22, 0 }
   0x9   : > { %p9688_p6 = scmp.lt.s32.totalorder %s9955_s21, 2  ;;  %s184_s28 = sand.u32 1, %s9951_s20  }
   0xa   : > { %p10030_p7 = por %p39_p5, %p38_p3  ;;  %s8753_s29 = sshll.u32 %s184_s28, 8 }
   0xb   : > { %s9280_s30 = sshll.u32 %s9955_s21, 12  ;;  %s188_s9 = scalar_lea.vmem [#allocation4], %s8753_s29 }
   0xc   : > { %s10039_s8 = scalar_lea.hbm %s15288_s0, %s9280_s30  ;;  %s195_s10 = sshll.u32 %s188_s9, 4  ;;  %s10041_s10 = int_to_ptr.vmem [resolvable:$true] %s195_s10 }
   0xd   : > { %p10043_p8 = pnand %p9688_p6, %p34_p4  ;;  %s10048_s12 = scalar_lea.sflag [#allocation5], %s184_s28 }
   0xe   : > { %s9891_s13 = scalar_lea.hbm %s10039_s8, 4096  ;;  %s9896_s16 = scalar_lea.hbm %s15288_s0, 8192 }
   0xf   : > { %p9892_p10 = scmp.ne.s32.totalorder %s10039_s8, %s9891_s13  ;;  %p9893_p11 = pneg %p10043_p8 }
  0x10   : > { %p9897_p0 = scmp.lt.u32.totalorder %s10039_s8, %s15288_s0  ;;  %p9898_p1 = scmp.lt.u32.totalorder %s9896_s16, %s9891_s13 }
  0x11   : > { %p9894_p12 = pnand %p9893_p11, %p9892_p10  ;;  %p9900_p3 = scmp.lt.u32.totalorder %s9891_s13, %s10039_s8 }
  0x12   : > { %p9899_p2 = por %p9898_p1, %p9897_p0 }
  0x13   : > { %p9895_p13 = pneg %p9894_p12 }
  0x14   : > { %p9901_p4 = por %p9900_p3, %p9899_p2 }
  0x16   : > { %p9902_p5 = pnand %p9901_p4, %p9895_p13 }
  0x18   : > { %9905 = shalt.err (!%p9902_p5)
}
  0x19   : > { %s9906_s24 = scalar_lea.vmem %s10041_s10, 4096  ;;  %s9957_s25 = smov [#allocation4]  }
  0x1a   : > { %p9907_p6 = scmp.ne.s32.totalorder %s10041_s10, %s9906_s24  ;;  %s9911_s28 = sshll.u32 %s9957_s25, 4  ;;  %s9912_s28 = int_to_ptr.vmem [resolvable:$false] %s9911_s28 }
  0x1b   : > { %s9913_s29 = scalar_lea.vmem %s9912_s28, 8192  ;;  %p9914_p9 = scmp.lt.s32.totalorder %s10041_s10, %s9912_s28 }
  0x1c   : > { %p9909_p10 = pnand %p9907_p6, %p9893_p11  ;;  %p9915_p0 = scmp.lt.s32.totalorder %s9913_s29, %s9906_s24 }
  0x1e   : > { %p9910_p12 = pneg %p9909_p10  ;;  %p9916_p1 = por %p9915_p0, %p9914_p9 }
  0x20   : > { %p9917_p2 = pnand %p9916_p1, %p9910_p12 }
  0x22   : > { %9920 = shalt.err (!%p9917_p2)
}
  0x23   : > { %s9958_s30 = smov 128   ;;  %s9959_s6 = smov 8  }
  0x24   : > { %9687 = dma.hbm_to_vmem [thread:$0]  (!%p10043_p8), %s10039_s8, 4096, %s10041_s10, %s10048_s12, %s9958_s30, %s9958_s30, %s9959_s6  }
  0x25   : > { %p203_p11 = scmp.lt.s32.totalorder %s9955_s21, 3  ;;  %p15361_p13 = scmp.ge.s32.totalorder %s9955_s21, 1 }
  0x27   : > { %p204_p3 = pnand %p15361_p13, %p203_p11 }
  0x29   : > { %207 = sbr.rel (%p204_p3) target bundleno = 1436 (0x59c), region = 40 }
  0x30   : > { %s209_s7 = sand.u32 1, %s9947_s19  }
  0x31   : > { %s8757_s9 = sshll.u32 %s209_s7, 8  ;;  %s210_s13 = scalar_lea.sflag [#allocation5], %s209_s7 }
  0x32   : > { %s10080_s14 = scalar_lea.vmem [#allocation4], %s8757_s9 }
  0x33   : > { %9938 = dma.done.wait (%p10030_p7), %s210_s13, 4096  }
  0x34   : > { %9940 = vsyncadd (%p10030_p7), %s210_s13, 4294963200  ;;  %vm246_vm0 = vcmask 257024   ;;  %vm249_vm1 = vcmask 253952   ;;  %v9960_v0 = vmov 0   ;;  %vm256_vm2 = vsmask.f32 256 }
  0x35   : > { %247 = vst.msk [vmem:[#allocation2] sm:$0xf] %vm246_vm0, %v9960_v0  ;;  %248 = vst.msk [vmem:[#allocation2 + $0x4] sm:$0xf] %vm246_vm0, %v9960_v0  ;;  %vm312_vm3 = vsmask.f32 7938 }
  0x36   : > { %250 = vst.msk [vmem:[#allocation2 + $0x8] sm:$0x1] %vm249_vm1, %v9960_v0  ;;  %254 = vst.msk [vmem:[#allocation2 + $0xd4] sm:$0x1] %vm249_vm1, %v9960_v0  ;;  %v15362_v1 = vmov 0  ;;  %vm1610_vm6 = vcmask 1042432  }
  0x37   : > { %252 = vst.msk [vmem:[#allocation2 + $0xcc] sm:$0xf] %vm246_vm0, %v9960_v0  ;;  %253 = vst.msk [vmem:[#allocation2 + $0xd0] sm:$0xf] %vm246_vm0, %v9960_v0  ;;  %v267_v3 = vld [vmem:[#allocation2 + $0x24] sm:$0x1] }
  0x38   : > { %vm10091_vm4 = vmand %vm249_vm1, %vm256_vm2  ;;  %v372_v4 = vld [vmem:[%s10080_s14 + $0x20] sm:$0xff]  ;;  %v373_v5 = vld [vmem:[%s10080_s14 + $0x28] sm:$0xff]  ;;  %vm496_vm7 = vsmask.f32 4368  ;;  %vm1611_vm8 = vcmask 1046532   ;;  %v15367_v32 = vmov 0 }
  0x39   : > { %v15363_v1 = vsel %vm10091_vm4, 4294967295, %v15362_v1  ;;  %vm10096_vm5 = vmand %vm249_vm1, %vm312_vm3  ;;  %v9286_v9 = vpack.c.bf16 %v372_v4, %v372_v4  ;;  %v9287_v10 = vpack.c.bf16 %v373_v5, %v373_v5  ;;  %v268_v14 = vsel %vm10091_vm4, 0, %v267_v3  ;;  %v264_v15 = vld [vmem:[#allocation2 + $0x18] sm:$0x1]  ;;  %v370_v20 = vld [vmem:[%s10080_s14 + $0x10] sm:$0xff]  ;;  %s9961_s21 = smov 64  }
  0x3a   : > { %15364 = vst [vmem:[#allocation7_spill] sm:$0xff] %v15363_v1  ;;  %269 = vst [vmem:[#allocation2 + $0x24] sm:$0x1] %v268_v14  ;;  %v371_v21 = vld [vmem:[%s10080_s14 + $0x18] sm:$0xff]  ;;  %v265_v22 = vsel %vm10091_vm4, 0, %v264_v15  ;;  %v9284_v23 = vpack.c.bf16 %v370_v20, %v370_v20  ;;  %v374_v26 = vld [vmem:[%s10080_s14 + $0x30] sm:$0xff] }
  0x3b   : > { %v533_v16 = vshrl.u32 %v9286_v9, 16  ;;  %v536_v17 = vshll.u32 %v9286_v9, 16  ;;  %v541_v18 = vshrl.u32 %v9287_v10, 16  ;;  %v544_v19 = vshll.u32 %v9287_v10, 16  ;;  %v270_v25 = vld [vmem:[#allocation2 + $0x30] sm:$0x1]  ;;  %vm10123_vm9 = vmor %vm256_vm2, %vm496_vm7 }
  0x3c   : > { %v258_v6 = vld [vmem:[#allocation2] sm:$0x1]  ;;  %v10102_v8 = vld [vmem:[#allocation2 + $0x4] sm:$0xf]  ;;  %v9285_v24 = vpack.c.bf16 %v371_v21, %v371_v21  ;;  %266 = vst [vmem:[#allocation2 + $0x18] sm:$0x1] %v265_v22  ;;  %v9288_v31 = vpack.c.bf16 %v374_v26, %v374_v26  ;;  %vm10134_vm10 = vmand %vm246_vm0, %vm312_vm3 }
  0x3d   : > { %v314_v7 = vld [vmem:[#allocation2 + $0x8] sm:$0x1]  ;;  %v259_v11 = vsel %vm10091_vm4, 0, %v258_v6  ;;  %v1615_v13 = vrot.slane %v10102_v8, 5  ;;  %v535_v27 = vrot.slane %v533_v16, 7  ;;  %v10116_v28 = vrot.slane %v541_v18, 7  ;;  %vm10142_vm11 = vmor %vm1610_vm6, %vm1611_vm8 }
  0x3e   : > { %v315_v12 = vsel %vm10096_vm5, 0, %v314_v7  ;;  %260 = vst [vmem:[#allocation2] sm:$0x1] %v259_v11  ;;  %v271_v29 = vsel %vm10091_vm4, 0, %v270_v25  ;;  %v375_v30 = vld [vmem:[%s10080_s14 + $0x38] sm:$0xff]  ;;  %v15368_v32 = vsel %vm10123_vm9, 4294967295, %v15367_v32 }
  0x3f   : > { %316 = vst [vmem:[#allocation2 + $0x8] sm:$0x1] %v315_v12  ;;  %15369 = vst [vmem:[#allocation8_spill] sm:$0xff] %v15368_v32  ;;  %v516_v33 = vshrl.u32 %v9284_v23, 16  ;;  %v519_v34 = vshll.u32 %v9284_v23, 16  ;;  %v524_v35 = vshrl.u32 %v9285_v24, 16  ;;  %v538_v39 = vor.u32 %v536_v17, %v535_v27 }
  0x40   : > { %v527_v36 = vshll.u32 %v9285_v24, 16  ;;  %272 = vst [vmem:[#allocation2 + $0x30] sm:$0x1] %v271_v29  ;;  %v261_v37 = vld [vmem:[#allocation2 + $0xc] sm:$0x1]  ;;  %v1617_v38 = vrot.slane %v1615_v13, 4  ;;  %v546_v41 = vor.u32 %v544_v19, %v10116_v28  ;;  %v9289_v47 = vpack.c.bf16 %v375_v30, %v375_v30 }
  0x41   : > { %v539_v40 = vrot.slane %v535_v27, 4  ;;  %v368_v42 = vld [vmem:[%s10080_s14] sm:$0xff]  ;;  %v369_v43 = vld [vmem:[%s10080_s14 + $0x8] sm:$0xff]  ;;  %v15370_v44 = vmov 0  ;;  %v518_v45 = vrot.slane %v516_v33, 7  ;;  %v10138_v46 = vrot.slane %v524_v35, 7 }
  0x42   : > { %v15371_v44 = vsel %vm10134_vm10, 4294967295, %v15370_v44  ;;  %v550_v48 = vshrl.u32 %v9288_v31, 16  ;;  %v553_v52 = vshll.u32 %v9288_v31, 16  ;;  %v262_v53 = vsel %vm10091_vm4, 0, %v261_v37  ;;  %v835_v56 = vld [vmem:[#allocation2 + $0x24] sm:$0xf] }
  0x43   : > { %15372 = vst [vmem:[#allocation9_spill] sm:$0xff] %v15371_v44  ;;  %v547_v50 = vsel %vm10123_vm9, %v539_v40, %v546_v41  ;;  %v521_v57 = vor.u32 %v519_v34, %v518_v45  ;;  %v529_v58 = vor.u32 %v527_v36, %v10138_v46  ;;  %263 = vst [vmem:[#allocation2 + $0xc] sm:$0x1] %v262_v53  ;;  %v522_v3 = vrot.slane %v518_v45, 4  ;;  %v828_v5 = vld [vmem:[#allocation2 + $0x18] sm:$0xf] }
  0x44   : > { %838 = vst.msk [vmem:[#allocation2 + $0x28] sm:$0xf] %vm246_vm0, %v547_v50  ;;  %v9282_v59 = vpack.c.bf16 %v368_v42, %v368_v42  ;;  %v9283_v60 = vpack.c.bf16 %v369_v43, %v369_v43  ;;  %v836_v0 = vsel %vm10134_vm10, %v538_v39, %v835_v56  ;;  %v552_v6 = vrot.slane %v550_v48, 7  ;;  %v376_v45 = vld [vmem:[%s10080_s14 + $0x40] sm:$0xff]  ;;  %s9962_s27 = smov 96   ;;  %s9963_s8 = smov 32  }
  0x45   : > { %v933_v54 = vld [vmem:[#allocation2] sm:$0xf]  ;;  %837 = vst [vmem:[#allocation2 + $0x24] sm:$0xf] %v836_v0  ;;  %v558_v7 = vshrl.u32 %v9289_v47, 16  ;;  %v829_v11 = vsel %vm10134_vm10, %v521_v57, %v828_v5  ;;  %v561_v12 = vshll.u32 %v9289_v47, 16  ;;  %v530_v16 = vsel %vm10123_vm9, %v522_v3, %v529_v58 }
  0x46   : > { %v10151_v55 = vld [vmem:[#allocation2 + $0x8] sm:$0x1]  ;;  %v8824_v62 = vrot.slane %v933_v54, 9  ;;  %830 = vst [vmem:[#allocation2 + $0x18] sm:$0xf] %v829_v11  ;;  %v555_v17 = vor.u32 %v553_v52, %v552_v6  ;;  %v556_v18 = vrot.slane %v552_v6, 4  ;;  %v10223_v6 = vpack.c.bf16 %v376_v45, %v376_v45 }
  0x47   : > { %v1117_v61 = vshll.u32 %v10151_v55, 16  ;;  %v1618_v63 = vrot.slane %v10151_v55, 5  ;;  %v842_v14 = vld [vmem:[#allocation2 + $0x30] sm:$0xf]  ;;  %831 = vst.msk [vmem:[#allocation2 + $0x1c] sm:$0xf] %vm246_vm0, %v530_v16 }
  0x48   : > { %v1616_v9 = vsel %vm10142_vm11, %v8824_v62, %v1615_v13  ;;  %v10171_v19 = vrot.slane %v558_v7, 7  ;;  %v499_v13 = vshrl.u32 %v9282_v59, 16  ;;  %v502_v20 = vshll.u32 %v9282_v59, 16  ;;  %p240_p7 = scmp.lt.s32.totalorder %s10013_s22, 1 }
  0x49   : > { %v1619_v10 = vsel %vm10142_vm11, %v1617_v38, %v1618_v63  ;;  %v507_v21 = vshrl.u32 %v9283_v60, 16  ;;  %vm1094_vm12 = vsmask.f32 3328  ;;  %vm1095_vm13 = vsmask.f32 7440 }
  0x4a   : > { %v8840_v15 = vcombine.low %v1616_v9, %v1619_v10  ;;  %v843_v22 = vsel %vm10134_vm10, %v555_v17, %v842_v14  ;;  %v510_v23 = vshll.u32 %v9283_v60, 16  ;;  %v1098_v24 = vshrl.u32 %v933_v54, 16  ;;  %v821_v34 = vld [vmem:[#allocation2 + $0xc] sm:$0xf]  ;;  %vm10252_vm14 = vmor %vm1094_vm12, %vm1095_vm13  ;;  %s15628_s22 = smov (!%p240_p7, %s10013_s22), 1 }
  0x4b   : > { %v1101_v25 = vshll.u32 %v933_v54, 16  ;;  %v10176_v26 = vld [vmem:[#allocation2 + $0x28] sm:$0xf]  ;;  %v563_v27 = vor.u32 %v561_v12, %v10171_v19  ;;  %844 = vst [vmem:[#allocation2 + $0x30] sm:$0xf] %v843_v22  ;;  %v501_v30 = vrot.slane %v499_v13, 7 }
  0x4c   : > { %1773 = vrot.lane.b32.xlu1 %v8840_v15, %s9961_s21  ;;  %v10180_v31 = vrot.slane %v507_v21, 7  ;;  %v3449_v33 = vrot.slane %v10176_v26, 5  ;;  %v1100_v35 = vrot.slane %v1098_v24, 4  ;;  %v1107_v37 = vshll.u32 %v10102_v8, 16  ;;  %v10184_v38 = vld [vmem:[#allocation2 + $0x24] sm:$0xf] }
  0x4d   : > { %v1103_v36 = vrot.slane %v1101_v25, 5  ;;  %v564_v39 = vsel %vm10123_vm9, %v556_v18, %v563_v27  ;;  %v504_v40 = vor.u32 %v502_v20, %v501_v30  ;;  %v505_v41 = vrot.slane %v501_v30, 4  ;;  %v10189_v43 = vld [vmem:[#allocation2 + $0x24] sm:$0xf]  ;;  %v10199_v53 = vld [vmem:[#allocation2 + $0x28] sm:$0xf] }
  0x4e   : > { %v512_v42 = vor.u32 %v510_v23, %v10180_v31  ;;  %v8921_v47 = vcombine.low %v10184_v38, %v10176_v26  ;;  %v8953_v48 = vrot.slane %v10184_v38, 9  ;;  %v10195_v50 = vrot.slane %v3449_v33, 4  ;;  %845 = vst.msk [vmem:[#allocation2 + $0x34] sm:$0xf] %vm246_vm0, %v564_v39  ;;  %v10201_v54 = vld [vmem:[#allocation2 + $0x18] sm:$0xf] }
  0x4f   : > { %v514_v52 = vrot.slane %v10180_v31, 4  ;;  %v822_v57 = vsel %vm10134_vm10, %v504_v40, %v821_v34  ;;  %v10207_v58 = vld [vmem:[#allocation2 + $0x18] sm:$0xf]  ;;  %v1104_v59 = vor.u32 %v1103_v36, %v1100_v35  ;;  %v10209_v60 = vrot.slane %v1107_v37, 5  ;;  %v10216_v63 = vld [vmem:[#allocation2 + $0x1c] sm:$0xf] }
  0x50   : > { %v513_v56 = vsel %vm10123_vm9, %v505_v41, %v512_v42  ;;  %v10213_v62 = vsel %vm10142_vm11, %v8953_v48, %v3449_v33  ;;  %2866 = vrot.lane.b32.xlu0 %v8921_v47, %s9961_s21  ;;  %v8952_v0 = vrot.slane %v10201_v54, 9  ;;  %823 = vst [vmem:[#allocation2 + $0xc] sm:$0xf] %v822_v57  ;;  %v10220_v3 = vld [vmem:[#allocation2 + $0x1c] sm:$0xf]  ;;  %v2056_v5 = vshrl.u32 %v10207_v58, 16 }
  0x51   : > { %824 = vst.msk [vmem:[#allocation2 + $0x10] sm:$0xf] %vm246_vm0, %v513_v56  ;;  %v8920_v7 = vcombine.low %v10201_v54, %v10216_v63  ;;  %v3442_v9 = vrot.slane %v10216_v63, 5  ;;  %v2059_v10 = vshll.u32 %v10207_v58, 16  ;;  %v8858_v11 = vcombine.low %v10189_v43, %v10199_v53  ;;  %v317_v22 = vld [vmem:[#allocation2 + $0x14] sm:$0x1] }
  0x52   : > { %v10231_v12 = vld [vmem:[#allocation2 + $0x30] sm:$0xf]  ;;  %v8857_v14 = vcombine.low %v10207_v58, %v10220_v3  ;;  %v10235_v15 = vrot.slane %v2056_v5, 4  ;;  %v2065_v16 = vshll.u32 %v10220_v3, 16  ;;  %v2069_v17 = vshrl.u32 %v10220_v3, 16 }
  0x53   : > { %v10239_v18 = vrot.slane %v3442_v9, 4  ;;  %2864 = vrot.lane.b32.xlu1 %v8920_v7, %s9961_s21  ;;  %v1105_v20 = vrot.slane %v1104_v59, 4  ;;  %v1111_v21 = vshrl.u32 %v10102_v8, 16  ;;  %v10244_v23 = vrot.slane %v2059_v10, 5  ;;  %v320_v7 = vld [vmem:[#allocation2 + $0x20] sm:$0x1] }
  0x54   : > { %15375 = vst [vmem:[#allocation10_spill] sm:$0xff] %v10235_v15  ;;  %v10246_v24 = vrot.slane %v2065_v16, 5  ;;  %v10248_v25 = vrot.slane %v2069_v17, 4  ;;  %v1119_v30 = vrot.slane %v1117_v61, 5  ;;  %v2080_v8 = vshrl.u32 %v10189_v43, 16 }
  0x55   : > { %15376 = vst [vmem:[#allocation11_spill] sm:$0xff] %v10244_v23  ;;  %v10258_v33 = vld [vmem:[#allocation2 + $0x34] sm:$0xf]  ;;  %v1113_v34 = vrot.slane %v1111_v21, 4  ;;  %v2083_v35 = vshll.u32 %v10189_v43, 16  ;;  %v2089_v36 = vshll.u32 %v10199_v53, 16  ;;  %v1110_v42 = vsel %vm10252_vm14, %v1105_v20, %v10209_v60 }
  0x56   : > { %15377 = vst [vmem:[#allocation12_spill] sm:$0xff] %v10246_v24  ;;  %15378 = vst [vmem:[#allocation13_spill] sm:$0xff] %v10248_v25  ;;  %v8922_v37 = vcombine.low %v10231_v12, %v10258_v33  ;;  %v15294_v39 = vrot.slane %v10258_v33, 5  ;;  %v2093_v40 = vshrl.u32 %v10199_v53, 16  ;;  %v318_v55 = vsel %vm10096_vm5, 0, %v317_v22 }
  0x57   : > { %v1838_v61 = vld [vmem:[#allocation2 + $0xc] sm:$0xf]  ;;  %v1114_v45 = vor.u32 %v1113_v34, %v10209_v60  ;;  %v10273_v47 = vrot.slane %v2080_v8, 4  ;;  %v10275_v48 = vrot.slane %v2083_v35, 5  ;;  %319 = vst [vmem:[#allocation2 + $0x14] sm:$0x1] %v318_v55  ;;  %v10280_v10 = vsel %vm10142_vm11, %v8952_v0, %v3442_v9 }
  0x58   : > { %v1839_v41 = vld [vmem:[#allocation2 + $0x10] sm:$0xf]  ;;  %2868 = vrot.lane.b32.xlu0 %v8922_v37, %s9961_s21  ;;  %v2032_v57 = vshrl.u32 %v1838_v61, 16  ;;  %v2035_v59 = vshll.u32 %v1838_v61, 16  ;;  %v936_v5 = vld [vmem:[#allocation2 + $0xc] sm:$0xf] }
  0x59   : > { %15381 = vst [vmem:[#allocation14_spill] sm:$0xff] %v10273_v47  ;;  %15382 = vst [vmem:[#allocation15_spill] sm:$0xff] %v10275_v48  ;;  %v8856_v56 = vcombine.low %v1838_v61, %v1839_v41  ;;  %v10284_v16 = vrot.slane %v15294_v39, 4  ;;  %v2041_v60 = vshll.u32 %v1839_v41, 16  ;;  %v2045_v17 = vshrl.u32 %v1839_v41, 16 }
  0x5a   : > { %v1115_v20 = vrot.slane %v1114_v45, 4  ;;  %v937_v21 = vld [vmem:[#allocation2 + $0x10] sm:$0xf]  ;;  %v10286_v22 = vrot.slane %v2032_v57, 4  ;;  %v10288_v34 = vrot.slane %v2035_v59, 5  ;;  %v10291_v8 = vrot.slane %v2089_v36, 5 }
  0x5b   : > { %1966 = vrot.lane.b32.xlu1 %v8856_v56, %s9962_s27  ;;  %v8888_v35 = vrot.slane %v1838_v61, 9  ;;  %v10293_v0 = vld [vmem:[#allocation2 + $0x18] sm:$0xf]  ;;  %v10295_v9 = vrot.slane %v2041_v60, 5  ;;  %v10299_v55 = vrot.slane %v2093_v40, 4  ;;  %v2513_v45 = vrot.slane %v1839_v41, 5 }
  0x5c   : > { %15383 = vst [vmem:[#allocation16_spill] sm:$0xff] %v10291_v8  ;;  %v1120_v37 = vsel %vm10252_vm14, %v1115_v20, %v1119_v30  ;;  %v10301_v57 = vld [vmem:[#allocation2 + $0x1c] sm:$0xf]  ;;  %v8825_v29 = vrot.slane %v936_v5, 9  ;;  %v1622_v51 = vrot.slane %v937_v21, 5  ;;  %v321_v36 = vsel %vm10096_vm5, 0, %v320_v7 }
  0x5d   : > { %15384 = vst [vmem:[#allocation17_spill] sm:$0xff] %v10299_v55  ;;  %v8808_v59 = vcombine.low %v1110_v42, %v1120_v37  ;;  %v323_v56 = vld [vmem:[#allocation2 + $0x2c] sm:$0x1]  ;;  %v10305_v61 = vrot.slane %v2045_v17, 4  ;;  %v10309_v60 = vsel %vm10142_vm11, %v8888_v35, %v2513_v45  ;;  %322 = vst [vmem:[#allocation2 + $0x20] sm:$0x1] %v321_v36 }
  0x5e   : > { %v8889_v30 = vrot.slane %v10207_v58, 9  ;;  %v2520_v40 = vrot.slane %v10220_v3, 5  ;;  %v825_v41 = vld [vmem:[#allocation2 + $0x14] sm:$0x1]  ;;  %v10318_v42 = vrot.slane %v2513_v45, 4  ;;  %v10322_v7 = vsel %vm10142_vm11, %v8825_v29, %v1622_v51 }
  0x5f   : > { %15385 = vst [vmem:[#allocation18_spill] sm:$0xff] %v10305_v61  ;;  %1968 = vrot.lane.b32.xlu1 %v8857_v14, %s9962_s27  ;;  %1529 = vrot.lane.b32.xlu0 %v8808_v59, %s9963_s8  ;;  %v8826_v17 = vrot.slane %v10293_v0, 9  ;;  %v1629_v20 = vrot.slane %v10301_v57, 5  ;;  %v826_v58 = vsel %vm10091_vm4, %v514_v52, %v825_v41  ;;  %v1624_v3 = vrot.slane %v1622_v51, 4  ;;  %v326_v37 = vld [vmem:[#allocation2 + $0x38] sm:$0x1] }
  0x60   : > { %v10332_v14 = vsel %vm10142_vm11, %v8889_v30, %v2520_v40  ;;  %v324_v35 = vsel %vm10096_vm5, 0, %v323_v56  ;;  %v10336_v29 = vld [vmem:[#allocation2 + $0x30] sm:$0xf]  ;;  %827 = vst [vmem:[#allocation2 + $0x14] sm:$0x1] %v826_v58  ;;  %v10338_v45 = vrot.slane %v2520_v40, 4 }
  0x61   : > { %v10342_v31 = vsel %vm10142_vm11, %v8826_v17, %v1629_v20  ;;  %325 = vst [vmem:[#allocation2 + $0x2c] sm:$0x1] %v324_v35  ;;  %v8890_v51 = vrot.slane %v10189_v43, 9  ;;  %v2527_v52 = vrot.slane %v10199_v53, 5  ;;  %v1122_v59 = vshrl.u32 %v936_v5, 16 }
  0x62   : > { %v1125_v36 = vshll.u32 %v936_v5, 16  ;;  %v1131_v30 = vshll.u32 %v937_v21, 16  ;;  %v1135_v56 = vshrl.u32 %v937_v21, 16  ;;  %v10346_v41 = vld [vmem:[#allocation2 + $0x34] sm:$0xf]  ;;  %v10352_v40 = vrot.slane %v1629_v20, 4 }
  0x63   : > { %1970 = vrot.lane.b32.xlu1 %v8858_v11, %s9962_s27  ;;  %v10356_v17 = vsel %vm10142_vm11, %v8890_v51, %v2527_v52  ;;  %v327_v58 = vsel %vm10096_vm5, 0, %v326_v37  ;;  %v8891_v5 = vrot.slane %v10336_v29, 9  ;;  %v377_v21 = vld [vmem:[%s10080_s14 + $0x48] sm:$0xff]  ;;  %v1124_v35 = vrot.slane %v1122_v59, 4 }
  0x64   : > { %v1127_v13 = vrot.slane %v1125_v36, 5  ;;  %v1133_v39 = vrot.slane %v1131_v30, 5  ;;  %v1137_v4 = vrot.slane %v1135_v56, 4  ;;  %328 = vst [vmem:[#allocation2 + $0x38] sm:$0x1] %v327_v58  ;;  %v10362_v53 = vrot.slane %v2527_v52, 4 }
  0x65   : > { %v832_v43 = vld [vmem:[#allocation2 + $0x20] sm:$0x1]  ;;  %v2534_v11 = vrot.slane %v10346_v41, 5  ;;  %v1146_v20 = vshrl.u32 %v10293_v0, 16  ;;  %v1149_v51 = vshll.u32 %v10293_v0, 16  ;;  %v15386_v37 = vrot.slane %v10138_v46, 4 }
  0x66   : > { %v1128_v8 = vor.u32 %v1127_v13, %v1124_v35  ;;  %v1138_v59 = vor.u32 %v1137_v4, %v1133_v39  ;;  %v1155_v36 = vshll.u32 %v10301_v57, 16  ;;  %v378_v30 = vld [vmem:[%s10080_s14 + $0x50] sm:$0xff]  ;;  %v1159_v48 = vshrl.u32 %v10301_v57, 16 }
  0x67   : > { %v833_v55 = vsel %vm10091_vm4, %v15386_v37, %v832_v43  ;;  %v10373_v56 = vrot.slane %v2534_v11, 4  ;;  %v1148_v52 = vrot.slane %v1146_v20, 4  ;;  %v1151_v58 = vrot.slane %v1149_v51, 5  ;;  %v1840_v47 = vld [vmem:[#allocation2 + $0x14] sm:$0x1] }
  0x68   : > { %834 = vst [vmem:[#allocation2 + $0x20] sm:$0x1] %v833_v55  ;;  %v938_v0 = vld [vmem:[#allocation2 + $0x14] sm:$0x1]  ;;  %v839_v25 = vld [vmem:[#allocation2 + $0x2c] sm:$0x1]  ;;  %v10378_v46 = vsel %vm10142_vm11, %v8891_v5, %v2534_v11  ;;  %v10388_v35 = vpack.c.bf16 %v377_v21, %v377_v21  ;;  %v10402_v61 = vpack.c.bf16 %v378_v30, %v378_v30 }
  0x69   : > { %v15387_v4 = vrot.slane %v10258_v33, 5  ;;  %v15388_v13 = vrot.slane %v10231_v12, 9  ;;  %v2051_v43 = vshll.u32 %v1840_v47, 16  ;;  %v2516_v20 = vrot.slane %v1840_v47, 5 }
  0x6a   : > { %v1625_v51 = vrot.slane %v938_v0, 5  ;;  %v15389_v5 = vrot.slane %v10116_v28, 4  ;;  %v1129_v37 = vrot.slane %v1128_v8, 4  ;;  %v1139_v24 = vrot.slane %v1138_v59, 4  ;;  %v380_v28 = vld [vmem:[%s10080_s14 + $0x60] sm:$0xff] }
  0x6b   : > { %v10386_v55 = vsel %vm10142_vm11, %v15388_v13, %v15387_v4  ;;  %v1141_v23 = vshll.u32 %v938_v0, 16  ;;  %v1152_v4 = vor.u32 %v1151_v58, %v1148_v52  ;;  %v379_v13 = vld [vmem:[%s10080_s14 + $0x58] sm:$0xff]  ;;  %v2517_v21 = vsel %vm10142_vm11, %v10318_v42, %v2516_v20  ;;  %v846_v47 = vld [vmem:[#allocation2 + $0x38] sm:$0x1] }
  0x6c   : > { %v840_v11 = vsel %vm10091_vm4, %v15389_v5, %v839_v25  ;;  %v1626_v57 = vsel %vm10142_vm11, %v1624_v3, %v1625_v51  ;;  %v1157_v15 = vrot.slane %v1155_v36, 5  ;;  %v8904_v25 = vcombine.low %v10309_v60, %v2517_v21 }
  0x6d   : > { %841 = vst [vmem:[#allocation2 + $0x2c] sm:$0x1] %v840_v11  ;;  %v8841_v8 = vcombine.low %v10322_v7, %v1626_v57  ;;  %v1134_v59 = vsel %vm10252_vm14, %v1129_v37, %v1133_v39  ;;  %v1143_v52 = vrot.slane %v1141_v23, 5  ;;  %v15390_v58 = vrot.slane %v10171_v19, 4 }
  0x6e   : > { %v1153_v0 = vrot.slane %v1152_v4, 4  ;;  %v1161_v3 = vrot.slane %v1159_v48, 4  ;;  %v2929_v36 = vshrl.u32 %v10201_v54, 16  ;;  %v10414_v30 = vrot.slane %v2051_v43, 5  ;;  %2671 = vrot.lane.b32.xlu0 %v8904_v25, %s9963_s8 }
  0x6f   : > { %v847_v42 = vsel %vm10091_vm4, %v15390_v58, %v846_v47  ;;  %1775 = vrot.lane.b32.xlu1 %v8841_v8, %s9961_s21  ;;  %v1843_v60 = vld [vmem:[#allocation2 + $0x20] sm:$0x1]  ;;  %v1144_v23 = vsel %vm10252_vm14, %v1139_v24, %v1143_v52  ;;  %v10420_v19 = vpack.c.bf16 %v379_v13, %v379_v13  ;;  %v10422_v39 = vpack.c.bf16 %v380_v28, %v380_v28 }
  0x70   : > { %v941_v7 = vld [vmem:[#allocation2 + $0x20] sm:$0x1]  ;;  %848 = vst [vmem:[#allocation2 + $0x38] sm:$0x1] %v847_v42  ;;  %v2075_v57 = vshll.u32 %v1843_v60, 16  ;;  %v2523_v48 = vrot.slane %v1843_v60, 5  ;;  %v8809_v51 = vcombine.low %v1134_v59, %v1144_v23  ;;  %v1158_v43 = vsel %vm10252_vm14, %v1153_v0, %v1157_v15 }
  0x71   : > { %v1632_v20 = vrot.slane %v941_v7, 5  ;;  %v1162_v5 = vor.u32 %v1161_v3, %v1157_v15  ;;  %v1165_v11 = vshll.u32 %v941_v7, 16  ;;  %v2931_v37 = vrot.slane %v2929_v36, 4  ;;  %v2738_v47 = vld [vmem:[#allocation2 + $0x20] sm:$0x1] }
  0x72   : > { %v10426_v4 = vrot.slane %v2075_v57, 5  ;;  %v2524_v24 = vsel %vm10142_vm11, %v10338_v45, %v2523_v48  ;;  %v2932_v28 = vshll.u32 %v10201_v54, 16  ;;  %vm1077_vm15 = vcmask 261120  }
  0x73   : > { %v1633_v13 = vsel %vm10142_vm11, %v10352_v40, %v1632_v20  ;;  %v8905_v25 = vcombine.low %v10332_v14, %v2524_v24  ;;  %v1163_v52 = vrot.slane %v1162_v5, 4  ;;  %v1167_v58 = vrot.slane %v1165_v11, 5 }
  0x74   : > { %v1846_v21 = vld [vmem:[#allocation2 + $0x2c] sm:$0x1]  ;;  %v8842_v15 = vcombine.low %v10342_v31, %v1633_v13  ;;  %v2934_v42 = vrot.slane %v2932_v28, 5  ;;  %v2938_v45 = vshll.u32 %v10216_v63, 16  ;;  %v2942_v14 = vshrl.u32 %v10216_v63, 16 }
  0x75   : > { %v2099_v8 = vshll.u32 %v1846_v21, 16  ;;  %v2530_v59 = vrot.slane %v1846_v21, 5  ;;  %2673 = vrot.lane.b32.xlu0 %v8905_v25, %s9963_s8  ;;  %v2948_v31 = vshll.u32 %v2738_v47, 16  ;;  %v1168_v36 = vsel %vm10252_vm14, %v1163_v52, %v1167_v58  ;;  %v2741_v13 = vld [vmem:[#allocation2 + $0x2c] sm:$0x1] }
  0x76   : > { %1777 = vrot.lane.b32.xlu1 %v8842_v15, %s9961_s21  ;;  %v2935_v60 = vor.u32 %v2934_v42, %v2931_v37  ;;  %v2940_v7 = vrot.slane %v2938_v45, 5  ;;  %v8810_v48 = vcombine.low %v1158_v43, %v1168_v36  ;;  %v2944_v20 = vrot.slane %v2942_v14, 4  ;;  %v10468_v42 = vld [vmem:[#allocation2 + $0x24] sm:$0xf] }
  0x77   : > { %v10440_v40 = vrot.slane %v2099_v8, 5  ;;  %v2531_v54 = vsel %vm10142_vm11, %v10362_v53, %v2530_v59  ;;  %v1849_v3 = vld [vmem:[#allocation2 + $0x38] sm:$0x1]  ;;  %v2950_v11 = vrot.slane %v2948_v31, 5  ;;  %v3445_v24 = vrot.slane %v2738_v47, 5 }
  0x78   : > { %v8906_v0 = vcombine.low %v10356_v17, %v2531_v54  ;;  %v2123_v23 = vshll.u32 %v1849_v3, 16  ;;  %v2537_v57 = vrot.slane %v1849_v3, 5  ;;  %v2936_v5 = vrot.slane %v2935_v60, 4 }
  0x79   : > { %15391 = vst [vmem:[#allocation19_spill] sm:$0xff] %v10440_v40  ;;  %v2953_v53 = vshrl.u32 %v10184_v38, 16  ;;  %v2945_v37 = vor.u32 %v2944_v20, %v2940_v7  ;;  %v2956_v43 = vshll.u32 %v10184_v38, 16  ;;  %v3446_v28 = vsel %vm10142_vm11, %v10239_v18, %v3445_v24 }
  0x7a   : > { %2675 = vrot.lane.b32.xlu0 %v8906_v0, %s9963_s8  ;;  %1531 = vrot.lane.b32.xlu1 %v8809_v51, %s9963_s8  ;;  %v10452_v63 = vrot.slane %v2123_v23, 5  ;;  %v2538_v17 = vsel %vm10142_vm11, %v10373_v56, %v2537_v57  ;;  %v2941_v47 = vsel %vm10252_vm14, %v2936_v5, %v2940_v7  ;;  %v8968_v15 = vcombine.low %v10280_v10, %v3446_v28  ;;  %v2744_v56 = vld [vmem:[#allocation2 + $0x38] sm:$0x1]  ;;  %v10480_v23 = vld [vmem:[#allocation2 + $0x28] sm:$0xf] }
  0x7b   : > { %v8907_v21 = vcombine.low %v10378_v46, %v2538_v17  ;;  %v2955_v25 = vrot.slane %v2953_v53, 4  ;;  %v2946_v51 = vrot.slane %v2945_v37, 4  ;;  %v2958_v8 = vrot.slane %v2956_v43, 5 }
  0x7c   : > { %15392 = vst [vmem:[#allocation20_spill] sm:$0xff] %v10452_v63  ;;  %v2962_v59 = vshll.u32 %v10176_v26, 16  ;;  %v2966_v52 = vshrl.u32 %v10176_v26, 16  ;;  %v2972_v38 = vshll.u32 %v2741_v13, 16  ;;  %v3452_v58 = vrot.slane %v2741_v13, 5  ;;  %3616 = vst.msk [vmem:[#allocation3 + $0x10] sm:$0xff] %vm1077_vm15, %v8968_v15 }
  0x7d   : > { %v2977_v46 = vshrl.u32 %v10231_v12, 16  ;;  %v2951_v18 = vsel %vm10252_vm14, %v2946_v51, %v2950_v11  ;;  %v2959_v10 = vor.u32 %v2958_v8, %v2955_v25  ;;  %v2980_v54 = vshll.u32 %v10231_v12, 16  ;;  %v273_v13 = vld [vmem:[#allocation2 + $0x3c] sm:$0x1]  ;;  %v294_v63 = vld [vmem:[#allocation2 + $0x90] sm:$0x1] }
  0x7e   : > { %2677 = vrot.lane.b32.xlu0 %v8907_v21, %s9963_s8  ;;  %1533 = vrot.lane.b32.xlu1 %v8810_v48, %s9963_s8  ;;  %v2964_v45 = vrot.slane %v2962_v59, 5  ;;  %v8936_v26 = vcombine.low %v2941_v47, %v2951_v18  ;;  %v2968_v14 = vrot.slane %v2966_v52, 4  ;;  %v2974_v31 = vrot.slane %v2972_v38, 5 }
  0x7f   : > { %v3453_v0 = vsel %vm10142_vm11, %v10195_v50, %v3452_v58  ;;  %v2960_v3 = vrot.slane %v2959_v10, 4  ;;  %v2979_v60 = vrot.slane %v2977_v46, 4  ;;  %v2982_v7 = vrot.slane %v2980_v54, 5 }
  0x80   : > { %v8969_v36 = vcombine.low %v10213_v62, %v3453_v0  ;;  %v2969_v57 = vor.u32 %v2968_v14, %v2964_v45  ;;  %v2986_v48 = vshll.u32 %v10258_v33, 16  ;;  %v2990_v20 = vshrl.u32 %v10258_v33, 16  ;;  %v10488_v62 = vld [vmem:[#allocation2 + $0x2c] sm:$0x1] }
  0x81   : > { %v2996_v12 = vshll.u32 %v2744_v56, 16  ;;  %v2965_v5 = vsel %vm10252_vm14, %v2960_v3, %v2964_v45  ;;  %v2983_v50 = vor.u32 %v2982_v7, %v2979_v60  ;;  %v3459_v11 = vrot.slane %v2744_v56, 5  ;;  %v329_v3 = vld [vmem:[#allocation2 + $0x44] sm:$0x1] }
  0x82   : > { %3360 = vrot.lane.b32.xlu0 %v8936_v26, %s9962_s27  ;;  %3617 = vst.msk [vmem:[#allocation3 + $0x28] sm:$0xff] %vm1077_vm15, %v8969_v36  ;;  %v1170_v24 = vshrl.u32 %v10468_v42, 16  ;;  %v2970_v53 = vrot.slane %v2969_v57, 4  ;;  %v2988_v17 = vrot.slane %v2986_v48, 5  ;;  %v2992_v37 = vrot.slane %v2990_v20, 4 }
  0x83   : > { %v2998_v43 = vrot.slane %v2996_v12, 5  ;;  %v2984_v33 = vrot.slane %v2983_v50, 4  ;;  %v3460_v21 = vsel %vm10142_vm11, %v10284_v16, %v3459_v11  ;;  %v1173_v28 = vshll.u32 %v10468_v42, 16  ;;  %v10513_v36 = vld [vmem:[#allocation2 + $0x30] sm:$0xf] }
  0x84   : > { %v1172_v47 = vrot.slane %v1170_v24, 4  ;;  %v2975_v25 = vsel %vm10252_vm14, %v2970_v53, %v2974_v31  ;;  %v2993_v51 = vor.u32 %v2992_v37, %v2988_v17  ;;  %v8970_v15 = vcombine.low %v10386_v55, %v3460_v21  ;;  %v10515_v20 = vld [vmem:[#allocation2 + $0x34] sm:$0xf]  ;;  %v10525_v53 = vld [vmem:[#allocation2 + $0x38] sm:$0x1] }
  0x85   : > { %v1179_v8 = vshll.u32 %v10480_v23, 16  ;;  %v8937_v59 = vcombine.low %v2965_v5, %v2975_v25  ;;  %v2989_v56 = vsel %vm10252_vm14, %v2984_v33, %v2988_v17  ;;  %v1175_v52 = vrot.slane %v1173_v28, 5  ;;  %v276_v17 = vld [vmem:[#allocation2 + $0x48] sm:$0x1] }
  0x86   : > { %v1183_v38 = vshrl.u32 %v10480_v23, 16  ;;  %v2994_v58 = vrot.slane %v2993_v51, 4  ;;  %3618 = vst.msk [vmem:[#allocation3 + $0x40] sm:$0xff] %vm1077_vm15, %v8970_v15  ;;  %v1189_v46 = vshll.u32 %v10488_v62, 16  ;;  %v274_v18 = vsel %vm10091_vm4, 0, %v273_v13 }
  0x87   : > { %v1181_v16 = vrot.slane %v1179_v8, 5  ;;  %3362 = vrot.lane.b32.xlu0 %v8937_v59, %s9962_s27  ;;  %v1176_v55 = vor.u32 %v1175_v52, %v1172_v47  ;;  %275 = vst [vmem:[#allocation2 + $0x3c] sm:$0x1] %v274_v18  ;;  %v567_v45 = vshrl.u32 %v10223_v6, 16  ;;  %v570_v54 = vshll.u32 %v10223_v6, 16 }
  0x88   : > { %v1185_v10 = vrot.slane %v1183_v38, 4  ;;  %v2999_v26 = vsel %vm10252_vm14, %v2994_v58, %v2998_v43  ;;  %v1191_v14 = vrot.slane %v1189_v46, 5  ;;  %v575_v31 = vshrl.u32 %v10388_v35, 16  ;;  %v332_v58 = vld [vmem:[#allocation2 + $0x50] sm:$0x1] }
  0x89   : > { %v578_v0 = vshll.u32 %v10388_v35, 16  ;;  %v8938_v60 = vcombine.low %v2989_v56, %v2999_v26  ;;  %v1177_v7 = vrot.slane %v1176_v55, 4  ;;  %v569_v48 = vrot.slane %v567_v45, 7 }
  0x8a   : > { %v1186_v57 = vor.u32 %v1185_v10, %v1181_v16  ;;  %v10517_v12 = vrot.slane %v575_v31, 7  ;;  %v8827_v6 = vrot.slane %v10468_v42, 9  ;;  %v1636_v5 = vrot.slane %v10480_v23, 5  ;;  %v279_v10 = vld [vmem:[#allocation2 + $0x54] sm:$0x1] }
  0x8b   : > { %v1639_v50 = vrot.slane %v10488_v62, 5  ;;  %3364 = vrot.lane.b32.xlu0 %v8938_v60, %s9962_s27  ;;  %v1182_v35 = vsel %vm10252_vm14, %v1177_v7, %v1181_v16  ;;  %v572_v24 = vor.u32 %v570_v54, %v569_v48  ;;  %v573_v13 = vrot.slane %v569_v48, 4 }
  0x8c   : > { %v1187_v11 = vrot.slane %v1186_v57, 4  ;;  %v580_v37 = vor.u32 %v578_v0, %v10517_v12  ;;  %v582_v43 = vrot.slane %v10517_v12, 4  ;;  %v1637_v42 = vsel %vm10142_vm11, %v8827_v6, %v1636_v5 }
  0x8d   : > { %v1638_v23 = vrot.slane %v1636_v5, 4  ;;  %v330_v33 = vsel %vm10096_vm5, 0, %v329_v3  ;;  %v1194_v21 = vshrl.u32 %v10513_v36, 16  ;;  %v1197_v47 = vshll.u32 %v10513_v36, 16 }
  0x8e   : > { %v1192_v62 = vsel %vm10252_vm14, %v1187_v11, %v1191_v14  ;;  %v581_v25 = vsel %vm10123_vm9, %v573_v13, %v580_v37  ;;  %v849_v51 = vld [vmem:[#allocation2 + $0x3c] sm:$0xf]  ;;  %331 = vst [vmem:[#allocation2 + $0x44] sm:$0x1] %v330_v33  ;;  %v1203_v8 = vshll.u32 %v10515_v20, 16  ;;  %v1207_v46 = vshrl.u32 %v10515_v20, 16 }
  0x8f   : > { %v8811_v28 = vcombine.low %v1182_v35, %v1192_v62  ;;  %v1640_v15 = vsel %vm10142_vm11, %v1638_v23, %v1639_v50  ;;  %v850_v59 = vsel %vm10134_vm10, %v572_v24, %v849_v51  ;;  %852 = vst.msk [vmem:[#allocation2 + $0x40] sm:$0xf] %vm246_vm0, %v581_v25  ;;  %v1196_v52 = vrot.slane %v1194_v21, 4 }
  0x90   : > { %v8843_v56 = vcombine.low %v1637_v42, %v1640_v15  ;;  %v1199_v38 = vrot.slane %v1197_v47, 5  ;;  %851 = vst [vmem:[#allocation2 + $0x3c] sm:$0xf] %v850_v59  ;;  %v10546_v16 = vrot.slane %v1203_v8, 5  ;;  %v1213_v18 = vshll.u32 %v10525_v53, 16 }
  0x91   : > { %1535 = vrot.lane.b32.xlu1 %v8811_v28, %s9963_s8  ;;  %v277_v55 = vsel %vm10091_vm4, 0, %v276_v17  ;;  %v584_v54 = vshrl.u32 %v10402_v61, 16  ;;  %v587_v26 = vshll.u32 %v10402_v61, 16  ;;  %v592_v14 = vshrl.u32 %v10420_v19, 16 }
  0x92   : > { %v1200_v45 = vor.u32 %v1199_v38, %v1196_v52  ;;  %278 = vst [vmem:[#allocation2 + $0x48] sm:$0x1] %v277_v55  ;;  %v1209_v31 = vrot.slane %v1207_v46, 4  ;;  %v1215_v0 = vrot.slane %v1213_v18, 5  ;;  %v595_v3 = vshll.u32 %v10420_v19, 16 }
  0x93   : > { %v8828_v60 = vrot.slane %v10513_v36, 9  ;;  %v586_v57 = vrot.slane %v584_v54, 7  ;;  %v10557_v48 = vrot.slane %v592_v14, 7  ;;  %v1643_v12 = vrot.slane %v10515_v20, 5 }
  0x94   : > { %v1201_v7 = vrot.slane %v1200_v45, 4  ;;  %v1210_v6 = vor.u32 %v1209_v31, %v10546_v16  ;;  %v1646_v61 = vrot.slane %v10525_v53, 5  ;;  %v333_v5 = vsel %vm10096_vm5, 0, %v332_v58  ;;  %v9741_v45 = vld [vmem:[%s15289_s1] sm:$0xff]  }
  0x95   : > { %1779 = vrot.lane.b32.xlu1 %v8843_v56, %s9961_s21  ;;  %v280_v19 = vsel %vm10091_vm4, 0, %v279_v10  ;;  %v853_v50 = vld [vmem:[#allocation2 + $0x44] sm:$0x1]  ;;  %v589_v35 = vor.u32 %v587_v26, %v586_v57  ;;  %v590_v11 = vrot.slane %v586_v57, 4  ;;  %v597_v20 = vor.u32 %v595_v3, %v10557_v48  ;;  %334 = vst [vmem:[#allocation2 + $0x50] sm:$0x1] %v333_v5 }
  0x96   : > { %v1206_v36 = vsel %vm10252_vm14, %v1201_v7, %v10546_v16  ;;  %281 = vst [vmem:[#allocation2 + $0x54] sm:$0x1] %v280_v19  ;;  %v2746_v24 = vld [vmem:[#allocation2 + $0x40] sm:$0xf]  ;;  %v854_v13 = vsel %vm10091_vm4, %v582_v43, %v853_v50  ;;  %v1211_v37 = vrot.slane %v1210_v6, 4  ;;  %v599_v42 = vrot.slane %v10557_v48, 4 }
  0x97   : > { %v10573_v17 = vld [vmem:[#allocation2 + $0x40] sm:$0xf]  ;;  %v10578_v23 = vsel %vm10142_vm11, %v8828_v60, %v1643_v12  ;;  %v2745_v62 = vld [vmem:[#allocation2 + $0x3c] sm:$0xf]  ;;  %v3463_v33 = vrot.slane %v2746_v24, 5  ;;  %v3010_v21 = vshll.u32 %v2746_v24, 16  ;;  %v15393_v8 = vcombine.low %v10336_v29, %v10346_v41 }
  0x98   : > { %855 = vst [vmem:[#allocation2 + $0x44] sm:$0x1] %v854_v13  ;;  %v3014_v47 = vshrl.u32 %v2746_v24, 16  ;;  %v2541_v28 = vrot.slane %v10573_v17, 5  ;;  %v8923_v25 = vcombine.low %v2745_v62, %v2746_v24  ;;  %v8955_v51 = vrot.slane %v2745_v62, 9  ;;  %v9740_v56 = vld [vmem:[%s15289_s1 + $0x40] sm:$0xff]  }
  0x99   : > { %v3001_v15 = vshrl.u32 %v2745_v62, 16  ;;  %v3004_v43 = vshll.u32 %v2745_v62, 16  ;;  %1972 = vrot.lane.b32.xlu1 %v15393_v8, %s9962_s27  ;;  %v10585_v59 = vld [vmem:[#allocation2 + $0x3c] sm:$0xf]  ;;  %v3465_v52 = vrot.slane %v3463_v33, 4  ;;  %v10590_v38 = vrot.slane %v3010_v21, 5  ;;  %9346 = vmatprep.subr.bf16.mxu0 %v9740_v56 }
  0x9a   : > { %v3016_v58 = vrot.slane %v3014_v47, 4  ;;  %v8892_v16 = vrot.slane %v10585_v59, 9  ;;  %v856_v46 = vld [vmem:[#allocation2 + $0x48] sm:$0xf]  ;;  %2870 = vrot.lane.b32.xlu0 %v8923_v25, %s9961_s21  ;;  %v3464_v29 = vsel %vm10142_vm11, %v8955_v51, %v3463_v33  ;;  %v2543_v41 = vrot.slane %v2541_v28, 4  ;;  %v381_v3 = vld [vmem:[%s10080_s14 + $0x68] sm:$0xff]  ;;  %9347 = vmatpush3.bf16.msra.mxu0 %v9741_v45 }
  0x9b   : > { %v3003_v18 = vrot.slane %v3001_v15, 4  ;;  %v3006_v55 = vrot.slane %v3004_v43, 5  ;;  %v10596_v10 = vld [vmem:[#allocation2 + $0x3c] sm:$0xf]  ;;  %v1216_v14 = vsel %vm10252_vm14, %v1211_v37, %v1215_v0  ;;  %v598_v31 = vsel %vm10123_vm9, %v590_v11, %v597_v20  ;;  %v9742_v60 = vld [vmem:[%s15289_s1 + $0x48] sm:$0xff]   ;;  %v9745_v56 = vld [vmem:[%s15289_s1 + $0x50] sm:$0xff]  }
  0x9c   : > { %v3017_v54 = vor.u32 %v3016_v58, %v10590_v38  ;;  %v10604_v26 = vsel %vm10142_vm11, %v8892_v16, %v2541_v28  ;;  %v8812_v57 = vcombine.low %v1206_v36, %v1216_v14  ;;  %v857_v48 = vsel %vm10134_vm10, %v589_v35, %v856_v46  ;;  %859 = vst.msk [vmem:[#allocation2 + $0x4c] sm:$0xf] %vm246_vm0, %v598_v31  ;;  %v860_v5 = vld [vmem:[#allocation2 + $0x50] sm:$0x1]  ;;  %v10621_v11 = vld [vmem:[#allocation2 + $0x40] sm:$0xf] }
  0x9d   : > { %v3007_v7 = vor.u32 %v3006_v55, %v3003_v18  ;;  %v1645_v6 = vrot.slane %v1643_v12, 4  ;;  %858 = vst [vmem:[#allocation2 + $0x48] sm:$0xf] %v857_v48  ;;  %v861_v19 = vsel %vm10091_vm4, %v599_v42, %v860_v5  ;;  %v8860_v50 = vcombine.low %v10585_v59, %v10573_v17  ;;  %9348 = vmatprep.subr.bf16.mxu0 %v9742_v60  ;;  %v382_v17 = vld [vmem:[%s10080_s14 + $0x70] sm:$0xff] }
  0x9e   : > { %v3018_v0 = vrot.slane %v3017_v54, 4  ;;  %v1218_v36 = vshrl.u32 %v10596_v10, 16  ;;  %1537 = vrot.lane.b32.xlu1 %v8812_v57, %s9963_s8  ;;  %862 = vst [vmem:[#allocation2 + $0x50] sm:$0x1] %v861_v19  ;;  %v1221_v13 = vshll.u32 %v10596_v10, 16  ;;  %v10630_v37 = vpack.c.bf16 %v381_v3, %v381_v3  ;;  %v9744_v59 = vld [vmem:[%s15289_s1 + $0x8] sm:$0xff]  }
  0x9f   : > { %v2747_v35 = vld [vmem:[#allocation2 + $0x44] sm:$0x1]  ;;  %v3008_v20 = vrot.slane %v3007_v7, 4  ;;  %v1647_v12 = vsel %vm10142_vm11, %v1645_v6, %v1646_v61  ;;  %v1231_v18 = vshrl.u32 %v10621_v11, 16  ;;  %9349 = vmatpush3.bf16.msra.mxu0 %v9744_v59  ;;  %vm1577_vm1 = vcmask 523520  }
  0xa0   : > { %v1852_v24 = vld [vmem:[#allocation2 + $0x44] sm:$0x1]  ;;  %v3020_v42 = vshll.u32 %v2747_v35, 16  ;;  %v3466_v62 = vrot.slane %v2747_v35, 5  ;;  %v8844_v53 = vcombine.low %v10578_v23, %v1647_v12  ;;  %v1220_v25 = vrot.slane %v1218_v36, 4  ;;  %9350 = vmatprep.subr.bf16.mxu0 %v9745_v56 }
  0xa1   : > { %v2147_v33 = vshll.u32 %v1852_v24, 16  ;;  %v2544_v21 = vrot.slane %v1852_v24, 5  ;;  %v10633_v47 = vld [vmem:[#allocation2 + $0x44] sm:$0x1]  ;;  %v3013_v28 = vsel %vm10252_vm14, %v3008_v20, %v10590_v38  ;;  %v1223_v61 = vrot.slane %v1221_v13, 5 }
  0xa2   : > { %v3022_v51 = vrot.slane %v3020_v42, 5  ;;  %v3467_v15 = vsel %vm10142_vm11, %v3465_v52, %v3466_v62  ;;  %1781 = vrot.lane.b32.xlu1 %v8844_v53, %s9961_s21  ;;  %v1227_v52 = vshll.u32 %v10621_v11, 16  ;;  %v1237_v55 = vshll.u32 %v10633_v47, 16 }
  0xa3   : > { %v10641_v43 = vrot.slane %v2147_v33, 5  ;;  %v2545_v8 = vsel %vm10142_vm11, %v2543_v41, %v2544_v21  ;;  %v8971_v23 = vcombine.low %v3464_v29, %v3467_v15  ;;  %v1224_v58 = vor.u32 %v1223_v61, %v1220_v25  ;;  %v2749_v46 = vld [vmem:[#allocation2 + $0x4c] sm:$0xf] }
  0xa4   : > { %v8908_v38 = vcombine.low %v10604_v26, %v2545_v8  ;;  %v3023_v16 = vsel %vm10252_vm14, %v3018_v0, %v3022_v51  ;;  %v10658_v41 = vpack.c.bf16 %v382_v17, %v382_v17  ;;  %v2748_v29 = vld [vmem:[#allocation2 + $0x48] sm:$0xf]  ;;  %v3470_v54 = vrot.slane %v2749_v46, 5  ;;  %v10661_v31 = vld [vmem:[#allocation2 + $0x4c] sm:$0xf] }
  0xa5   : > { %15394 = vst [vmem:[#allocation21_spill] sm:$0xff] %v10641_v43  ;;  %v8939_v45 = vcombine.low %v3013_v28, %v3023_v16  ;;  %3619 = vst.msk [vmem:[#allocation3 + $0x58] sm:$0xff] %vm1077_vm15, %v8971_v23  ;;  %v3034_v26 = vshll.u32 %v2749_v46, 16  ;;  %v3038_v14 = vshrl.u32 %v2749_v46, 16  ;;  %v8924_v3 = vcombine.low %v2748_v29, %v2749_v46  ;;  %v2750_v7 = vld [vmem:[#allocation2 + $0x50] sm:$0x1] }
  0xa6   : > { %v8956_v60 = vrot.slane %v2748_v29, 9  ;;  %v3025_v57 = vshrl.u32 %v2748_v29, 16  ;;  %v3028_v48 = vshll.u32 %v2748_v29, 16  ;;  %v3472_v6 = vrot.slane %v3470_v54, 4  ;;  %1974 = vrot.lane.b32.xlu1 %v8860_v50, %s9962_s27  ;;  %v10665_v36 = vld [vmem:[#allocation2 + $0x48] sm:$0xf] }
  0xa7   : > { %3366 = vrot.lane.b32.xlu0 %v8939_v45, %s9962_s27  ;;  %v3036_v5 = vrot.slane %v3034_v26, 5  ;;  %v3040_v0 = vrot.slane %v3038_v14, 4  ;;  %v3044_v19 = vshll.u32 %v2750_v7, 16  ;;  %v3473_v12 = vrot.slane %v2750_v7, 5  ;;  %v1855_v13 = vld [vmem:[#allocation2 + $0x50] sm:$0x1] }
  0xa8   : > { %v3027_v35 = vrot.slane %v3025_v57, 4  ;;  %v3030_v20 = vrot.slane %v3028_v48, 5  ;;  %v3471_v24 = vsel %vm10142_vm11, %v8956_v60, %v3470_v54  ;;  %v2171_v62 = vshll.u32 %v1855_v13, 16  ;;  %v9746_v16 = vld [vmem:[%s15289_s1 + $0x10] sm:$0xff]   ;;  %v335_v29 = vld [vmem:[#allocation2 + $0x5c] sm:$0x1] }
  0xa9   : > { %v3041_v17 = vor.u32 %v3040_v0, %v3036_v5  ;;  %v3046_v42 = vrot.slane %v3044_v19, 5  ;;  %v8893_v33 = vrot.slane %v10665_v36, 9  ;;  %v3474_v28 = vsel %vm10142_vm11, %v3472_v6, %v3473_v12  ;;  %v9747_v54 = vld [vmem:[%s15289_s1 + $0x58] sm:$0xff]   ;;  %9351 = vmatpush3.bf16.msra.mxu0 %v9746_v16 }
  0xaa   : > { %v3031_v21 = vor.u32 %v3030_v20, %v3027_v35  ;;  %v2548_v50 = vrot.slane %v10661_v31, 5  ;;  %v2551_v53 = vrot.slane %v1855_v13, 5  ;;  %v8972_v61 = vcombine.low %v3471_v24, %v3474_v28  ;;  %9352 = vmatprep.subr.bf16.mxu0 %v9747_v54  ;;  %v10705_v35 = vld [vmem:[#allocation2 + $0x4c] sm:$0xf] }
  0xab   : > { %2679 = vrot.lane.b32.xlu0 %v8908_v38, %s9963_s8  ;;  %v3042_v25 = vrot.slane %v3041_v17, 4  ;;  %v10674_v51 = vrot.slane %v2171_v62, 5  ;;  %v1225_v15 = vrot.slane %v1224_v58, 4  ;;  %v1229_v23 = vrot.slane %v1227_v52, 5  ;;  %v10711_v17 = vld [vmem:[#allocation2 + $0x50] sm:$0x1] }
  0xac   : > { %v3032_v8 = vrot.slane %v3031_v21, 4  ;;  %v10678_v59 = vsel %vm10142_vm11, %v8893_v33, %v2548_v50  ;;  %v2550_v56 = vrot.slane %v2548_v50, 4  ;;  %3620 = vst.msk [vmem:[#allocation3 + $0x70] sm:$0xff] %vm1077_vm15, %v8972_v61  ;;  %v1233_v38 = vrot.slane %v1231_v18, 4  ;;  %v863_v18 = vld [vmem:[#allocation2 + $0x54] sm:$0xf] }
  0xad   : > { %15395 = vst [vmem:[#allocation22_spill] sm:$0xff] %v10674_v51  ;;  %v3047_v46 = vsel %vm10252_vm14, %v3042_v25, %v3046_v42  ;;  %v1239_v45 = vrot.slane %v1237_v55, 5  ;;  %v601_v58 = vshrl.u32 %v10422_v39, 16  ;;  %v1230_v14 = vsel %vm10252_vm14, %v1225_v15, %v1229_v23  ;;  %v10697_v55 = vld [vmem:[#allocation2 + $0x48] sm:$0xf] }
  0xae   : > { %v3037_v52 = vsel %vm10252_vm14, %v3032_v8, %v3036_v5  ;;  %v2552_v26 = vsel %vm10142_vm11, %v2550_v56, %v2551_v53  ;;  %v604_v60 = vshll.u32 %v10422_v39, 16  ;;  %v1234_v48 = vor.u32 %v1233_v38, %v1229_v23  ;;  %v282_v42 = vld [vmem:[#allocation2 + $0x60] sm:$0x1]  ;;  %v383_v8 = vld [vmem:[%s10080_s14 + $0x78] sm:$0xff] }
  0xaf   : > { %2872 = vrot.lane.b32.xlu0 %v8924_v3, %s9961_s21  ;;  %v8940_v7 = vcombine.low %v3037_v52, %v3047_v46  ;;  %v8909_v57 = vcombine.low %v10678_v59, %v2552_v26  ;;  %v603_v6 = vrot.slane %v601_v58, 7  ;;  %v609_v5 = vshrl.u32 %v10630_v37, 16  ;;  %v9748_v3 = vld [vmem:[%s15289_s1 + $0x18] sm:$0xff]  }
  0xb0   : > { %v612_v0 = vshll.u32 %v10630_v37, 16  ;;  %v8829_v19 = vrot.slane %v10596_v10, 9  ;;  %v1650_v39 = vrot.slane %v10621_v11, 5  ;;  %v1235_v20 = vrot.slane %v1234_v48, 4  ;;  %v9749_v10 = vld [vmem:[%s15289_s1 + $0x60] sm:$0xff]   ;;  %9353 = vmatpush3.bf16.msra.mxu0 %v9748_v3 }
  0xb1   : > { %v606_v24 = vor.u32 %v604_v60, %v603_v6  ;;  %v607_v12 = vrot.slane %v603_v6, 4  ;;  %v1653_v13 = vrot.slane %v10633_v47, 5  ;;  %v611_v37 = vrot.slane %v609_v5, 7  ;;  %9354 = vmatprep.subr.bf16.mxu0 %v9749_v10  ;;  %v9751_v3 = vld [vmem:[%s15289_s1 + $0x20] sm:$0xff]  }
  0xb2   : > { %v1651_v11 = vsel %vm10142_vm11, %v8829_v19, %v1650_v39  ;;  %v1652_v62 = vrot.slane %v1650_v39, 4  ;;  %v336_v33 = vsel %vm10096_vm5, 0, %v335_v29  ;;  %v1240_v47 = vsel %vm10252_vm14, %v1235_v20, %v1239_v45  ;;  %v338_v29 = vld [vmem:[#allocation2 + $0x68] sm:$0x1]  ;;  %v384_v19 = vld [vmem:[%s10080_s14 + $0x80] sm:$0xff]  ;;  %v385_v39 = vld [vmem:[%s10080_s14 + $0x88] sm:$0xff] }
  0xb3   : > { %3368 = vrot.lane.b32.xlu0 %v8940_v7, %s9962_s27  ;;  %v864_v21 = vsel %vm10134_vm10, %v606_v24, %v863_v18  ;;  %337 = vst [vmem:[#allocation2 + $0x5c] sm:$0x1] %v336_v33  ;;  %v8861_v28 = vcombine.low %v10665_v36, %v10661_v31  ;;  %v1242_v50 = vshrl.u32 %v10697_v55, 16  ;;  %v8813_v53 = vcombine.low %v1230_v14, %v1240_v47 }
  0xb4   : > { %v614_v25 = vor.u32 %v612_v0, %v611_v37  ;;  %v616_v61 = vrot.slane %v611_v37, 4  ;;  %865 = vst [vmem:[#allocation2 + $0x54] sm:$0xf] %v864_v21  ;;  %v1654_v15 = vsel %vm10142_vm11, %v1652_v62, %v1653_v13  ;;  %v1245_v23 = vshll.u32 %v10697_v55, 16  ;;  %v9752_v13 = vld [vmem:[%s15289_s1 + $0x68] sm:$0xff]   ;;  %9355 = vmatpush3.bf16.msra.mxu0 %v9751_v3 }
  0xb5   : > { %v8845_v59 = vcombine.low %v1651_v11, %v1654_v15  ;;  %v1244_v56 = vrot.slane %v1242_v50, 4  ;;  %v1251_v16 = vshll.u32 %v10705_v35, 16  ;;  %1539 = vrot.lane.b32.xlu1 %v8813_v53, %s9963_s8  ;;  %v1255_v38 = vshrl.u32 %v10705_v35, 16  ;;  %9356 = vmatprep.subr.bf16.mxu0 %v9752_v13 }
  0xb6   : > { %v615_v46 = vsel %vm10123_vm9, %v607_v12, %v614_v25  ;;  %v1261_v45 = vshll.u32 %v10711_v17, 16  ;;  %v283_v58 = vsel %vm10091_vm4, 0, %v282_v42  ;;  %v1247_v54 = vrot.slane %v1245_v23, 5 }
  0xb7   : > { %2681 = vrot.lane.b32.xlu0 %v8909_v57, %s9963_s8  ;;  %866 = vst.msk [vmem:[#allocation2 + $0x58] sm:$0xf] %vm246_vm0, %v615_v46  ;;  %v10742_v52 = vrot.slane %v1251_v16, 5  ;;  %284 = vst [vmem:[#allocation2 + $0x60] sm:$0x1] %v283_v58  ;;  %v9297_v26 = vpack.c.bf16 %v383_v8, %v383_v8  ;;  %v618_v14 = vshrl.u32 %v10658_v41, 16  ;;  %v10781_v46 = vpack.c.bf16 %v384_v19, %v384_v19 }
  0xb8   : > { %v1257_v60 = vrot.slane %v1255_v38, 4  ;;  %v1263_v18 = vrot.slane %v1261_v45, 5  ;;  %v621_v7 = vshll.u32 %v10658_v41, 16  ;;  %v8830_v48 = vrot.slane %v10697_v55, 9 }
  0xb9   : > { %v1248_v6 = vor.u32 %v1247_v54, %v1244_v56  ;;  %v620_v5 = vrot.slane %v618_v14, 7  ;;  %v626_v0 = vshrl.u32 %v9297_v26, 16  ;;  %v629_v57 = vshll.u32 %v9297_v26, 16  ;;  %1783 = vrot.lane.b32.xlu1 %v8845_v59, %s9961_s21 }
  0xba   : > { %v867_v20 = vld [vmem:[#allocation2 + $0x5c] sm:$0x1]  ;;  %v1258_v24 = vor.u32 %v1257_v60, %v10742_v52  ;;  %v1657_v12 = vrot.slane %v10705_v35, 5  ;;  %v1660_v41 = vrot.slane %v10711_v17, 5  ;;  %v339_v55 = vsel %vm10096_vm5, 0, %v338_v29  ;;  %v386_v35 = vld [vmem:[%s10080_s14 + $0x90] sm:$0xff] }
  0xbb   : > { %v2751_v42 = vld [vmem:[#allocation2 + $0x54] sm:$0xf]  ;;  %v868_v10 = vsel %vm10091_vm4, %v616_v61, %v867_v20  ;;  %v1249_v11 = vrot.slane %v1248_v6, 4  ;;  %v623_v62 = vor.u32 %v621_v7, %v620_v5  ;;  %v624_v33 = vrot.slane %v620_v5, 4  ;;  %340 = vst [vmem:[#allocation2 + $0x68] sm:$0x1] %v339_v55 }
  0xbc   : > { %v10763_v37 = vld [vmem:[#allocation2 + $0x54] sm:$0xf]  ;;  %v8957_v47 = vrot.slane %v2751_v42, 9  ;;  %869 = vst [vmem:[#allocation2 + $0x5c] sm:$0x1] %v868_v10  ;;  %v3049_v21 = vshrl.u32 %v2751_v42, 16  ;;  %v10773_v8 = vsel %vm10142_vm11, %v8830_v48, %v1657_v12  ;;  %v10783_v38 = vpack.c.bf16 %v385_v39, %v385_v39 }
  0xbd   : > { %v3052_v50 = vshll.u32 %v2751_v42, 16  ;;  %v8894_v53 = vrot.slane %v10763_v37, 9  ;;  %v1254_v25 = vsel %vm10252_vm14, %v1249_v11, %v10742_v52  ;;  %v1259_v15 = vrot.slane %v1258_v24, 4  ;;  %1976 = vrot.lane.b32.xlu1 %v8861_v28, %s9962_s27 }
  0xbe   : > { %v628_v61 = vrot.slane %v626_v0, 7  ;;  %v2752_v59 = vld [vmem:[#allocation2 + $0x58] sm:$0xf]  ;;  %v3051_v56 = vrot.slane %v3049_v21, 4  ;;  %v870_v7 = vld [vmem:[#allocation2 + $0x60] sm:$0xf] }
  0xbf   : > { %v3054_v23 = vrot.slane %v3052_v50, 5  ;;  %v10779_v16 = vld [vmem:[#allocation2 + $0x58] sm:$0xf]  ;;  %v8925_v45 = vcombine.low %v2751_v42, %v2752_v59  ;;  %v3477_v58 = vrot.slane %v2752_v59, 5  ;;  %v3058_v29 = vshll.u32 %v2752_v59, 16 }
  0xc0   : > { %v3062_v54 = vshrl.u32 %v2752_v59, 16  ;;  %v2555_v26 = vrot.slane %v10779_v16, 5  ;;  %v1264_v14 = vsel %vm10252_vm14, %v1259_v15, %v1263_v18  ;;  %v631_v60 = vor.u32 %v629_v57, %v628_v61  ;;  %v10815_v59 = vld [vmem:[#allocation2 + $0x58] sm:$0xf] }
  0xc1   : > { %v3055_v52 = vor.u32 %v3054_v23, %v3051_v56  ;;  %v3479_v31 = vrot.slane %v3477_v58, 4  ;;  %2874 = vrot.lane.b32.xlu0 %v8925_v45, %s9961_s21  ;;  %v3060_v36 = vrot.slane %v3058_v29, 5  ;;  %v3478_v48 = vsel %vm10142_vm11, %v8957_v47, %v3477_v58  ;;  %v10803_v47 = vld [vmem:[#allocation2 + $0x54] sm:$0xf] }
  0xc2   : > { %v3064_v28 = vrot.slane %v3062_v54, 4  ;;  %v10793_v5 = vsel %vm10142_vm11, %v8894_v53, %v2555_v26  ;;  %v2557_v0 = vrot.slane %v2555_v26, 4  ;;  %v8814_v19 = vcombine.low %v1254_v25, %v1264_v14  ;;  %v874_v39 = vld [vmem:[#allocation2 + $0x68] sm:$0x1]  ;;  %v9754_v29 = vld [vmem:[%s15289_s1 + $0x70] sm:$0xff]  }
  0xc3   : > { %v3056_v6 = vrot.slane %v3055_v52, 4  ;;  %v2753_v3 = vld [vmem:[#allocation2 + $0x5c] sm:$0x1]  ;;  %v632_v20 = vsel %vm10123_vm9, %v624_v33, %v631_v60  ;;  %v633_v24 = vrot.slane %v628_v61, 4  ;;  %v871_v55 = vsel %vm10134_vm10, %v623_v62, %v870_v7  ;;  %v387_v14 = vld [vmem:[%s10080_s14 + $0x98] sm:$0xff]  ;;  %v389_v60 = vld [vmem:[%s10080_s14 + $0xa8] sm:$0xff] }
  0xc4   : > { %v3065_v18 = vor.u32 %v3064_v28, %v3060_v36  ;;  %v1858_v57 = vld [vmem:[#allocation2 + $0x5c] sm:$0x1]  ;;  %v3068_v42 = vshll.u32 %v2753_v3, 16  ;;  %v3480_v10 = vrot.slane %v2753_v3, 5  ;;  %1541 = vrot.lane.b32.xlu1 %v8814_v19, %s9963_s8  ;;  %872 = vst [vmem:[#allocation2 + $0x60] sm:$0xf] %v871_v55  ;;  %v8862_v61 = vcombine.low %v10763_v37, %v10779_v16 }
  0xc5   : > { %v3061_v13 = vsel %vm10252_vm14, %v3056_v6, %v3060_v36  ;;  %v2195_v11 = vshll.u32 %v1858_v57, 16  ;;  %873 = vst.msk [vmem:[#allocation2 + $0x64] sm:$0xf] %vm246_vm0, %v632_v20  ;;  %v2558_v33 = vrot.slane %v1858_v57, 5  ;;  %v1659_v50 = vrot.slane %v1657_v12, 4  ;;  %v9753_v12 = vld [vmem:[%s15289_s1 + $0x28] sm:$0xff]  }
  0xc6   : > { %v3066_v21 = vrot.slane %v3065_v18, 4  ;;  %v875_v62 = vsel %vm10091_vm4, %v633_v24, %v874_v39  ;;  %v3070_v53 = vrot.slane %v3068_v42, 5  ;;  %v3481_v25 = vsel %vm10142_vm11, %v3479_v31, %v3480_v10  ;;  %v10827_v58 = vld [vmem:[#allocation2 + $0x5c] sm:$0x1]  ;;  %v285_v16 = vld [vmem:[#allocation2 + $0x6c] sm:$0x1]  ;;  %9357 = vmatpush3.bf16.msra.mxu0 %v9753_v12 }
  0xc7   : > { %v10811_v15 = vrot.slane %v2195_v11, 5  ;;  %876 = vst [vmem:[#allocation2 + $0x68] sm:$0x1] %v875_v62  ;;  %v8973_v56 = vcombine.low %v3478_v48, %v3481_v25  ;;  %v2559_v23 = vsel %vm10142_vm11, %v2557_v0, %v2558_v33  ;;  %v1661_v45 = vsel %vm10142_vm11, %v1659_v50, %v1660_v41  ;;  %v388_v41 = vld [vmem:[%s10080_s14 + $0xa0] sm:$0xff]  ;;  %9358 = vmatprep.subr.bf16.mxu0 %v9754_v29  ;;  %v9755_v0 = vld [vmem:[%s15289_s1 + $0x30] sm:$0xff]   ;;  %v9756_v19 = vld [vmem:[%s15289_s1 + $0x80] sm:$0xff]  }
  0xc8   : > { %v1266_v37 = vshrl.u32 %v10803_v47, 16  ;;  %v3071_v54 = vsel %vm10252_vm14, %v3066_v21, %v3070_v53  ;;  %v8910_v52 = vcombine.low %v10793_v5, %v2559_v23  ;;  %v8846_v26 = vcombine.low %v10773_v8, %v1661_v45  ;;  %9606 = vmatprep.subr.bf16.mxu1 %v9756_v19  ;;  %v9757_v33 = vld [vmem:[%s15289_s1 + $0x78] sm:$0xff]  }
  0xc9   : > { %15396 = vst [vmem:[#allocation23_spill] sm:$0xff] %v10811_v15  ;;  %v1269_v17 = vshll.u32 %v10803_v47, 16  ;;  %v8941_v7 = vcombine.low %v3061_v13, %v3071_v54  ;;  %3621 = vst.msk [vmem:[#allocation3 + $0x88] sm:$0xff] %vm1077_vm15, %v8973_v56  ;;  %v1275_v36 = vshll.u32 %v10815_v59, 16  ;;  %v1279_v28 = vshrl.u32 %v10815_v59, 16  ;;  %9607 = vmatpush3.bf16.msra.mxu1 %v9756_v19  ;;  %v9760_v19 = vld [vmem:[%s15289_s1 + $0x88] sm:$0xff]  }
  0xca   : > { %v10842_v31 = vrot.slane %v1266_v37, 4  ;;  %1785 = vrot.lane.b32.xlu1 %v8846_v26, %s9961_s21  ;;  %v1285_v8 = vshll.u32 %v10827_v58, 16  ;;  %v286_v6 = vsel %vm10091_vm4, 0, %v285_v16  ;;  %v635_v5 = vshrl.u32 %v10781_v46, 16  ;;  %9359 = vmatpush3.bf16.msra.mxu0 %v9755_v0 }
  0xcb   : > { %v1271_v48 = vrot.slane %v1269_v17, 5  ;;  %3370 = vrot.lane.b32.xlu0 %v8941_v7, %s9962_s27  ;;  %v2754_v39 = vld [vmem:[#allocation2 + $0x60] sm:$0xf]  ;;  %287 = vst [vmem:[#allocation2 + $0x6c] sm:$0x1] %v286_v6  ;;  %v10860_v57 = vpack.c.bf16 %v386_v35, %v386_v35  ;;  %v10862_v20 = vpack.c.bf16 %v387_v14, %v387_v14  ;;  %v10864_v24 = vpack.c.bf16 %v388_v41, %v388_v41 }
  0xcc   : > { %v2755_v3 = vld [vmem:[#allocation2 + $0x64] sm:$0xf]  ;;  %v10858_v18 = vld [vmem:[#allocation2 + $0x60] sm:$0xf]  ;;  %v10866_v55 = vpack.c.bf16 %v389_v60, %v389_v60  ;;  %v8958_v42 = vrot.slane %v2754_v39, 9  ;;  %v3073_v11 = vshrl.u32 %v2754_v39, 16  ;;  %9360 = vmatprep.subr.bf16.mxu0 %v9757_v33  ;;  %9608 = vmatprep.subr.bf16.mxu1 %v9760_v19 }
  0xcd   : > { %v8926_v13 = vcombine.low %v2754_v39, %v2755_v3  ;;  %v3484_v10 = vrot.slane %v2755_v3, 5  ;;  %v10868_v21 = vld [vmem:[#allocation2 + $0x64] sm:$0xf]  ;;  %v3076_v62 = vshll.u32 %v2754_v39, 16  ;;  %v3082_v53 = vshll.u32 %v2755_v3, 16  ;;  %9609 = vmatpush3.bf16.msra.mxu1 %v9760_v19 }
  0xce   : > { %v2756_v50 = vld [vmem:[#allocation2 + $0x68] sm:$0x1]  ;;  %v3086_v25 = vshrl.u32 %v2755_v3, 16  ;;  %v8895_v35 = vrot.slane %v10858_v18, 9  ;;  %v3075_v56 = vrot.slane %v3073_v11, 4  ;;  %1978 = vrot.lane.b32.xlu1 %v8862_v61, %s9962_s27  ;;  %v2562_v41 = vrot.slane %v10868_v21, 5 }
  0xcf   : > { %v3486_v12 = vrot.slane %v3484_v10, 4  ;;  %v3092_v23 = vshll.u32 %v2756_v50, 16  ;;  %v3485_v45 = vsel %vm10142_vm11, %v8958_v42, %v3484_v10  ;;  %v1861_v37 = vld [vmem:[#allocation2 + $0x68] sm:$0x1]  ;;  %2683 = vrot.lane.b32.xlu0 %v8910_v52, %s9963_s8  ;;  %v3078_v16 = vrot.slane %v3076_v62, 5  ;;  %v9759_v52 = vld [vmem:[%s15289_s1 + $0x38] sm:$0xff]  }
  0xd0   : > { %v3084_v29 = vrot.slane %v3082_v53, 5  ;;  %v3088_v54 = vrot.slane %v3086_v25, 4  ;;  %v3487_v26 = vrot.slane %v2756_v50, 5  ;;  %v2219_v14 = vshll.u32 %v1861_v37, 16  ;;  %v3634_v11 = vld [vmem:[#allocation3 + $0x10] sm:$0xff]  ;;  %9361 = vmatpush3.bf16.msra.mxu0 %v9759_v52 }
  0xd1   : > { %v3094_v17 = vrot.slane %v3092_v23, 5  ;;  %v2565_v60 = vrot.slane %v1861_v37, 5  ;;  %v3079_v7 = vor.u32 %v3078_v16, %v3075_v56  ;;  %v1272_v61 = vor.u32 %v1271_v48, %v10842_v31  ;;  %9610 = vmatprep.mubr.msk.bf16.mxu1 %vm1077_vm15, %v3634_v11  ;;  %v341_v23 = vld [vmem:[#allocation2 + $0x74] sm:$0x1]  ;;  %v10910_v37 = vld [vmem:[#allocation2 + $0x60] sm:$0xf] }
  0xd2   : > { %v3089_v6 = vor.u32 %v3088_v54, %v3084_v29  ;;  %v3488_v0 = vsel %vm10142_vm11, %v3486_v12, %v3487_v26  ;;  %v10888_v3 = vrot.slane %v2219_v14, 5  ;;  %v2563_v42 = vsel %vm10142_vm11, %v8895_v35, %v2562_v41  ;;  %v877_v54 = vld [vmem:[#allocation2 + $0x6c] sm:$0xf]  ;;  %v10930_v52 = vld [vmem:[#allocation2 + $0x68] sm:$0x1] }
  0xd3   : > { %v8974_v39 = vcombine.low %v3485_v45, %v3488_v0  ;;  %v2564_v10 = vrot.slane %v2562_v41, 4  ;;  %2876 = vrot.lane.b32.xlu0 %v8926_v13, %s9961_s21  ;;  %v3080_v33 = vrot.slane %v3079_v7, 4  ;;  %v1273_v48 = vrot.slane %v1272_v61, 4  ;;  %v10920_v7 = vpop.permute.xlu1 %1773 }
  0xd4   : > { %15397 = vst [vmem:[#allocation24_spill] sm:$0xff] %v10888_v3  ;;  %v3090_v31 = vrot.slane %v3089_v6, 4  ;;  %v1277_v50 = vrot.slane %v1275_v36, 5  ;;  %v1281_v53 = vrot.slane %v1279_v28, 4  ;;  %v1287_v25 = vrot.slane %v1285_v8, 5 }
  0xd5   : > { %3622 = vst.msk [vmem:[#allocation3 + $0xa0] sm:$0xff] %vm1077_vm15, %v8974_v39  ;;  %v2566_v62 = vsel %vm10142_vm11, %v2564_v10, %v2565_v60  ;;  %v637_v35 = vrot.slane %v635_v5, 7  ;;  %v3085_v13 = vsel %vm10252_vm14, %v3080_v33, %v3084_v29  ;;  %v638_v8 = vshll.u32 %v10781_v46, 16 }
  0xd6   : > { %v3095_v36 = vsel %vm10252_vm14, %v3090_v31, %v3094_v17  ;;  %v8911_v12 = vcombine.low %v2563_v42, %v2566_v62  ;;  %v1278_v56 = vsel %vm10252_vm14, %v1273_v48, %v1277_v50  ;;  %v1282_v45 = vor.u32 %v1281_v53, %v1277_v50  ;;  %v288_v42 = vld [vmem:[#allocation2 + $0x78] sm:$0x1] }
  0xd7   : > { %v8942_v28 = vcombine.low %v3085_v13, %v3095_v36  ;;  %v641_v5 = vrot.slane %v637_v35, 4  ;;  %v643_v16 = vshrl.u32 %v10783_v38, 16  ;;  %v646_v29 = vshll.u32 %v10783_v38, 16 }
  0xd8   : > { %v8831_v26 = vrot.slane %v10803_v47, 9  ;;  %v1664_v17 = vrot.slane %v10815_v59, 5  ;;  %v1283_v14 = vrot.slane %v1282_v45, 4  ;;  %v640_v41 = vor.u32 %v638_v8, %v637_v35  ;;  %v958_v59 = vld [vmem:[#allocation2 + $0x64] sm:$0xf]  ;;  %v10949_v8 = vpop.permute.xlu1 %2864 }
  0xd9   : > { %3372 = vrot.lane.b32.xlu0 %v8942_v28, %s9962_s27  ;;  %v1667_v60 = vrot.slane %v10827_v58, 5  ;;  %v342_v46 = vsel %vm10096_vm5, 0, %v341_v23  ;;  %v645_v6 = vrot.slane %v643_v16, 7  ;;  %v8863_v47 = vcombine.low %v10858_v18, %v10868_v21 }
  0xda   : > { %v1665_v38 = vsel %vm10142_vm11, %v8831_v26, %v1664_v17  ;;  %v1666_v0 = vrot.slane %v1664_v17, 4  ;;  %343 = vst [vmem:[#allocation2 + $0x74] sm:$0x1] %v342_v46  ;;  %v1288_v61 = vsel %vm10252_vm14, %v1283_v14, %v1287_v25  ;;  %v878_v58 = vsel %vm10134_vm10, %v640_v41, %v877_v54  ;;  %v3637_v25 = vld [vmem:[#allocation3 + $0x28] sm:$0xff]  ;;  %v10955_v26 = vpop.permute.xlu0 %2866 }
  0xdb   : > { %v1290_v19 = vshrl.u32 %v10910_v37, 16  ;;  %v1293_v39 = vshll.u32 %v10910_v37, 16  ;;  %v8815_v10 = vcombine.low %v1278_v56, %v1288_v61  ;;  %v648_v11 = vor.u32 %v646_v29, %v645_v6  ;;  %879 = vst [vmem:[#allocation2 + $0x6c] sm:$0xf] %v878_v58  ;;  %9611 = vmatmul.mubr.msk.bf16.vlgmr.msra.gmra.mrb[0].mxu1 %vm1077_vm15, %v3637_v25 }
  0xdc   : > { %v650_v33 = vrot.slane %v645_v6, 4  ;;  %v1668_v31 = vsel %vm10142_vm11, %v1666_v0, %v1667_v60  ;;  %v1299_v53 = vshll.u32 %v958_v59, 16  ;;  %v1303_v13 = vshrl.u32 %v958_v59, 16 }
  0xdd   : > { %2685 = vrot.lane.b32.xlu0 %v8911_v12, %s9963_s8  ;;  %v8847_v48 = vcombine.low %v1665_v38, %v1668_v31  ;;  %v1292_v50 = vrot.slane %v1290_v19, 4  ;;  %v1295_v62 = vrot.slane %v1293_v39, 5  ;;  %1543 = vrot.lane.b32.xlu1 %v8815_v10, %s9963_s8  ;;  %v649_v35 = vsel %vm10123_vm9, %v641_v5, %v648_v11  ;;  %v390_v39 = vld [vmem:[%s10080_s14 + $0xb0] sm:$0xff] }
  0xde   : > { %v1309_v36 = vshll.u32 %v10930_v52, 16  ;;  %v289_v56 = vsel %vm10091_vm4, 0, %v288_v42  ;;  %880 = vst.msk [vmem:[#allocation2 + $0x70] sm:$0xf] %vm246_vm0, %v649_v35  ;;  %v10945_v23 = vrot.slane %v1299_v53, 5  ;;  %v652_v28 = vshrl.u32 %v10860_v57, 16 }
  0xdf   : > { %v1296_v12 = vor.u32 %v1295_v62, %v1292_v50  ;;  %290 = vst [vmem:[#allocation2 + $0x78] sm:$0x1] %v289_v56  ;;  %v655_v45 = vshll.u32 %v10860_v57, 16  ;;  %v1305_v5 = vrot.slane %v1303_v13, 4  ;;  %v660_v29 = vshrl.u32 %v10862_v20, 16  ;;  %v10978_v62 = vpop.permute.xlu1 %1966 }
  0xe0   : > { %v10951_v16 = vrot.slane %v1309_v36, 5  ;;  %v663_v54 = vshll.u32 %v10862_v20, 16  ;;  %v654_v41 = vrot.slane %v652_v28, 7  ;;  %v8832_v60 = vrot.slane %v10910_v37, 9  ;;  %v10986_v36 = vpop.permute.xlu0 %2868  ;;  %v9809_v56 = vld [vmem:[#allocation2 + $0x4] sm:$0xf] }
  0xe1   : > { %v881_v17 = vld [vmem:[#allocation2 + $0x74] sm:$0x1]  ;;  %v1297_v14 = vrot.slane %v1296_v12, 4  ;;  %v1671_v46 = vrot.slane %v958_v59, 5  ;;  %1787 = vrot.lane.b32.xlu1 %v8847_v48, %s9961_s21  ;;  %v1306_v6 = vor.u32 %v1305_v5, %v10945_v23  ;;  %v10962_v38 = vrot.slane %v660_v29, 7  ;;  %15398 = vst [vmem:[#allocation25_spill] sm:$0xff] %v10986_v36 }
  0xe2   : > { %v882_v57 = vsel %vm10091_vm4, %v650_v33, %v881_v17  ;;  %v1674_v20 = vrot.slane %v10930_v52, 5  ;;  %v2757_v0 = vld [vmem:[#allocation2 + $0x6c] sm:$0xf]  ;;  %v657_v59 = vor.u32 %v655_v45, %v654_v41  ;;  %v658_v58 = vrot.slane %v654_v41, 4  ;;  %v9810_v12 = vld [vmem:[#allocation2] sm:$0xf] }
  0xe3   : > { %883 = vst [vmem:[#allocation2 + $0x74] sm:$0x1] %v882_v57  ;;  %v10965_v61 = vld [vmem:[#allocation2 + $0x6c] sm:$0xf]  ;;  %v1302_v37 = vsel %vm10252_vm14, %v1297_v14, %v10945_v23  ;;  %v10972_v19 = vsel %vm10142_vm11, %v8832_v60, %v1671_v46  ;;  %v8959_v42 = vrot.slane %v2757_v0, 9  ;;  %v3097_v10 = vshrl.u32 %v2757_v0, 16 }
  0xe4   : > { %v3100_v11 = vshll.u32 %v2757_v0, 16  ;;  %v8896_v52 = vrot.slane %v10965_v61, 9  ;;  %v1307_v33 = vrot.slane %v1306_v6, 4  ;;  %v665_v31 = vor.u32 %v663_v54, %v10962_v38 }
  0xe5   : > { %v667_v48 = vrot.slane %v10962_v38, 4  ;;  %v1673_v50 = vrot.slane %v1671_v46, 4  ;;  %v2758_v53 = vld [vmem:[#allocation2 + $0x70] sm:$0xf]  ;;  %v3099_v25 = vrot.slane %v3097_v10, 4  ;;  %1980 = vrot.lane.b32.xlu1 %v8863_v47, %s9962_s27  ;;  %v8792_v23 = vcombine.low %v9810_v12, %v9809_v56 }
  0xe6   : > { %v3102_v35 = vrot.slane %v3100_v11, 5  ;;  %v10984_v13 = vld [vmem:[#allocation2 + $0x70] sm:$0xf]  ;;  %v10988_v28 = vpack.c.bf16 %v390_v39, %v390_v39  ;;  %v8927_v45 = vcombine.low %v2757_v0, %v2758_v53  ;;  %v3491_v5 = vrot.slane %v2758_v53, 5  ;;  %v884_v57 = vld [vmem:[#allocation2 + $0x78] sm:$0xf] }
  0xe7   : > { %v3106_v29 = vshll.u32 %v2758_v53, 16  ;;  %v3110_v54 = vshrl.u32 %v2758_v53, 16  ;;  %v2569_v14 = vrot.slane %v10984_v13, 5  ;;  %v1312_v18 = vsel %vm10252_vm14, %v1307_v33, %v10951_v16  ;;  %1078 = vst.msk [vmem:[#allocation3] sm:$0xff] %vm1077_vm15, %v8792_v23  ;;  %v11014_v12 = vld [vmem:[#allocation2 + $0x6c] sm:$0xf]  ;;  %v11016_v23 = vpop.permute.xlu0 %1529 }
  0xe8   : > { %v3103_v17 = vor.u32 %v3102_v35, %v3099_v25  ;;  %v666_v21 = vsel %vm10123_vm9, %v658_v58, %v665_v31  ;;  %v3493_v47 = vrot.slane %v3491_v5, 4  ;;  %2878 = vrot.lane.b32.xlu0 %v8927_v45, %s9961_s21  ;;  %v3492_v46 = vsel %vm10142_vm11, %v8959_v42, %v3491_v5  ;;  %v344_v25 = vld [vmem:[#allocation2 + $0x80] sm:$0x1]  ;;  %v11005_v35 = vpop.permute.xlu1 %1968  ;;  %1578 = vst.msk [vmem:[#allocation3] sm:$0xff] %vm1577_vm1, %v11016_v23 }
  0xe9   : > { %v3108_v41 = vrot.slane %v3106_v29, 5  ;;  %v3112_v60 = vrot.slane %v3110_v54, 4  ;;  %887 = vst.msk [vmem:[#allocation2 + $0x7c] sm:$0xf] %vm246_vm0, %v666_v21  ;;  %v11003_v16 = vsel %vm10142_vm11, %v8896_v52, %v2569_v14  ;;  %v2571_v58 = vrot.slane %v2569_v14, 4  ;;  %v391_v14 = vld [vmem:[%s10080_s14 + $0xb8] sm:$0xff] }
  0xea   : > { %v2759_v6 = vld [vmem:[#allocation2 + $0x74] sm:$0x1]  ;;  %v3104_v0 = vrot.slane %v3103_v17, 4  ;;  %v8816_v10 = vcombine.low %v1302_v37, %v1312_v18  ;;  %v885_v52 = vsel %vm10134_vm10, %v657_v59, %v884_v57  ;;  %v1675_v37 = vsel %vm10142_vm11, %v1673_v50, %v1674_v20  ;;  %v11022_v17 = vld [vmem:[#allocation2 + $0x70] sm:$0xf] }
  0xeb   : > { %v1864_v39 = vld [vmem:[#allocation2 + $0x74] sm:$0x1]  ;;  %v3113_v11 = vor.u32 %v3112_v60, %v3108_v41  ;;  %v3116_v33 = vshll.u32 %v2759_v6, 16  ;;  %v3494_v31 = vrot.slane %v2759_v6, 5  ;;  %886 = vst [vmem:[#allocation2 + $0x78] sm:$0xf] %v885_v52  ;;  %v8848_v20 = vcombine.low %v10972_v19, %v1675_v37 }
  0xec   : > { %v2243_v53 = vshll.u32 %v1864_v39, 16  ;;  %v3109_v42 = vsel %vm10252_vm14, %v3104_v0, %v3108_v41  ;;  %v2572_v56 = vrot.slane %v1864_v39, 5  ;;  %1545 = vrot.lane.b32.xlu1 %v8816_v10, %s9963_s8  ;;  %v345_v50 = vsel %vm10096_vm5, 0, %v344_v25 }
  0xed   : > { %v3114_v45 = vrot.slane %v3113_v11, 4  ;;  %v3118_v5 = vrot.slane %v3116_v33, 5  ;;  %v3495_v29 = vsel %vm10142_vm11, %v3493_v47, %v3494_v31  ;;  %346 = vst [vmem:[#allocation2 + $0x80] sm:$0x1] %v345_v50  ;;  %v8864_v41 = vcombine.low %v10965_v61, %v10984_v13  ;;  %v11045_v13 = vld [vmem:[#allocation2 + $0x74] sm:$0x1]  ;;  %v11047_v11 = vpop.permute.xlu1 %1970 }
  0xee   : > { %v11020_v54 = vrot.slane %v2243_v53, 5  ;;  %v8975_v18 = vcombine.low %v3492_v46, %v3495_v29  ;;  %v2573_v59 = vsel %vm10142_vm11, %v2571_v58, %v2572_v56  ;;  %v1314_v60 = vshrl.u32 %v11014_v12, 16  ;;  %15400 = vst [vmem:[#allocation27_spill] sm:$0xff] %v11047_v11 }
  0xef   : > { %v3119_v21 = vsel %vm10252_vm14, %v3114_v45, %v3118_v5  ;;  %v8912_v47 = vcombine.low %v11003_v16, %v2573_v59  ;;  %v1317_v6 = vshll.u32 %v11014_v12, 16  ;;  %v1323_v0 = vshll.u32 %v11022_v17, 16 }
  0xf0   : > { %15399 = vst [vmem:[#allocation26_spill] sm:$0xff] %v11020_v54  ;;  %v8943_v46 = vcombine.low %v3109_v42, %v3119_v21  ;;  %3623 = vst.msk [vmem:[#allocation3 + $0xb8] sm:$0xff] %vm1077_vm15, %v8975_v18  ;;  %v2761_v57 = vld [vmem:[#allocation2 + $0x7c] sm:$0xf]  ;;  %1789 = vrot.lane.b32.xlu1 %v8848_v20, %s9961_s21  ;;  %v11042_v39 = vpack.c.bf16 %v391_v14, %v391_v14  ;;  %v1316_v33 = vrot.slane %v1314_v60, 4  ;;  %v1327_v25 = vshrl.u32 %v11022_v17, 16  ;;  %v11051_v42 = vpop.permute.xlu0 %2671 }
  0xf1   : > { %v11038_v19 = vld [vmem:[#allocation2 + $0x7c] sm:$0xf]  ;;  %v3498_v16 = vrot.slane %v2761_v57, 5  ;;  %v3130_v58 = vshll.u32 %v2761_v57, 16  ;;  %v3134_v10 = vshrl.u32 %v2761_v57, 16  ;;  %v1319_v31 = vrot.slane %v1317_v6, 5 }
  0xf2   : > { %v2576_v61 = vrot.slane %v11038_v19, 5  ;;  %3374 = vrot.lane.b32.xlu0 %v8943_v46, %s9962_s27  ;;  %v1325_v53 = vrot.slane %v1323_v0, 5  ;;  %v2760_v5 = vld [vmem:[#allocation2 + $0x78] sm:$0xf]  ;;  %v1329_v18 = vrot.slane %v1327_v25, 4  ;;  %v1333_v59 = vshll.u32 %v11045_v13, 16 }
  0xf3   : > { %v11053_v56 = vrot.slane %v3498_v16, 4  ;;  %v11055_v52 = vrot.slane %v3130_v58, 5  ;;  %v3136_v37 = vrot.slane %v3134_v10, 4  ;;  %v11060_v29 = vld [vmem:[#allocation2 + $0x78] sm:$0xf]  ;;  %v1320_v14 = vor.u32 %v1319_v31, %v1316_v33 }
  0xf4   : > { %v11057_v45 = vrot.slane %v2576_v61, 4  ;;  %1982 = vrot.lane.b32.xlu1 %v8864_v41, %s9962_s27  ;;  %v8928_v50 = vcombine.low %v2760_v5, %v2761_v57  ;;  %v8960_v21 = vrot.slane %v2760_v5, 9  ;;  %v3121_v60 = vshrl.u32 %v2760_v5, 16  ;;  %v888_v6 = vld [vmem:[#allocation2 + $0x80] sm:$0x1]  ;;  %v3640_v20 = vld [vmem:[#allocation3 + $0x40] sm:$0xff] }
  0xf5   : > { %v3124_v46 = vshll.u32 %v2760_v5, 16  ;;  %v3137_v0 = vor.u32 %v3136_v37, %v11055_v52  ;;  %v8897_v41 = vrot.slane %v11060_v29, 9  ;;  %v1321_v58 = vrot.slane %v1320_v14, 4  ;;  %v291_v33 = vld [vmem:[#allocation2 + $0x84] sm:$0x1]  ;;  %v3643_v37 = vld [vmem:[#allocation3 + $0x58] sm:$0xff]  ;;  %9614 = vmatprep.mubr.msk.bf16.mxu1 %vm1077_vm15, %v3640_v20 }
  0xf6   : > { %2687 = vrot.lane.b32.xlu0 %v8912_v47, %s9963_s8  ;;  %v1330_v10 = vor.u32 %v1329_v18, %v1325_v53  ;;  %v889_v31 = vsel %vm10091_vm4, %v667_v48, %v888_v6  ;;  %v3123_v25 = vrot.slane %v3121_v60, 4  ;;  %v11074_v5 = vsel %vm10142_vm11, %v8960_v21, %v3498_v16  ;;  %v11076_v47 = vpop.permute.xlu1 %1775  ;;  %v11086_v18 = vpop.permute.xlu0 %2673  ;;  %v347_v6 = vld [vmem:[#allocation2 + $0x8c] sm:$0x1]  ;;  %9615 = vmatmul.mubr.msk.bf16.gmra.mrb[4].mxu1 %vm1077_vm15, %v3643_v37  ;;  %v11130_v51 = vld [vmem:[#allocation2 + $0x7c] sm:$0xf] }
  0xf7   : > { %v3126_v57 = vrot.slane %v3124_v46, 5  ;;  %890 = vst [vmem:[#allocation2 + $0x80] sm:$0x1] %v889_v31  ;;  %v11078_v54 = vrot.slane %v3137_v0, 4  ;;  %v11082_v14 = vsel %vm10142_vm11, %v8897_v41, %v2576_v61  ;;  %v1326_v38 = vsel %vm10252_vm14, %v1321_v58, %v1325_v53 }
  0xf8   : > { %v1331_v48 = vrot.slane %v1330_v10, 4  ;;  %v1335_v21 = vrot.slane %v1333_v59, 5  ;;  %v292_v60 = vsel %vm10091_vm4, 0, %v291_v33  ;;  %v669_v46 = vshrl.u32 %v10864_v24, 16 }
  0xf9   : > { %v3127_v16 = vor.u32 %v3126_v57, %v3123_v25  ;;  %293 = vst [vmem:[#allocation2 + $0x84] sm:$0x1] %v292_v60  ;;  %v672_v61 = vshll.u32 %v10864_v24, 16  ;;  %v677_v53 = vshrl.u32 %v10866_v55, 16  ;;  %v680_v0 = vshll.u32 %v10866_v55, 16 }
  0xfa   : > { %2880 = vrot.lane.b32.xlu0 %v8928_v50, %s9961_s21  ;;  %v8833_v20 = vrot.slane %v11014_v12, 9  ;;  %v1336_v41 = vsel %vm10252_vm14, %v1331_v48, %v1335_v21  ;;  %v671_v58 = vrot.slane %v669_v46, 7  ;;  %v1678_v10 = vrot.slane %v11022_v17, 5  ;;  %v11109_v37 = vpop.permute.xlu1 %1777  ;;  %v11116_v21 = vpop.permute.xlu0 %2675  ;;  %v15403_v46 = vld [vmem:[#allocation18_spill] sm:$0xff] }
  0xfb   : > { %v3128_v59 = vrot.slane %v3127_v16, 4  ;;  %v8817_v33 = vcombine.low %v1326_v38, %v1336_v41  ;;  %v679_v31 = vrot.slane %v677_v53, 7  ;;  %v1681_v50 = vrot.slane %v11045_v13, 5  ;;  %15401 = vst [vmem:[#allocation28_spill] sm:$0xff] %v11109_v37  ;;  %v11114_v16 = vld [vmem:[#allocation2 + $0x78] sm:$0xf] }
  0xfc   : > { %v348_v24 = vsel %vm10096_vm5, 0, %v347_v6  ;;  %v674_v25 = vor.u32 %v672_v61, %v671_v58  ;;  %v675_v12 = vrot.slane %v671_v58, 4  ;;  %v1679_v57 = vsel %vm10142_vm11, %v8833_v20, %v1678_v10  ;;  %15402 = vst [vmem:[#allocation29_spill] sm:$0xff] %v11116_v21  ;;  %v15404_v61 = vld [vmem:[#allocation10_spill] sm:$0xff]  ;;  %v15405_v53 = vld [vmem:[#allocation11_spill] sm:$0xff]  ;;  %v15407_v41 = vld [vmem:[#allocation13_spill] sm:$0xff] }
  0xfd   : > { %v3133_v55 = vsel %vm10252_vm14, %v3128_v59, %v11055_v52  ;;  %349 = vst [vmem:[#allocation2 + $0x8c] sm:$0x1] %v348_v24  ;;  %1547 = vrot.lane.b32.xlu1 %v8817_v33, %s9963_s8  ;;  %v682_v17 = vor.u32 %v680_v0, %v679_v31  ;;  %v684_v38 = vrot.slane %v679_v31, 4  ;;  %v1680_v13 = vrot.slane %v1678_v10, 4  ;;  %v15406_v59 = vld [vmem:[#allocation12_spill] sm:$0xff]  ;;  %v15408_v58 = vld [vmem:[#allocation14_spill] sm:$0xff] }
  0xfe   : > { %v8865_v48 = vcombine.low %v11060_v29, %v11038_v19  ;;  %v2762_v52 = vld [vmem:[#allocation2 + $0x80] sm:$0x1]  ;;  %v15409_v10 = vld [vmem:[#allocation15_spill] sm:$0xff]  ;;  %v1338_v20 = vshrl.u32 %v11114_v16, 16  ;;  %v1341_v0 = vshll.u32 %v11114_v16, 16  ;;  %vm1821_vm2 = vcmask 785920  }
  0xff   : > { %v1867_v60 = vld [vmem:[#allocation2 + $0x80] sm:$0x1]  ;;  %v3140_v31 = vshll.u32 %v2762_v52, 16  ;;  %v3501_v19 = vrot.slane %v2762_v52, 5  ;;  %v683_v3 = vsel %vm10123_vm9, %v675_v12, %v682_v17  ;;  %v1682_v6 = vsel %vm10142_vm11, %v1680_v13, %v1681_v50  ;;  %1822 = vst.msk [vmem:[#allocation3] sm:$0xff] %vm1821_vm2, %v10920_v7 }
 0x100   : > { %v2267_v29 = vshll.u32 %v1867_v60, 16  ;;  %v2579_v24 = vrot.slane %v1867_v60, 5  ;;  %v891_v15 = vld [vmem:[#allocation2 + $0x84] sm:$0xf]  ;;  %894 = vst.msk [vmem:[#allocation2 + $0x88] sm:$0xf] %vm246_vm0, %v683_v3 }
 0x101   : > { %v3142_v43 = vrot.slane %v3140_v31, 5  ;;  %v3502_v52 = vsel %vm10142_vm11, %v11053_v56, %v3501_v19  ;;  %v11143_v50 = vld [vmem:[#allocation2 + $0x80] sm:$0x1]  ;;  %v892_v60 = vsel %vm10134_vm10, %v674_v25, %v891_v15  ;;  %v8849_v31 = vcombine.low %v1679_v57, %v1682_v6  ;;  %v11149_v56 = vpop.permute.xlu1 %1531 }
 0x102   : > { %v11137_v33 = vrot.slane %v2267_v29, 5  ;;  %v2580_v12 = vsel %vm10142_vm11, %v11057_v45, %v2579_v24  ;;  %v8976_v17 = vcombine.low %v11074_v5, %v3502_v52  ;;  %893 = vst [vmem:[#allocation2 + $0x84] sm:$0xf] %v892_v60  ;;  %v1340_v3 = vrot.slane %v1338_v20, 4  ;;  %v11155_v5 = vpop.permute.xlu0 %2677 }
 0x103   : > { %v8913_v13 = vcombine.low %v11082_v14, %v2580_v12  ;;  %v3143_v19 = vsel %vm10252_vm14, %v11078_v54, %v3142_v43  ;;  %v1343_v29 = vrot.slane %v1341_v0, 5  ;;  %v1347_v24 = vshll.u32 %v11130_v51, 16  ;;  %15411 = vst [vmem:[#allocation10_spill] sm:$0xff] %v11155_v5  ;;  %1791 = vrot.lane.b32.xlu1 %v8849_v31, %s9961_s21 }
 0x104   : > { %15410 = vst [vmem:[#allocation18_spill] sm:$0xff] %v11137_v33  ;;  %v895_v45 = vld [vmem:[#allocation2 + $0x8c] sm:$0x1]  ;;  %v8944_v14 = vcombine.low %v3133_v55, %v3143_v19  ;;  %3624 = vst.msk [vmem:[#allocation3 + $0xd0] sm:$0xff] %vm1077_vm15, %v8976_v17  ;;  %v1351_v25 = vshrl.u32 %v11130_v51, 16  ;;  %v1357_v43 = vshll.u32 %v11143_v50, 16 }
 0x105   : > { %v896_v15 = vsel %vm10091_vm4, %v684_v38, %v895_v45  ;;  %v1344_v54 = vor.u32 %v1343_v29, %v1340_v3  ;;  %v11163_v57 = vrot.slane %v1347_v24, 5  ;;  %vm2014_vm3 = vcmask 1048320   ;;  %v392_v17 = vld [vmem:[%s10080_s14 + $0xc0] sm:$0xff]  ;;  %v15412_v19 = vld [vmem:[#allocation16_spill] sm:$0xff]  ;;  %v15413_v45 = vld [vmem:[#allocation17_spill] sm:$0xff]  ;;  %v11190_v3 = vpop.permute.xlu1 %1533 }
 0x106   : > { %897 = vst [vmem:[#allocation2 + $0x8c] sm:$0x1] %v896_v15  ;;  %3376 = vrot.lane.b32.xlu0 %v8944_v14, %s9962_s27  ;;  %v1353_v55 = vrot.slane %v1351_v25, 4  ;;  %v11166_v6 = vrot.slane %v1357_v43, 5  ;;  %v295_v38 = vsel %vm10091_vm4, 0, %v294_v63  ;;  %v686_v0 = vshrl.u32 %v10988_v28, 16  ;;  %v11193_v15 = vpop.permute.xlu0 %3360 }
 0x107   : > { %v11172_v20 = vrot.slane %v1344_v54, 4  ;;  %296 = vst [vmem:[#allocation2 + $0x90] sm:$0x1] %v295_v38  ;;  %v689_v52 = vshll.u32 %v10988_v28, 16  ;;  %v2764_v60 = vld [vmem:[#allocation2 + $0x88] sm:$0xf]  ;;  %1984 = vrot.lane.b32.xlu1 %v8865_v48, %s9962_s27  ;;  %v11204_v38 = vpack.c.bf16 %v392_v17, %v392_v17 }
 0x108   : > { %v11181_v23 = vld [vmem:[#allocation2 + $0x88] sm:$0xf]  ;;  %v1354_v63 = vor.u32 %v1353_v55, %v11163_v57  ;;  %2015 = vst.msk [vmem:[#allocation3] sm:$0xff] %vm2014_vm3, %v10978_v62  ;;  %15414 = vst [vmem:[#allocation11_spill] sm:$0xff] %v11190_v3  ;;  %v3505_v29 = vrot.slane %v2764_v60, 5  ;;  %v3154_v24 = vshll.u32 %v2764_v60, 16 }
 0x109   : > { %v3158_v14 = vshrl.u32 %v2764_v60, 16  ;;  %v2583_v48 = vrot.slane %v11181_v23, 5  ;;  %v2763_v25 = vld [vmem:[#allocation2 + $0x84] sm:$0xf]  ;;  %v1350_v43 = vsel %vm10252_vm14, %v11172_v20, %v11163_v57  ;;  %v11202_v55 = vrot.slane %v686_v0, 7  ;;  %15415 = vst [vmem:[#allocation12_spill] sm:$0xff] %v11204_v38  ;;  %v11207_v11 = vpop.permute.xlu1 %1535 }
 0x10a   : > { %2689 = vrot.lane.b32.xlu0 %v8913_v13, %s9963_s8  ;;  %v11196_v62 = vld [vmem:[#allocation2 + $0x84] sm:$0xf]  ;;  %v1355_v54 = vrot.slane %v1354_v63, 4  ;;  %v8929_v28 = vcombine.low %v2763_v25, %v2764_v60  ;;  %v8961_v31 = vrot.slane %v2763_v25, 9  ;;  %v3507_v7 = vrot.slane %v3505_v29, 4  ;;  %15416 = vst [vmem:[#allocation13_spill] sm:$0xff] %v11207_v11  ;;  %v11218_v38 = vpop.permute.xlu0 %3362 }
 0x10b   : > { %v3145_v12 = vshrl.u32 %v2763_v25, 16  ;;  %v3148_v5 = vshll.u32 %v2763_v25, 16  ;;  %v3156_v13 = vrot.slane %v3154_v24, 5  ;;  %v3160_v36 = vrot.slane %v3158_v14, 4 }
 0x10c   : > { %v8898_v21 = vrot.slane %v11196_v62, 9  ;;  %v3506_v57 = vsel %vm10142_vm11, %v8961_v31, %v3505_v29  ;;  %vm8108_vm6 = vcmask 1044484   ;;  %vm8111_vm7 = vcmask 1045509  }
 0x10d   : > { %v2765_v33 = vld [vmem:[#allocation2 + $0x8c] sm:$0x1]  ;;  %v3147_v40 = vrot.slane %v3145_v12, 4  ;;  %v3150_v17 = vrot.slane %v3148_v5, 5  ;;  %v3161_v60 = vor.u32 %v3160_v36, %v3156_v13  ;;  %v2585_v12 = vrot.slane %v2583_v48, 4 }
 0x10e   : > { %v3164_v37 = vshll.u32 %v2765_v33, 16  ;;  %v3508_v20 = vrot.slane %v2765_v33, 5  ;;  %v1870_v0 = vld [vmem:[#allocation2 + $0x8c] sm:$0x1]  ;;  %2882 = vrot.lane.b32.xlu0 %v8929_v28, %s9961_s21  ;;  %v11214_v24 = vsel %vm10142_vm11, %v8898_v21, %v2583_v48  ;;  %v898_v5 = vld [vmem:[#allocation2 + $0x90] sm:$0xf]  ;;  %v691_v21 = vor.u32 %v689_v52, %v11202_v55 }
 0x10f   : > { %v2291_v63 = vshll.u32 %v1870_v0, 16  ;;  %v2586_v11 = vrot.slane %v1870_v0, 5  ;;  %v3151_v31 = vor.u32 %v3150_v17, %v3147_v40  ;;  %v3162_v33 = vrot.slane %v3161_v60, 4  ;;  %v350_v28 = vld [vmem:[#allocation2 + $0x98] sm:$0x1]  ;;  %v3646_v48 = vld [vmem:[#allocation3 + $0x70] sm:$0xff]  ;;  %v11233_v17 = vpop.permute.xlu1 %1779 }
 0x110   : > { %v3166_v14 = vrot.slane %v3164_v37, 5  ;;  %v3509_v25 = vsel %vm10142_vm11, %v3507_v7, %v3508_v20  ;;  %v1360_v37 = vsel %vm10252_vm14, %v1355_v54, %v11166_v6  ;;  %v692_v7 = vrot.slane %v11202_v55, 4  ;;  %v3649_v20 = vld [vmem:[#allocation3 + $0x88] sm:$0xff]  ;;  %9618 = vmatprep.mubr.msk.bf16.mxu1 %vm1077_vm15, %v3646_v48 }
 0x111   : > { %v8977_v29 = vcombine.low %v3506_v57, %v3509_v25  ;;  %v11220_v3 = vrot.slane %v2291_v63, 5  ;;  %v2587_v36 = vsel %vm10142_vm11, %v2585_v12, %v2586_v11  ;;  %v3152_v40 = vrot.slane %v3151_v31, 4  ;;  %9619 = vmatmul.mubr.msk.bf16.gmra.mrb[8].mxu1 %vm1077_vm15, %v3649_v20 }
 0x112   : > { %v3167_v57 = vsel %vm10252_vm14, %v3162_v33, %v3166_v14  ;;  %v8914_v0 = vcombine.low %v11214_v24, %v2587_v36  ;;  %v8818_v11 = vcombine.low %v1350_v43, %v1360_v37  ;;  %v15417_v6 = vshrl.u32 %v11042_v39, 16 }
 0x113   : > { %3625 = vst.msk [vmem:[#allocation3 + $0xe8] sm:$0xff] %vm1077_vm15, %v8977_v29  ;;  %v899_v54 = vsel %vm10134_vm10, %v691_v21, %v898_v5  ;;  %v1685_v55 = vrot.slane %v11130_v51, 5  ;;  %v1688_v60 = vrot.slane %v11143_v50, 5  ;;  %v3157_v43 = vsel %vm10252_vm14, %v3152_v40, %v3156_v13  ;;  %v11268_v29 = vpop.permute.xlu0 %3364 }
 0x114   : > { %v11238_v52 = vrot.slane %v15417_v6, 7  ;;  %1549 = vrot.lane.b32.xlu1 %v8818_v11, %s9963_s8  ;;  %900 = vst [vmem:[#allocation2 + $0x90] sm:$0xf] %v899_v54  ;;  %v15418_v63 = vor.u32 %v10288_v34, %v10286_v22  ;;  %v15419_v14 = vor.u32 %v15403_v46, %v10295_v9  ;;  %v351_v51 = vsel %vm10096_vm5, 0, %v350_v28  ;;  %v11264_v34 = vld [vmem:[#allocation2 + $0x84] sm:$0xf] }
 0x115   : > { %v8945_v50 = vcombine.low %v3157_v43, %v3167_v57  ;;  %v15420_v12 = vshll.u32 %v11042_v39, 16  ;;  %v15421_v33 = vrot.slane %v11114_v16, 9  ;;  %352 = vst [vmem:[#allocation2 + $0x98] sm:$0x1] %v351_v51  ;;  %v11266_v46 = vld [vmem:[#allocation2 + $0x88] sm:$0xf]  ;;  %v8866_v36 = vcombine.low %v11196_v62, %v11181_v23 }
 0x116   : > { %v2039_v24 = vrot.slane %v15418_v63, 4  ;;  %v2049_v25 = vrot.slane %v15419_v14, 4  ;;  %v701_v13 = vrot.slane %v11238_v52, 4  ;;  %v1687_v5 = vrot.slane %v1685_v55, 4  ;;  %v11290_v23 = vld [vmem:[#allocation2 + $0x8c] sm:$0x1] }
 0x117   : > { %v699_v31 = vor.u32 %v15420_v12, %v11238_v52  ;;  %v1686_v22 = vsel %vm10142_vm11, %v15421_v33, %v1685_v55  ;;  %3378 = vrot.lane.b32.xlu0 %v8945_v50, %s9962_s27  ;;  %v15422_v28 = vor.u32 %v15405_v53, %v15404_v61  ;;  %v1362_v62 = vshrl.u32 %v11264_v34, 16  ;;  %v393_v61 = vld [vmem:[%s10080_s14 + $0xc8] sm:$0xff]  ;;  %v11296_v53 = vpop.permute.xlu1 %1972  ;;  %v394_v43 = vld [vmem:[%s10080_s14 + $0xd0] sm:$0xff]  ;;  %v11322_v50 = vpop.permute.xlu0 %2870 }
 0x118   : > { %v2044_v39 = vsel %vm10252_vm14, %v2039_v24, %v10295_v9  ;;  %v2054_v16 = vsel %vm10252_vm14, %v2049_v25, %v10414_v30  ;;  %v15423_v9 = vor.u32 %v15407_v41, %v15406_v59  ;;  %v1689_v30 = vsel %vm10142_vm11, %v1687_v5, %v1688_v60  ;;  %v9811_v14 = vld [vmem:[#allocation2 + $0xc] sm:$0xf]  ;;  %v9812_v25 = vld [vmem:[#allocation2 + $0x10] sm:$0xf] }
 0x119   : > { %v700_v37 = vsel %vm10123_vm9, %v692_v7, %v699_v31  ;;  %v8872_v21 = vcombine.low %v2044_v39, %v2054_v16  ;;  %v2063_v48 = vrot.slane %v15422_v28, 4  ;;  %v1365_v7 = vshll.u32 %v11264_v34, 16 }
 0x11a   : > { %v2073_v20 = vrot.slane %v15423_v9, 4  ;;  %901 = vst.msk [vmem:[#allocation2 + $0x94] sm:$0xf] %vm246_vm0, %v700_v37  ;;  %v1371_v40 = vshll.u32 %v11266_v46, 16  ;;  %v8850_v57 = vcombine.low %v1686_v22, %v1689_v30  ;;  %v1375_v6 = vshrl.u32 %v11266_v46, 16  ;;  %v3652_v37 = vld [vmem:[#allocation3 + $0xa0] sm:$0xff] }
 0x11b   : > { %2479 = vst.msk [vmem:[#allocation3 + $0x8] sm:$0xff] %vm1077_vm15, %v8872_v21  ;;  %v2068_v41 = vsel %vm10252_vm14, %v2063_v48, %v15406_v59  ;;  %v1364_v54 = vrot.slane %v1362_v62, 4  ;;  %v1367_v55 = vrot.slane %v1365_v7, 5  ;;  %2691 = vrot.lane.b32.xlu0 %v8914_v0, %s9963_s8  ;;  %v11312_v63 = vld [vmem:[#allocation2 + $0x90] sm:$0xf]  ;;  %v11320_v24 = vpack.c.bf16 %v393_v61, %v393_v61  ;;  %9622 = vmatprep.mubr.msk.bf16.mxu1 %vm1077_vm15, %v3652_v37 }
 0x11c   : > { %v2078_v11 = vsel %vm10252_vm14, %v2073_v20, %v10426_v4  ;;  %2719 = vst.msk [vmem:[#allocation3 + $0x8] sm:$0xff] %vm1577_vm1, %v11051_v42  ;;  %v11308_v60 = vrot.slane %v1371_v40, 5  ;;  %1793 = vrot.lane.b32.xlu1 %v8850_v57, %s9961_s21  ;;  %v11317_v4 = vld [vmem:[#allocation2 + $0x90] sm:$0xf]  ;;  %v1377_v59 = vrot.slane %v1375_v6, 4  ;;  %v1381_v42 = vshll.u32 %v11290_v23, 16  ;;  %v11347_v20 = vpop.permute.xlu1 %1537 }
 0x11d   : > { %v8873_v52 = vcombine.low %v2068_v41, %v2078_v11  ;;  %2912 = vst.msk [vmem:[#allocation3 + $0x8] sm:$0xff] %vm1821_vm2, %v10949_v8  ;;  %v8793_v51 = vcombine.low %v9811_v14, %v9812_v25  ;;  %v8962_v0 = vrot.slane %v11312_v63, 9  ;;  %v902_v12 = vld [vmem:[#allocation2 + $0x98] sm:$0x1]  ;;  %v3169_v31 = vshrl.u32 %v11312_v63, 16  ;;  %v3655_v21 = vld [vmem:[#allocation3 + $0xb8] sm:$0xff] }
 0x11e   : > { %v3172_v33 = vshll.u32 %v11312_v63, 16  ;;  %v8899_v8 = vrot.slane %v11317_v4, 9  ;;  %3408 = vst.msk [vmem:[#allocation3 + $0x8] sm:$0xff] %vm2014_vm3, %v11193_v15  ;;  %v903_v22 = vsel %vm10091_vm4, %v701_v13, %v902_v12  ;;  %v1368_v5 = vor.u32 %v1367_v55, %v1364_v54  ;;  %9623 = vmatmul.mubr.msk.bf16.gmra.mrb[12].mxu1 %vm1077_vm15, %v3655_v21  ;;  %v297_v6 = vld [vmem:[#allocation2 + $0x9c] sm:$0x1]  ;;  %v15427_v25 = vld [vmem:[#allocation28_spill] sm:$0xff] }
 0x11f   : > { %2480 = vst.msk [vmem:[#allocation3 + $0x20] sm:$0xff] %vm1077_vm15, %v8873_v52  ;;  %v1378_v39 = vor.u32 %v1377_v59, %v11308_v60  ;;  %v1383_v16 = vrot.slane %v1381_v42, 5  ;;  %1079 = vst.msk [vmem:[#allocation3 + $0x18] sm:$0xff] %vm1077_vm15, %v8793_v51  ;;  %v3171_v28 = vrot.slane %v3169_v31, 4  ;;  %v15424_v15 = vor.u32 %v15409_v10, %v15408_v58  ;;  %v9813_v58 = vld [vmem:[#allocation2 + $0x18] sm:$0xf]  ;;  %v11370_v52 = vpop.permute.xlu0 %3366 }
 0x120   : > { %2720 = vst.msk [vmem:[#allocation3 + $0x20] sm:$0xff] %vm1577_vm1, %v11086_v18  ;;  %904 = vst [vmem:[#allocation2 + $0x98] sm:$0x1] %v903_v22  ;;  %v3174_v48 = vrot.slane %v3172_v33, 5  ;;  %v15425_v18 = vor.u32 %v15413_v45, %v15412_v19  ;;  %1986 = vrot.lane.b32.xlu1 %v8866_v36, %s9962_s27  ;;  %v9814_v10 = vld [vmem:[#allocation2 + $0x1c] sm:$0xf] }
 0x121   : > { %2913 = vst.msk [vmem:[#allocation3 + $0x20] sm:$0xff] %vm1821_vm2, %v10955_v26  ;;  %v2087_v13 = vrot.slane %v15424_v15, 4  ;;  %v2767_v30 = vld [vmem:[#allocation2 + $0x94] sm:$0xf]  ;;  %v1369_v26 = vrot.slane %v1368_v5, 4  ;;  %v1379_v7 = vrot.slane %v1378_v39, 4  ;;  %v8794_v45 = vcombine.low %v9813_v58, %v9814_v10  ;;  %v11395_v39 = vpop.permute.xlu1 %1781 }
 0x122   : > { %v2097_v9 = vrot.slane %v15425_v18, 4  ;;  %1579 = vst.msk [vmem:[#allocation3 + $0x18] sm:$0xff] %vm1577_vm1, %v11149_v56  ;;  %v11351_v62 = vld [vmem:[#allocation2 + $0x94] sm:$0xf]  ;;  %v11357_v56 = vpack.c.bf16 %v394_v43, %v394_v43  ;;  %v8930_v40 = vcombine.low %v11312_v63, %v2767_v30  ;;  %v3512_v36 = vrot.slane %v2767_v30, 5  ;;  %v15426_v63 = vld [vmem:[#allocation11_spill] sm:$0xff] }
 0x123   : > { %1823 = vst.msk [vmem:[#allocation3 + $0x18] sm:$0xff] %vm1821_vm2, %v11076_v47  ;;  %v3175_v61 = vor.u32 %v3174_v48, %v3171_v28  ;;  %v3178_v57 = vshll.u32 %v2767_v30, 16  ;;  %v3182_v41 = vshrl.u32 %v2767_v30, 16  ;;  %v2590_v47 = vrot.slane %v11351_v62, 5  ;;  %v15428_v31 = vld [vmem:[#allocation19_spill] sm:$0xff]  ;;  %v15430_v28 = vld [vmem:[#allocation12_spill] sm:$0xff] }
 0x124   : > { %3409 = vst.msk [vmem:[#allocation3 + $0x20] sm:$0xff] %vm2014_vm3, %v11218_v38  ;;  %2016 = vst.msk [vmem:[#allocation3 + $0x18] sm:$0xff] %vm2014_vm3, %v11005_v35  ;;  %v1374_v11 = vsel %vm10252_vm14, %v1369_v26, %v11308_v60  ;;  %v1384_v38 = vsel %vm10252_vm14, %v1379_v7, %v1383_v16  ;;  %v3514_v54 = vrot.slane %v3512_v36, 4  ;;  %2884 = vrot.lane.b32.xlu0 %v8930_v40, %s9961_s21  ;;  %v15429_v22 = vld [vmem:[#allocation27_spill] sm:$0xff]  ;;  %v703_v48 = vshrl.u32 %v15430_v28, 16  ;;  %v11403_v40 = vpop.permute.xlu0 %2679 }
 0x125   : > { %1080 = vst.msk [vmem:[#allocation3 + $0x30] sm:$0xff] %vm1077_vm15, %v8794_v45  ;;  %v3176_v55 = vrot.slane %v3175_v61, 4  ;;  %v3180_v35 = vrot.slane %v3178_v57, 5  ;;  %v3513_v43 = vsel %vm10142_vm11, %v8962_v0, %v3512_v36  ;;  %v3184_v60 = vrot.slane %v3182_v41, 4  ;;  %v3633_v51 = vld [vmem:[#allocation3 + $0x8] sm:$0xff]  ;;  %v3632_v5 = vld [vmem:[#allocation3] sm:$0xff] }
 0x126   : > { %1580 = vst.msk [vmem:[#allocation3 + $0x30] sm:$0xff] %vm1577_vm1, %v15426_v63  ;;  %v11379_v59 = vsel %vm10142_vm11, %v8899_v8, %v2590_v47  ;;  %v2592_v42 = vrot.slane %v2590_v47, 4  ;;  %v8819_v14 = vcombine.low %v1374_v11, %v1384_v38  ;;  %v2092_v0 = vsel %vm10252_vm14, %v2087_v13, %v15412_v19  ;;  %3911 = vmatprep.mubr.bf16.mxu0 %v3633_v51  ;;  %v15431_v47 = vld [vmem:[#allocation29_spill] sm:$0xff] }
 0x127   : > { %1824 = vst.msk [vmem:[#allocation3 + $0x30] sm:$0xff] %vm1821_vm2, %v15427_v25  ;;  %v3181_v12 = vsel %vm10252_vm14, %v3176_v55, %v3180_v35  ;;  %v2102_v33 = vsel %vm10252_vm14, %v2097_v9, %v15428_v31  ;;  %v298_v8 = vsel %vm10091_vm4, 0, %v297_v6  ;;  %v2768_v16 = vld [vmem:[#allocation2 + $0x98] sm:$0x1]  ;;  %v3185_v37 = vor.u32 %v3184_v60, %v3180_v35  ;;  %3912 = vmatmul.mubr.bf16.vlgmr.msra.gmra.mrb[0].mxu0 %v3632_v5  ;;  %v9815_v25 = vld [vmem:[#allocation2 + $0x30] sm:$0xf] }
 0x128   : > { %2017 = vst.msk [vmem:[#allocation3 + $0x30] sm:$0xff] %vm2014_vm3, %v15429_v22  ;;  %v1873_v21 = vld [vmem:[#allocation2 + $0x98] sm:$0x1]  ;;  %1551 = vrot.lane.b32.xlu1 %v8819_v14, %s9963_s8  ;;  %v8874_v19 = vcombine.low %v2092_v0, %v2102_v33  ;;  %299 = vst [vmem:[#allocation2 + $0x9c] sm:$0x1] %v298_v8  ;;  %v706_v15 = vshll.u32 %v15430_v28, 16 }
 0x129   : > { %v3188_v13 = vshll.u32 %v2768_v16, 16  ;;  %v3515_v18 = vrot.slane %v2768_v16, 5  ;;  %v2315_v9 = vshll.u32 %v1873_v21, 16  ;;  %v2593_v30 = vrot.slane %v1873_v21, 5  ;;  %v11428_v31 = vld [vmem:[#allocation2 + $0x90] sm:$0xf] }
 0x12a   : > { %v3186_v26 = vrot.slane %v3185_v37, 4  ;;  %2481 = vst.msk [vmem:[#allocation3 + $0x38] sm:$0xff] %vm1077_vm15, %v8874_v19  ;;  %v705_v7 = vrot.slane %v703_v48, 7  ;;  %v711_v58 = vshrl.u32 %v11320_v24, 16  ;;  %v714_v10 = vshll.u32 %v11320_v24, 16  ;;  %v15432_v24 = vld [vmem:[#allocation25_spill] sm:$0xff]  ;;  %v11440_v48 = vpop.permute.xlu0 %2872 }
 0x12b   : > { %v3636_v45 = vld [vmem:[#allocation3 + $0x20] sm:$0xff]  ;;  %v3190_v36 = vrot.slane %v3188_v13, 5  ;;  %v3516_v61 = vsel %vm10142_vm11, %v3514_v54, %v3515_v18  ;;  %v11407_v57 = vrot.slane %v2315_v9, 5  ;;  %v2594_v41 = vsel %vm10142_vm11, %v2592_v42, %v2593_v30  ;;  %2721 = vst.msk [vmem:[#allocation3 + $0x38] sm:$0xff] %vm1577_vm1, %v15431_v47  ;;  %v353_v42 = vld [vmem:[#allocation2 + $0xa4] sm:$0x1] }
 0x12c   : > { %3919 = vmatprep.mubr.bf16.mxu0 %v3636_v45  ;;  %v8978_v11 = vcombine.low %v3513_v43, %v3516_v61  ;;  %v8915_v38 = vcombine.low %v11379_v59, %v2594_v41  ;;  %2914 = vst.msk [vmem:[#allocation3 + $0x38] sm:$0xff] %vm1821_vm2, %v15432_v24  ;;  %v708_v6 = vor.u32 %v706_v15, %v705_v7  ;;  %v709_v55 = vrot.slane %v705_v7, 4  ;;  %v11424_v43 = vpop.permute.xlu1 %1974  ;;  %v3658_v33 = vld [vmem:[#allocation3 + $0xd0] sm:$0xff]  ;;  %v3635_v5 = vld [vmem:[#allocation3 + $0x18] sm:$0xff]  ;;  %v11448_v30 = vld [vmem:[#allocation2 + $0x98] sm:$0x1] }
 0x12d   : > { %v3191_v54 = vsel %vm10252_vm14, %v3186_v26, %v3190_v36  ;;  %v11418_v35 = vrot.slane %v711_v58, 7  ;;  %v8835_v63 = vrot.slane %v11264_v34, 9  ;;  %v1692_v60 = vrot.slane %v11266_v46, 5  ;;  %3410 = vst.msk [vmem:[#allocation3 + $0x38] sm:$0xff] %vm2014_vm3, %v11268_v29  ;;  %v3661_v34 = vld [vmem:[#allocation3 + $0xe8] sm:$0xff]  ;;  %9626 = vmatprep.mubr.msk.bf16.mxu1 %vm1077_vm15, %v3658_v33 }
 0x12e   : > { %v8946_v59 = vcombine.low %v3181_v12, %v3191_v54  ;;  %3626 = vst.msk [vmem:[#allocation3 + $0x100] sm:$0xff] %vm1077_vm15, %v8978_v11  ;;  %v1695_v14 = vrot.slane %v11290_v23, 5  ;;  %v2104_v51 = vshrl.u32 %v9815_v25, 16  ;;  %v2107_v0 = vshll.u32 %v9815_v25, 16  ;;  %v9816_v21 = vld [vmem:[#allocation2 + $0x34] sm:$0xf]  ;;  %9627 = vmatmul.mubr.msk.bf16.gmra.mrb[16].mxu1 %vm1077_vm15, %v3661_v34  ;;  %v11475_v33 = vpop.permute.xlu0 %3368 }
 0x12f   : > { %v716_v46 = vor.u32 %v714_v10, %v11418_v35  ;;  %v718_v8 = vrot.slane %v11418_v35, 4  ;;  %v905_v22 = vld [vmem:[#allocation2 + $0x9c] sm:$0xf]  ;;  %v1693_v29 = vsel %vm10142_vm11, %v8835_v63, %v1692_v60  ;;  %v1694_v12 = vrot.slane %v1692_v60, 4  ;;  %v11438_v28 = vld [vmem:[#allocation2 + $0x94] sm:$0xf]  ;;  %3920 = vmatmul.mubr.bf16.gmra.mrb[4].mxu0 %v3635_v5 }
 0x130   : > { %3380 = vrot.lane.b32.xlu0 %v8946_v59, %s9962_s27  ;;  %v906_v23 = vsel %vm10134_vm10, %v708_v6, %v905_v22  ;;  %v2106_v16 = vrot.slane %v2104_v51, 4  ;;  %v2109_v37 = vrot.slane %v2107_v0, 5  ;;  %v2113_v19 = vshll.u32 %v9816_v21, 16  ;;  %v300_v26 = vld [vmem:[#allocation2 + $0xa8] sm:$0x1]  ;;  %v395_v11 = vld [vmem:[%s10080_s14 + $0xd8] sm:$0xff]  ;;  %v11458_v24 = vpop.permute.xlu1 %1539 }
 0x131   : > { %v717_v15 = vsel %vm10123_vm9, %v709_v55, %v716_v46  ;;  %907 = vst [vmem:[#allocation2 + $0x9c] sm:$0xf] %v906_v23  ;;  %v1696_v13 = vsel %vm10142_vm11, %v1694_v12, %v1695_v14  ;;  %v2117_v18 = vshrl.u32 %v9816_v21, 16  ;;  %v354_v9 = vsel %vm10096_vm5, 0, %v353_v42  ;;  %v396_v0 = vld [vmem:[%s10080_s14 + $0xe0] sm:$0xff]  ;;  %v3638_v12 = vld [vmem:[#allocation3 + $0x30] sm:$0xff] }
 0x132   : > { %908 = vst.msk [vmem:[#allocation2 + $0xa0] sm:$0xf] %vm246_vm0, %v717_v15  ;;  %v8851_v7 = vcombine.low %v1693_v29, %v1696_v13  ;;  %v2110_v58 = vor.u32 %v2109_v37, %v2106_v16  ;;  %v2115_v10 = vrot.slane %v2113_v19, 5  ;;  %355 = vst [vmem:[#allocation2 + $0xa4] sm:$0x1] %v354_v9  ;;  %v8867_v45 = vcombine.low %v11317_v4, %v11351_v62 }
 0x133   : > { %v2119_v36 = vrot.slane %v2117_v18, 4  ;;  %v1386_v61 = vshrl.u32 %v11428_v31, 16  ;;  %v1389_v41 = vshll.u32 %v11428_v31, 16  ;;  %v1395_v47 = vshll.u32 %v11438_v28, 16  ;;  %v9817_v19 = vld [vmem:[#allocation2 + $0x24] sm:$0xf] }
 0x134   : > { %2693 = vrot.lane.b32.xlu0 %v8915_v38, %s9963_s8  ;;  %1795 = vrot.lane.b32.xlu1 %v8851_v7, %s9961_s21  ;;  %v2111_v6 = vrot.slane %v2110_v58, 4  ;;  %v1399_v55 = vshrl.u32 %v11438_v28, 16  ;;  %v1405_v4 = vshll.u32 %v11448_v30, 16  ;;  %v301_v62 = vsel %vm10091_vm4, 0, %v300_v26  ;;  %v3639_v54 = vld [vmem:[#allocation3 + $0x38] sm:$0xff]  ;;  %v15433_v26 = vld [vmem:[#allocation20_spill] sm:$0xff] }
 0x135   : > { %v2120_v63 = vor.u32 %v2119_v36, %v2115_v10  ;;  %v1388_v60 = vrot.slane %v1386_v61, 4  ;;  %v1391_v42 = vrot.slane %v1389_v41, 5  ;;  %v11466_v59 = vrot.slane %v1395_v47, 5  ;;  %302 = vst [vmem:[#allocation2 + $0xa8] sm:$0x1] %v301_v62  ;;  %3927 = vmatprep.mubr.bf16.mxu0 %v3639_v54  ;;  %v15434_v54 = vld [vmem:[#allocation13_spill] sm:$0xff] }
 0x136   : > { %v2116_v38 = vsel %vm10252_vm14, %v2111_v6, %v2115_v10  ;;  %v1401_v14 = vrot.slane %v1399_v55, 4  ;;  %v11470_v25 = vrot.slane %v1405_v4, 5  ;;  %v11472_v51 = vpack.c.bf16 %v395_v11, %v395_v11  ;;  %v9818_v15 = vld [vmem:[#allocation2 + $0x28] sm:$0xf] }
 0x137   : > { %v2121_v34 = vrot.slane %v2120_v63, 4  ;;  %v1392_v46 = vor.u32 %v1391_v42, %v1388_v60  ;;  %v720_v22 = vshrl.u32 %v11357_v56, 16  ;;  %v723_v29 = vshll.u32 %v11357_v56, 16  ;;  %3928 = vmatmul.mubr.bf16.gmra.mrb[8].mxu0 %v3638_v12  ;;  %v11511_v42 = vpop.permute.xlu0 %2681 }
 0x138   : > { %v2769_v5 = vld [vmem:[#allocation2 + $0x9c] sm:$0xf]  ;;  %1988 = vrot.lane.b32.xlu1 %v8867_v45, %s9962_s27  ;;  %v1402_v16 = vor.u32 %v1401_v14, %v11466_v59  ;;  %v728_v37 = vshrl.u32 %v11472_v51, 16  ;;  %v731_v21 = vshll.u32 %v11472_v51, 16  ;;  %v8795_v13 = vcombine.low %v9817_v19, %v9818_v15  ;;  %v11490_v45 = vpop.permute.xlu1 %1783 }
 0x139   : > { %v11480_v23 = vld [vmem:[#allocation2 + $0x9c] sm:$0xf]  ;;  %v2770_v18 = vld [vmem:[#allocation2 + $0xa0] sm:$0xf]  ;;  %v8963_v9 = vrot.slane %v2769_v5, 9  ;;  %v2126_v56 = vsel %vm10252_vm14, %v2121_v34, %v15433_v26  ;;  %v3193_v58 = vshrl.u32 %v2769_v5, 16  ;;  %v11488_v10 = vpack.c.bf16 %v396_v0, %v396_v0 }
 0x13a   : > { %v909_v7 = vld [vmem:[#allocation2 + $0xa4] sm:$0x1]  ;;  %v8931_v36 = vcombine.low %v2769_v5, %v2770_v18  ;;  %v3519_v61 = vrot.slane %v2770_v18, 5  ;;  %v8875_v41 = vcombine.low %v2116_v38, %v2126_v56  ;;  %v11496_v11 = vld [vmem:[#allocation2 + $0xa0] sm:$0xf]  ;;  %1081 = vst.msk [vmem:[#allocation3 + $0x48] sm:$0xff] %vm1077_vm15, %v8795_v13 }
 0x13b   : > { %v910_v47 = vsel %vm10091_vm4, %v718_v8, %v909_v7  ;;  %v3195_v6 = vrot.slane %v3193_v58, 4  ;;  %v3196_v55 = vshll.u32 %v2769_v5, 16  ;;  %v3202_v4 = vshll.u32 %v2770_v18, 16  ;;  %1581 = vst.msk [vmem:[#allocation3 + $0x48] sm:$0xff] %vm1577_vm1, %v15434_v54  ;;  %v15435_v38 = vld [vmem:[#allocation10_spill] sm:$0xff]  ;;  %v3664_v15 = vld [vmem:[#allocation3 + $0x100] sm:$0xff] }
 0x13c   : > { %911 = vst [vmem:[#allocation2 + $0xa4] sm:$0x1] %v910_v47  ;;  %v3206_v62 = vshrl.u32 %v2770_v18, 16  ;;  %v3521_v63 = vrot.slane %v3519_v61, 4  ;;  %2886 = vrot.lane.b32.xlu0 %v8931_v36, %s9961_s21  ;;  %2482 = vst.msk [vmem:[#allocation3 + $0x50] sm:$0xff] %vm1077_vm15, %v8875_v41  ;;  %v11505_v35 = vsel %vm10142_vm11, %v8963_v9, %v3519_v61  ;;  %v8900_v8 = vrot.slane %v11480_v23, 9  ;;  %v11533_v26 = vpop.permute.xlu1 %1976  ;;  %9630 = vmatprep.mubr.msk.bf16.mxu1 %vm1077_vm15, %v3664_v15 }
 0x13d   : > { %v2597_v60 = vrot.slane %v11496_v11, 5  ;;  %1825 = vst.msk [vmem:[#allocation3 + $0x48] sm:$0xff] %vm1821_vm2, %v11233_v17  ;;  %v3198_v14 = vrot.slane %v3196_v55, 5  ;;  %v11515_v51 = vrot.slane %v3202_v4, 5  ;;  %v1393_v34 = vrot.slane %v1392_v46, 4 }
 0x13e   : > { %2722 = vst.msk [vmem:[#allocation3 + $0x50] sm:$0xff] %vm1577_vm1, %v15435_v38  ;;  %v3208_v0 = vrot.slane %v3206_v62, 4  ;;  %v1403_v19 = vrot.slane %v1402_v16, 4  ;;  %v722_v17 = vrot.slane %v720_v22, 7  ;;  %v11529_v9 = vrot.slane %v728_v37, 7 }
 0x13f   : > { %2018 = vst.msk [vmem:[#allocation3 + $0x48] sm:$0xff] %vm2014_vm3, %v11296_v53  ;;  %v11521_v12 = vsel %vm10142_vm11, %v8900_v8, %v2597_v60  ;;  %v2599_v5 = vrot.slane %v2597_v60, 4  ;;  %v3199_v13 = vor.u32 %v3198_v14, %v3195_v6  ;;  %v1398_v46 = vsel %vm10252_vm14, %v1393_v34, %v11466_v59  ;;  %v912_v53 = vld [vmem:[#allocation2 + $0xa8] sm:$0xf]  ;;  %v356_v36 = vld [vmem:[#allocation2 + $0xb0] sm:$0x1] }
 0x140   : > { %2915 = vst.msk [vmem:[#allocation3 + $0x50] sm:$0xff] %vm1821_vm2, %v11322_v50  ;;  %v3209_v18 = vor.u32 %v3208_v0, %v11515_v51  ;;  %v1408_v50 = vsel %vm10252_vm14, %v1403_v19, %v11470_v25  ;;  %v725_v22 = vor.u32 %v723_v29, %v722_v17  ;;  %v726_v16 = vrot.slane %v722_v17, 4  ;;  %v11547_v29 = vpop.permute.xlu0 %2874  ;;  %v11553_v62 = vld [vmem:[#allocation2 + $0x9c] sm:$0xf]  ;;  %v303_v38 = vld [vmem:[#allocation2 + $0xb4] sm:$0x1]  ;;  %v11567_v15 = vpop.permute.xlu1 %1541 }
 0x141   : > { %3411 = vst.msk [vmem:[#allocation3 + $0x50] sm:$0xff] %vm2014_vm3, %v11370_v52  ;;  %v8836_v56 = vrot.slane %v11428_v31, 9  ;;  %v3200_v7 = vrot.slane %v3199_v13, 4  ;;  %v8820_v37 = vcombine.low %v1398_v46, %v1408_v50  ;;  %v733_v58 = vor.u32 %v731_v21, %v11529_v9  ;;  %v11565_v19 = vld [vmem:[#allocation2 + $0xa0] sm:$0xf] }
 0x142   : > { %v3210_v59 = vrot.slane %v3209_v18, 4  ;;  %v735_v41 = vrot.slane %v11529_v9, 4  ;;  %v913_v47 = vsel %vm10134_vm10, %v725_v22, %v912_v53  ;;  %v1699_v6 = vrot.slane %v11438_v28, 5 }
 0x143   : > { %v2771_v61 = vld [vmem:[#allocation2 + $0xa4] sm:$0x1]  ;;  %v8868_v25 = vcombine.low %v11480_v23, %v11496_v11  ;;  %v3205_v31 = vsel %vm10252_vm14, %v3200_v7, %v11515_v51  ;;  %1553 = vrot.lane.b32.xlu1 %v8820_v37, %s9963_s8  ;;  %914 = vst [vmem:[#allocation2 + $0xa8] sm:$0xf] %v913_v47  ;;  %v734_v28 = vsel %vm10123_vm9, %v726_v16, %v733_v58  ;;  %v1702_v34 = vrot.slane %v11448_v30, 5  ;;  %v398_v47 = vld [vmem:[%s10080_s14 + $0xf0] sm:$0xff] }
 0x144   : > { %v1876_v52 = vld [vmem:[#allocation2 + $0xa4] sm:$0x1]  ;;  %v3212_v21 = vshll.u32 %v2771_v61, 16  ;;  %v3522_v55 = vrot.slane %v2771_v61, 5  ;;  %v1700_v8 = vsel %vm10142_vm11, %v8836_v56, %v1699_v6  ;;  %v1701_v60 = vrot.slane %v1699_v6, 4 }
 0x145   : > { %v2339_v4 = vshll.u32 %v1876_v52, 16  ;;  %v2600_v54 = vrot.slane %v1876_v52, 5  ;;  %915 = vst.msk [vmem:[#allocation2 + $0xac] sm:$0xf] %vm246_vm0, %v734_v28  ;;  %v11574_v46 = vld [vmem:[#allocation2 + $0xa4] sm:$0x1] }
 0x146   : > { %v3214_v14 = vrot.slane %v3212_v21, 5  ;;  %v3523_v51 = vsel %vm10142_vm11, %v3521_v63, %v3522_v55  ;;  %v3641_v17 = vld [vmem:[#allocation3 + $0x48] sm:$0xff]  ;;  %v357_v63 = vsel %vm10096_vm5, 0, %v356_v36  ;;  %v1410_v53 = vshrl.u32 %v11553_v62, 16  ;;  %v9820_v28 = vld [vmem:[#allocation2 + $0x34] sm:$0xf] }
 0x147   : > { %v11561_v0 = vrot.slane %v2339_v4, 5  ;;  %v8979_v13 = vcombine.low %v11505_v35, %v3523_v51  ;;  %v2601_v18 = vsel %vm10142_vm11, %v2599_v5, %v2600_v54  ;;  %v1703_v16 = vsel %vm10142_vm11, %v1701_v60, %v1702_v34  ;;  %358 = vst [vmem:[#allocation2 + $0xb0] sm:$0x1] %v357_v63  ;;  %v397_v5 = vld [vmem:[%s10080_s14 + $0xe8] sm:$0xff]  ;;  %v9819_v54 = vld [vmem:[#allocation2 + $0x30] sm:$0xf]  ;;  %v11603_v34 = vpop.permute.xlu1 %1785 }
 0x148   : > { %v3642_v50 = vld [vmem:[#allocation3 + $0x50] sm:$0xff]  ;;  %v3215_v30 = vsel %vm10252_vm14, %v3210_v59, %v3214_v14  ;;  %v8916_v22 = vcombine.low %v11521_v12, %v2601_v18  ;;  %v1413_v35 = vshll.u32 %v11553_v62, 16  ;;  %v8852_v7 = vcombine.low %v1700_v8, %v1703_v16  ;;  %v11586_v59 = vpop.permute.xlu0 %3370 }
 0x149   : > { %3935 = vmatprep.mubr.bf16.mxu0 %v3642_v50  ;;  %v8947_v56 = vcombine.low %v3205_v31, %v3215_v30  ;;  %3627 = vst.msk [vmem:[#allocation3 + $0x118] sm:$0xff] %vm1077_vm15, %v8979_v13  ;;  %v1412_v37 = vrot.slane %v1410_v53, 4  ;;  %v1419_v58 = vshll.u32 %v11565_v19, 16  ;;  %v1423_v36 = vshrl.u32 %v11565_v19, 16 }
 0x14a   : > { %3936 = vmatmul.mubr.bf16.gmra.mrb[12].mxu0 %v3641_v17  ;;  %v1415_v12 = vrot.slane %v1413_v35, 5  ;;  %v1429_v61 = vshll.u32 %v11574_v46, 16  ;;  %v304_v52 = vsel %vm10091_vm4, 0, %v303_v38  ;;  %v2772_v6 = vld [vmem:[#allocation2 + $0xa8] sm:$0xf]  ;;  %1797 = vrot.lane.b32.xlu1 %v8852_v7, %s9961_s21  ;;  %v11599_v55 = vpack.c.bf16 %v397_v5, %v397_v5 }
 0x14b   : > { %3382 = vrot.lane.b32.xlu0 %v8947_v56, %s9962_s27  ;;  %v11595_v31 = vld [vmem:[#allocation2 + $0xa8] sm:$0xf]  ;;  %v11597_v21 = vrot.slane %v1419_v58, 5  ;;  %305 = vst [vmem:[#allocation2 + $0xb4] sm:$0x1] %v304_v52  ;;  %v737_v4 = vshrl.u32 %v11488_v10, 16  ;;  %v8796_v8 = vcombine.low %v9819_v54, %v9820_v28  ;;  %v11608_v50 = vpack.c.bf16 %v398_v47, %v398_v47  ;;  %v11645_v54 = vpop.permute.xlu1 %1978 }
 0x14c   : > { %v8964_v60 = vrot.slane %v2772_v6, 9  ;;  %v3217_v38 = vshrl.u32 %v2772_v6, 16  ;;  %v3220_v14 = vshll.u32 %v2772_v6, 16  ;;  %v8901_v51 = vrot.slane %v11595_v31, 9  ;;  %v2773_v17 = vld [vmem:[#allocation2 + $0xac] sm:$0xf] }
 0x14d   : > { %v11605_v13 = vld [vmem:[#allocation2 + $0xac] sm:$0xf]  ;;  %v1416_v18 = vor.u32 %v1415_v12, %v1412_v37  ;;  %v1425_v63 = vrot.slane %v1423_v36, 4  ;;  %v1431_v53 = vrot.slane %v1429_v61, 5  ;;  %1082 = vst.msk [vmem:[#allocation3 + $0x60] sm:$0xff] %vm1077_vm15, %v8796_v8  ;;  %v8932_v30 = vcombine.low %v2772_v6, %v2773_v17  ;;  %v11620_v36 = vpop.permute.xlu0 %2683 }
 0x14e   : > { %v3526_v16 = vrot.slane %v2773_v17, 5  ;;  %v3219_v35 = vrot.slane %v3217_v38, 4  ;;  %v3222_v5 = vrot.slane %v3220_v14, 5  ;;  %1582 = vst.msk [vmem:[#allocation3 + $0x60] sm:$0xff] %vm1577_vm1, %v11347_v20  ;;  %v916_v56 = vld [vmem:[#allocation2 + $0xb0] sm:$0x1]  ;;  %1990 = vrot.lane.b32.xlu1 %v8868_v25, %s9962_s27 }
 0x14f   : > { %2695 = vrot.lane.b32.xlu0 %v8916_v22, %s9963_s8  ;;  %v3226_v7 = vshll.u32 %v2773_v17, 16  ;;  %v3230_v58 = vshrl.u32 %v2773_v17, 16  ;;  %v2604_v37 = vrot.slane %v11605_v13, 5  ;;  %v1417_v12 = vrot.slane %v1416_v18, 4  ;;  %1826 = vst.msk [vmem:[#allocation3 + $0x60] sm:$0xff] %vm1821_vm2, %v11395_v39 }
 0x150   : > { %v3528_v61 = vrot.slane %v3526_v16, 4  ;;  %v917_v20 = vsel %vm10091_vm4, %v735_v41, %v916_v56  ;;  %v3223_v22 = vor.u32 %v3222_v5, %v3219_v35  ;;  %v11628_v52 = vsel %vm10142_vm11, %v8964_v60, %v3526_v16  ;;  %2019 = vst.msk [vmem:[#allocation3 + $0x60] sm:$0xff] %vm2014_vm3, %v11424_v43  ;;  %v3667_v23 = vld [vmem:[#allocation3 + $0x118] sm:$0xff]  ;;  %v9821_v5 = vld [vmem:[#allocation2 + $0x3c] sm:$0xf] }
 0x151   : > { %918 = vst [vmem:[#allocation2 + $0xb0] sm:$0x1] %v917_v20  ;;  %v11632_v11 = vrot.slane %v3226_v7, 5  ;;  %v3232_v39 = vrot.slane %v3230_v58, 4  ;;  %v11636_v25 = vsel %vm10142_vm11, %v8901_v51, %v2604_v37  ;;  %v2606_v9 = vrot.slane %v2604_v37, 4  ;;  %9631 = vmatmul.mubr.msk.bf16.gmra.mrb[20].mxu1 %vm1077_vm15, %v3667_v23  ;;  %v11660_v16 = vpop.permute.xlu0 %2876 }
 0x152   : > { %v11639_v41 = vrot.slane %v3223_v22, 4  ;;  %v1422_v47 = vsel %vm10252_vm14, %v1417_v12, %v11597_v21  ;;  %v1426_v43 = vor.u32 %v1425_v63, %v11597_v21  ;;  %v739_v6 = vrot.slane %v737_v4, 7  ;;  %v919_v4 = vld [vmem:[#allocation2 + $0xb4] sm:$0xf] }
 0x153   : > { %2888 = vrot.lane.b32.xlu0 %v8932_v30, %s9961_s21  ;;  %v3233_v28 = vor.u32 %v3232_v39, %v11632_v11  ;;  %v740_v8 = vshll.u32 %v11488_v10, 16  ;;  %v745_v60 = vshrl.u32 %v11599_v55, 16  ;;  %v748_v38 = vshll.u32 %v11599_v55, 16 }
 0x154   : > { %v3229_v14 = vsel %vm10252_vm14, %v11639_v41, %v11632_v11  ;;  %v1427_v51 = vrot.slane %v1426_v43, 4  ;;  %v743_v21 = vrot.slane %v739_v6, 4  ;;  %v8837_v17 = vrot.slane %v11553_v62, 9  ;;  %v11673_v11 = vpop.permute.xlu1 %1543 }
 0x155   : > { %v3234_v18 = vrot.slane %v3233_v28, 4  ;;  %v742_v63 = vor.u32 %v740_v8, %v739_v6  ;;  %v11657_v30 = vrot.slane %v745_v60, 7  ;;  %v1706_v10 = vrot.slane %v11565_v19, 5  ;;  %v9822_v60 = vld [vmem:[#allocation2 + $0x40] sm:$0xf] }
 0x156   : > { %v1432_v55 = vsel %vm10252_vm14, %v1427_v51, %v1431_v53  ;;  %v1709_v35 = vrot.slane %v11574_v46, 5  ;;  %v2128_v56 = vshrl.u32 %v9821_v5, 16  ;;  %v2131_v7 = vshll.u32 %v9821_v5, 16  ;;  %v359_v51 = vld [vmem:[#allocation2 + $0xbc] sm:$0x1] }
 0x157   : > { %v8821_v58 = vcombine.low %v1422_v47, %v1432_v55  ;;  %v750_v37 = vor.u32 %v748_v38, %v11657_v30  ;;  %v752_v62 = vrot.slane %v11657_v30, 4  ;;  %v920_v12 = vsel %vm10134_vm10, %v742_v63, %v919_v4  ;;  %v11689_v63 = vpop.permute.xlu0 %3372 }
 0x158   : > { %v2774_v20 = vld [vmem:[#allocation2 + $0xb0] sm:$0x1]  ;;  %921 = vst [vmem:[#allocation2 + $0xb4] sm:$0xf] %v920_v12  ;;  %v1707_v22 = vsel %vm10142_vm11, %v8837_v17, %v1706_v10  ;;  %v1708_v53 = vrot.slane %v1706_v10, 4  ;;  %v2130_v23 = vrot.slane %v2128_v56, 4  ;;  %v8869_v46 = vcombine.low %v11595_v31, %v11605_v13 }
 0x159   : > { %v1879_v19 = vld [vmem:[#allocation2 + $0xb0] sm:$0x1]  ;;  %v3236_v39 = vshll.u32 %v2774_v20, 16  ;;  %v3529_v41 = vrot.slane %v2774_v20, 5  ;;  %1555 = vrot.lane.b32.xlu1 %v8821_v58, %s9963_s8  ;;  %v751_v6 = vsel %vm10123_vm9, %v743_v21, %v750_v37  ;;  %v2133_v8 = vrot.slane %v2131_v7, 5 }
 0x15a   : > { %v2363_v47 = vshll.u32 %v1879_v19, 16  ;;  %v2607_v43 = vrot.slane %v1879_v19, 5  ;;  %v1710_v28 = vsel %vm10142_vm11, %v1708_v53, %v1709_v35  ;;  %v2137_v38 = vshll.u32 %v9822_v60, 16  ;;  %922 = vst.msk [vmem:[#allocation2 + $0xb8] sm:$0xf] %vm246_vm0, %v751_v6  ;;  %v1788_v19 = vpop.permute.xlu1 %1787 }
 0x15b   : > { %v3238_v31 = vrot.slane %v3236_v39, 5  ;;  %v3530_v13 = vsel %vm10142_vm11, %v3528_v61, %v3529_v41  ;;  %v11687_v21 = vld [vmem:[#allocation2 + $0xa8] sm:$0xf]  ;;  %v8853_v35 = vcombine.low %v1707_v22, %v1710_v28  ;;  %v2134_v5 = vor.u32 %v2133_v8, %v2130_v23  ;;  %v11693_v56 = vld [vmem:[#allocation2 + $0xac] sm:$0xf]  ;;  %v399_v61 = vld [vmem:[%s10080_s14 + $0xf8] sm:$0xff] }
 0x15c   : > { %v11682_v4 = vrot.slane %v2363_v47, 5  ;;  %v2608_v17 = vsel %vm10142_vm11, %v2606_v9, %v2607_v43  ;;  %v8980_v10 = vcombine.low %v11628_v52, %v3530_v13  ;;  %v11698_v58 = vrot.slane %v2137_v38, 5  ;;  %v9824_v41 = vld [vmem:[#allocation2 + $0x40] sm:$0xf]  ;;  %v11723_v13 = vpop.permute.xlu0 %2685 }
 0x15d   : > { %v8917_v55 = vcombine.low %v11636_v25, %v2608_v17  ;;  %v3239_v7 = vsel %vm10252_vm14, %v3234_v18, %v3238_v31  ;;  %v2141_v9 = vshrl.u32 %v9822_v60, 16  ;;  %v360_v37 = vsel %vm10096_vm5, 0, %v359_v51  ;;  %1799 = vrot.lane.b32.xlu1 %v8853_v35, %s9961_s21 }
 0x15e   : > { %v8948_v12 = vcombine.low %v3229_v14, %v3239_v7  ;;  %3628 = vst.msk [vmem:[#allocation3 + $0x130] sm:$0xff] %vm1077_vm15, %v8980_v10  ;;  %v2135_v52 = vrot.slane %v2134_v5, 4  ;;  %361 = vst [vmem:[#allocation2 + $0xbc] sm:$0x1] %v360_v37  ;;  %v1434_v25 = vshrl.u32 %v11687_v21, 16  ;;  %v1437_v20 = vshll.u32 %v11687_v21, 16 }
 0x15f   : > { %v11706_v22 = vld [vmem:[#allocation2 + $0xb4] sm:$0xf]  ;;  %v2143_v18 = vrot.slane %v2141_v9, 4  ;;  %v1443_v23 = vshll.u32 %v11693_v56, 16  ;;  %v11711_v39 = vpack.c.bf16 %v399_v61, %v399_v61  ;;  %v9823_v14 = vld [vmem:[#allocation2 + $0x3c] sm:$0xf] }
 0x160   : > { %v11708_v53 = vld [vmem:[#allocation2 + $0xb4] sm:$0xf]  ;;  %v8797_v47 = vcombine.low %v9823_v14, %v9824_v41  ;;  %3384 = vrot.lane.b32.xlu0 %v8948_v12, %s9962_s27  ;;  %v8965_v43 = vrot.slane %v11706_v22, 9  ;;  %v2140_v6 = vsel %vm10252_vm14, %v2135_v52, %v11698_v58  ;;  %v3241_v28 = vshrl.u32 %v11706_v22, 16  ;;  %v9825_v61 = vld [vmem:[#allocation2 + $0x48] sm:$0xf] }
 0x161   : > { %v3244_v8 = vshll.u32 %v11706_v22, 16  ;;  %v2144_v60 = vor.u32 %v2143_v18, %v11698_v58  ;;  %v8902_v38 = vrot.slane %v11708_v53, 9  ;;  %v1436_v51 = vrot.slane %v1434_v25, 4  ;;  %v2776_v17 = vld [vmem:[#allocation2 + $0xb8] sm:$0xf]  ;;  %1992 = vrot.lane.b32.xlu1 %v8869_v46, %s9962_s27 }
 0x162   : > { %v1439_v31 = vrot.slane %v1437_v20, 5  ;;  %1083 = vst.msk [vmem:[#allocation3 + $0x78] sm:$0xff] %vm1077_vm15, %v8797_v47  ;;  %v3243_v10 = vrot.slane %v3241_v28, 4  ;;  %v11726_v5 = vld [vmem:[#allocation2 + $0xb8] sm:$0xf]  ;;  %v8933_v52 = vcombine.low %v11706_v22, %v2776_v17  ;;  %v3533_v25 = vrot.slane %v2776_v17, 5  ;;  %v1981_v22 = vpop.permute.xlu1 %1980 }
 0x163   : > { %v3246_v35 = vrot.slane %v3244_v8, 5  ;;  %1583 = vst.msk [vmem:[#allocation3 + $0x78] sm:$0xff] %vm1577_vm1, %v11458_v24  ;;  %v9826_v7 = vld [vmem:[#allocation2 + $0x4c] sm:$0xf]  ;;  %v9827_v9 = vld [vmem:[#allocation2 + $0x54] sm:$0xf] }
 0x164   : > { %v8798_v58 = vcombine.low %v9825_v61, %v9826_v7  ;;  %v9828_v37 = vld [vmem:[#allocation2 + $0x58] sm:$0xf]  ;;  %v2145_v20 = vrot.slane %v2144_v60, 4  ;;  %v3250_v18 = vshll.u32 %v2776_v17, 16  ;;  %1827 = vst.msk [vmem:[#allocation3 + $0x78] sm:$0xff] %vm1821_vm2, %v11490_v45  ;;  %2697 = vrot.lane.b32.xlu0 %v8917_v55, %s9963_s8  ;;  %v3254_v14 = vshrl.u32 %v2776_v17, 16 }
 0x165   : > { %v8799_v12 = vcombine.low %v9827_v9, %v9828_v37  ;;  %v3247_v46 = vor.u32 %v3246_v35, %v3243_v10  ;;  %v2611_v24 = vrot.slane %v11726_v5, 5  ;;  %v1440_v41 = vor.u32 %v1439_v31, %v1436_v51  ;;  %2020 = vst.msk [vmem:[#allocation3 + $0x78] sm:$0xff] %vm2014_vm3, %v11533_v26  ;;  %v15436_v28 = vld [vmem:[#allocation21_spill] sm:$0xff]  ;;  %v923_v55 = vld [vmem:[#allocation2 + $0xbc] sm:$0x1] }
 0x166   : > { %1084 = vst.msk [vmem:[#allocation3 + $0x90] sm:$0xff] %vm1077_vm15, %v8798_v58  ;;  %v11739_v47 = vrot.slane %v3533_v25, 4  ;;  %v2150_v45 = vsel %vm10252_vm14, %v2145_v20, %v15436_v28  ;;  %v11744_v8 = vrot.slane %v3250_v18, 5  ;;  %v11748_v60 = vsel %vm10142_vm11, %v8965_v43, %v3533_v25  ;;  %v11750_v51 = vld [vmem:[#allocation2 + $0xb0] sm:$0x1]  ;;  %v3670_v58 = vld [vmem:[#allocation3 + $0x130] sm:$0xff]  ;;  %v11808_v18 = vpop.permute.xlu1 %1545 }
 0x167   : > { %1085 = vst.msk [vmem:[#allocation3 + $0xa8] sm:$0xff] %vm1077_vm15, %v8799_v12  ;;  %v8876_v26 = vcombine.low %v2140_v6, %v2150_v45  ;;  %v924_v31 = vsel %vm10091_vm4, %v752_v62, %v923_v55  ;;  %v11760_v17 = vrot.slane %v3247_v46, 4  ;;  %v3256_v10 = vrot.slane %v3254_v14, 4  ;;  %v306_v35 = vld [vmem:[#allocation2 + $0xc0] sm:$0x1]  ;;  %v11775_v62 = vpop.permute.xlu0 %2878  ;;  %9634 = vmatprep.mubr.msk.bf16.mxu1 %vm1077_vm15, %v3670_v58 }
 0x168   : > { %1584 = vst.msk [vmem:[#allocation3 + $0x90] sm:$0xff] %vm1577_vm1, %v11567_v15  ;;  %1585 = vst.msk [vmem:[#allocation3 + $0xa8] sm:$0xff] %vm1577_vm1, %v11673_v11  ;;  %v11767_v15 = vsel %vm10142_vm11, %v8902_v38, %v2611_v24  ;;  %v2613_v11 = vrot.slane %v2611_v24, 4  ;;  %v11769_v43 = vrot.slane %v1440_v41, 4  ;;  %v11771_v30 = vrot.slane %v1443_v23, 5  ;;  %2890 = vrot.lane.b32.xlu0 %v8933_v52, %s9961_s21 }
 0x169   : > { %1828 = vst.msk [vmem:[#allocation3 + $0x90] sm:$0xff] %vm1821_vm2, %v11603_v34  ;;  %1829 = vst.msk [vmem:[#allocation3 + $0xa8] sm:$0xff] %vm1821_vm2, %v1788_v19  ;;  %v3253_v34 = vsel %vm10252_vm14, %v11760_v17, %v11744_v8  ;;  %v3257_v19 = vor.u32 %v3256_v10, %v11744_v8  ;;  %v1447_v23 = vshrl.u32 %v11693_v56, 16  ;;  %v1453_v6 = vshll.u32 %v11750_v51, 16  ;;  %v9829_v24 = vld [vmem:[#allocation2 + $0x48] sm:$0xf] }
 0x16a   : > { %925 = vst [vmem:[#allocation2 + $0xbc] sm:$0x1] %v924_v31  ;;  %2021 = vst.msk [vmem:[#allocation3 + $0x90] sm:$0xff] %vm2014_vm3, %v11645_v54  ;;  %v1446_v54 = vsel %vm10252_vm14, %v11769_v43, %v11771_v30  ;;  %v307_v38 = vsel %vm10091_vm4, 0, %v306_v35  ;;  %v754_v61 = vshrl.u32 %v11608_v50, 16  ;;  %v757_v7 = vshll.u32 %v11608_v50, 16 }
 0x16b   : > { %2022 = vst.msk [vmem:[#allocation3 + $0xa8] sm:$0xff] %vm2014_vm3, %v1981_v22  ;;  %v11797_v9 = vrot.slane %v3257_v19, 4  ;;  %v1449_v37 = vrot.slane %v1447_v23, 4  ;;  %308 = vst [vmem:[#allocation2 + $0xc0] sm:$0x1] %v307_v38  ;;  %v762_v12 = vshrl.u32 %v11711_v39, 16  ;;  %v11818_v45 = vpop.permute.xlu0 %3374 }
 0x16c   : > { %2483 = vst.msk [vmem:[#allocation3 + $0x68] sm:$0xff] %vm1077_vm15, %v8876_v26  ;;  %v756_v52 = vrot.slane %v754_v61, 7  ;;  %v765_v25 = vshll.u32 %v11711_v39, 16  ;;  %v8838_v50 = vrot.slane %v11687_v21, 9  ;;  %v1713_v20 = vrot.slane %v11693_v56, 5  ;;  %v3647_v1 = vld [vmem:[#allocation3 + $0x78] sm:$0xff] }
 0x16d   : > { %2723 = vst.msk [vmem:[#allocation3 + $0x68] sm:$0xff] %vm1577_vm1, %v11403_v40  ;;  %v1455_v40 = vrot.slane %v1453_v6, 5  ;;  %v11811_v46 = vrot.slane %v762_v12, 7  ;;  %v1716_v14 = vrot.slane %v11750_v51, 5  ;;  %v2152_v41 = vshrl.u32 %v9829_v24, 16 }
 0x16e   : > { %2916 = vst.msk [vmem:[#allocation3 + $0x68] sm:$0xff] %vm1821_vm2, %v11440_v48  ;;  %v1450_v48 = vor.u32 %v1449_v37, %v11771_v30  ;;  %v759_v22 = vor.u32 %v757_v7, %v756_v52  ;;  %v760_v28 = vrot.slane %v756_v52, 4  ;;  %v1715_v39 = vrot.slane %v1713_v20, 4  ;;  %v362_v58 = vld [vmem:[#allocation2 + $0xc8] sm:$0x1]  ;;  %v3644_v37 = vld [vmem:[#allocation3 + $0x60] sm:$0xff] }
 0x16f   : > { %3412 = vst.msk [vmem:[#allocation3 + $0x68] sm:$0xff] %vm2014_vm3, %v11475_v33  ;;  %v11816_v33 = vsel %vm10142_vm11, %v8838_v50, %v1713_v20  ;;  %v767_v10 = vor.u32 %v765_v25, %v11811_v46  ;;  %v769_v35 = vrot.slane %v11811_v46, 4  ;;  %v8870_v51 = vcombine.low %v11708_v53, %v11726_v5  ;;  %v11838_v20 = vld [vmem:[#allocation2 + $0xb4] sm:$0xf] }
 0x170   : > { %v1451_v31 = vrot.slane %v1450_v48, 4  ;;  %v1717_v61 = vsel %vm10142_vm11, %v1715_v39, %v1716_v14  ;;  %v2154_v7 = vrot.slane %v2152_v41, 4  ;;  %v11840_v48 = vpop.permute.xlu1 %1789  ;;  %v11846_v39 = vld [vmem:[#allocation2 + $0xb8] sm:$0xf]  ;;  %vm8114_vm8 = vcmask 1046534  }
 0x171   : > { %v2777_v55 = vld [vmem:[#allocation2 + $0xbc] sm:$0x1]  ;;  %v768_v38 = vsel %vm10123_vm9, %v760_v28, %v767_v10  ;;  %v9830_v10 = vld [vmem:[#allocation2 + $0x4c] sm:$0xf]  ;;  %v1467_v8 = vshll.u32 %v11846_v39, 16 }
 0x172   : > { %v1882_v26 = vld [vmem:[#allocation2 + $0xbc] sm:$0x1]  ;;  %v3260_v43 = vshll.u32 %v2777_v55, 16  ;;  %v3536_v30 = vrot.slane %v2777_v55, 5  ;;  %v1456_v6 = vsel %vm10252_vm14, %v1451_v31, %v1455_v40  ;;  %v926_v40 = vld [vmem:[#allocation2 + $0xc0] sm:$0xf] }
 0x173   : > { %v2387_v19 = vshll.u32 %v1882_v26, 16  ;;  %v2614_v23 = vrot.slane %v1882_v26, 5  ;;  %929 = vst.msk [vmem:[#allocation2 + $0xc4] sm:$0xf] %vm246_vm0, %v768_v38  ;;  %v8822_v28 = vcombine.low %v1446_v54, %v1456_v6  ;;  %v8854_v26 = vcombine.low %v11816_v33, %v1717_v61  ;;  %v309_v33 = vld [vmem:[#allocation2 + $0xcc] sm:$0x1] }
 0x174   : > { %v3262_v12 = vrot.slane %v3260_v43, 5  ;;  %v3537_v52 = vsel %vm10142_vm11, %v11739_v47, %v3536_v30  ;;  %v927_v47 = vsel %vm10134_vm10, %v759_v22, %v926_v40  ;;  %v2155_v31 = vshll.u32 %v9829_v24, 16 }
 0x175   : > { %v11833_v25 = vrot.slane %v2387_v19, 5  ;;  %v2615_v50 = vsel %vm10142_vm11, %v2613_v11, %v2614_v23  ;;  %v8981_v14 = vcombine.low %v11748_v60, %v3537_v52  ;;  %928 = vst [vmem:[#allocation2 + $0xc0] sm:$0xf] %v927_v47  ;;  %v2161_v43 = vshll.u32 %v9830_v10, 16  ;;  %v11852_v60 = vld [vmem:[#allocation2 + $0xbc] sm:$0x1]  ;;  %1557 = vrot.lane.b32.xlu1 %v8822_v28, %s9963_s8  ;;  %v1983_v52 = vpop.permute.xlu1 %1982 }
 0x176   : > { %v8918_v41 = vcombine.low %v11767_v15, %v2615_v50  ;;  %v3645_v55 = vld [vmem:[#allocation3 + $0x68] sm:$0xff]  ;;  %v3263_v11 = vsel %vm10252_vm14, %v11797_v9, %v3262_v12  ;;  %v11854_v15 = vpop.permute.xlu0 %2687  ;;  %v2165_v9 = vshrl.u32 %v9830_v10, 16  ;;  %v363_v24 = vsel %vm10096_vm5, 0, %v362_v58 }
 0x177   : > { %3943 = vmatprep.mubr.bf16.mxu0 %v3645_v55  ;;  %v8949_v54 = vcombine.low %v3253_v34, %v3263_v11  ;;  %3629 = vst.msk [vmem:[#allocation3 + $0x148] sm:$0xff] %vm1077_vm15, %v8981_v14  ;;  %v1458_v22 = vshrl.u32 %v11838_v20, 16  ;;  %v2157_v30 = vrot.slane %v2155_v31, 5  ;;  %v2163_v19 = vrot.slane %v2161_v43, 5  ;;  %364 = vst [vmem:[#allocation2 + $0xc8] sm:$0x1] %v363_v24 }
 0x178   : > { %3944 = vmatmul.mubr.bf16.gmra.mrb[16].mxu0 %v3644_v37  ;;  %v1461_v23 = vshll.u32 %v11838_v20, 16  ;;  %v2167_v17 = vrot.slane %v2165_v9, 4  ;;  %v1471_v6 = vshrl.u32 %v11846_v39, 16  ;;  %v1477_v38 = vshll.u32 %v11852_v60, 16  ;;  %v9831_v55 = vld [vmem:[#allocation2 + $0x60] sm:$0xf] }
 0x179   : > { %3386 = vrot.lane.b32.xlu0 %v8949_v54, %s9962_s27  ;;  %v1460_v34 = vrot.slane %v1458_v22, 4  ;;  %v2158_v61 = vor.u32 %v2157_v30, %v2154_v7  ;;  %v11871_v12 = vrot.slane %v1467_v8, 5  ;;  %v310_v37 = vsel %vm10091_vm4, 0, %v309_v33  ;;  %1801 = vrot.lane.b32.xlu1 %v8854_v26, %s9961_s21  ;;  %v9832_v11 = vld [vmem:[#allocation2 + $0x64] sm:$0xf] }
 0x17a   : > { %v1463_v58 = vrot.slane %v1461_v23, 5  ;;  %v2779_v50 = vld [vmem:[#allocation2 + $0xc4] sm:$0xf]  ;;  %v2168_v40 = vor.u32 %v2167_v17, %v2163_v19  ;;  %v1473_v28 = vrot.slane %v1471_v6, 4  ;;  %v11878_v47 = vrot.slane %v1477_v38, 5  ;;  %v11880_v9 = vpop.permute.xlu0 %2880 }
 0x17b   : > { %v11876_v14 = vld [vmem:[#allocation2 + $0xc4] sm:$0xf]  ;;  %311 = vst [vmem:[#allocation2 + $0xcc] sm:$0x1] %v310_v37  ;;  %v8800_v7 = vcombine.low %v9831_v55, %v9832_v11  ;;  %v3540_v31 = vrot.slane %v2779_v50, 5  ;;  %v2159_v10 = vrot.slane %v2158_v61, 4 }
 0x17c   : > { %v3274_v43 = vshll.u32 %v2779_v50, 16  ;;  %v3278_v54 = vshrl.u32 %v2779_v50, 16  ;;  %v2778_v24 = vld [vmem:[#allocation2 + $0xc0] sm:$0xf]  ;;  %v2169_v26 = vrot.slane %v2168_v40, 4  ;;  %v2618_v22 = vrot.slane %v11876_v14, 5 }
 0x17d   : > { %2699 = vrot.lane.b32.xlu0 %v8918_v41, %s9963_s8  ;;  %v1464_v33 = vor.u32 %v1463_v58, %v1460_v34  ;;  %v1474_v30 = vor.u32 %v1473_v28, %v11871_v12  ;;  %v11885_v23 = vld [vmem:[#allocation2 + $0xd0] sm:$0xf]  ;;  %1086 = vst.msk [vmem:[#allocation3 + $0xc0] sm:$0xff] %vm1077_vm15, %v8800_v7  ;;  %v8934_v8 = vcombine.low %v2778_v24, %v2779_v50  ;;  %v8966_v17 = vrot.slane %v2778_v24, 9  ;;  %v11892_v61 = vld [vmem:[#allocation2 + $0xc0] sm:$0xf]  ;;  %v11917_v7 = vpop.permute.xlu1 %1547 }
 0x17e   : > { %v11888_v6 = vrot.slane %v3540_v31, 4  ;;  %v2164_v38 = vsel %vm10252_vm14, %v2159_v10, %v2163_v19  ;;  %1586 = vst.msk [vmem:[#allocation3 + $0xc0] sm:$0xff] %vm1577_vm1, %v11808_v18  ;;  %v3673_v41 = vld [vmem:[#allocation3 + $0x148] sm:$0xff]  ;;  %v15437_v34 = vld [vmem:[#allocation22_spill] sm:$0xff]  ;;  %v930_v37 = vld [vmem:[#allocation2 + $0xc8] sm:$0x1]  ;;  %1994 = vrot.lane.b32.xlu1 %v8870_v51, %s9962_s27 }
 0x17f   : > { %v2174_v58 = vsel %vm10252_vm14, %v2169_v26, %v15437_v34  ;;  %v3265_v40 = vshrl.u32 %v2778_v24, 16  ;;  %v3268_v28 = vshll.u32 %v2778_v24, 16  ;;  %v11899_v50 = vrot.slane %v3274_v43, 5  ;;  %1830 = vst.msk [vmem:[#allocation3 + $0xc0] sm:$0xff] %vm1821_vm2, %v11840_v48  ;;  %9635 = vmatmul.mubr.msk.bf16.gmra.mrb[24].mxu1 %vm1077_vm15, %v3673_v41  ;;  %v11926_v24 = vpop.permute.xlu0 %3376 }
 0x180   : > { %v8877_v18 = vcombine.low %v2164_v38, %v2174_v58  ;;  %v931_v19 = vsel %vm10091_vm4, %v769_v35, %v930_v37  ;;  %v3280_v55 = vrot.slane %v3278_v54, 4  ;;  %v11914_v11 = vsel %vm10142_vm11, %v8966_v17, %v3540_v31  ;;  %2023 = vst.msk [vmem:[#allocation3 + $0xc0] sm:$0xff] %vm2014_vm3, %v1983_v52  ;;  %v365_v52 = vld [vmem:[#allocation2 + $0xd4] sm:$0x1] }
 0x181   : > { %2892 = vrot.lane.b32.xlu0 %v8934_v8, %s9961_s21  ;;  %932 = vst [vmem:[#allocation2 + $0xc8] sm:$0x1] %v931_v19  ;;  %v3267_v51 = vrot.slane %v3265_v40, 4  ;;  %v3270_v48 = vrot.slane %v3268_v28, 5  ;;  %v8903_v10 = vrot.slane %v11892_v61, 9  ;;  %v2620_v46 = vrot.slane %v2618_v22, 4 }
 0x182   : > { %2484 = vst.msk [vmem:[#allocation3 + $0x80] sm:$0xff] %vm1077_vm15, %v8877_v18  ;;  %v3281_v35 = vor.u32 %v3280_v55, %v11899_v50  ;;  %v1465_v43 = vrot.slane %v1464_v33, 4  ;;  %v1475_v54 = vrot.slane %v1474_v30, 4  ;;  %v11923_v31 = vld [vmem:[#allocation2 + $0xcc] sm:$0xf]  ;;  %v3547_v37 = vrot.slane %v11885_v23, 5 }
 0x183   : > { %2724 = vst.msk [vmem:[#allocation3 + $0x80] sm:$0xff] %vm1577_vm1, %v11511_v42  ;;  %v3271_v26 = vor.u32 %v3270_v48, %v3267_v51  ;;  %v11932_v8 = vsel %vm10142_vm11, %v8903_v10, %v2618_v22  ;;  %v3289_v33 = vshrl.u32 %v11923_v31, 16  ;;  %v3292_v22 = vshll.u32 %v11923_v31, 16  ;;  %v9833_v28 = vld [vmem:[#allocation2 + $0x54] sm:$0xf] }
 0x184   : > { %v3282_v30 = vrot.slane %v3281_v35, 4  ;;  %2917 = vst.msk [vmem:[#allocation3 + $0x80] sm:$0xff] %vm1821_vm2, %v11547_v29  ;;  %v1470_v38 = vsel %vm10252_vm14, %v1465_v43, %v11871_v12  ;;  %v1480_v42 = vsel %vm10252_vm14, %v1475_v54, %v11878_v47  ;;  %v8967_v58 = vrot.slane %v11923_v31, 9  ;;  %v11953_v47 = vpop.permute.xlu1 %1791 }
 0x185   : > { %v3272_v41 = vrot.slane %v3271_v26, 4  ;;  %v8823_v34 = vcombine.low %v1470_v38, %v1480_v42  ;;  %3413 = vst.msk [vmem:[#allocation3 + $0x80] sm:$0xff] %vm2014_vm3, %v11586_v59  ;;  %v8839_v29 = vrot.slane %v11838_v20, 9  ;;  %v1720_v40 = vrot.slane %v11846_v39, 5 }
 0x186   : > { %v1723_v12 = vrot.slane %v11852_v60, 5  ;;  %v2176_v18 = vshrl.u32 %v9833_v28, 16  ;;  %v11961_v59 = vsel %vm10142_vm11, %v8967_v58, %v3547_v37  ;;  %v11963_v55 = vrot.slane %v3547_v37, 4  ;;  %v9834_v37 = vld [vmem:[#allocation2 + $0x58] sm:$0xf] }
 0x187   : > { %v3277_v19 = vsel %vm10252_vm14, %v3272_v41, %v11899_v50  ;;  %1559 = vrot.lane.b32.xlu1 %v8823_v34, %s9963_s8  ;;  %v2179_v51 = vshll.u32 %v9833_v28, 16  ;;  %v1721_v60 = vsel %vm10142_vm11, %v8839_v29, %v1720_v40  ;;  %v1722_v35 = vrot.slane %v1720_v40, 4  ;;  %v11969_v50 = vpop.permute.xlu0 %2689 }
 0x188   : > { %v2780_v48 = vld [vmem:[#allocation2 + $0xc8] sm:$0x1]  ;;  %v2178_v43 = vrot.slane %v2176_v18, 4  ;;  %v8871_v54 = vcombine.low %v11892_v61, %v11876_v14  ;;  %v2185_v28 = vshll.u32 %v9834_v37, 16  ;;  %v2189_v17 = vshrl.u32 %v9834_v37, 16  ;;  %v11982_v37 = vpop.permute.xlu1 %1984 }
 0x189   : > { %v1885_v10 = vld [vmem:[#allocation2 + $0xc8] sm:$0x1]  ;;  %v3284_v26 = vshll.u32 %v2780_v48, 16  ;;  %v3543_v38 = vrot.slane %v2780_v48, 5  ;;  %v1724_v34 = vsel %vm10142_vm11, %v1722_v35, %v1723_v12  ;;  %v2181_v58 = vrot.slane %v2179_v51, 5 }
 0x18a   : > { %v2411_v42 = vshll.u32 %v1885_v10, 16  ;;  %v2621_v41 = vrot.slane %v1885_v10, 5  ;;  %v8855_v51 = vcombine.low %v1721_v60, %v1724_v34  ;;  %v2187_v44 = vrot.slane %v2185_v28, 5 }
 0x18b   : > { %v3286_v29 = vrot.slane %v3284_v26, 5  ;;  %v3544_v40 = vsel %vm10142_vm11, %v11888_v6, %v3543_v38  ;;  %v2182_v35 = vor.u32 %v2181_v58, %v2178_v43  ;;  %v2191_v6 = vrot.slane %v2189_v17, 4  ;;  %v11990_v43 = vpop.permute.xlu0 %2882 }
 0x18c   : > { %v11976_v18 = vrot.slane %v2411_v42, 5  ;;  %v2622_v48 = vsel %vm10142_vm11, %v2620_v46, %v2621_v41  ;;  %v8982_v10 = vcombine.low %v11914_v11, %v3544_v40  ;;  %v3648_v32 = vld [vmem:[#allocation3 + $0x80] sm:$0xff]  ;;  %v366_v38 = vsel %vm10096_vm5, 0, %v365_v52  ;;  %1803 = vrot.lane.b32.xlu1 %v8855_v51, %s9961_s21  ;;  %v9835_v52 = vld [vmem:[#allocation2 + $0x60] sm:$0xf] }
 0x18d   : > { %v8919_v12 = vcombine.low %v11932_v8, %v2622_v48  ;;  %v3287_v26 = vsel %vm10252_vm14, %v3282_v30, %v3286_v29  ;;  %3951 = vmatprep.mubr.bf16.mxu0 %v3648_v32  ;;  %v2183_v11 = vrot.slane %v2182_v35, 4  ;;  %367 = vst [vmem:[#allocation2 + $0xd4] sm:$0x1] %v366_v38  ;;  %v3291_v8 = vrot.slane %v3289_v33, 4  ;;  %v9836_v33 = vld [vmem:[#allocation2 + $0x64] sm:$0xf] }
 0x18e   : > { %v8950_v46 = vcombine.low %v3277_v19, %v3287_v26  ;;  %3630 = vst.msk [vmem:[#allocation3 + $0x160] sm:$0xff] %vm1077_vm15, %v8982_v10  ;;  %v3294_v60 = vrot.slane %v3292_v22, 5  ;;  %3952 = vmatmul.mubr.bf16.gmra.mrb[20].mxu0 %v3647_v1  ;;  %v2192_v42 = vor.u32 %v2191_v6, %v2187_v44  ;;  %v3298_v30 = vshll.u32 %v11885_v23, 16  ;;  %v9837_v51 = vld [vmem:[#allocation2 + $0x6c] sm:$0xf]  ;;  %v11999_v26 = vpop.permute.xlu1 %1549  ;;  %v15439_v6 = vld [vmem:[#allocation23_spill] sm:$0xff] }
 0x18f   : > { %v15438_v17 = vshrl.u32 %v11885_v23, 16  ;;  %v2200_v32 = vshrl.u32 %v9835_v52, 16  ;;  %v2188_v19 = vsel %vm10252_vm14, %v2183_v11, %v2187_v44  ;;  %v2203_v34 = vshll.u32 %v9835_v52, 16 }
 0x190   : > { %3388 = vrot.lane.b32.xlu0 %v8950_v46, %s9962_s27  ;;  %v3295_v41 = vor.u32 %v3294_v60, %v3291_v8  ;;  %v2209_v22 = vshll.u32 %v9836_v33, 16  ;;  %v2193_v1 = vrot.slane %v2192_v42, 4  ;;  %v3300_v58 = vrot.slane %v3298_v30, 5  ;;  %1996 = vrot.lane.b32.xlu1 %v8871_v54, %s9962_s27  ;;  %v12007_v30 = vpop.permute.xlu0 %3378 }
 0x191   : > { %v3304_v2 = vrot.slane %v15438_v17, 4  ;;  %v2202_v28 = vrot.slane %v2200_v32, 4  ;;  %v2213_v29 = vshrl.u32 %v9836_v33, 16  ;;  %v2205_v48 = vrot.slane %v2203_v34, 5  ;;  %v9838_v34 = vld [vmem:[#allocation2 + $0x70] sm:$0xf] }
 0x192   : > { %v3296_v40 = vrot.slane %v3295_v41, 4  ;;  %v2211_v10 = vrot.slane %v2209_v22, 5  ;;  %v2224_v35 = vshrl.u32 %v9837_v51, 16  ;;  %v2198_v44 = vsel %vm10252_vm14, %v2193_v1, %v15439_v6 }
 0x193   : > { %v3305_v38 = vor.u32 %v3304_v2, %v3300_v58  ;;  %v2215_v46 = vrot.slane %v2213_v29, 4  ;;  %v2227_v11 = vshll.u32 %v9837_v51, 16  ;;  %v8878_v8 = vcombine.low %v2188_v19, %v2198_v44 }
 0x194   : > { %2701 = vrot.lane.b32.xlu0 %v8919_v12, %s9963_s8  ;;  %v3301_v60 = vsel %vm10252_vm14, %v3296_v40, %v3300_v58  ;;  %v2206_v54 = vor.u32 %v2205_v48, %v2202_v28  ;;  %v2226_v42 = vrot.slane %v2224_v35, 4  ;;  %v2783_v17 = vld [vmem:[#allocation2 + $0xd4] sm:$0x1]  ;;  %v2233_v33 = vshll.u32 %v9838_v34, 16  ;;  %v9839_v40 = vld [vmem:[#allocation2 + $0x78] sm:$0xf] }
 0x195   : > { %v3306_v52 = vrot.slane %v3305_v38, 4  ;;  %v2216_v32 = vor.u32 %v2215_v46, %v2211_v10  ;;  %v2229_v41 = vrot.slane %v2227_v11, 5  ;;  %v3676_v22 = vld [vmem:[#allocation3 + $0x160] sm:$0xff]  ;;  %2485 = vst.msk [vmem:[#allocation3 + $0x98] sm:$0xff] %vm1077_vm15, %v8878_v8  ;;  %v3308_v2 = vshll.u32 %v2783_v17, 16  ;;  %v12024_v38 = vpop.permute.xlu1 %1793 }
 0x196   : > { %v3550_v1 = vrot.slane %v2783_v17, 5  ;;  %v2207_v12 = vrot.slane %v2206_v54, 4  ;;  %v2237_v19 = vshrl.u32 %v9838_v34, 16  ;;  %9638 = vmatprep.mubr.msk.bf16.mxu1 %vm1077_vm15, %v3676_v22  ;;  %2725 = vst.msk [vmem:[#allocation3 + $0x98] sm:$0xff] %vm1577_vm1, %v11620_v36  ;;  %v2235_v29 = vrot.slane %v2233_v33, 5 }
 0x197   : > { %v2217_v58 = vrot.slane %v2216_v32, 4  ;;  %v2230_v28 = vor.u32 %v2229_v41, %v2226_v42  ;;  %v2248_v48 = vshrl.u32 %v9839_v40, 16  ;;  %v15440_v51 = vcombine.low %v11923_v31, %v11885_v23  ;;  %2918 = vst.msk [vmem:[#allocation3 + $0x98] sm:$0xff] %vm1821_vm2, %v11660_v16  ;;  %v15441_v23 = vld [vmem:[#allocation24_spill] sm:$0xff]  ;;  %v12034_v42 = vpop.permute.xlu0 %2691  ;;  %v9841_v22 = vld [vmem:[#allocation2 + $0x6c] sm:$0xf] }
 0x198   : > { %v3310_v35 = vrot.slane %v3308_v2, 5  ;;  %v3551_v6 = vsel %vm10142_vm11, %v11963_v55, %v3550_v1  ;;  %v2212_v36 = vsel %vm10252_vm14, %v2207_v12, %v2211_v10  ;;  %v2239_v44 = vrot.slane %v2237_v19, 4  ;;  %3414 = vst.msk [vmem:[#allocation3 + $0x98] sm:$0xff] %vm2014_vm3, %v11689_v63  ;;  %v9843_v1 = vld [vmem:[#allocation2 + $0x84] sm:$0xf] }
 0x199   : > { %2894 = vrot.lane.b32.xlu0 %v15440_v51, %s9961_s21  ;;  %v8983_v46 = vcombine.low %v11961_v59, %v3551_v6  ;;  %v2222_v31 = vsel %vm10252_vm14, %v2217_v58, %v15441_v23  ;;  %v2231_v11 = vrot.slane %v2230_v28, 4  ;;  %v2250_v55 = vrot.slane %v2248_v48, 4  ;;  %v9840_v59 = vld [vmem:[#allocation2 + $0x7c] sm:$0xf]  ;;  %v9844_v28 = vld [vmem:[#allocation2 + $0x88] sm:$0xf] }
 0x19a   : > { %v3311_v16 = vsel %vm10252_vm14, %v3306_v52, %v3310_v35  ;;  %v8879_v8 = vcombine.low %v2212_v36, %v2222_v31  ;;  %v2240_v54 = vor.u32 %v2239_v44, %v2235_v29  ;;  %v2251_v10 = vshll.u32 %v9839_v40, 16  ;;  %v9842_v52 = vld [vmem:[#allocation2 + $0x70] sm:$0xf]  ;;  %v1987_v36 = vpop.permute.xlu1 %1986 }
 0x19b   : > { %v8951_v17 = vcombine.low %v3301_v60, %v3311_v16  ;;  %3631 = vst.msk [vmem:[#allocation3 + $0x178] sm:$0xff] %vm1077_vm15, %v8983_v46  ;;  %v2236_v63 = vsel %vm10252_vm14, %v2231_v11, %v2235_v29  ;;  %v2257_v32 = vshll.u32 %v9840_v59, 16  ;;  %v2261_v41 = vshrl.u32 %v9840_v59, 16  ;;  %v15442_v40 = vld [vmem:[#allocation26_spill] sm:$0xff]  ;;  %v9845_v16 = vld [vmem:[#allocation2 + $0x78] sm:$0xf] }
 0x19c   : > { %2486 = vst.msk [vmem:[#allocation3 + $0xb0] sm:$0xff] %vm1077_vm15, %v8879_v8  ;;  %v2241_v34 = vrot.slane %v2240_v54, 4  ;;  %v2253_v33 = vrot.slane %v2251_v10, 5  ;;  %v8801_v2 = vcombine.low %v9841_v22, %v9842_v52  ;;  %v2272_v12 = vshrl.u32 %v9843_v1, 16  ;;  %v9846_v8 = vld [vmem:[#allocation2 + $0x7c] sm:$0xf]  ;;  %v12055_v10 = vpop.permute.xlu0 %2884 }
 0x19d   : > { %3390 = vrot.lane.b32.xlu0 %v8951_v17, %s9962_s27  ;;  %2726 = vst.msk [vmem:[#allocation3 + $0xb0] sm:$0xff] %vm1577_vm1, %v11723_v13  ;;  %v2259_v60 = vrot.slane %v2257_v32, 5  ;;  %v2263_v19 = vrot.slane %v2261_v41, 4  ;;  %v2275_v58 = vshll.u32 %v9843_v1, 16  ;;  %v2281_v29 = vshll.u32 %v9844_v28, 16  ;;  %v3650_v13 = vld [vmem:[#allocation3 + $0x90] sm:$0xff] }
 0x19e   : > { %2919 = vst.msk [vmem:[#allocation3 + $0xb0] sm:$0xff] %vm1821_vm2, %v11775_v62  ;;  %v2246_v48 = vsel %vm10252_vm14, %v2241_v34, %v15442_v40  ;;  %v2254_v51 = vor.u32 %v2253_v33, %v2250_v55  ;;  %v2274_v35 = vrot.slane %v2272_v12, 4  ;;  %v2285_v6 = vshrl.u32 %v9844_v28, 16  ;;  %v9848_v32 = vld [vmem:[#allocation2 + $0x94] sm:$0xf]  ;;  %v1552_v40 = vpop.permute.xlu1 %1551 }
 0x19f   : > { %1087 = vst.msk [vmem:[#allocation3 + $0xd8] sm:$0xff] %vm1077_vm15, %v8801_v2  ;;  %v8880_v44 = vcombine.low %v2236_v63, %v2246_v48  ;;  %v2264_v46 = vor.u32 %v2263_v19, %v2259_v60  ;;  %v2277_v62 = vrot.slane %v2275_v58, 5  ;;  %v2283_v23 = vrot.slane %v2281_v29, 5  ;;  %v3651_v31 = vld [vmem:[#allocation3 + $0x98] sm:$0xff]  ;;  %v9849_v58 = vld [vmem:[#allocation2 + $0x84] sm:$0xf] }
 0x1a0   : > { %3415 = vst.msk [vmem:[#allocation3 + $0xb0] sm:$0xff] %vm2014_vm3, %v11818_v45  ;;  %v2255_v11 = vrot.slane %v2254_v51, 4  ;;  %v2287_v55 = vrot.slane %v2285_v6, 4  ;;  %v8802_v54 = vcombine.low %v9845_v16, %v9846_v8  ;;  %v9847_v45 = vld [vmem:[#allocation2 + $0x90] sm:$0xf]  ;;  %3959 = vmatprep.mubr.bf16.mxu0 %v3651_v31  ;;  %v2305_v41 = vshll.u32 %v9848_v32, 16 }
 0x1a1   : > { %1587 = vst.msk [vmem:[#allocation3 + $0xd8] sm:$0xff] %vm1577_vm1, %v11917_v7  ;;  %v2296_v17 = vshrl.u32 %v9847_v45, 16  ;;  %v2265_v63 = vrot.slane %v2264_v46, 4  ;;  %v2278_v7 = vor.u32 %v2277_v62, %v2274_v35  ;;  %v2299_v59 = vshll.u32 %v9847_v45, 16  ;;  %3960 = vmatmul.mubr.bf16.gmra.mrb[24].mxu0 %v3650_v13  ;;  %v9850_v28 = vld [vmem:[#allocation2 + $0x88] sm:$0xf] }
 0x1a2   : > { %1831 = vst.msk [vmem:[#allocation3 + $0xd8] sm:$0xff] %vm1821_vm2, %v11953_v47  ;;  %v2260_v47 = vsel %vm10252_vm14, %v2255_v11, %v2259_v60  ;;  %v2288_v34 = vor.u32 %v2287_v55, %v2283_v23  ;;  %v2309_v22 = vshrl.u32 %v9848_v32, 16  ;;  %v3679_v52 = vld [vmem:[#allocation3 + $0x178] sm:$0xff]  ;;  %v2307_v12 = vrot.slane %v2305_v41, 5  ;;  %v9851_v51 = vld [vmem:[#allocation2 + $0x9c] sm:$0xf]  ;;  %v3381_v13 = vpop.permute.xlu0 %3380 }
 0x1a3   : > { %2487 = vst.msk [vmem:[#allocation3 + $0xc8] sm:$0xff] %vm1077_vm15, %v8880_v44  ;;  %1088 = vst.msk [vmem:[#allocation3 + $0xf0] sm:$0xff] %vm1077_vm15, %v8802_v54  ;;  %v2298_v33 = vrot.slane %v2296_v17, 4  ;;  %v2279_v1 = vrot.slane %v2278_v7, 4  ;;  %9639 = vmatmul.mubr.msk.bf16.gmra.mrb[28].mxu1 %vm1077_vm15, %v3679_v52  ;;  %v8803_v29 = vcombine.low %v9849_v58, %v9850_v28  ;;  %v2320_v35 = vshrl.u32 %v9851_v51, 16 }
 0x1a4   : > { %2024 = vst.msk [vmem:[#allocation3 + $0xd8] sm:$0xff] %vm2014_vm3, %v11982_v37  ;;  %v15443_v37 = vld [vmem:[#allocation18_spill] sm:$0xff]  ;;  %v2289_v19 = vrot.slane %v2288_v34, 4  ;;  %v2323_v6 = vshll.u32 %v9851_v51, 16  ;;  %v9852_v46 = vld [vmem:[#allocation2 + $0xa0] sm:$0xf] }
 0x1a5   : > { %2727 = vst.msk [vmem:[#allocation3 + $0xc8] sm:$0xff] %vm1577_vm1, %v11854_v15  ;;  %v2270_v2 = vsel %vm10252_vm14, %v2265_v63, %v15443_v37  ;;  %1588 = vst.msk [vmem:[#allocation3 + $0xf0] sm:$0xff] %vm1577_vm1, %v11999_v26  ;;  %v2301_v15 = vrot.slane %v2299_v59, 5  ;;  %v2284_v26 = vsel %vm10252_vm14, %v2279_v1, %v2283_v23  ;;  %v2329_v62 = vshll.u32 %v9852_v46, 16  ;;  %v9853_v45 = vld [vmem:[#allocation2 + $0x90] sm:$0xf] }
 0x1a6   : > { %2920 = vst.msk [vmem:[#allocation3 + $0xc8] sm:$0xff] %vm1821_vm2, %v11880_v9  ;;  %v8881_v60 = vcombine.low %v2260_v47, %v2270_v2  ;;  %1832 = vst.msk [vmem:[#allocation3 + $0xf0] sm:$0xff] %vm1821_vm2, %v12024_v38  ;;  %v2311_v9 = vrot.slane %v2309_v22, 4  ;;  %v2294_v38 = vsel %vm10252_vm14, %v2289_v19, %v11220_v3  ;;  %v2333_v23 = vshrl.u32 %v9852_v46, 16  ;;  %v9854_v17 = vld [vmem:[#allocation2 + $0x94] sm:$0xf]  ;;  %v1796_v47 = vpop.permute.xlu1 %1795 }
 0x1a7   : > { %3416 = vst.msk [vmem:[#allocation3 + $0xc8] sm:$0xff] %vm2014_vm3, %v11926_v24  ;;  %2025 = vst.msk [vmem:[#allocation3 + $0xf0] sm:$0xff] %vm2014_vm3, %v1987_v36  ;;  %v2302_v48 = vor.u32 %v2301_v15, %v2298_v33  ;;  %v3654_v24 = vld [vmem:[#allocation3 + $0xb0] sm:$0xff]  ;;  %v3653_v36 = vld [vmem:[#allocation3 + $0xa8] sm:$0xff]  ;;  %v8882_v31 = vcombine.low %v2284_v26, %v2294_v38  ;;  %v2322_v55 = vrot.slane %v2320_v35, 4  ;;  %v2325_v16 = vrot.slane %v2323_v6, 5 }
 0x1a8   : > { %2488 = vst.msk [vmem:[#allocation3 + $0xe0] sm:$0xff] %vm1077_vm15, %v8881_v60  ;;  %v2312_v44 = vor.u32 %v2311_v9, %v2307_v12  ;;  %1089 = vst.msk [vmem:[#allocation3 + $0x108] sm:$0xff] %vm1077_vm15, %v8803_v29  ;;  %3967 = vmatprep.mubr.bf16.mxu0 %v3654_v24  ;;  %v2331_v8 = vrot.slane %v2329_v62, 5  ;;  %v2335_v54 = vrot.slane %v2333_v23, 4  ;;  %v8804_v63 = vcombine.low %v9853_v45, %v9854_v17  ;;  %v9855_v59 = vld [vmem:[#allocation2 + $0xa8] sm:$0xf] }
 0x1a9   : > { %2728 = vst.msk [vmem:[#allocation3 + $0xe0] sm:$0xff] %vm1577_vm1, %v11969_v50  ;;  %v2303_v11 = vrot.slane %v2302_v48, 4  ;;  %1589 = vst.msk [vmem:[#allocation3 + $0x108] sm:$0xff] %vm1577_vm1, %v1552_v40  ;;  %v2326_v7 = vor.u32 %v2325_v16, %v2322_v55  ;;  %v2344_v32 = vshrl.u32 %v9855_v59, 16  ;;  %v2347_v41 = vshll.u32 %v9855_v59, 16  ;;  %3968 = vmatmul.mubr.bf16.gmra.mrb[28].mxu0 %v3653_v36  ;;  %v3656_v24 = vld [vmem:[#allocation3 + $0xc0] sm:$0xff] }
 0x1aa   : > { %2921 = vst.msk [vmem:[#allocation3 + $0xe0] sm:$0xff] %vm1821_vm2, %v11990_v43  ;;  %v2313_v3 = vrot.slane %v2312_v44, 4  ;;  %v2336_v34 = vor.u32 %v2335_v54, %v2331_v8  ;;  %1833 = vst.msk [vmem:[#allocation3 + $0x108] sm:$0xff] %vm1821_vm2, %v1796_v47  ;;  %v9857_v19 = vld [vmem:[#allocation2 + $0x9c] sm:$0xf]  ;;  %v2368_v29 = vshrl.u32 %v11708_v53, 16  ;;  %v1989_v26 = vpop.permute.xlu1 %1988 }
 0x1ab   : > { %3417 = vst.msk [vmem:[#allocation3 + $0xe0] sm:$0xff] %vm2014_vm3, %v12007_v30  ;;  %v2308_v50 = vsel %vm10252_vm14, %v2303_v11, %v2307_v12  ;;  %v9856_v30 = vld [vmem:[#allocation2 + $0xac] sm:$0xf]  ;;  %v2327_v2 = vrot.slane %v2326_v7, 4  ;;  %v2349_v1 = vrot.slane %v2347_v41, 5  ;;  %v2371_v40 = vshll.u32 %v11708_v53, 16 }
 0x1ac   : > { %2489 = vst.msk [vmem:[#allocation3 + $0xf8] sm:$0xff] %vm1077_vm15, %v8882_v31  ;;  %v2318_v43 = vsel %vm10252_vm14, %v2313_v3, %v11407_v57  ;;  %1090 = vst.msk [vmem:[#allocation3 + $0x120] sm:$0xff] %vm1077_vm15, %v8804_v63  ;;  %v2353_v33 = vshll.u32 %v9856_v30, 16  ;;  %v2357_v22 = vshrl.u32 %v9856_v30, 16  ;;  %v2694_v57 = vpop.permute.xlu0 %2693  ;;  %v2337_v15 = vrot.slane %v2336_v34, 4 }
 0x1ad   : > { %2729 = vst.msk [vmem:[#allocation3 + $0xf8] sm:$0xff] %vm1577_vm1, %v12034_v42  ;;  %v8883_v37 = vcombine.low %v2308_v50, %v2318_v43  ;;  %v2346_v42 = vrot.slane %v2344_v32, 4  ;;  %v9858_v9 = vld [vmem:[#allocation2 + $0xa0] sm:$0xf]  ;;  %v2377_v35 = vshll.u32 %v11726_v5, 16  ;;  %v2381_v6 = vshrl.u32 %v11726_v5, 16 }
 0x1ae   : > { %v3657_v52 = vld [vmem:[#allocation3 + $0xc8] sm:$0xff]  ;;  %2922 = vst.msk [vmem:[#allocation3 + $0xf8] sm:$0xff] %vm1821_vm2, %v12055_v10  ;;  %v2355_v12 = vrot.slane %v2353_v33, 5  ;;  %v2359_v60 = vrot.slane %v2357_v22, 4  ;;  %v8805_v58 = vcombine.low %v9857_v19, %v9858_v9  ;;  %v2332_v10 = vsel %vm10252_vm14, %v2327_v2, %v2331_v8  ;;  %v6598_v54 = vld [vmem:[#allocation2 + $0xcc] sm:$0xf] }
 0x1af   : > { %3975 = vmatprep.mubr.bf16.mxu0 %v3657_v52  ;;  %3418 = vst.msk [vmem:[#allocation3 + $0xf8] sm:$0xff] %vm2014_vm3, %v3381_v13  ;;  %v2350_v28 = vor.u32 %v2349_v1, %v2346_v42  ;;  %v2342_v48 = vsel %vm10252_vm14, %v2337_v15, %v11561_v0  ;;  %2026 = vst.msk [vmem:[#allocation3 + $0x108] sm:$0xff] %vm2014_vm3, %v1989_v26  ;;  %v2370_v53 = vrot.slane %v2368_v29, 4  ;;  %v2373_v44 = vrot.slane %v2371_v40, 5  ;;  %v6599_v50 = vld [vmem:[#allocation2 + $0xd0] sm:$0xf] }
 0x1b0   : > { %2490 = vst.msk [vmem:[#allocation3 + $0x110] sm:$0xff] %vm1077_vm15, %v8883_v37  ;;  %v2360_v51 = vor.u32 %v2359_v60, %v2355_v12  ;;  %1091 = vst.msk [vmem:[#allocation3 + $0x138] sm:$0xff] %vm1077_vm15, %v8805_v58  ;;  %v8884_v38 = vcombine.low %v2332_v10, %v2342_v48  ;;  %v2379_v23 = vrot.slane %v2377_v35, 5  ;;  %v2383_v36 = vrot.slane %v2381_v6, 4  ;;  %v2887_v16 = vpop.permute.xlu0 %2886  ;;  %v6600_v41 = vld [vmem:[#allocation2 + $0xd4] sm:$0x1] }
 0x1b1   : > { %2730 = vst.msk [vmem:[#allocation3 + $0x110] sm:$0xff] %vm1577_vm1, %v2694_v57  ;;  %v2351_v13 = vrot.slane %v2350_v28, 4  ;;  %v8806_v0 = vcombine.low %v11687_v21, %v11693_v56  ;;  %v2374_v5 = vor.u32 %v2373_v44, %v2370_v53  ;;  %v2392_v11 = vshrl.u32 %v11892_v61, 16  ;;  %3976 = vmatmul.mubr.bf16.gmra.mrb[32].mxu0 %v3656_v24  ;;  %v4761_v30 = vld [vmem:[#allocation2] sm:$0xf]  ;;  %v3659_v2 = vld [vmem:[#allocation3 + $0xd8] sm:$0xff] }
 0x1b2   : > { %v3660_v46 = vld [vmem:[#allocation3 + $0xe0] sm:$0xff]  ;;  %v2361_v62 = vrot.slane %v2360_v51, 4  ;;  %2491 = vst.msk [vmem:[#allocation3 + $0x128] sm:$0xff] %vm1077_vm15, %v8884_v38  ;;  %v2395_v55 = vshll.u32 %v11892_v61, 16  ;;  %v2384_v8 = vor.u32 %v2383_v36, %v2379_v23  ;;  %v2401_v21 = vshll.u32 %v11876_v14, 16 }
 0x1b3   : > { %v2356_v31 = vsel %vm10252_vm14, %v2351_v13, %v2355_v12  ;;  %1092 = vst.msk [vmem:[#allocation3 + $0x150] sm:$0xff] %vm1077_vm15, %v8806_v0  ;;  %v2405_v56 = vshrl.u32 %v11876_v14, 16  ;;  %3983 = vmatprep.mubr.bf16.mxu0 %v3660_v46  ;;  %v2375_v17 = vrot.slane %v2374_v5, 4  ;;  %v2394_v61 = vrot.slane %v2392_v11, 4  ;;  %v4762_v33 = vld [vmem:[#allocation2 + $0x4] sm:$0xf] }
 0x1b4   : > { %v2366_v3 = vsel %vm10252_vm14, %v2361_v62, %v11682_v4  ;;  %2923 = vst.msk [vmem:[#allocation3 + $0x110] sm:$0xff] %vm1821_vm2, %v2887_v16  ;;  %v2397_v63 = vrot.slane %v2395_v55, 5  ;;  %v2385_v7 = vrot.slane %v2384_v8, 4  ;;  %v2403_v59 = vrot.slane %v2401_v21, 5  ;;  %v12143_v12 = vpop.f32.mrb[0].mxu1  ;;  %v3662_v55 = vld [vmem:[#allocation3 + $0xf0] sm:$0xff] }
 0x1b5   : > { %v8885_v45 = vcombine.low %v2356_v31, %v2366_v3  ;;  %v2407_v32 = vrot.slane %v2405_v56, 4  ;;  %v8807_v4 = vcombine.low %v11838_v20, %v11846_v39  ;;  %v2380_v14 = vsel %vm10252_vm14, %v2375_v17, %v2379_v23  ;;  %v4763_v20 = vld [vmem:[#allocation2 + $0x8] sm:$0x1]  ;;  %v12145_v9 = vpop.f32.mrb[1].mxu1  ;;  %v1554_v28 = vpop.permute.xlu1 %1553 }
 0x1b6   : > { %v2398_v43 = vor.u32 %v2397_v63, %v2394_v61  ;;  %v9226_v47 = vrot.slane %v6598_v54, 9  ;;  %v7364_v34 = vrot.slane %v6599_v50, 5  ;;  %v2390_v22 = vsel %vm10252_vm14, %v2385_v7, %v11833_v25  ;;  %v3663_v60 = vld [vmem:[#allocation3 + $0xf8] sm:$0xff]  ;;  %v12153_v26 = vpop.f32.mrb[2].mxu1  ;;  %1590 = vst.msk [vmem:[#allocation3 + $0x120] sm:$0xff] %vm1577_vm1, %v1554_v28  ;;  %v3665_v7 = vld [vmem:[#allocation3 + $0x108] sm:$0xff] }
 0x1b7   : > { %2492 = vst.msk [vmem:[#allocation3 + $0x140] sm:$0xff] %vm1077_vm15, %v8885_v45  ;;  %v2408_v52 = vor.u32 %v2407_v32, %v2403_v59  ;;  %1093 = vst.msk [vmem:[#allocation3 + $0x168] sm:$0xff] %vm1077_vm15, %v8807_v4  ;;  %v7367_v37 = vrot.slane %v6600_v41, 5  ;;  %v9051_v39 = vcombine.low %v4761_v30, %v4762_v33  ;;  %v8886_v42 = vcombine.low %v2380_v14, %v2390_v22  ;;  %v12159_v24 = vpop.f32.mrb[3].mxu1 }
 0x1b8   : > { %v2399_v1 = vrot.slane %v2398_v43, 4  ;;  %v7365_v57 = vsel %vm10142_vm11, %v9226_v47, %v7364_v34  ;;  %v7366_v15 = vrot.slane %v7364_v34, 4  ;;  %v4922_v25 = vshrl.u32 %v4761_v30, 16 }
 0x1b9   : > { %v2409_v19 = vrot.slane %v2408_v52, 4  ;;  %v4925_v58 = vshll.u32 %v4761_v30, 16  ;;  %v4931_v10 = vshll.u32 %v4762_v33, 16  ;;  %4905 = vst.msk [vmem:[#allocation3] sm:$0xff] %vm1077_vm15, %v9051_v39  ;;  %2493 = vst.msk [vmem:[#allocation3 + $0x158] sm:$0xff] %vm1077_vm15, %v8886_v42  ;;  %v4935_v48 = vshrl.u32 %v4762_v33, 16  ;;  %3984 = vmatmul.mubr.bf16.gmra.mrb[36].mxu0 %v3659_v2 }
 0x1ba   : > { %v2404_v29 = vsel %vm10252_vm14, %v2399_v1, %v2403_v59  ;;  %v7368_v40 = vsel %vm10142_vm11, %v7366_v15, %v7367_v37  ;;  %v4941_v51 = vshll.u32 %v4763_v20, 16  ;;  %v4924_v38 = vrot.slane %v4922_v25, 4  ;;  %3991 = vmatprep.mubr.bf16.mxu0 %v3663_v60 }
 0x1bb   : > { %v2414_v35 = vsel %vm10252_vm14, %v2409_v19, %v11976_v18  ;;  %v9242_v6 = vcombine.low %v7365_v57, %v7368_v40  ;;  %v4927_v13 = vrot.slane %v4925_v58, 5  ;;  %v4933_v44 = vrot.slane %v4931_v10, 5  ;;  %v9771_v40 = vld [vmem:[%s15291_s3 + $0x88] sm:$0xff]  }
 0x1bc   : > { %v8887_v53 = vcombine.low %v2404_v29, %v2414_v35  ;;  %v4937_v46 = vrot.slane %v4935_v48, 4  ;;  %v5435_v23 = vrot.slane %v4762_v33, 5  ;;  %v4943_v0 = vrot.slane %v4941_v51, 5  ;;  %v1798_v8 = vpop.permute.xlu1 %1797  ;;  %v9769_v29 = vld [vmem:[%s15291_s3 + $0x80] sm:$0xff]  }
 0x1bd   : > { %7448 = vst.msk [vmem:[#allocation3 + $0x178] sm:$0xff] %vm1077_vm15, %v9242_v6  ;;  %v4928_v62 = vor.u32 %v4927_v13, %v4924_v38  ;;  %v5438_v31 = vrot.slane %v4763_v20, 5  ;;  %v9083_v5 = vrot.slane %v4761_v30, 9  ;;  %v3383_v3 = vpop.permute.xlu0 %3382  ;;  %9642 = vmatprep.subr.bf16.mxu0 %v9769_v29  ;;  %vm8105_vm5 = vcmask 1043459  }
 0x1be   : > { %2494 = vst.msk [vmem:[#allocation3 + $0x170] sm:$0xff] %vm1077_vm15, %v8887_v53  ;;  %v4938_v36 = vor.u32 %v4937_v46, %v4933_v44  ;;  %v5437_v11 = vrot.slane %v5435_v23, 4  ;;  %9643 = vmatpush3.bf16.msra.mxu0 %v9769_v29  ;;  %v12220_v53 = vld [vmem:[%s15290_s2] ss:$0 sm:$0xff] }
 0x1bf   : > { %v4929_v18 = vrot.slane %v4928_v62, 4  ;;  %3419 = vst.msk [vmem:[#allocation3 + $0x110] sm:$0xff] %vm2014_vm3, %v3383_v3  ;;  %v5436_v54 = vsel %vm10142_vm11, %v9083_v5, %v5435_v23  ;;  %9644 = vmatprep.subr.bf16.mxu0 %v9771_v40 }
 0x1c0   : > { %v4939_v16 = vrot.slane %v4938_v36, 4  ;;  %1834 = vst.msk [vmem:[#allocation3 + $0x120] sm:$0xff] %vm1821_vm2, %v1798_v8  ;;  %v5439_v45 = vsel %vm10142_vm11, %v5437_v11, %v5438_v31  ;;  %v1991_v63 = vpop.permute.xlu1 %1990 }
 0x1c1   : > { %v4934_v21 = vsel %vm10252_vm14, %v4929_v18, %v4933_v44  ;;  %3992 = vmatmul.mubr.bf16.gmra.mrb[40].mxu0 %v3662_v55  ;;  %v2696_v61 = vpop.permute.xlu0 %2695  ;;  %v9099_v50 = vcombine.low %v5436_v54, %v5439_v45  ;;  %2027 = vst.msk [vmem:[#allocation3 + $0x120] sm:$0xff] %vm2014_vm3, %v1991_v63 }
 0x1c2   : > { %v4944_v56 = vsel %vm10252_vm14, %v4939_v16, %v4943_v0  ;;  %2731 = vst.msk [vmem:[#allocation3 + $0x128] sm:$0xff] %vm1577_vm1, %v2696_v61  ;;  %9645 = vmatpush3.bf16.msra.mxu0 %v9771_v40 }
 0x1c3   : > { %v9067_v17 = vcombine.low %v4934_v21, %v4944_v56 }
 0x1c5   : > { %5353 = vrot.lane.b32.xlu1 %v9067_v17, %s9963_s8  ;;  %v2889_v59 = vpop.permute.xlu0 %2888 }
 0x1c6   : > { %v3666_v32 = vld [vmem:[#allocation3 + $0x110] sm:$0xff]  ;;  %2924 = vst.msk [vmem:[#allocation3 + $0x128] sm:$0xff] %vm1821_vm2, %v2889_v59 }
 0x1c7   : > { %3999 = vmatprep.mubr.bf16.mxu0 %v3666_v32 }
 0x1c8   : > { %v3668_v52 = vld [vmem:[#allocation3 + $0x120] sm:$0xff] }
 0x1c9   : > { %5593 = vrot.lane.b32.xlu1 %v9099_v50, %s9961_s21  ;;  %4000 = vmatmul.mubr.bf16.gmra.mrb[44].mxu0 %v3665_v7  ;;  %v12179_v41 = vpop.f32.mrb[4].mxu1 }
 0x1ca   : > { %v12181_v43 = vpop.f32.mrb[5].mxu1 }
 0x1cb   : > { %v1556_v4 = vpop.permute.xlu1 %1555  ;;  %v12184_v47 = vpop.f32.mrb[6].mxu1 }
 0x1cc   : > { %1591 = vst.msk [vmem:[#allocation3 + $0x138] sm:$0xff] %vm1577_vm1, %v1556_v4  ;;  %v12186_v30 = vpop.f32.mrb[7].mxu1 }
 0x1cf   : > { %v1800_v14 = vpop.permute.xlu1 %1799 }
 0x1d0   : > { %1835 = vst.msk [vmem:[#allocation3 + $0x138] sm:$0xff] %vm1821_vm2, %v1800_v14 }
 0x1d2   : > { %v3385_v34 = vpop.permute.xlu0 %3384 }
 0x1d3   : > { %3420 = vst.msk [vmem:[#allocation3 + $0x128] sm:$0xff] %vm2014_vm3, %v3385_v34  ;;  %v1993_v33 = vpop.permute.xlu1 %1992 }
 0x1d4   : > { %2028 = vst.msk [vmem:[#allocation3 + $0x138] sm:$0xff] %vm2014_vm3, %v1993_v33 }
 0x1d6   : > { %v2698_v22 = vpop.permute.xlu0 %2697 }
 0x1d7   : > { %2732 = vst.msk [vmem:[#allocation3 + $0x140] sm:$0xff] %vm1577_vm1, %v2698_v22 }
 0x1da   : > { %v2891_v37 = vpop.permute.xlu0 %2890  ;;  %v3669_v20 = vld [vmem:[#allocation3 + $0x128] sm:$0xff] }
 0x1db   : > { %2925 = vst.msk [vmem:[#allocation3 + $0x140] sm:$0xff] %vm1821_vm2, %v2891_v37  ;;  %4007 = vmatprep.mubr.bf16.mxu0 %v3669_v20  ;;  %v3671_v58 = vld [vmem:[#allocation3 + $0x138] sm:$0xff] }
 0x1dc   : > { %4008 = vmatmul.mubr.bf16.gmra.mrb[48].mxu0 %v3668_v52  ;;  %v4649_v52 = vld [vmem:[#allocation2 + $0xc] sm:$0xf] }
 0x1e4   : > { %v12194_v1 = vpop.f32.mrb[8].mxu1 }
 0x1e5   : > { %v12197_v57 = vpop.f32.mrb[9].mxu1 }
 0x1e6   : > { %v12199_v60 = vpop.f32.mrb[10].mxu1 }
 0x1e7   : > { %v1558_v39 = vpop.permute.xlu1 %1557  ;;  %v12202_v19 = vpop.f32.mrb[11].mxu1 }
 0x1e8   : > { %1592 = vst.msk [vmem:[#allocation3 + $0x150] sm:$0xff] %vm1577_vm1, %v1558_v39 }
 0x1eb   : > { %v3387_v2 = vpop.permute.xlu0 %3386  ;;  %v1802_v42 = vpop.permute.xlu1 %1801 }
 0x1ec   : > { %3421 = vst.msk [vmem:[#allocation3 + $0x140] sm:$0xff] %vm2014_vm3, %v3387_v2 }
 0x1ed   : > { %1836 = vst.msk [vmem:[#allocation3 + $0x150] sm:$0xff] %vm1821_vm2, %v1802_v42 }
 0x1ef   : > { %v2700_v15 = vpop.permute.xlu0 %2699 }
 0x1f0   : > { %2733 = vst.msk [vmem:[#allocation3 + $0x158] sm:$0xff] %vm1577_vm1, %v2700_v15  ;;  %v1995_v25 = vpop.permute.xlu1 %1994 }
 0x1f1   : > { %2029 = vst.msk [vmem:[#allocation3 + $0x150] sm:$0xff] %vm2014_vm3, %v1995_v25  ;;  %v12212_v51 = vpop.f32.mrb[12].mxu1 }
 0x1f2   : > { %v12215_v35 = vpop.f32.mrb[13].mxu1 }
 0x1f3   : > { %v2893_v10 = vpop.permute.xlu0 %2892  ;;  %v3672_v28 = vld [vmem:[#allocation3 + $0x140] sm:$0xff]  ;;  %v12230_v21 = vpop.f32.mrb[14].mxu1 }
 0x1f4   : > { %2926 = vst.msk [vmem:[#allocation3 + $0x158] sm:$0xff] %vm1821_vm2, %v2893_v10  ;;  %4015 = vmatprep.mubr.bf16.mxu0 %v3672_v28  ;;  %v12232_v63 = vpop.f32.mrb[15].mxu1  ;;  %v4653_v10 = vld [vmem:[#allocation2 + $0x14] sm:$0x1] }
 0x1f5   : > { %4016 = vmatmul.mubr.bf16.gmra.mrb[52].mxu0 %v3671_v58 }
 0x1f8   : > { %v3674_v56 = vld [vmem:[#allocation3 + $0x150] sm:$0xff] }
 0x1f9   : > { %v1560_v48 = vpop.permute.xlu1 %1559 }
 0x1fa   : > { %1593 = vst.msk [vmem:[#allocation3 + $0x168] sm:$0xff] %vm1577_vm1, %v1560_v48  ;;  %v9362_v6 = vpop.f32.mrb[0].mxu0 }
 0x1fb   : > { %v9363_v13 = vpop.f32.mrb[1].mxu0 }
 0x1fc   : > { %v9364_v44 = vadd.f32 %v9363_v13, %v9362_v6  ;;  %v9365_v46 = vpop.f32.mrb[2].mxu0 }
 0x1fd   : > { %v9366_v23 = vpop.f32.mrb[3].mxu0 }
 0x1fe   : > { %v1804_v38 = vpop.permute.xlu1 %1803  ;;  %v3914_v36 = vadd.f32 %v9364_v44, %v12220_v53  ;;  %v9367_v0 = vadd.f32 %v9366_v23, %v9365_v46 }
 0x1ff   : > { %1837 = vst.msk [vmem:[#allocation3 + $0x168] sm:$0xff] %vm1821_vm2, %v1804_v38 }
 0x200   : > { %v4075_v5 = vadd.f32 %v12145_v9, %v3914_v36  ;;  %v3917_v18 = vadd.f32 %v9367_v0, %v12220_v53 }
 0x202   : > { %v3389_v62 = vpop.permute.xlu0 %3388  ;;  %v1997_v31 = vpop.permute.xlu1 %1996  ;;  %v4201_v55 = vmax.f32 %v4075_v5, 0.0  ;;  %v4078_v16 = vadd.f32 %v12159_v24, %v3917_v18 }
 0x203   : > { %3422 = vst.msk [vmem:[#allocation3 + $0x158] sm:$0xff] %vm2014_vm3, %v3389_v62  ;;  %2030 = vst.msk [vmem:[#allocation3 + $0x168] sm:$0xff] %vm2014_vm3, %v1997_v31  ;;  %v9368_v3 = vpop.f32.mrb[4].mxu0 }
 0x204   : > { %v9369_v8 = vpop.f32.mrb[5].mxu0  ;;  %v9314_v54 = vpack.c.bf16 %v4201_v55, %v4201_v55  ;;  %v4202_v45 = vmax.f32 %v4078_v16, 0.0 }
 0x205   : > { %v9370_v17 = vadd.f32 %v9369_v8, %v9368_v3  ;;  %v9371_v61 = vpop.f32.mrb[6].mxu0 }
 0x206   : > { %v2702_v11 = vpop.permute.xlu0 %2701  ;;  %v9372_v7 = vpop.f32.mrb[7].mxu0  ;;  %v4330_v59 = vshrl.u32 %v9314_v54, 16  ;;  %v9315_v32 = vpack.c.bf16 %v4202_v45, %v4202_v45  ;;  %v4333_v34 = vshll.u32 %v9314_v54, 16  ;;  %v4656_v54 = vld [vmem:[#allocation2 + $0x18] sm:$0xf] }
 0x207   : > { %2734 = vst.msk [vmem:[#allocation3 + $0x170] sm:$0xff] %vm1577_vm1, %v2702_v11  ;;  %v3922_v24 = vadd.f32 %v9370_v17, %v12220_v53  ;;  %v9373_v4 = vadd.f32 %v9372_v7, %v9371_v61 }
 0x208   : > { %v4332_v14 = vrot.slane %v4330_v59, 7  ;;  %v4338_v33 = vshrl.u32 %v9315_v32, 16  ;;  %v4341_v42 = vshll.u32 %v9315_v32, 16 }
 0x209   : > { %v4083_v22 = vadd.f32 %v12143_v12, %v3922_v24  ;;  %v3925_v37 = vadd.f32 %v9373_v4, %v12220_v53 }
 0x20a   : > { %v3675_v50 = vld [vmem:[#allocation3 + $0x158] sm:$0xff]  ;;  %v4335_v39 = vor.u32 %v4333_v34, %v4332_v14  ;;  %v4340_v2 = vrot.slane %v4338_v33, 7  ;;  %v9374_v25 = vpop.f32.mrb[8].mxu0  ;;  %v4336_v58 = vrot.slane %v4332_v14, 4  ;;  %v4660_v34 = vld [vmem:[#allocation2 + $0x20] sm:$0x1] }
 0x20b   : > { %v2895_v9 = vpop.permute.xlu0 %2894  ;;  %4023 = vmatprep.mubr.bf16.mxu0 %v3675_v50  ;;  %v4203_v15 = vmax.f32 %v4083_v22, 0.0  ;;  %v4086_v28 = vadd.f32 %v12153_v26, %v3925_v37  ;;  %v9375_v29 = vpop.f32.mrb[9].mxu0 }
 0x20c   : > { %2927 = vst.msk [vmem:[#allocation3 + $0x170] sm:$0xff] %vm1821_vm2, %v2895_v9  ;;  %4024 = vmatmul.mubr.bf16.gmra.mrb[56].mxu0 %v3674_v56  ;;  %v4650_v48 = vsel %vm10134_vm10, %v4335_v39, %v4649_v52  ;;  %v4343_v12 = vor.u32 %v4341_v42, %v4340_v2  ;;  %v4345_v6 = vrot.slane %v4340_v2, 4  ;;  %v9377_v13 = vpop.f32.mrb[10].mxu0  ;;  %v9376_v46 = vadd.f32 %v9375_v29, %v9374_v25  ;;  %v12246_v26 = vpop.f32.mrb[16].mxu1  ;;  %v3677_v56 = vld [vmem:[#allocation3 + $0x168] sm:$0xff] }
 0x20d   : > { %v9316_v38 = vpack.c.bf16 %v4203_v15, %v4203_v15  ;;  %4651 = vst [vmem:[#allocation2 + $0xc] sm:$0xf] %v4650_v48  ;;  %v4204_v44 = vmax.f32 %v4086_v28, 0.0  ;;  %v9378_v62 = vpop.f32.mrb[11].mxu0  ;;  %v12250_v16 = vpop.f32.mrb[17].mxu1 }
 0x20e   : > { %v4344_v36 = vsel %vm10123_vm9, %v4336_v58, %v4343_v12  ;;  %v4654_v31 = vsel %vm10091_vm4, %v4345_v6, %v4653_v10  ;;  %v9379_v11 = vadd.f32 %v9378_v62, %v9377_v13  ;;  %v3930_v55 = vadd.f32 %v9376_v46, %v12220_v53  ;;  %v12257_v22 = vpop.f32.mrb[18].mxu1  ;;  %v4663_v62 = vld [vmem:[#allocation2 + $0x24] sm:$0xf] }
 0x20f   : > { %v3391_v20 = vpop.permute.xlu0 %3390  ;;  %v4347_v5 = vshrl.u32 %v9316_v38, 16  ;;  %4652 = vst.msk [vmem:[#allocation2 + $0x10] sm:$0xf] %vm246_vm0, %v4344_v36  ;;  %4655 = vst [vmem:[#allocation2 + $0x14] sm:$0x1] %v4654_v31  ;;  %v9317_v18 = vpack.c.bf16 %v4204_v44, %v4204_v44  ;;  %v4350_v8 = vshll.u32 %v9316_v38, 16 }
 0x210   : > { %3423 = vst.msk [vmem:[#allocation3 + $0x170] sm:$0xff] %vm2014_vm3, %v3391_v20  ;;  %v4091_v17 = vadd.f32 %v12181_v43, %v3930_v55  ;;  %v3933_v61 = vadd.f32 %v9379_v11, %v12220_v53  ;;  %v12259_v39 = vpop.f32.mrb[19].mxu1 }
 0x211   : > { %v4349_v3 = vrot.slane %v4347_v5, 7  ;;  %v4355_v45 = vshrl.u32 %v9317_v18, 16  ;;  %v4358_v59 = vshll.u32 %v9317_v18, 16 }
 0x212   : > { %v4205_v32 = vmax.f32 %v4091_v17, 0.0  ;;  %v4094_v24 = vadd.f32 %v12186_v30, %v3933_v61 }
 0x213   : > { %v4352_v50 = vor.u32 %v4350_v8, %v4349_v3  ;;  %v4357_v7 = vrot.slane %v4355_v45, 7  ;;  %v4353_v4 = vrot.slane %v4349_v3, 4 }
 0x214   : > { %v5657_v33 = vld [vmem:[#allocation2 + $0xc] sm:$0xf]  ;;  %v9318_v37 = vpack.c.bf16 %v4205_v32, %v4205_v32  ;;  %v4206_v20 = vmax.f32 %v4094_v24, 0.0 }
 0x215   : > { %v4657_v14 = vsel %vm10134_vm10, %v4352_v50, %v4656_v54  ;;  %v4360_v43 = vor.u32 %v4358_v59, %v4357_v7  ;;  %v4362_v52 = vrot.slane %v4357_v7, 4  ;;  %v5850_v42 = vshrl.u32 %v5657_v33, 16  ;;  %v4667_v59 = vld [vmem:[#allocation2 + $0x2c] sm:$0x1] }
 0x216   : > { %4658 = vst [vmem:[#allocation2 + $0x18] sm:$0xf] %v4657_v14  ;;  %v5658_v2 = vld [vmem:[#allocation2 + $0x10] sm:$0xf]  ;;  %v5853_v15 = vshll.u32 %v5657_v33, 16  ;;  %v4364_v10 = vshrl.u32 %v9318_v37, 16  ;;  %v9319_v29 = vpack.c.bf16 %v4206_v20, %v4206_v20 }
 0x217   : > { %v3678_v9 = vld [vmem:[#allocation3 + $0x170] sm:$0xff]  ;;  %v5659_v30 = vld [vmem:[#allocation2 + $0x14] sm:$0x1]  ;;  %v4361_v25 = vsel %vm10123_vm9, %v4353_v4, %v4360_v43  ;;  %v4661_v58 = vsel %vm10091_vm4, %v4362_v52, %v4660_v34  ;;  %v4367_v28 = vshll.u32 %v9318_v37, 16  ;;  %v9115_v48 = vcombine.low %v5657_v33, %v5658_v2  ;;  %v12272_v20 = vld [vmem:[#allocation2 + $0x10] sm:$0xf] }
 0x218   : > { %4031 = vmatprep.mubr.bf16.mxu0 %v3678_v9  ;;  %4659 = vst.msk [vmem:[#allocation2 + $0x1c] sm:$0xf] %vm246_vm0, %v4361_v25  ;;  %4662 = vst [vmem:[#allocation2 + $0x20] sm:$0x1] %v4661_v58  ;;  %v5852_v12 = vrot.slane %v5850_v42, 4  ;;  %v5855_v6 = vrot.slane %v5853_v15, 5 }
 0x219   : > { %4032 = vmatmul.mubr.bf16.gmra.mrb[60].mxu0 %v3677_v56  ;;  %v4366_v38 = vrot.slane %v4364_v10, 7  ;;  %v5859_v13 = vshll.u32 %v5658_v2, 16  ;;  %v5863_v44 = vshrl.u32 %v5658_v2, 16  ;;  %v5869_v46 = vshll.u32 %v5659_v30, 16  ;;  %5785 = vrot.lane.b32.xlu1 %v9115_v48, %s9962_s27  ;;  %v12270_v37 = vld [vmem:[#allocation2 + $0xc] sm:$0xf] }
 0x21a   : > { %v4372_v36 = vshrl.u32 %v9319_v29, 16  ;;  %v4375_v31 = vshll.u32 %v9319_v29, 16  ;;  %v5856_v18 = vor.u32 %v5855_v6, %v5852_v12  ;;  %v9147_v11 = vrot.slane %v5657_v33, 9  ;;  %v12284_v29 = vld [vmem:[#allocation2 + $0x14] sm:$0x1] }
 0x21b   : > { %v4369_v55 = vor.u32 %v4367_v28, %v4366_v38  ;;  %v4370_v3 = vrot.slane %v4366_v38, 4  ;;  %v5861_v56 = vrot.slane %v5859_v13, 5  ;;  %v5865_v54 = vrot.slane %v5863_v44, 4 }
 0x21c   : > { %v4374_v45 = vrot.slane %v4372_v36, 7  ;;  %v5857_v9 = vrot.slane %v5856_v18, 4  ;;  %v5871_v50 = vrot.slane %v5869_v46, 5  ;;  %v6331_v4 = vrot.slane %v5658_v2, 5 }
 0x21d   : > { %v9380_v5 = vpop.f32.mrb[12].mxu0  ;;  %v4664_v7 = vsel %vm10134_vm10, %v4369_v55, %v4663_v62  ;;  %v5866_v24 = vor.u32 %v5865_v54, %v5861_v56  ;;  %v6334_v14 = vrot.slane %v5659_v30, 5  ;;  %v9084_v38 = vrot.slane %v12270_v37, 9 }
 0x21e   : > { %v9381_v8 = vpop.f32.mrb[13].mxu0  ;;  %4665 = vst [vmem:[#allocation2 + $0x24] sm:$0xf] %v4664_v7  ;;  %v4377_v34 = vor.u32 %v4375_v31, %v4374_v45  ;;  %v4379_v33 = vrot.slane %v4374_v45, 4  ;;  %v6332_v15 = vsel %vm10142_vm11, %v9147_v11, %v6331_v4  ;;  %v6333_v25 = vrot.slane %v6331_v4, 4 }
 0x21f   : > { %v9382_v17 = vadd.f32 %v9381_v8, %v9380_v5  ;;  %v9383_v61 = vpop.f32.mrb[14].mxu0  ;;  %v5867_v42 = vrot.slane %v5866_v24, 4  ;;  %v5862_v58 = vsel %vm10252_vm14, %v5857_v9, %v5861_v56  ;;  %v12286_v48 = vld [vmem:[#allocation2 + $0x1c] sm:$0xf]  ;;  %v5442_v13 = vrot.slane %v12272_v20, 5 }
 0x220   : > { %v9384_v32 = vpop.f32.mrb[15].mxu0  ;;  %v4378_v2 = vsel %vm10123_vm9, %v4370_v3, %v4377_v34  ;;  %v4668_v30 = vsel %vm10091_vm4, %v4379_v33, %v4667_v59  ;;  %v6335_v6 = vsel %vm10142_vm11, %v6333_v25, %v6334_v14  ;;  %v5445_v18 = vrot.slane %v12284_v29, 5  ;;  %v12301_v11 = vld [vmem:[#allocation2 + $0x20] sm:$0x1]  ;;  %v5661_v54 = vld [vmem:[#allocation2 + $0x1c] sm:$0xf] }
 0x221   : > { %v3938_v43 = vadd.f32 %v9382_v17, %v12220_v53  ;;  %v9385_v52 = vadd.f32 %v9384_v32, %v9383_v61  ;;  %4666 = vst.msk [vmem:[#allocation2 + $0x28] sm:$0xf] %vm246_vm0, %v4378_v2  ;;  %4669 = vst [vmem:[#allocation2 + $0x2c] sm:$0x1] %v4668_v30  ;;  %v5872_v12 = vsel %vm10252_vm14, %v5867_v42, %v5871_v50  ;;  %v5444_v5 = vrot.slane %v5442_v13, 4 }
 0x222   : > { %v9163_v62 = vcombine.low %v6332_v15, %v6335_v6  ;;  %v9131_v36 = vcombine.low %v5862_v58, %v5872_v12  ;;  %v5443_v31 = vsel %vm10142_vm11, %v9084_v38, %v5442_v13  ;;  %v6759_v17 = vshrl.u32 %v12286_v48, 16  ;;  %v5660_v50 = vld [vmem:[#allocation2 + $0x18] sm:$0xf] }
 0x223   : > { %v4099_v10 = vadd.f32 %v12179_v41, %v3938_v43  ;;  %v3941_v28 = vadd.f32 %v9385_v52, %v12220_v53  ;;  %v12295_v41 = vld [vmem:[#allocation2 + $0x18] sm:$0xf]  ;;  %v5446_v45 = vsel %vm10142_vm11, %v5444_v5, %v5445_v18  ;;  %v7259_v9 = vrot.slane %v12286_v48, 5  ;;  %v4670_v52 = vld [vmem:[#allocation2 + $0x30] sm:$0xf] }
 0x224   : > { %v9179_v55 = vcombine.low %v12295_v41, %v12286_v48  ;;  %6489 = vrot.lane.b32.xlu0 %v9163_v62, %s9963_s8  ;;  %6297 = vst.msk [vmem:[#allocation3 + $0x8] sm:$0xff] %vm1077_vm15, %v9131_v36  ;;  %v6749_v56 = vshll.u32 %v12295_v41, 16  ;;  %v9211_v61 = vrot.slane %v12295_v41, 9  ;;  %v9100_v24 = vcombine.low %v5443_v31, %v5446_v45 }
 0x225   : > { %v4207_v44 = vmax.f32 %v4099_v10, 0.0  ;;  %v4102_v46 = vadd.f32 %v12184_v47, %v3941_v28  ;;  %v6746_v47 = vshrl.u32 %v12295_v41, 16  ;;  %v7261_v14 = vrot.slane %v7259_v9, 4  ;;  %v5662_v28 = vld [vmem:[#allocation2 + $0x20] sm:$0x1] }
 0x226   : > { %v7260_v4 = vsel %vm10142_vm11, %v9211_v61, %v7259_v9  ;;  %v7262_v34 = vrot.slane %v12301_v11, 5  ;;  %v9116_v33 = vcombine.low %v5660_v50, %v5661_v54  ;;  %5595 = vrot.lane.b32.xlu1 %v9100_v24, %s9961_s21  ;;  %v5874_v25 = vshrl.u32 %v5660_v50, 16 }
 0x227   : > { %v9320_v3 = vpack.c.bf16 %v4207_v44, %v4207_v44  ;;  %v4208_v8 = vmax.f32 %v4102_v46, 0.0  ;;  %v5877_v2 = vshll.u32 %v5660_v50, 16  ;;  %v5883_v30 = vshll.u32 %v5661_v54, 16  ;;  %v4674_v44 = vld [vmem:[#allocation2 + $0x38] sm:$0x1] }
 0x228   : > { %6681 = vrot.lane.b32.xlu0 %v9179_v55, %s9961_s21  ;;  %v7263_v58 = vsel %vm10142_vm11, %v7261_v14, %v7262_v34  ;;  %v5887_v10 = vshrl.u32 %v5661_v54, 16  ;;  %v5876_v46 = vrot.slane %v5874_v25, 4  ;;  %v9148_v61 = vrot.slane %v5660_v50, 9  ;;  %v12341_v34 = vld [vmem:[#allocation2 + $0x24] sm:$0xf] }
 0x229   : > { %v4381_v7 = vshrl.u32 %v9320_v3, 16  ;;  %v4384_v59 = vshll.u32 %v9320_v3, 16  ;;  %v9321_v32 = vpack.c.bf16 %v4208_v8, %v4208_v8  ;;  %v9227_v13 = vcombine.low %v7260_v4, %v7263_v58 }
 0x22a   : > { %v5879_v62 = vrot.slane %v5877_v2, 5  ;;  %v12321_v36 = vrot.slane %v5883_v30, 5  ;;  %v5889_v31 = vrot.slane %v5887_v10, 4  ;;  %5787 = vrot.lane.b32.xlu1 %v9116_v33, %s9962_s27  ;;  %v5893_v3 = vshll.u32 %v5662_v28, 16  ;;  %v12360_v30 = vld [vmem:[#allocation2 + $0x18] sm:$0xf] }
 0x22b   : > { %v4383_v43 = vrot.slane %v4381_v7, 7  ;;  %v4389_v42 = vshrl.u32 %v9321_v32, 16  ;;  %v4392_v15 = vshll.u32 %v9321_v32, 16  ;;  %7433 = vst.msk [vmem:[#allocation3 + $0x10] sm:$0xff] %vm1077_vm15, %v9227_v13  ;;  %v6338_v9 = vrot.slane %v5661_v54, 5 }
 0x22c   : > { %v5880_v8 = vor.u32 %v5879_v62, %v5876_v46  ;;  %v5890_v45 = vor.u32 %v5889_v31, %v12321_v36  ;;  %v12332_v32 = vrot.slane %v5893_v3, 5  ;;  %v6341_v24 = vrot.slane %v5662_v28, 5  ;;  %v12369_v31 = vld [vmem:[#allocation2 + $0x20] sm:$0x1] }
 0x22d   : > { %v4386_v12 = vor.u32 %v4384_v59, %v4383_v43  ;;  %v4387_v6 = vrot.slane %v4383_v43, 4  ;;  %v4391_v38 = vrot.slane %v4389_v42, 7  ;;  %v6339_v50 = vsel %vm10142_vm11, %v9148_v61, %v6338_v9 }
 0x22e   : > { %v12335_v4 = vrot.slane %v5880_v8, 4  ;;  %v12337_v14 = vrot.slane %v5890_v45, 4  ;;  %v6340_v54 = vrot.slane %v6338_v9, 4  ;;  %v4946_v33 = vshrl.u32 %v12270_v37, 16 }
 0x22f   : > { %v4671_v5 = vsel %vm10134_vm10, %v4386_v12, %v4670_v52  ;;  %v4394_v18 = vor.u32 %v4392_v15, %v4391_v38  ;;  %v4396_v55 = vrot.slane %v4391_v38, 4  ;;  %v4949_v43 = vshll.u32 %v12270_v37, 16  ;;  %v12347_v15 = vld [vmem:[#allocation2 + $0x28] sm:$0xf]  ;;  %v12364_v38 = vld [vmem:[#allocation2 + $0x2c] sm:$0x1] }
 0x230   : > { %4672 = vst [vmem:[#allocation2 + $0x30] sm:$0xf] %v4671_v5  ;;  %v4955_v52 = vshll.u32 %v12272_v20, 16  ;;  %v4959_v42 = vshrl.u32 %v12272_v20, 16  ;;  %v6342_v2 = vsel %vm10142_vm11, %v6340_v54, %v6341_v24  ;;  %v4965_v37 = vshll.u32 %v12284_v29, 16 }
 0x231   : > { %v4395_v7 = vsel %vm10123_vm9, %v4387_v6, %v4394_v18  ;;  %v4675_v59 = vsel %vm10091_vm4, %v4396_v55, %v4674_v44  ;;  %v12362_v20 = vld [vmem:[#allocation2 + $0x1c] sm:$0xf]  ;;  %v9164_v10 = vcombine.low %v6339_v50, %v6342_v2  ;;  %v4948_v28 = vrot.slane %v4946_v33, 4 }
 0x232   : > { %4673 = vst.msk [vmem:[#allocation2 + $0x34] sm:$0xf] %vm246_vm0, %v4395_v7  ;;  %4676 = vst [vmem:[#allocation2 + $0x38] sm:$0x1] %v4675_v59  ;;  %v4951_v12 = vrot.slane %v4949_v43, 5  ;;  %v4957_v6 = vrot.slane %v4955_v52, 5  ;;  %v9180_v46 = vcombine.low %v12341_v34, %v12347_v15 }
 0x233   : > { %v4961_v13 = vrot.slane %v4959_v42, 4  ;;  %v4967_v44 = vrot.slane %v4965_v37, 5  ;;  %v6770_v62 = vshrl.u32 %v12341_v34, 16  ;;  %v7451_v29 = vld [vmem:[#allocation3 + $0x10] sm:$0xff]  ;;  %6491 = vrot.lane.b32.xlu0 %v9164_v10, %s9963_s8  ;;  %v6773_v18 = vshll.u32 %v12341_v34, 16 }
 0x234   : > { %v4952_v5 = vor.u32 %v4951_v12, %v4948_v28  ;;  %v9212_v3 = vrot.slane %v12341_v34, 9  ;;  %9646 = vmatprep.mubr.msk.bf16.mxu0 %vm1077_vm15, %v7451_v29  ;;  %v7266_v45 = vrot.slane %v12347_v15, 5  ;;  %v7269_v61 = vrot.slane %v12364_v38, 5 }
 0x235   : > { %v4962_v8 = vor.u32 %v4961_v13, %v4957_v6  ;;  %v9085_v9 = vrot.slane %v12360_v30, 9  ;;  %v5449_v59 = vrot.slane %v12362_v20, 5  ;;  %v5452_v24 = vrot.slane %v12369_v31, 5 }
 0x236   : > { %v4953_v7 = vrot.slane %v4952_v5, 4  ;;  %v6748_v50 = vrot.slane %v6746_v47, 4  ;;  %v7267_v33 = vsel %vm10142_vm11, %v9212_v3, %v7266_v45  ;;  %v7268_v43 = vrot.slane %v7266_v45, 4  ;;  %v5664_v47 = vld [vmem:[#allocation2 + $0x28] sm:$0xf] }
 0x237   : > { %v4963_v54 = vrot.slane %v4962_v8, 4  ;;  %v6751_v52 = vrot.slane %v6749_v56, 5  ;;  %6683 = vrot.lane.b32.xlu0 %v9180_v46, %s9961_s21  ;;  %v5450_v2 = vsel %vm10142_vm11, %v9085_v9, %v5449_v59  ;;  %v5451_v37 = vrot.slane %v5449_v59, 4  ;;  %v5665_v3 = vld [vmem:[#allocation2 + $0x2c] sm:$0x1]  ;;  %v12401_v8 = vpop.f32.mrb[20].mxu1 }
 0x238   : > { %v4958_v42 = vsel %vm10252_vm14, %v4953_v7, %v4957_v6  ;;  %v6755_v10 = vshll.u32 %v12286_v48, 16  ;;  %v7270_v12 = vsel %vm10142_vm11, %v7268_v43, %v7269_v61  ;;  %v6761_v56 = vrot.slane %v6759_v17, 4  ;;  %v5663_v6 = vld [vmem:[#allocation2 + $0x24] sm:$0xf]  ;;  %v12404_v61 = vpop.f32.mrb[21].mxu1 }
 0x239   : > { %v4968_v28 = vsel %vm10252_vm14, %v4963_v54, %v4967_v44  ;;  %v6752_v41 = vor.u32 %v6751_v52, %v6748_v50  ;;  %v9228_v46 = vcombine.low %v7267_v33, %v7270_v12  ;;  %v5453_v29 = vsel %vm10142_vm11, %v5451_v37, %v5452_v24 }
 0x23a   : > { %v9068_v13 = vcombine.low %v4958_v42, %v4968_v28  ;;  %v6757_v5 = vrot.slane %v6755_v10, 5  ;;  %v9101_v45 = vcombine.low %v5450_v2, %v5453_v29  ;;  %v6765_v44 = vshll.u32 %v12301_v11, 16 }
 0x23b   : > { %v6753_v9 = vrot.slane %v6752_v41, 4  ;;  %v9117_v7 = vcombine.low %v5663_v6, %v5664_v47  ;;  %7434 = vst.msk [vmem:[#allocation3 + $0x28] sm:$0xff] %vm1077_vm15, %v9228_v46  ;;  %v5898_v17 = vshrl.u32 %v5663_v6, 16  ;;  %v5901_v59 = vshll.u32 %v5663_v6, 16 }
 0x23c   : > { %5355 = vrot.lane.b32.xlu1 %v9068_v13, %s9963_s8  ;;  %v6762_v48 = vor.u32 %v6761_v56, %v6757_v5  ;;  %v5907_v50 = vshll.u32 %v5664_v47, 16  ;;  %v6767_v54 = vrot.slane %v6765_v44, 5  ;;  %v5911_v33 = vshrl.u32 %v5664_v47, 16 }
 0x23d   : > { %v6758_v24 = vsel %vm10252_vm14, %v6753_v9, %v6757_v5  ;;  %v5917_v43 = vshll.u32 %v5665_v3, 16  ;;  %v5900_v42 = vrot.slane %v5898_v17, 4  ;;  %v5903_v11 = vrot.slane %v5901_v59, 5 }
 0x23e   : > { %v6763_v52 = vrot.slane %v6762_v48, 4  ;;  %v12410_v2 = vrot.slane %v5907_v50, 5  ;;  %v5913_v37 = vrot.slane %v5911_v33, 4  ;;  %v9149_v28 = vrot.slane %v5663_v6, 9  ;;  %v12421_v48 = vld [vmem:[#allocation2 + $0x34] sm:$0xf] }
 0x23f   : > { %v12412_v10 = vrot.slane %v5917_v43, 5  ;;  %v6345_v12 = vrot.slane %v5664_v47, 5  ;;  %v5904_v56 = vor.u32 %v5903_v11, %v5900_v42  ;;  %v6348_v13 = vrot.slane %v5665_v3, 5  ;;  %v12423_v6 = vpop.f32.mrb[22].mxu1 }
 0x240   : > { %15447 = vst [vmem:[#allocation14_spill] sm:$0xff] %v12410_v2  ;;  %5597 = vrot.lane.b32.xlu1 %v9101_v45, %s9961_s21  ;;  %v6768_v41 = vsel %vm10252_vm14, %v6763_v52, %v6767_v54  ;;  %v4970_v46 = vshrl.u32 %v12360_v30, 16  ;;  %v5914_v5 = vor.u32 %v5913_v37, %v12410_v2  ;;  %v4973_v17 = vshll.u32 %v12360_v30, 16  ;;  %v12429_v59 = vpop.f32.mrb[23].mxu1  ;;  %v12438_v52 = vld [vmem:[#allocation2 + $0x30] sm:$0xf] }
 0x241   : > { %15448 = vst [vmem:[#allocation15_spill] sm:$0xff] %v12412_v10  ;;  %v9195_v29 = vcombine.low %v6758_v24, %v6768_v41  ;;  %v6346_v9 = vsel %vm10142_vm11, %v9149_v28, %v6345_v12  ;;  %v6347_v44 = vrot.slane %v6345_v12, 4  ;;  %v12425_v47 = vrot.slane %v5904_v56, 4  ;;  %v12446_v28 = vld [vmem:[#allocation2 + $0x24] sm:$0xf] }
 0x242   : > { %v4972_v45 = vrot.slane %v4970_v46, 4  ;;  %v4979_v3 = vshll.u32 %v12362_v20, 16  ;;  %v12432_v50 = vrot.slane %v5914_v5, 4  ;;  %v4983_v54 = vshrl.u32 %v12362_v20, 16  ;;  %v7454_v43 = vld [vmem:[#allocation3 + $0x28] sm:$0xff] }
 0x243   : > { %15449 = vst [vmem:[#allocation16_spill] sm:$0xff] %v12425_v47  ;;  %7177 = vrot.lane.b32.xlu0 %v9195_v29, %s9962_s27  ;;  %v6349_v24 = vsel %vm10142_vm11, %v6347_v44, %v6348_v13  ;;  %v4989_v33 = vshll.u32 %v12369_v31, 16  ;;  %v4975_v11 = vrot.slane %v4973_v17, 5  ;;  %9647 = vmatmul.mubr.msk.bf16.vlgmr.msra.gmra.mrb[64].mxu0 %vm1077_vm15, %v7454_v43  ;;  %v12448_v20 = vld [vmem:[#allocation2 + $0x28] sm:$0xf]  ;;  %v15451_v34 = vshrl.u32 %v12347_v15, 16 }
 0x244   : > { %15450 = vst [vmem:[#allocation17_spill] sm:$0xff] %v12432_v50  ;;  %5789 = vrot.lane.b32.xlu1 %v9117_v7, %s9962_s27  ;;  %v9165_v42 = vcombine.low %v6346_v9, %v6349_v24  ;;  %v4981_v37 = vrot.slane %v4979_v3, 5  ;;  %v4985_v41 = vrot.slane %v4983_v54, 4  ;;  %v12454_v13 = vld [vmem:[#allocation2 + $0x38] sm:$0x1]  ;;  %v9181_v7 = vcombine.low %v12438_v52, %v12421_v48 }
 0x245   : > { %v4991_v56 = vrot.slane %v4989_v33, 5  ;;  %v4976_v29 = vor.u32 %v4975_v11, %v4972_v45  ;;  %v9213_v54 = vrot.slane %v12438_v52, 9  ;;  %v7273_v33 = vrot.slane %v12421_v48, 5  ;;  %v12464_v43 = vld [vmem:[#allocation2 + $0x2c] sm:$0x1] }
 0x246   : > { %v4986_v24 = vor.u32 %v4985_v41, %v4981_v37  ;;  %v7276_v45 = vrot.slane %v12454_v13, 5  ;;  %v9086_v11 = vrot.slane %v12446_v28, 9  ;;  %v5456_v25 = vrot.slane %v12448_v20, 5  ;;  %v4691_v2 = vld [vmem:[#allocation2 + $0x54] sm:$0xf] }
 0x247   : > { %6493 = vrot.lane.b32.xlu0 %v9165_v42, %s9963_s8  ;;  %v4977_v12 = vrot.slane %v4976_v29, 4  ;;  %v7274_v42 = vsel %vm10142_vm11, %v9213_v54, %v7273_v33  ;;  %v7275_v44 = vrot.slane %v7273_v33, 4  ;;  %v12493_v54 = vld [vmem:[#allocation2 + $0x30] sm:$0xf] }
 0x248   : > { %v5457_v29 = vsel %vm10142_vm11, %v9086_v11, %v5456_v25  ;;  %v5458_v9 = vrot.slane %v5456_v25, 4  ;;  %v6775_v25 = vrot.slane %v6773_v18, 5  ;;  %v6785_v18 = vrot.slane %v15451_v34, 4 }
 0x249   : > { %v4982_v41 = vsel %vm10252_vm14, %v4977_v12, %v4981_v37  ;;  %v7277_v37 = vsel %vm10142_vm11, %v7275_v44, %v7276_v45  ;;  %v6772_v12 = vrot.slane %v6770_v62, 4  ;;  %v6779_v62 = vshll.u32 %v12347_v15, 16 }
 0x24b   : > { %v9386_v31 = vpop.f32.mrb[16].mxu0  ;;  %6685 = vrot.lane.b32.xlu0 %v9181_v7, %s9961_s21  ;;  %v6776_v33 = vor.u32 %v6775_v25, %v6772_v12  ;;  %v15510_v0 = vld [vmem:[#allocation17_spill] sm:$0xff] }
 0x24c   : > { %v9387_v46 = vpop.f32.mrb[17].mxu0 }
 0x24d   : > { %v9388_v17 = vadd.f32 %v9387_v46, %v9386_v31  ;;  %v9389_v3 = vpop.f32.mrb[18].mxu0  ;;  %v4987_v46 = vrot.slane %v4986_v24, 4 }
 0x24e   : > { %v9390_v30 = vpop.f32.mrb[19].mxu0 }
 0x24f   : > { %v9391_v58 = vadd.f32 %v9390_v30, %v9389_v3  ;;  %v3946_v31 = vadd.f32 %v9388_v17, %v12220_v53  ;;  %v4992_v30 = vsel %vm10252_vm14, %v4987_v46, %v4991_v56  ;;  %v5459_v17 = vrot.slane %v12464_v43, 5 }
 0x250   : > { %v9069_v3 = vcombine.low %v4982_v41, %v4992_v30  ;;  %v9229_v56 = vcombine.low %v7274_v42, %v7277_v37  ;;  %v5925_v46 = vshll.u32 %v12493_v54, 16  ;;  %v5668_v30 = vld [vmem:[#allocation2 + $0x38] sm:$0x1] }
 0x251   : > { %v4107_v5 = vadd.f32 %v12197_v57, %v3946_v31  ;;  %v3949_v55 = vadd.f32 %v9391_v58, %v12220_v53  ;;  %v12488_v57 = vld [vmem:[#allocation2 + $0x34] sm:$0xf]  ;;  %v5460_v7 = vsel %vm10142_vm11, %v5458_v9, %v5459_v17  ;;  %v6781_v9 = vrot.slane %v6779_v62, 5 }
 0x252   : > { %5357 = vrot.lane.b32.xlu1 %v9069_v3, %s9963_s8  ;;  %v9102_v44 = vcombine.low %v5457_v29, %v5460_v7  ;;  %7435 = vst.msk [vmem:[#allocation3 + $0x40] sm:$0xff] %vm1077_vm15, %v9229_v56  ;;  %v5922_v31 = vshrl.u32 %v12493_v54, 16  ;;  %v5927_v37 = vrot.slane %v5925_v46, 5  ;;  %v4677_v56 = vld [vmem:[#allocation2 + $0x3c] sm:$0xf]  ;;  %v5935_v62 = vshrl.u32 %v12488_v57, 16 }
 0x253   : > { %v4209_v58 = vmax.f32 %v4107_v5, 0.0  ;;  %v4110_v24 = vadd.f32 %v12202_v19, %v3949_v55  ;;  %v6789_v19 = vshll.u32 %v12364_v38, 16  ;;  %v9118_v55 = vcombine.low %v12493_v54, %v12488_v57 }
 0x254   : > { %v6777_v5 = vrot.slane %v6776_v33, 4  ;;  %v6786_v38 = vor.u32 %v6785_v18, %v6781_v9  ;;  %v5924_v3 = vrot.slane %v5922_v31, 4  ;;  %v5941_v34 = vshll.u32 %v5668_v30, 16 }
 0x255   : > { %v9322_v45 = vpack.c.bf16 %v4209_v58, %v4209_v58  ;;  %v4210_v11 = vmax.f32 %v4110_v24, 0.0  ;;  %v6791_v15 = vrot.slane %v6789_v19, 5  ;;  %v5931_v24 = vshll.u32 %v12488_v57, 16 }
 0x256   : > { %5599 = vrot.lane.b32.xlu1 %v9102_v44, %s9961_s21  ;;  %v6782_v17 = vsel %vm10252_vm14, %v6777_v5, %v6781_v9  ;;  %v6787_v7 = vrot.slane %v6786_v38, 4  ;;  %v5928_v33 = vor.u32 %v5927_v37, %v5924_v3  ;;  %v4681_v5 = vld [vmem:[#allocation2 + $0x44] sm:$0x1]  ;;  %v5937_v31 = vrot.slane %v5935_v62, 4  ;;  %v12543_v62 = vld [vmem:[#allocation2 + $0x34] sm:$0xf] }
 0x257   : > { %v4398_v42 = vshrl.u32 %v9322_v45, 16  ;;  %v4401_v41 = vshll.u32 %v9322_v45, 16  ;;  %v9323_v29 = vpack.c.bf16 %v4210_v11, %v4210_v11  ;;  %v12510_v19 = vrot.slane %v5931_v24, 5 }
 0x258   : > { %v6792_v18 = vsel %vm10252_vm14, %v6787_v7, %v6791_v15  ;;  %v12514_v9 = vrot.slane %v5928_v33, 4  ;;  %v4994_v24 = vshrl.u32 %v12446_v28, 16  ;;  %v4997_v33 = vshll.u32 %v12446_v28, 16 }
 0x259   : > { %v4400_v12 = vrot.slane %v4398_v42, 7  ;;  %v4406_v25 = vshrl.u32 %v9323_v29, 16  ;;  %v4409_v58 = vshll.u32 %v9323_v29, 16  ;;  %15452 = vst [vmem:[#allocation11_spill] sm:$0xff] %v12510_v19  ;;  %v7457_v46 = vld [vmem:[#allocation3 + $0x40] sm:$0xff]  ;;  %v12517_v42 = vrot.slane %v5941_v34, 5 }
 0x25a   : > { %15453 = vst [vmem:[#allocation28_spill] sm:$0xff] %v12514_v9  ;;  %5791 = vrot.lane.b32.xlu1 %v9118_v55, %s9962_s27  ;;  %v9196_v3 = vcombine.low %v6782_v17, %v6792_v18  ;;  %9650 = vmatprep.mubr.msk.bf16.mxu0 %vm1077_vm15, %v7457_v46  ;;  %v5938_v37 = vor.u32 %v5937_v31, %v12510_v19  ;;  %v9150_v55 = vrot.slane %v12493_v54, 9  ;;  %v4996_v34 = vrot.slane %v4994_v24, 4 }
 0x25b   : > { %v4403_v45 = vor.u32 %v4401_v41, %v4400_v12  ;;  %v4404_v11 = vrot.slane %v4400_v12, 4  ;;  %v4408_v44 = vrot.slane %v4406_v25, 7  ;;  %15454 = vst [vmem:[#allocation19_spill] sm:$0xff] %v12517_v42  ;;  %v6352_v12 = vrot.slane %v12488_v57, 5 }
 0x25c   : > { %7179 = vrot.lane.b32.xlu0 %v9196_v3, %s9962_s27  ;;  %v12538_v7 = vrot.slane %v5938_v37, 4  ;;  %v4999_v31 = vrot.slane %v4997_v33, 5 }
 0x25d   : > { %v4678_v29 = vsel %vm10134_vm10, %v4403_v45, %v4677_v56  ;;  %v4411_v41 = vor.u32 %v4409_v58, %v4408_v44  ;;  %v4413_v38 = vrot.slane %v4408_v44, 4  ;;  %v6355_v58 = vrot.slane %v5668_v30, 5  ;;  %v12535_v56 = vld [vmem:[#allocation2 + $0x30] sm:$0xf]  ;;  %v12548_v44 = vld [vmem:[#allocation2 + $0x38] sm:$0x1] }
 0x25e   : > { %4679 = vst [vmem:[#allocation2 + $0x3c] sm:$0xf] %v4678_v29  ;;  %15455 = vst [vmem:[#allocation27_spill] sm:$0xff] %v12538_v7  ;;  %v6353_v57 = vsel %vm10142_vm11, %v9150_v55, %v6352_v12  ;;  %v6354_v54 = vrot.slane %v6352_v12, 4  ;;  %v5003_v30 = vshll.u32 %v12448_v20, 16  ;;  %v5007_v45 = vshrl.u32 %v12448_v20, 16 }
 0x25f   : > { %v4412_v25 = vsel %vm10123_vm9, %v4404_v11, %v4411_v41  ;;  %v4682_v17 = vsel %vm10091_vm4, %v4413_v38, %v4681_v5  ;;  %v5013_v11 = vshll.u32 %v12464_v43, 16  ;;  %v9087_v46 = vrot.slane %v12535_v56, 9 }
 0x260   : > { %4680 = vst.msk [vmem:[#allocation2 + $0x40] sm:$0xf] %vm246_vm0, %v4412_v25  ;;  %4683 = vst [vmem:[#allocation2 + $0x44] sm:$0x1] %v4682_v17  ;;  %v6356_v28 = vsel %vm10142_vm11, %v6354_v54, %v6355_v58  ;;  %v5005_v38 = vrot.slane %v5003_v30, 5  ;;  %v5009_v20 = vrot.slane %v5007_v45, 4  ;;  %v5000_v55 = vor.u32 %v4999_v31, %v4996_v34 }
 0x261   : > { %v9392_v5 = vpop.f32.mrb[20].mxu0  ;;  %v9166_v41 = vcombine.low %v6353_v57, %v6356_v28  ;;  %v5015_v3 = vrot.slane %v5013_v11, 5  ;;  %v5463_v12 = vrot.slane %v12543_v62, 5  ;;  %v5466_v25 = vrot.slane %v12548_v44, 5 }
 0x262   : > { %v9393_v29 = vpop.f32.mrb[21].mxu0  ;;  %v5010_v24 = vor.u32 %v5009_v20, %v5005_v38  ;;  %v15456_v54 = vshrl.u32 %v12438_v52, 16  ;;  %v15457_v57 = vshll.u32 %v12438_v52, 16  ;;  %v6803_v45 = vshll.u32 %v12421_v48, 16 }
 0x263   : > { %v9394_v43 = vadd.f32 %v9393_v29, %v9392_v5  ;;  %v9395_v37 = vpop.f32.mrb[22].mxu0  ;;  %6495 = vrot.lane.b32.xlu0 %v9166_v41, %s9963_s8  ;;  %v5001_v5 = vrot.slane %v5000_v55, 4 }
 0x264   : > { %v9396_v17 = vpop.f32.mrb[23].mxu0  ;;  %v6796_v33 = vrot.slane %v15456_v54, 4  ;;  %v6799_v30 = vrot.slane %v15457_v57, 5  ;;  %v5011_v31 = vrot.slane %v5010_v24, 4  ;;  %v5464_v54 = vsel %vm10142_vm11, %v9087_v46, %v5463_v12 }
 0x265   : > { %v12560_v58 = vld [vmem:[#allocation2 + $0x3c] sm:$0xf]  ;;  %v3954_v34 = vadd.f32 %v9394_v43, %v12220_v53  ;;  %v9397_v11 = vadd.f32 %v9396_v17, %v9395_v37  ;;  %v5006_v43 = vsel %vm10252_vm14, %v5001_v5, %v5005_v38 }
 0x266   : > { %v6800_v52 = vor.u32 %v6799_v30, %v6796_v33  ;;  %v5016_v55 = vsel %vm10252_vm14, %v5011_v31, %v5015_v3  ;;  %v9214_v24 = vrot.slane %v12560_v58, 9  ;;  %v12592_v5 = vld [vmem:[#allocation2 + $0x3c] sm:$0xf] }
 0x267   : > { %v12569_v29 = vld [vmem:[#allocation2 + $0x40] sm:$0xf]  ;;  %v12571_v41 = vld [vmem:[#allocation2 + $0x44] sm:$0x1]  ;;  %v4115_v57 = vadd.f32 %v12194_v1, %v3954_v34  ;;  %v3957_v15 = vadd.f32 %v9397_v11, %v12220_v53  ;;  %v9070_v30 = vcombine.low %v5006_v43, %v5016_v55  ;;  %v5465_v11 = vrot.slane %v5463_v12, 4 }
 0x268   : > { %v9182_v37 = vcombine.low %v12560_v58, %v12569_v29  ;;  %v7280_v46 = vrot.slane %v12569_v29, 5  ;;  %v7283_v53 = vrot.slane %v12571_v41, 5  ;;  %v6801_v3 = vrot.slane %v6800_v52, 4  ;;  %v12597_v43 = vld [vmem:[#allocation2 + $0x40] sm:$0xf] }
 0x269   : > { %v4211_v33 = vmax.f32 %v4115_v57, 0.0  ;;  %v4118_v1 = vadd.f32 %v12199_v60, %v3957_v15  ;;  %5359 = vrot.lane.b32.xlu1 %v9070_v30, %s9963_s8  ;;  %v6805_v57 = vrot.slane %v6803_v45, 5  ;;  %v15458_v60 = vshrl.u32 %v12421_v48, 16 }
 0x26a   : > { %6687 = vrot.lane.b32.xlu0 %v9182_v37, %s9961_s21  ;;  %v7281_v38 = vsel %vm10142_vm11, %v9214_v24, %v7280_v46  ;;  %v7282_v34 = vrot.slane %v7280_v46, 4  ;;  %v5467_v55 = vsel %vm10142_vm11, %v5465_v11, %v5466_v25  ;;  %v6813_v12 = vshll.u32 %v12454_v13, 16  ;;  %v12610_v25 = vpop.f32.mrb[24].mxu1 }
 0x26b   : > { %v9324_v31 = vpack.c.bf16 %v4211_v33, %v4211_v33  ;;  %v4212_v18 = vmax.f32 %v4118_v1, 0.0  ;;  %v6809_v15 = vrot.slane %v15458_v60, 4  ;;  %v9119_v52 = vcombine.low %v12592_v5, %v12597_v43  ;;  %v4684_v1 = vld [vmem:[#allocation2 + $0x48] sm:$0xf] }
 0x26c   : > { %v7284_v37 = vsel %vm10142_vm11, %v7282_v34, %v7283_v53  ;;  %v9103_v48 = vcombine.low %v5464_v54, %v5467_v55  ;;  %v6806_v30 = vsel %vm10252_vm14, %v6801_v3, %v6805_v57  ;;  %v6815_v17 = vrot.slane %v6813_v12, 5  ;;  %v12616_v3 = vpop.f32.mrb[25].mxu1  ;;  %v5671_v55 = vld [vmem:[#allocation2 + $0x44] sm:$0x1]  ;;  %v4688_v12 = vld [vmem:[#allocation2 + $0x50] sm:$0x1] }
 0x26d   : > { %v4415_v24 = vshrl.u32 %v9324_v31, 16  ;;  %v4418_v46 = vshll.u32 %v9324_v31, 16  ;;  %v9325_v33 = vpack.c.bf16 %v4212_v18, %v4212_v18  ;;  %v9230_v45 = vcombine.low %v7281_v38, %v7284_v37 }
 0x26e   : > { %v6810_v60 = vor.u32 %v6809_v15, %v6805_v57  ;;  %v5946_v13 = vshrl.u32 %v12592_v5, 16  ;;  %5601 = vrot.lane.b32.xlu1 %v9103_v48, %s9961_s21  ;;  %v5949_v38 = vshll.u32 %v12592_v5, 16  ;;  %v5955_v54 = vshll.u32 %v12597_v43, 16 }
 0x26f   : > { %v4417_v53 = vrot.slane %v4415_v24, 7  ;;  %v4423_v34 = vshrl.u32 %v9325_v33, 16  ;;  %v4426_v20 = vshll.u32 %v9325_v33, 16  ;;  %7436 = vst.msk [vmem:[#allocation3 + $0x58] sm:$0xff] %vm1077_vm15, %v9230_v45  ;;  %v5959_v11 = vshrl.u32 %v12597_v43, 16 }
 0x270   : > { %v6811_v18 = vrot.slane %v6810_v60, 4  ;;  %v5948_v37 = vrot.slane %v5946_v13, 4  ;;  %v5951_v33 = vrot.slane %v5949_v38, 5  ;;  %v12620_v45 = vrot.slane %v5955_v54, 5 }
 0x271   : > { %v4420_v31 = vor.u32 %v4418_v46, %v4417_v53  ;;  %v4421_v57 = vrot.slane %v4417_v53, 4  ;;  %v4425_v15 = vrot.slane %v4423_v34, 7  ;;  %v5961_v48 = vrot.slane %v5959_v11, 4 }
 0x272   : > { %v6816_v24 = vsel %vm10252_vm14, %v6811_v18, %v6815_v17  ;;  %15459 = vst [vmem:[#allocation12_spill] sm:$0xff] %v12620_v45  ;;  %v5952_v46 = vor.u32 %v5951_v33, %v5948_v37  ;;  %5793 = vrot.lane.b32.xlu1 %v9119_v52, %s9962_s27  ;;  %v5965_v34 = vshll.u32 %v5671_v55, 16  ;;  %v9151_v13 = vrot.slane %v12592_v5, 9 }
 0x273   : > { %v4685_v60 = vsel %vm10134_vm10, %v4420_v31, %v4684_v1  ;;  %v4428_v28 = vor.u32 %v4426_v20, %v4425_v15  ;;  %v4430_v19 = vrot.slane %v4425_v15, 4  ;;  %v9197_v9 = vcombine.low %v6806_v30, %v6816_v24  ;;  %v12645_v15 = vpop.f32.mrb[26].mxu1 }
 0x274   : > { %4686 = vst [vmem:[#allocation2 + $0x48] sm:$0xf] %v4685_v60  ;;  %v5962_v53 = vor.u32 %v5961_v48, %v12620_v45  ;;  %v9398_v38 = vpop.f32.mrb[24].mxu0  ;;  %v6359_v20 = vrot.slane %v12597_v43, 5  ;;  %v6362_v1 = vrot.slane %v5671_v55, 5  ;;  %v12634_v54 = vrot.slane %v5952_v46, 4 }
 0x275   : > { %v4429_v17 = vsel %vm10123_vm9, %v4421_v57, %v4428_v28  ;;  %v4689_v18 = vsel %vm10091_vm4, %v4430_v19, %v4688_v12  ;;  %7181 = vrot.lane.b32.xlu0 %v9197_v9, %s9962_s27  ;;  %v9399_v30 = vpop.f32.mrb[25].mxu0  ;;  %v12638_v11 = vrot.slane %v5965_v34, 5  ;;  %v5018_v28 = vshrl.u32 %v12535_v56, 16  ;;  %v12656_v48 = vpop.f32.mrb[27].mxu1 }
 0x276   : > { %4687 = vst.msk [vmem:[#allocation2 + $0x4c] sm:$0xf] %vm246_vm0, %v4429_v17  ;;  %4690 = vst [vmem:[#allocation2 + $0x50] sm:$0x1] %v4689_v18  ;;  %v7460_v52 = vld [vmem:[#allocation3 + $0x58] sm:$0xff]  ;;  %v12636_v5 = vrot.slane %v5962_v53, 4  ;;  %v9400_v19 = vadd.f32 %v9399_v30, %v9398_v38  ;;  %v6360_v9 = vsel %vm10142_vm11, %v9151_v13, %v6359_v20 }
 0x277   : > { %15460 = vst [vmem:[#allocation29_spill] sm:$0xff] %v12634_v54  ;;  %15462 = vst [vmem:[#allocation20_spill] sm:$0xff] %v12638_v11  ;;  %v9401_v31 = vpop.f32.mrb[26].mxu0  ;;  %9651 = vmatmul.mubr.msk.bf16.gmra.mrb[68].mxu0 %vm1077_vm15, %v7460_v52  ;;  %v6361_v43 = vrot.slane %v6359_v20, 4  ;;  %v5021_v57 = vshll.u32 %v12535_v56, 16  ;;  %v5020_v24 = vrot.slane %v5018_v28, 4  ;;  %v5354_v52 = vpop.permute.xlu1 %5353 }
 0x278   : > { %15461 = vst [vmem:[#allocation25_spill] sm:$0xff] %v12636_v5  ;;  %v9402_v37 = vpop.f32.mrb[27].mxu0  ;;  %v5027_v33 = vshll.u32 %v12543_v62, 16  ;;  %v12661_v56 = vld [vmem:[%s15290_s2] ss:$0 sm:$0xff]  ;;  %v5031_v38 = vshrl.u32 %v12543_v62, 16 }
 0x279   : > { %v9403_v60 = vadd.f32 %v9402_v37, %v9401_v31  ;;  %v3962_v46 = vadd.f32 %v12661_v56, %v9400_v19  ;;  %v6363_v53 = vsel %vm10142_vm11, %v6361_v43, %v6362_v1  ;;  %v5023_v34 = vrot.slane %v5021_v57, 5  ;;  %v12666_v13 = vld [vmem:[#allocation2 + $0x3c] sm:$0xf]  ;;  %v12670_v30 = vld [vmem:[#allocation2 + $0x44] sm:$0x1]  ;;  %5401 = vst.msk [vmem:[#allocation3] sm:$0xff] %vm1577_vm1, %v5354_v52 }
 0x27a   : > { %v9167_v17 = vcombine.low %v6360_v9, %v6363_v53  ;;  %v5029_v18 = vrot.slane %v5027_v33, 5  ;;  %v5037_v20 = vshll.u32 %v12548_v44, 16  ;;  %v12676_v1 = vld [vmem:[#allocation2 + $0x40] sm:$0xf]  ;;  %v9088_v43 = vrot.slane %v12666_v13, 9 }
 0x27b   : > { %v4123_v28 = vadd.f32 %v12215_v35, %v3962_v46  ;;  %v3965_v31 = vadd.f32 %v12661_v56, %v9403_v60  ;;  %v5024_v19 = vor.u32 %v5023_v34, %v5020_v24  ;;  %v12674_v37 = vld [vmem:[#allocation2 + $0x48] sm:$0xf]  ;;  %v5033_v62 = vrot.slane %v5031_v38, 4 }
 0x27c   : > { %6497 = vrot.lane.b32.xlu0 %v9167_v17, %s9963_s8  ;;  %v5039_v44 = vrot.slane %v5037_v20, 5  ;;  %v9215_v9 = vrot.slane %v12674_v37, 9  ;;  %v5470_v57 = vrot.slane %v12676_v1, 5  ;;  %v9404_v24 = vpop.f32.mrb[28].mxu0  ;;  %v5473_v53 = vrot.slane %v12670_v30, 5 }
 0x27d   : > { %v4213_v35 = vmax.f32 %v4123_v28, 0.0  ;;  %v4126_v33 = vadd.f32 %v12232_v63, %v3965_v31  ;;  %v5025_v60 = vrot.slane %v5024_v19, 4  ;;  %v12684_v46 = vld [vmem:[#allocation2 + $0x4c] sm:$0xf]  ;;  %v9405_v34 = vpop.f32.mrb[29].mxu0  ;;  %v5034_v55 = vor.u32 %v5033_v62, %v5029_v18 }
 0x27e   : > { %v12687_v52 = vld [vmem:[#allocation2 + $0x50] sm:$0x1]  ;;  %v7287_v17 = vrot.slane %v12684_v46, 5  ;;  %v9183_v38 = vcombine.low %v12674_v37, %v12684_v46  ;;  %v12694_v20 = vsel %vm10142_vm11, %v9088_v43, %v5470_v57  ;;  %v9406_v31 = vadd.f32 %v9405_v34, %v9404_v24  ;;  %v9407_v19 = vpop.f32.mrb[30].mxu0 }
 0x27f   : > { %v9326_v63 = vpack.c.bf16 %v4213_v35, %v4213_v35  ;;  %v4214_v28 = vmax.f32 %v4126_v33, 0.0  ;;  %v5030_v12 = vsel %vm10252_vm14, %v5025_v60, %v5029_v18  ;;  %v9408_v45 = vpop.f32.mrb[31].mxu0  ;;  %v5035_v62 = vrot.slane %v5034_v55, 4 }
 0x280   : > { %v7288_v54 = vsel %vm10142_vm11, %v9215_v9, %v7287_v17  ;;  %v7289_v11 = vrot.slane %v7287_v17, 4  ;;  %v7290_v5 = vrot.slane %v12687_v52, 5  ;;  %6689 = vrot.lane.b32.xlu0 %v9183_v38, %s9961_s21  ;;  %v3970_v35 = vadd.f32 %v12661_v56, %v9406_v31 }
 0x281   : > { %v4432_v42 = vshrl.u32 %v9326_v63, 16  ;;  %v4435_v43 = vshll.u32 %v9326_v63, 16  ;;  %v9327_v7 = vpack.c.bf16 %v4214_v28, %v4214_v28  ;;  %v9409_v33 = vadd.f32 %v9408_v45, %v9407_v19 }
 0x282   : > { %v5040_v24 = vsel %vm10252_vm14, %v5035_v62, %v5039_v44  ;;  %v7291_v55 = vsel %vm10142_vm11, %v7289_v11, %v7290_v5  ;;  %v5472_v18 = vrot.slane %v5470_v57, 4  ;;  %v4131_v17 = vadd.f32 %v12212_v51, %v3970_v35  ;;  %v4695_v5 = vld [vmem:[#allocation2 + $0x5c] sm:$0x1] }
 0x283   : > { %v4434_v60 = vrot.slane %v4432_v42, 7  ;;  %v4440_v9 = vshrl.u32 %v9327_v7, 16  ;;  %v4443_v34 = vshll.u32 %v9327_v7, 16  ;;  %v3973_v38 = vadd.f32 %v12661_v56, %v9409_v33 }
 0x284   : > { %v9071_v63 = vcombine.low %v5030_v12, %v5040_v24  ;;  %v9231_v28 = vcombine.low %v7288_v54, %v7291_v55  ;;  %v5474_v45 = vsel %vm10142_vm11, %v5472_v18, %v5473_v53  ;;  %v4215_v62 = vmax.f32 %v4131_v17, 0.0  ;;  %v9410_v47 = vpop.f32.mrb[32].mxu0 }
 0x285   : > { %v4437_v31 = vor.u32 %v4435_v43, %v4434_v60  ;;  %v4438_v19 = vrot.slane %v4434_v60, 4  ;;  %v4442_v44 = vrot.slane %v4440_v9, 7  ;;  %v4134_v42 = vadd.f32 %v12230_v21, %v3973_v38  ;;  %v9411_v11 = vpop.f32.mrb[33].mxu0 }
 0x286   : > { %5361 = vrot.lane.b32.xlu1 %v9071_v63, %s9963_s8  ;;  %7437 = vst.msk [vmem:[#allocation3 + $0x70] sm:$0xff] %vm1077_vm15, %v9231_v28  ;;  %v9104_v51 = vcombine.low %v12694_v20, %v5474_v45  ;;  %v15463_v7 = vshrl.u32 %v12560_v58, 16  ;;  %v15464_v12 = vshll.u32 %v12560_v58, 16  ;;  %v9328_v33 = vpack.c.bf16 %v4215_v62, %v4215_v62  ;;  %v9413_v21 = vpop.f32.mrb[34].mxu0 }
 0x287   : > { %v4692_v53 = vsel %vm10134_vm10, %v4437_v31, %v4691_v2  ;;  %v4445_v43 = vor.u32 %v4443_v34, %v4442_v44  ;;  %v4447_v35 = vrot.slane %v4442_v44, 4  ;;  %v4216_v24 = vmax.f32 %v4134_v42, 0.0  ;;  %v9414_v18 = vpop.f32.mrb[35].mxu0  ;;  %v5594_v2 = vpop.permute.xlu1 %5593  ;;  %v9783_v34 = vld [vmem:[%s15291_s3 + $0x40] sm:$0xff]  }
 0x288   : > { %v6820_v54 = vrot.slane %v15463_v7, 4  ;;  %v6823_v57 = vrot.slane %v15464_v12, 5  ;;  %4693 = vst [vmem:[#allocation2 + $0x54] sm:$0xf] %v4692_v53  ;;  %v9412_v55 = vadd.f32 %v9411_v11, %v9410_v47  ;;  %v6827_v20 = vshll.u32 %v12569_v29, 16  ;;  %5641 = vst.msk [vmem:[#allocation3] sm:$0xff] %vm1821_vm2, %v5594_v2  ;;  %9476 = vmatprep.subr.bf16.mxu1 %v9783_v34 }
 0x289   : > { %v4446_v9 = vsel %vm10123_vm9, %v4438_v19, %v4445_v43  ;;  %v4696_v58 = vsel %vm10091_vm4, %v4447_v35, %v4695_v5  ;;  %v4449_v17 = vshrl.u32 %v9328_v33, 16  ;;  %v4452_v38 = vshll.u32 %v9328_v33, 16  ;;  %v4698_v19 = vld [vmem:[#allocation2 + $0x60] sm:$0xf] }
 0x28a   : > { %v6824_v60 = vor.u32 %v6823_v57, %v6820_v54  ;;  %4694 = vst.msk [vmem:[#allocation2 + $0x58] sm:$0xf] %vm246_vm0, %v4446_v9  ;;  %4697 = vst [vmem:[#allocation2 + $0x5c] sm:$0x1] %v4696_v58  ;;  %v9329_v47 = vpack.c.bf16 %v4216_v24, %v4216_v24  ;;  %v9415_v63 = vadd.f32 %v9414_v18, %v9413_v21  ;;  %5603 = vrot.lane.b32.xlu1 %v9104_v51, %s9961_s21  ;;  %v12738_v57 = vld [vmem:[#allocation2 + $0x48] sm:$0xf] }
 0x28b   : > { %v3978_v28 = vadd.f32 %v12661_v56, %v9412_v55  ;;  %v4451_v31 = vrot.slane %v4449_v17, 7  ;;  %v6829_v44 = vrot.slane %v6827_v20, 5  ;;  %v15465_v62 = vshrl.u32 %v12569_v29, 16  ;;  %v12740_v51 = vld [vmem:[#allocation2 + $0x4c] sm:$0xf] }
 0x28c   : > { %v6825_v45 = vrot.slane %v6824_v60, 4  ;;  %v6837_v42 = vshll.u32 %v12571_v41, 16  ;;  %v4457_v11 = vshrl.u32 %v9329_v47, 16  ;;  %v4460_v7 = vshll.u32 %v9329_v47, 16  ;;  %v9416_v33 = vpop.f32.mrb[36].mxu0  ;;  %v9785_v41 = vld [vmem:[%s15291_s3] sm:$0xff]  }
 0x28d   : > { %v6833_v5 = vrot.slane %v15465_v62, 4  ;;  %v4139_v54 = vadd.f32 %v12250_v16, %v3978_v28  ;;  %v3981_v12 = vadd.f32 %v12661_v56, %v9415_v63  ;;  %v4454_v53 = vor.u32 %v4452_v38, %v4451_v31  ;;  %v7463_v35 = vld [vmem:[#allocation3 + $0x70] sm:$0xff]  ;;  %v9417_v60 = vpop.f32.mrb[37].mxu0  ;;  %9477 = vmatpush3.bf16.msra.mxu1 %v9785_v41  ;;  %v5786_v62 = vpop.permute.xlu1 %5785 }
 0x28e   : > { %v4455_v43 = vrot.slane %v4451_v31, 4  ;;  %v6830_v29 = vsel %vm10252_vm14, %v6825_v45, %v6829_v44  ;;  %v4459_v24 = vrot.slane %v4457_v11, 7  ;;  %9654 = vmatprep.mubr.msk.bf16.mxu0 %vm1077_vm15, %v7463_v35  ;;  %v6839_v18 = vrot.slane %v6837_v42, 5  ;;  %v4702_v9 = vld [vmem:[#allocation2 + $0x68] sm:$0x1]  ;;  %v9419_v2 = vpop.f32.mrb[38].mxu0 }
 0x28f   : > { %v6834_v21 = vor.u32 %v6833_v5, %v6829_v44  ;;  %v4217_v16 = vmax.f32 %v4139_v54, 0.0  ;;  %v4142_v55 = vadd.f32 %v12259_v39, %v3981_v12  ;;  %v4699_v20 = vsel %vm10134_vm10, %v4454_v53, %v4698_v19  ;;  %v9420_v39 = vpop.f32.mrb[39].mxu0  ;;  %v12763_v54 = vld [vmem:[#allocation2 + $0x50] sm:$0x1]  ;;  %5833 = vst.msk [vmem:[#allocation3] sm:$0xff] %vm2014_vm3, %v5786_v62 }
 0x290   : > { %v9120_v17 = vcombine.low %v12738_v57, %v12740_v51  ;;  %v5970_v38 = vshrl.u32 %v12738_v57, 16  ;;  %4700 = vst [vmem:[#allocation2 + $0x60] sm:$0xf] %v4699_v20  ;;  %v4462_v34 = vor.u32 %v4460_v7, %v4459_v24  ;;  %v4464_v47 = vrot.slane %v4459_v24, 4  ;;  %v4705_v24 = vld [vmem:[#allocation2 + $0x6c] sm:$0xf] }
 0x291   : > { %v6835_v58 = vrot.slane %v6834_v21, 4  ;;  %v9330_v63 = vpack.c.bf16 %v4217_v16, %v4217_v16  ;;  %v4218_v28 = vmax.f32 %v4142_v55, 0.0  ;;  %v5973_v19 = vshll.u32 %v12738_v57, 16  ;;  %v4709_v62 = vld [vmem:[#allocation2 + $0x74] sm:$0x1] }
 0x292   : > { %v5972_v31 = vrot.slane %v5970_v38, 4  ;;  %v5979_v44 = vshll.u32 %v12740_v51, 16  ;;  %5795 = vrot.lane.b32.xlu1 %v9120_v17, %s9962_s27  ;;  %v4463_v5 = vsel %vm10123_vm9, %v4455_v43, %v4462_v34  ;;  %v4703_v42 = vsel %vm10091_vm4, %v4464_v47, %v4702_v9  ;;  %v9788_v38 = vld [vmem:[%s15291_s3 + $0x8] sm:$0xff]  }
 0x293   : > { %v6840_v45 = vsel %vm10252_vm14, %v6835_v58, %v6839_v18  ;;  %v4466_v11 = vshrl.u32 %v9330_v63, 16  ;;  %v4469_v7 = vshll.u32 %v9330_v63, 16  ;;  %4701 = vst.msk [vmem:[#allocation2 + $0x64] sm:$0xf] %vm246_vm0, %v4463_v5  ;;  %4704 = vst [vmem:[#allocation2 + $0x68] sm:$0x1] %v4703_v42  ;;  %v9331_v12 = vpack.c.bf16 %v4218_v28, %v4218_v28 }
 0x294   : > { %v9198_v53 = vcombine.low %v6830_v29, %v6840_v45  ;;  %v5975_v35 = vrot.slane %v5973_v19, 5  ;;  %v12767_v21 = vrot.slane %v5979_v44, 5  ;;  %v5983_v43 = vshrl.u32 %v12740_v51, 16  ;;  %v12772_v17 = vpop.f32.mrb[40].mxu0  ;;  %v9786_v29 = vld [vmem:[%s15291_s3 + $0x48] sm:$0xff]   ;;  %v9789_v63 = vld [vmem:[%s15291_s3 + $0x50] sm:$0xff]  }
 0x295   : > { %v4468_v41 = vrot.slane %v4466_v11, 7  ;;  %v9418_v16 = vadd.f32 %v9417_v60, %v9416_v33  ;;  %v9421_v55 = vadd.f32 %v9420_v39, %v9419_v2  ;;  %v4474_v18 = vshrl.u32 %v9331_v12, 16  ;;  %v12781_v47 = vpop.f32.mrb[41].mxu0  ;;  %9478 = vmatprep.subr.bf16.mxu1 %v9786_v29 }
 0x296   : > { %15466 = vst [vmem:[#allocation13_spill] sm:$0xff] %v12767_v21  ;;  %v4477_v20 = vshll.u32 %v9331_v12, 16  ;;  %7183 = vrot.lane.b32.xlu0 %v9198_v53, %s9962_s27  ;;  %v5976_v9 = vor.u32 %v5975_v35, %v5972_v31  ;;  %v5989_v58 = vshll.u32 %v12763_v54, 16  ;;  %v5985_v60 = vrot.slane %v5983_v43, 4  ;;  %v12791_v19 = vpop.f32.mrb[42].mxu0  ;;  %9479 = vmatpush3.bf16.msra.mxu1 %v9788_v38 }
 0x297   : > { %v4471_v34 = vor.u32 %v4469_v7, %v4468_v41  ;;  %v4472_v33 = vrot.slane %v4468_v41, 4  ;;  %v3986_v2 = vadd.f32 %v12661_v56, %v9418_v16  ;;  %v4476_v28 = vrot.slane %v4474_v18, 7  ;;  %v12798_v7 = vpop.f32.mrb[43].mxu0  ;;  %9480 = vmatprep.subr.bf16.mxu1 %v9789_v63 }
 0x298   : > { %v12786_v39 = vrot.slane %v5976_v9, 4  ;;  %v3989_v45 = vadd.f32 %v12661_v56, %v9421_v55  ;;  %v12789_v31 = vrot.slane %v5989_v58, 5  ;;  %v5986_v5 = vor.u32 %v5985_v60, %v12767_v21  ;;  %v6490_v9 = vpop.permute.xlu0 %6489  ;;  %v12824_v60 = vld [vmem:[#allocation2 + $0x54] sm:$0xf] }
 0x299   : > { %v4706_v44 = vsel %vm10134_vm10, %v4471_v34, %v4705_v24  ;;  %v4147_v42 = vadd.f32 %v12246_v26, %v3986_v2  ;;  %v9152_v11 = vrot.slane %v12738_v57, 9  ;;  %v4479_v12 = vor.u32 %v4477_v20, %v4476_v28  ;;  %6537 = vst.msk [vmem:[#allocation3 + $0x8] sm:$0xff] %vm1577_vm1, %v6490_v9  ;;  %v4716_v9 = vld [vmem:[#allocation2 + $0x80] sm:$0x1] }
 0x29a   : > { %15467 = vst [vmem:[#allocation10_spill] sm:$0xff] %v12786_v39  ;;  %15468 = vst [vmem:[#allocation21_spill] sm:$0xff] %v12789_v31  ;;  %v4481_v53 = vrot.slane %v4476_v28, 4  ;;  %v4150_v41 = vadd.f32 %v12257_v22, %v3989_v45  ;;  %v12805_v24 = vrot.slane %v5986_v5, 4  ;;  %v6366_v26 = vrot.slane %v12740_v51, 5 }
 0x29b   : > { %4707 = vst [vmem:[#allocation2 + $0x6c] sm:$0xf] %v4706_v44  ;;  %v4219_v43 = vmax.f32 %v4147_v42, 0.0  ;;  %v6369_v57 = vrot.slane %v12763_v54, 5  ;;  %v4480_v16 = vsel %vm10123_vm9, %v4472_v33, %v4479_v12  ;;  %v5042_v20 = vshrl.u32 %v12666_v13, 16 }
 0x29c   : > { %15469 = vst [vmem:[#allocation22_spill] sm:$0xff] %v12805_v24  ;;  %v4710_v55 = vsel %vm10091_vm4, %v4481_v53, %v4709_v62  ;;  %v4220_v18 = vmax.f32 %v4150_v41, 0.0  ;;  %4708 = vst.msk [vmem:[#allocation2 + $0x70] sm:$0xf] %vm246_vm0, %v4480_v16  ;;  %v6367_v54 = vsel %vm10142_vm11, %v9152_v11, %v6366_v26  ;;  %v6368_v58 = vrot.slane %v6366_v26, 4  ;;  %v12826_v2 = vpop.f32.mrb[44].mxu0 }
 0x29d   : > { %4711 = vst [vmem:[#allocation2 + $0x74] sm:$0x1] %v4710_v55  ;;  %v9332_v22 = vpack.c.bf16 %v4219_v43, %v4219_v43  ;;  %v5044_v38 = vrot.slane %v5042_v20, 4  ;;  %v5045_v34 = vshll.u32 %v12666_v13, 16  ;;  %v5051_v33 = vshll.u32 %v12676_v1, 16  ;;  %v12833_v5 = vpop.f32.mrb[45].mxu0 }
 0x29e   : > { %v9333_v29 = vpack.c.bf16 %v4220_v18, %v4220_v18  ;;  %v6370_v45 = vsel %vm10142_vm11, %v6368_v58, %v6369_v57  ;;  %v5055_v44 = vshrl.u32 %v12676_v1, 16  ;;  %v12831_v62 = vld [vmem:[#allocation2 + $0x58] sm:$0xf]  ;;  %v12835_v41 = vpop.f32.mrb[46].mxu0  ;;  %v9790_v43 = vld [vmem:[%s15291_s3 + $0x10] sm:$0xff]   ;;  %v5061_v1 = vshll.u32 %v12670_v30, 16  ;;  %v6682_v18 = vpop.permute.xlu0 %6681 }
 0x29f   : > { %v4483_v63 = vshrl.u32 %v9332_v22, 16  ;;  %v4486_v28 = vshll.u32 %v9332_v22, 16  ;;  %v4712_v42 = vld [vmem:[#allocation2 + $0x78] sm:$0xf]  ;;  %v9168_v12 = vcombine.low %v6367_v54, %v6370_v45  ;;  %v5047_v53 = vrot.slane %v5045_v34, 5  ;;  %v12841_v55 = vpop.f32.mrb[47].mxu0  ;;  %9481 = vmatpush3.bf16.msra.mxu1 %v9790_v43 }
 0x2a0   : > { %v4491_v11 = vshrl.u32 %v9333_v29, 16  ;;  %v4494_v13 = vshll.u32 %v9333_v29, 16  ;;  %v5053_v16 = vrot.slane %v5051_v33, 5  ;;  %v5057_v57 = vrot.slane %v5055_v44, 4  ;;  %v12847_v29 = vld [vmem:[#allocation2 + $0x48] sm:$0xf] }
 0x2a1   : > { %v4485_v26 = vrot.slane %v4483_v63, 7  ;;  %6499 = vrot.lane.b32.xlu0 %v9168_v12, %s9963_s8  ;;  %v5048_v22 = vor.u32 %v5047_v53, %v5044_v38  ;;  %v9184_v54 = vcombine.low %v12824_v60, %v12831_v62  ;;  %6729 = vst.msk [vmem:[#allocation3 + $0x8] sm:$0xff] %vm1821_vm2, %v6682_v18  ;;  %v5063_v63 = vrot.slane %v5061_v1, 5  ;;  %v12850_v45 = vld [vmem:[#allocation2 + $0x4c] sm:$0xf]  ;;  %v12852_v44 = vpop.f32.mrb[28].mxu1 }
 0x2a2   : > { %v4493_v20 = vrot.slane %v4491_v11, 7  ;;  %v5058_v33 = vor.u32 %v5057_v57, %v5053_v16  ;;  %15470 = vst [vmem:[#allocation23_spill] sm:$0xff] %v12852_v44  ;;  %v12854_v53 = vld [vmem:[#allocation2 + $0x5c] sm:$0x1]  ;;  %v12857_v51 = vpop.f32.mrb[29].mxu1  ;;  %v9216_v57 = vrot.slane %v12824_v60, 9 }
 0x2a3   : > { %v4488_v34 = vor.u32 %v4486_v28, %v4485_v26  ;;  %v4489_v30 = vrot.slane %v4485_v26, 4  ;;  %v5049_v12 = vrot.slane %v5048_v22, 4  ;;  %v12863_v1 = vld [vmem:[#allocation2 + $0x50] sm:$0x1]  ;;  %v7294_v22 = vrot.slane %v12831_v62, 5 }
 0x2a4   : > { %v4496_v11 = vor.u32 %v4494_v13, %v4493_v20  ;;  %v4498_v38 = vrot.slane %v4493_v20, 4  ;;  %v5059_v28 = vrot.slane %v5058_v33, 4  ;;  %v12882_v33 = vpop.f32.mrb[30].mxu1  ;;  %v5676_v58 = vld [vmem:[#allocation2 + $0x58] sm:$0xf] }
 0x2a5   : > { %v4713_v43 = vsel %vm10134_vm10, %v4488_v34, %v4712_v42  ;;  %v5054_v20 = vsel %vm10252_vm14, %v5049_v12, %v5053_v16  ;;  %6691 = vrot.lane.b32.xlu0 %v9184_v54, %s9961_s21  ;;  %v9791_v42 = vld [vmem:[%s15291_s3 + $0x58] sm:$0xff]   ;;  %v5477_v16 = vrot.slane %v12850_v45, 5  ;;  %15471 = vst [vmem:[#allocation24_spill] sm:$0xff] %v12882_v33  ;;  %v7295_v54 = vsel %vm10142_vm11, %v9216_v57, %v7294_v22  ;;  %v13007_v33 = vld [vmem:[#allocation2 + $0x60] sm:$0xf] }
 0x2a6   : > { %4714 = vst [vmem:[#allocation2 + $0x78] sm:$0xf] %v4713_v43  ;;  %v4497_v13 = vsel %vm10123_vm9, %v4489_v30, %v4496_v11  ;;  %v4717_v18 = vsel %vm10091_vm4, %v4498_v38, %v4716_v9  ;;  %v5064_v34 = vsel %vm10252_vm14, %v5059_v28, %v5063_v63  ;;  %v7297_v30 = vrot.slane %v12854_v53, 5  ;;  %9482 = vmatprep.subr.bf16.mxu1 %v9791_v42 }
 0x2a7   : > { %4715 = vst.msk [vmem:[#allocation2 + $0x7c] sm:$0xf] %vm246_vm0, %v4497_v13  ;;  %4718 = vst [vmem:[#allocation2 + $0x80] sm:$0x1] %v4717_v18  ;;  %v9089_v9 = vrot.slane %v12847_v29, 9  ;;  %v9072_v11 = vcombine.low %v5054_v20, %v5064_v34  ;;  %v7296_v38 = vrot.slane %v7294_v22, 4 }
 0x2a8   : > { %v5480_v12 = vrot.slane %v12863_v1, 5  ;;  %v5479_v63 = vrot.slane %v5477_v16, 4  ;;  %v6842_v28 = vshrl.u32 %v12674_v37, 16  ;;  %v6845_v13 = vshll.u32 %v12674_v37, 16  ;;  %v9792_v18 = vld [vmem:[%s15291_s3 + $0x18] sm:$0xff]   ;;  %v12894_v20 = vpop.f32.mrb[31].mxu1 }
 0x2a9   : > { %v5478_v43 = vsel %vm10142_vm11, %v9089_v9, %v5477_v16  ;;  %5363 = vrot.lane.b32.xlu1 %v9072_v11, %s9963_s8  ;;  %v7298_v57 = vsel %vm10142_vm11, %v7296_v38, %v7297_v30  ;;  %v6851_v22 = vshll.u32 %v12684_v46, 16  ;;  %v6855_v42 = vshrl.u32 %v12684_v46, 16  ;;  %v5675_v9 = vld [vmem:[#allocation2 + $0x54] sm:$0xf]  ;;  %v9793_v37 = vld [vmem:[%s15291_s3 + $0x60] sm:$0xff]   ;;  %9483 = vmatpush3.bf16.msra.mxu1 %v9792_v18 }
 0x2aa   : > { %v6861_v34 = vshll.u32 %v12687_v52, 16  ;;  %v9232_v16 = vcombine.low %v7295_v54, %v7298_v57  ;;  %v5481_v26 = vsel %vm10142_vm11, %v5479_v63, %v5480_v12  ;;  %v6844_v35 = vrot.slane %v6842_v28, 4  ;;  %v5677_v46 = vld [vmem:[#allocation2 + $0x5c] sm:$0x1]  ;;  %9484 = vmatprep.subr.bf16.mxu1 %v9793_v37 }
 0x2ab   : > { %v6847_v11 = vrot.slane %v6845_v13, 5  ;;  %v9105_v30 = vcombine.low %v5478_v43, %v5481_v26  ;;  %v6853_v38 = vrot.slane %v6851_v22, 5  ;;  %v6857_v21 = vrot.slane %v6855_v42, 4 }
 0x2ac   : > { %v6863_v39 = vrot.slane %v6861_v34, 5  ;;  %7438 = vst.msk [vmem:[#allocation3 + $0x88] sm:$0xff] %vm1077_vm15, %v9232_v16  ;;  %v9121_v31 = vcombine.low %v5675_v9, %v5676_v58  ;;  %v5994_v24 = vshrl.u32 %v5675_v9, 16  ;;  %v5997_v10 = vshll.u32 %v5675_v9, 16 }
 0x2ad   : > { %v6848_v52 = vor.u32 %v6847_v11, %v6844_v35  ;;  %5605 = vrot.lane.b32.xlu1 %v9105_v30, %s9961_s21  ;;  %v6858_v54 = vor.u32 %v6857_v21, %v6853_v38  ;;  %v6003_v12 = vshll.u32 %v5676_v58, 16  ;;  %v6007_v63 = vshrl.u32 %v5676_v58, 16  ;;  %v12917_v11 = vpop.permute.xlu0 %6491 }
 0x2ae   : > { %v9424_v28 = vadd.f32 %v12781_v47, %v12772_v17  ;;  %v5996_v43 = vrot.slane %v5994_v24, 4  ;;  %v5999_v13 = vrot.slane %v5997_v10, 5  ;;  %v6013_v18 = vshll.u32 %v5677_v46, 16 }
 0x2af   : > { %v6849_v26 = vrot.slane %v6848_v52, 4  ;;  %v6859_v57 = vrot.slane %v6858_v54, 4  ;;  %v12911_v22 = vrot.slane %v6003_v12, 5  ;;  %v6009_v42 = vrot.slane %v6007_v63, 4  ;;  %v12930_v54 = vld [vmem:[#allocation2 + $0x64] sm:$0xf] }
 0x2b0   : > { %v9153_v35 = vrot.slane %v5675_v9, 9  ;;  %v6000_v37 = vor.u32 %v5999_v13, %v5996_v43  ;;  %v12915_v16 = vrot.slane %v6013_v18, 5  ;;  %v6373_v21 = vrot.slane %v5676_v58, 5  ;;  %v12928_v58 = vld [vmem:[#allocation2 + $0x60] sm:$0xf]  ;;  %v12932_v12 = vpop.f32.mrb[48].mxu0 }
 0x2b1   : > { %15472 = vst [vmem:[#allocation26_spill] sm:$0xff] %v12911_v22  ;;  %v6854_v34 = vsel %vm10252_vm14, %v6849_v26, %v6853_v38  ;;  %v6864_v17 = vsel %vm10252_vm14, %v6859_v57, %v6863_v39  ;;  %v6010_v10 = vor.u32 %v6009_v42, %v12911_v22  ;;  %5797 = vrot.lane.b32.xlu1 %v9121_v31, %s9962_s27  ;;  %v6376_v47 = vrot.slane %v5677_v46, 5  ;;  %v12938_v43 = vpop.f32.mrb[49].mxu0  ;;  %v12950_v42 = vld [vmem:[#allocation2 + $0x68] sm:$0x1] }
 0x2b2   : > { %15473 = vst [vmem:[#allocation18_spill] sm:$0xff] %v12915_v16  ;;  %v5066_v24 = vshrl.u32 %v12847_v29, 16  ;;  %v9199_v9 = vcombine.low %v6854_v34, %v6864_v17  ;;  %v12924_v30 = vrot.slane %v6000_v37, 4  ;;  %v6374_v38 = vsel %vm10142_vm11, %v9153_v35, %v6373_v21  ;;  %v12952_v35 = vpop.f32.mrb[50].mxu0 }
 0x2b3   : > { %v6375_v52 = vrot.slane %v6373_v21, 4  ;;  %v7466_v39 = vld [vmem:[#allocation3 + $0x88] sm:$0xff]  ;;  %v12934_v63 = vrot.slane %v6010_v10, 4  ;;  %v5069_v46 = vshll.u32 %v12847_v29, 16  ;;  %v5075_v26 = vshll.u32 %v12850_v45, 16  ;;  %v12958_v10 = vpop.f32.mrb[51].mxu0 }
 0x2b4   : > { %15474 = vst [vmem:[#allocation9_spill] sm:$0xff] %v12924_v30  ;;  %v5068_v31 = vrot.slane %v5066_v24, 4  ;;  %9655 = vmatmul.mubr.msk.bf16.gmra.mrb[72].mxu0 %vm1077_vm15, %v7466_v39  ;;  %7185 = vrot.lane.b32.xlu0 %v9199_v9, %s9962_s27  ;;  %v5079_v57 = vshrl.u32 %v12850_v45, 16  ;;  %v5085_v29 = vshll.u32 %v12863_v1, 16  ;;  %v9427_v45 = vadd.f32 %v12798_v7, %v12791_v19  ;;  %v12963_v9 = vld [vmem:[#allocation2 + $0x54] sm:$0xf]  ;;  %v12968_v39 = vpop.permute.xlu0 %6683 }
 0x2b5   : > { %15475 = vst [vmem:[#allocation8_spill] sm:$0xff] %v12934_v63  ;;  %v6377_v18 = vsel %vm10142_vm11, %v6375_v52, %v6376_v47  ;;  %v5071_v21 = vrot.slane %v5069_v46, 5  ;;  %v5077_v17 = vrot.slane %v5075_v26, 5  ;;  %v3994_v1 = vadd.f32 %v12661_v56, %v9424_v28  ;;  %v9795_v52 = vld [vmem:[%s15291_s3 + $0x20] sm:$0xff]  }
 0x2b6   : > { %v9169_v37 = vcombine.low %v6374_v38, %v6377_v18  ;;  %v5081_v24 = vrot.slane %v5079_v57, 4  ;;  %v5087_v47 = vrot.slane %v5085_v29, 5  ;;  %v9217_v46 = vrot.slane %v12928_v58, 9  ;;  %v12973_v57 = vld [vmem:[#allocation2 + $0x5c] sm:$0x1]  ;;  %9485 = vmatpush3.bf16.msra.mxu1 %v9795_v52 }
 0x2b7   : > { %v5072_v38 = vor.u32 %v5071_v21, %v5068_v31  ;;  %v7301_v26 = vrot.slane %v12930_v54, 5  ;;  %v7304_v18 = vrot.slane %v12950_v42, 5  ;;  %v4155_v7 = vadd.f32 %v12404_v61, %v3994_v1  ;;  %v12979_v29 = vld [vmem:[#allocation2 + $0x58] sm:$0xf]  ;;  %v9796_v21 = vld [vmem:[%s15291_s3 + $0x68] sm:$0xff]  }
 0x2b8   : > { %6501 = vrot.lane.b32.xlu0 %v9169_v37, %s9963_s8  ;;  %v5082_v19 = vor.u32 %v5081_v24, %v5077_v17  ;;  %v9185_v28 = vcombine.low %v12928_v58, %v12930_v54  ;;  %v9090_v31 = vrot.slane %v12963_v9, 9  ;;  %v5484_v24 = vrot.slane %v12979_v29, 5  ;;  %v9797_v61 = vld [vmem:[%s15291_s3 + $0x28] sm:$0xff]   ;;  %9486 = vmatprep.subr.bf16.mxu1 %v9796_v21  ;;  %v7178_v16 = vpop.permute.xlu0 %7177 }
 0x2b9   : > { %v5073_v13 = vrot.slane %v5072_v38, 4  ;;  %v7302_v34 = vsel %vm10142_vm11, %v9217_v46, %v7301_v26  ;;  %v7303_v37 = vrot.slane %v7301_v26, 4  ;;  %v4221_v22 = vmax.f32 %v4155_v7, 0.0  ;;  %v9798_v38 = vld [vmem:[%s15291_s3 + $0x70] sm:$0xff]   ;;  %7225 = vst.msk [vmem:[#allocation3 + $0x8] sm:$0xff] %vm2014_vm3, %v7178_v16 }
 0x2ba   : > { %v5083_v1 = vrot.slane %v5082_v19, 4  ;;  %v5487_v30 = vrot.slane %v12973_v57, 5  ;;  %v3997_v52 = vadd.f32 %v12661_v56, %v9427_v45  ;;  %v5485_v19 = vsel %vm10142_vm11, %v9090_v31, %v5484_v24  ;;  %9487 = vmatpush3.bf16.msra.mxu1 %v9797_v61 }
 0x2bb   : > { %v5078_v46 = vsel %vm10252_vm14, %v5073_v13, %v5077_v17  ;;  %v7305_v26 = vsel %vm10142_vm11, %v7303_v37, %v7304_v18  ;;  %v5486_v7 = vrot.slane %v5484_v24, 4  ;;  %v9334_v21 = vpack.c.bf16 %v4221_v22, %v4221_v22  ;;  %v13015_v24 = vld [vmem:[#allocation2 + $0x64] sm:$0xf]  ;;  %v9800_v22 = vld [vmem:[%s15291_s3 + $0x30] sm:$0xff]   ;;  %9488 = vmatprep.subr.bf16.mxu1 %v9798_v38 }
 0x2bc   : > { %v5088_v45 = vsel %vm10252_vm14, %v5083_v1, %v5087_v47  ;;  %v9233_v63 = vcombine.low %v7302_v34, %v7305_v26  ;;  %6693 = vrot.lane.b32.xlu0 %v9185_v28, %s9961_s21  ;;  %v4158_v50 = vadd.f32 %v12429_v59, %v3997_v52  ;;  %v15476_v18 = vshrl.u32 %v12824_v60, 16 }
 0x2bd   : > { %v9073_v13 = vcombine.low %v5078_v46, %v5088_v45  ;;  %v5488_v17 = vsel %vm10142_vm11, %v5486_v7, %v5487_v30  ;;  %v15477_v16 = vshll.u32 %v12824_v60, 16  ;;  %v4500_v59 = vshrl.u32 %v9334_v21, 16 }
 0x2be   : > { %v6868_v31 = vrot.slane %v15476_v18, 4  ;;  %v4503_v34 = vshll.u32 %v9334_v21, 16  ;;  %7439 = vst.msk [vmem:[#allocation3 + $0xa0] sm:$0xff] %vm1077_vm15, %v9233_v63  ;;  %v9106_v47 = vcombine.low %v5485_v19, %v5488_v17  ;;  %v4222_v28 = vmax.f32 %v4158_v50, 0.0  ;;  %v4719_v19 = vld [vmem:[#allocation2 + $0x84] sm:$0xf]  ;;  %9489 = vmatpush3.bf16.msra.mxu1 %v9800_v22 }
 0x2bf   : > { %v6871_v37 = vrot.slane %v15477_v16, 5  ;;  %5365 = vrot.lane.b32.xlu1 %v9073_v13, %s9963_s8  ;;  %v6875_v60 = vshll.u32 %v12831_v62, 16  ;;  %v15478_v1 = vshrl.u32 %v12831_v62, 16  ;;  %v6885_v61 = vshll.u32 %v12854_v53, 16 }
 0x2c0   : > { %v4502_v46 = vrot.slane %v4500_v59, 7  ;;  %v9335_v26 = vpack.c.bf16 %v4222_v28, %v4222_v28  ;;  %v9122_v7 = vcombine.low %v13007_v33, %v13015_v24  ;;  %v6018_v63 = vshrl.u32 %v13007_v33, 16 }
 0x2c1   : > { %v6872_v30 = vor.u32 %v6871_v37, %v6868_v31  ;;  %v6881_v52 = vrot.slane %v15478_v1, 4  ;;  %v6877_v38 = vrot.slane %v6875_v60, 5  ;;  %v6887_v45 = vrot.slane %v6885_v61, 5 }
 0x2c2   : > { %v6021_v21 = vshll.u32 %v13007_v33, 16  ;;  %v4505_v13 = vor.u32 %v4503_v34, %v4502_v46  ;;  %v4506_v17 = vrot.slane %v4502_v46, 4  ;;  %v4508_v62 = vshrl.u32 %v9335_v26, 16  ;;  %v9801_v46 = vld [vmem:[%s15291_s3 + $0x78] sm:$0xff]  }
 0x2c3   : > { %v6873_v50 = vrot.slane %v6872_v30, 4  ;;  %v4511_v18 = vshll.u32 %v9335_v26, 16  ;;  %5607 = vrot.lane.b32.xlu1 %v9106_v47, %s9961_s21  ;;  %v6882_v31 = vor.u32 %v6881_v52, %v6877_v38  ;;  %v6020_v16 = vrot.slane %v6018_v63, 4  ;;  %v4723_v30 = vld [vmem:[#allocation2 + $0x8c] sm:$0x1]  ;;  %v9803_v26 = vld [vmem:[%s15291_s3 + $0x38] sm:$0xff]   ;;  %9490 = vmatprep.subr.bf16.mxu1 %v9801_v46 }
 0x2c4   : > { %v6023_v37 = vrot.slane %v6021_v21, 5  ;;  %v4720_v59 = vsel %vm10134_vm10, %v4505_v13, %v4719_v19  ;;  %v4510_v28 = vrot.slane %v4508_v62, 7  ;;  %v6027_v60 = vshll.u32 %v13015_v24, 16  ;;  %v5680_v21 = vld [vmem:[#allocation2 + $0x68] sm:$0x1]  ;;  %9491 = vmatpush3.bf16.msra.mxu1 %v9803_v26 }
 0x2c5   : > { %v6878_v53 = vsel %vm10252_vm14, %v6873_v50, %v6877_v38  ;;  %v6031_v22 = vshrl.u32 %v13015_v24, 16  ;;  %4721 = vst [vmem:[#allocation2 + $0x84] sm:$0xf] %v4720_v59  ;;  %v7469_v34 = vld [vmem:[#allocation3 + $0xa0] sm:$0xff]  ;;  %v6883_v1 = vrot.slane %v6882_v31, 4  ;;  %v9430_v47 = vadd.f32 %v12833_v5, %v12826_v2  ;;  %v7450_v2 = vld [vmem:[#allocation3 + $0x8] sm:$0xff] }
 0x2c6   : > { %v6024_v61 = vor.u32 %v6023_v37, %v6020_v16  ;;  %v9433_v52 = vadd.f32 %v12841_v55, %v12835_v41  ;;  %9658 = vmatprep.mubr.msk.bf16.mxu0 %vm1077_vm15, %v7469_v34  ;;  %v4513_v63 = vor.u32 %v4511_v18, %v4510_v28  ;;  %v4515_v19 = vrot.slane %v4510_v28, 4  ;;  %7728 = vmatprep.mubr.bf16.mxu1 %v7450_v2  ;;  %v9861_v2 = vld [vmem:[%s15291_s3 + $0x88] sm:$0xff]  }
 0x2c7   : > { %v13048_v50 = vrot.slane %v6027_v60, 5  ;;  %v6033_v38 = vrot.slane %v6031_v22, 4  ;;  %v6888_v5 = vsel %vm10252_vm14, %v6883_v1, %v6887_v45  ;;  %5799 = vrot.lane.b32.xlu1 %v9122_v7, %s9962_s27  ;;  %v4002_v55 = vadd.f32 %v12661_v56, %v9430_v47 }
 0x2c8   : > { %v13052_v41 = vrot.slane %v6024_v61, 4  ;;  %v4005_v13 = vadd.f32 %v12661_v56, %v9433_v52  ;;  %v4514_v62 = vsel %vm10123_vm9, %v4506_v17, %v4513_v63  ;;  %v4724_v18 = vsel %vm10091_vm4, %v4515_v19, %v4723_v30  ;;  %v13062_v37 = vpop.f32.mrb[52].mxu0 }
 0x2c9   : > { %15479 = vst [vmem:[#allocation7_spill] sm:$0xff] %v13048_v50  ;;  %v9200_v31 = vcombine.low %v6878_v53, %v6888_v5  ;;  %v6034_v16 = vor.u32 %v6033_v38, %v13048_v50  ;;  %4722 = vst.msk [vmem:[#allocation2 + $0x88] sm:$0xf] %vm246_vm0, %v4514_v62  ;;  %v4163_v7 = vadd.f32 %v12401_v8, %v4002_v55  ;;  %v6037_v17 = vshll.u32 %v5680_v21, 16  ;;  %v13071_v59 = vpop.f32.mrb[53].mxu0  ;;  %v9860_v53 = vld [vmem:[%s15291_s3 + $0x80] sm:$0xff]  }
 0x2ca   : > { %15480 = vst [vmem:[#allocation30_spill] sm:$0xff] %v13052_v41  ;;  %4725 = vst [vmem:[#allocation2 + $0x8c] sm:$0x1] %v4724_v18  ;;  %v4166_v45 = vadd.f32 %v12423_v6, %v4005_v13  ;;  %9678 = vmatprep.subr.bf16.mxu1 %v9860_v53  ;;  %v9154_v30 = vrot.slane %v13007_v33, 9  ;;  %v6380_v60 = vrot.slane %v13015_v24, 5  ;;  %v6383_v8 = vrot.slane %v5680_v21, 5 }
 0x2cb   : > { %7187 = vrot.lane.b32.xlu0 %v9200_v31, %s9962_s27  ;;  %v13077_v28 = vrot.slane %v6034_v16, 4  ;;  %v13081_v22 = vpop.f32.mrb[54].mxu0  ;;  %v7449_v6 = vld [vmem:[#allocation3] sm:$0xff]  ;;  %v4223_v34 = vmax.f32 %v4163_v7, 0.0  ;;  %v13083_v61 = vrot.slane %v6037_v17, 5  ;;  %v5090_v47 = vshrl.u32 %v12963_v9, 16 }
 0x2cc   : > { %v4224_v1 = vmax.f32 %v4166_v45, 0.0  ;;  %v13086_v52 = vpop.f32.mrb[55].mxu0  ;;  %7729 = vmatmul.mubr.bf16.vlgmr.msra.gmra.mrb[32].mxu1 %v7449_v6  ;;  %v6381_v46 = vsel %vm10142_vm11, %v9154_v30, %v6380_v60  ;;  %v6382_v26 = vrot.slane %v6380_v60, 4  ;;  %v5093_v33 = vshll.u32 %v12963_v9, 16  ;;  %v13102_v62 = vld [vmem:[#allocation2 + $0x6c] sm:$0xf] }
 0x2cd   : > { %15481 = vst [vmem:[#allocation31_spill] sm:$0xff] %v13077_v28  ;;  %15482 = vst [vmem:[#allocation32_spill] sm:$0xff] %v13083_v61  ;;  %v5099_v24 = vshll.u32 %v12979_v29, 16  ;;  %9680 = vmatpush3.bf16.msra.mxu1 %v9860_v53  ;;  %v9336_v63 = vpack.c.bf16 %v4223_v34, %v4223_v34  ;;  %v5092_v21 = vrot.slane %v5090_v47, 4  ;;  %v5103_v13 = vshrl.u32 %v12979_v29, 16 }
 0x2ce   : > { %v9337_v19 = vpack.c.bf16 %v4224_v1, %v4224_v1  ;;  %9679 = vmatprep.subr.bf16.mxu1 %v9861_v2  ;;  %v6384_v5 = vsel %vm10142_vm11, %v6382_v26, %v6383_v8  ;;  %v5095_v9 = vrot.slane %v5093_v33, 5  ;;  %v4726_v45 = vld [vmem:[#allocation2 + $0x90] sm:$0xf]  ;;  %v5109_v60 = vshll.u32 %v12973_v57, 16  ;;  %v4730_v1 = vld [vmem:[#allocation2 + $0x98] sm:$0x1] }
 0x2cf   : > { %v5101_v55 = vrot.slane %v5099_v24, 5  ;;  %v4517_v18 = vshrl.u32 %v9336_v63, 16  ;;  %v4520_v31 = vshll.u32 %v9336_v63, 16  ;;  %v9170_v17 = vcombine.low %v6381_v46, %v6384_v5  ;;  %v13105_v6 = vld [vmem:[#allocation2 + $0x70] sm:$0xf] }
 0x2d0   : > { %v4525_v16 = vshrl.u32 %v9337_v19, 16  ;;  %v4528_v7 = vshll.u32 %v9337_v19, 16  ;;  %v5096_v53 = vor.u32 %v5095_v9, %v5092_v21  ;;  %v5105_v30 = vrot.slane %v5103_v13, 4  ;;  %v13112_v63 = vld [vmem:[#allocation2 + $0x60] sm:$0xf] }
 0x2d1   : > { %9681 = vmatpush3.bf16.msra.mxu1 %v9861_v2  ;;  %v4519_v8 = vrot.slane %v4517_v18, 7  ;;  %v9186_v29 = vcombine.low %v13102_v62, %v13105_v6  ;;  %6503 = vrot.lane.b32.xlu0 %v9170_v17, %s9963_s8  ;;  %v5111_v46 = vrot.slane %v5109_v60, 5  ;;  %v13114_v5 = vld [vmem:[#allocation2 + $0x74] sm:$0x1]  ;;  %v13116_v9 = vld [vmem:[#allocation2 + $0x64] sm:$0xf] }
 0x2d2   : > { %v4527_v34 = vrot.slane %v4525_v16, 7  ;;  %v5097_v26 = vrot.slane %v5096_v53, 4  ;;  %v5106_v33 = vor.u32 %v5105_v30, %v5101_v55  ;;  %v9218_v17 = vrot.slane %v13102_v62, 9  ;;  %v13122_v53 = vld [vmem:[#allocation2 + $0x68] sm:$0x1] }
 0x2d3   : > { %v4522_v57 = vor.u32 %v4520_v31, %v4519_v8  ;;  %v4523_v19 = vrot.slane %v4519_v8, 4  ;;  %v7308_v60 = vrot.slane %v13105_v6, 5  ;;  %v7311_v8 = vrot.slane %v13114_v5, 5  ;;  %v5683_v38 = vld [vmem:[#allocation2 + $0x74] sm:$0x1] }
 0x2d4   : > { %v4530_v21 = vor.u32 %v4528_v7, %v4527_v34  ;;  %v4532_v2 = vrot.slane %v4527_v34, 4  ;;  %v5102_v13 = vsel %vm10252_vm14, %v5097_v26, %v5101_v55  ;;  %v5107_v18 = vrot.slane %v5106_v33, 4 }
 0x2d5   : > { %v4727_v31 = vsel %vm10134_vm10, %v4522_v57, %v4726_v45  ;;  %6695 = vrot.lane.b32.xlu0 %v9186_v29, %s9961_s21  ;;  %v9091_v45 = vrot.slane %v13112_v63, 9  ;;  %v5491_v34 = vrot.slane %v13116_v9, 5  ;;  %v7310_v33 = vrot.slane %v7308_v60, 4 }
 0x2d6   : > { %v4531_v7 = vsel %vm10123_vm9, %v4523_v19, %v4530_v21  ;;  %v4731_v30 = vsel %vm10091_vm4, %v4532_v2, %v4730_v1  ;;  %4728 = vst [vmem:[#allocation2 + $0x90] sm:$0xf] %v4727_v31  ;;  %v5112_v55 = vsel %vm10252_vm14, %v5107_v18, %v5111_v46  ;;  %v7309_v1 = vsel %vm10142_vm11, %v9218_v17, %v7308_v60  ;;  %v5681_v31 = vld [vmem:[#allocation2 + $0x6c] sm:$0xf] }
 0x2d7   : > { %4729 = vst.msk [vmem:[#allocation2 + $0x94] sm:$0xf] %vm246_vm0, %v4531_v7  ;;  %4732 = vst [vmem:[#allocation2 + $0x98] sm:$0x1] %v4731_v30  ;;  %v9074_v26 = vcombine.low %v5102_v13, %v5112_v55  ;;  %v5494_v57 = vrot.slane %v13122_v53, 5  ;;  %v5492_v19 = vsel %vm10142_vm11, %v9091_v45, %v5491_v34  ;;  %v5493_v21 = vrot.slane %v5491_v34, 4 }
 0x2d8   : > { %v6890_v46 = vshrl.u32 %v12928_v58, 16  ;;  %v6893_v2 = vshll.u32 %v12928_v58, 16  ;;  %v7312_v29 = vsel %vm10142_vm11, %v7310_v33, %v7311_v8  ;;  %v6899_v13 = vshll.u32 %v12930_v54, 16  ;;  %v5682_v45 = vld [vmem:[#allocation2 + $0x70] sm:$0xf] }
 0x2d9   : > { %5367 = vrot.lane.b32.xlu1 %v9074_v26, %s9963_s8  ;;  %v6903_v18 = vshrl.u32 %v12930_v54, 16  ;;  %v6909_v17 = vshll.u32 %v12950_v42, 16  ;;  %v9234_v7 = vcombine.low %v7309_v1, %v7312_v29  ;;  %v5495_v30 = vsel %vm10142_vm11, %v5493_v21, %v5494_v57 }
 0x2da   : > { %v6892_v60 = vrot.slane %v6890_v46, 4  ;;  %v6895_v55 = vrot.slane %v6893_v2, 5  ;;  %v9107_v58 = vcombine.low %v5492_v19, %v5495_v30  ;;  %v6901_v34 = vrot.slane %v6899_v13, 5 }
 0x2db   : > { %v6905_v26 = vrot.slane %v6903_v18, 4  ;;  %v6911_v56 = vrot.slane %v6909_v17, 5  ;;  %7440 = vst.msk [vmem:[#allocation3 + $0xb8] sm:$0xff] %vm1077_vm15, %v9234_v7  ;;  %v9123_v33 = vcombine.low %v5681_v31, %v5682_v45  ;;  %v6042_v54 = vshrl.u32 %v5681_v31, 16 }
 0x2dc   : > { %v6896_v8 = vor.u32 %v6895_v55, %v6892_v60  ;;  %v6045_v16 = vshll.u32 %v5681_v31, 16  ;;  %v6051_v1 = vshll.u32 %v5682_v45, 16  ;;  %v6055_v29 = vshrl.u32 %v5682_v45, 16 }
 0x2dd   : > { %5609 = vrot.lane.b32.xlu1 %v9107_v58, %s9961_s21  ;;  %v6906_v42 = vor.u32 %v6905_v26, %v6901_v34  ;;  %v9436_v57 = vadd.f32 %v12938_v43, %v12932_v12  ;;  %v6044_v19 = vrot.slane %v6042_v54, 4  ;;  %v6061_v2 = vshll.u32 %v5683_v38, 16 }
 0x2de   : > { %v6897_v21 = vrot.slane %v6896_v8, 4  ;;  %v6047_v46 = vrot.slane %v6045_v16, 5  ;;  %v13157_v18 = vrot.slane %v6051_v1, 5  ;;  %v6057_v17 = vrot.slane %v6055_v29, 4  ;;  %v13178_v1 = vld [vmem:[#allocation2 + $0x78] sm:$0xf] }
 0x2df   : > { %v6907_v13 = vrot.slane %v6906_v42, 4  ;;  %v9155_v7 = vrot.slane %v5681_v31, 9  ;;  %v13159_v30 = vpop.f32.mrb[56].mxu0  ;;  %v13163_v58 = vrot.slane %v6061_v2, 5  ;;  %v6387_v26 = vrot.slane %v5682_v45, 5 }
 0x2e0   : > { %15483 = vst [vmem:[#allocation33_spill] sm:$0xff] %v13157_v18  ;;  %v6902_v60 = vsel %vm10252_vm14, %v6897_v21, %v6901_v34  ;;  %v6048_v55 = vor.u32 %v6047_v46, %v6044_v19  ;;  %v13165_v24 = vpop.f32.mrb[57].mxu0  ;;  %v6058_v43 = vor.u32 %v6057_v17, %v13157_v18  ;;  %v6390_v16 = vrot.slane %v5683_v38, 5  ;;  %v13186_v46 = vpop.permute.xlu1 %5595 }
 0x2e1   : > { %15484 = vst [vmem:[#allocation34_spill] sm:$0xff] %v13163_v58  ;;  %v6912_v12 = vsel %vm10252_vm14, %v6907_v13, %v6911_v56  ;;  %5801 = vrot.lane.b32.xlu1 %v9123_v33, %s9962_s27  ;;  %v5114_v31 = vshrl.u32 %v13112_v63, 16  ;;  %v13172_v8 = vpop.f32.mrb[58].mxu0  ;;  %v6388_v45 = vsel %vm10142_vm11, %v9155_v7, %v6387_v26  ;;  %v6389_v42 = vrot.slane %v6387_v26, 4  ;;  %v13198_v7 = vld [vmem:[#allocation2 + $0x7c] sm:$0xf] }
 0x2e2   : > { %v9201_v54 = vcombine.low %v6902_v60, %v6912_v12  ;;  %v13174_v34 = vrot.slane %v6048_v55, 4  ;;  %v13180_v29 = vpop.f32.mrb[59].mxu0  ;;  %v7472_v56 = vld [vmem:[#allocation3 + $0xb8] sm:$0xff]  ;;  %v13182_v21 = vrot.slane %v6058_v43, 4  ;;  %v5117_v38 = vshll.u32 %v13112_v63, 16 }
 0x2e3   : > { %v5116_v33 = vrot.slane %v5114_v31, 4  ;;  %v5123_v19 = vshll.u32 %v13116_v9, 16  ;;  %9659 = vmatmul.mubr.msk.bf16.gmra.mrb[76].mxu0 %vm1077_vm15, %v7472_v56  ;;  %v6391_v13 = vsel %vm10142_vm11, %v6389_v42, %v6390_v16  ;;  %v5127_v17 = vshrl.u32 %v13116_v9, 16  ;;  %v13200_v60 = vld [vmem:[#allocation2 + $0x80] sm:$0x1] }
 0x2e4   : > { %15485 = vst [vmem:[#allocation35_spill] sm:$0xff] %v13174_v34  ;;  %15486 = vst [vmem:[#allocation36_spill] sm:$0xff] %v13182_v21  ;;  %7189 = vrot.lane.b32.xlu0 %v9201_v54, %s9962_s27  ;;  %v5133_v63 = vshll.u32 %v13122_v53, 16  ;;  %v9171_v26 = vcombine.low %v6388_v45, %v6391_v13  ;;  %v5119_v12 = vrot.slane %v5117_v38, 5  ;;  %v9439_v16 = vadd.f32 %v12958_v10, %v12952_v35  ;;  %v13211_v9 = vld [vmem:[%s15290_s2] ss:$0 sm:$0xff]  ;;  %v13231_v47 = vpop.permute.xlu1 %5787 }
 0x2e5   : > { %v5125_v43 = vrot.slane %v5123_v19, 5  ;;  %v5129_v31 = vrot.slane %v5127_v17, 4  ;;  %v4010_v53 = vadd.f32 %v13211_v9, %v9436_v57  ;;  %v13214_v42 = vld [vmem:[#allocation2 + $0x6c] sm:$0xf]  ;;  %v9219_v2 = vrot.slane %v13178_v1, 9 }
 0x2e6   : > { %v5135_v54 = vrot.slane %v5133_v63, 5  ;;  %v5120_v56 = vor.u32 %v5119_v12, %v5116_v33  ;;  %v7315_v45 = vrot.slane %v13198_v7, 5  ;;  %v7318_v38 = vrot.slane %v13200_v60, 5  ;;  %v13219_v19 = vld [vmem:[#allocation2 + $0x74] sm:$0x1] }
 0x2e7   : > { %v5130_v35 = vor.u32 %v5129_v31, %v5125_v43  ;;  %v4171_v10 = vadd.f32 %v12616_v3, %v4010_v53  ;;  %v9187_v13 = vcombine.low %v13178_v1, %v13198_v7  ;;  %v13225_v57 = vld [vmem:[#allocation2 + $0x70] sm:$0xf]  ;;  %v9092_v33 = vrot.slane %v13214_v42, 9 }
 0x2e8   : > { %6505 = vrot.lane.b32.xlu0 %v9171_v26, %s9963_s8  ;;  %v5121_v17 = vrot.slane %v5120_v56, 4  ;;  %v7316_v63 = vsel %vm10142_vm11, %v9219_v2, %v7315_v45  ;;  %v7317_v12 = vrot.slane %v7315_v45, 4  ;;  %v5498_v55 = vrot.slane %v13225_v57, 5 }
 0x2e9   : > { %v5131_v26 = vrot.slane %v5130_v35, 4  ;;  %v4225_v31 = vmax.f32 %v4171_v10, 0.0  ;;  %v5501_v3 = vrot.slane %v13219_v19, 5  ;;  %v4013_v53 = vadd.f32 %v13211_v9, %v9439_v16  ;;  %v13245_v16 = vld [vmem:[#allocation2 + $0x78] sm:$0xf] }
 0x2ea   : > { %v5126_v18 = vsel %vm10252_vm14, %v5121_v17, %v5125_v43  ;;  %v7319_v56 = vsel %vm10142_vm11, %v7317_v12, %v7318_v38  ;;  %v5499_v2 = vsel %vm10142_vm11, %v9092_v33, %v5498_v55  ;;  %v5500_v45 = vrot.slane %v5498_v55, 4  ;;  %v13255_v12 = vld [vmem:[#allocation2 + $0x7c] sm:$0xf] }
 0x2eb   : > { %v5136_v34 = vsel %vm10252_vm14, %v5131_v26, %v5135_v54  ;;  %v9338_v58 = vpack.c.bf16 %v4225_v31, %v4225_v31  ;;  %v9235_v35 = vcombine.low %v7316_v63, %v7319_v56  ;;  %v4174_v10 = vadd.f32 %v12656_v48, %v4013_v53 }
 0x2ec   : > { %6697 = vrot.lane.b32.xlu0 %v9187_v13, %s9961_s21  ;;  %v13247_v21 = vpop.f32.mrb[60].mxu0  ;;  %v9075_v43 = vcombine.low %v5126_v18, %v5136_v34  ;;  %v5502_v38 = vsel %vm10142_vm11, %v5500_v45, %v5501_v3  ;;  %v15487_v33 = vshrl.u32 %v13102_v62, 16  ;;  %v15488_v17 = vshll.u32 %v13102_v62, 16  ;;  %v13267_v45 = vpop.permute.xlu1 %5355 }
 0x2ed   : > { %v13257_v63 = vpop.f32.mrb[61].mxu0  ;;  %v4534_v13 = vshrl.u32 %v9338_v58, 16  ;;  %v4537_v48 = vshll.u32 %v9338_v58, 16  ;;  %7441 = vst.msk [vmem:[#allocation3 + $0xd0] sm:$0xff] %vm1077_vm15, %v9235_v35  ;;  %v9108_v26 = vcombine.low %v5499_v2, %v5502_v38  ;;  %v4226_v31 = vmax.f32 %v4174_v10, 0.0 }
 0x2ee   : > { %v6916_v55 = vrot.slane %v15487_v33, 4  ;;  %v6919_v54 = vrot.slane %v15488_v17, 5  ;;  %v13260_v18 = vpop.f32.mrb[62].mxu0  ;;  %5369 = vrot.lane.b32.xlu1 %v9075_v43, %s9963_s8  ;;  %v6923_v3 = vshll.u32 %v13105_v6, 16  ;;  %v15489_v62 = vshrl.u32 %v13105_v6, 16 }
 0x2ef   : > { %v6933_v56 = vshll.u32 %v13114_v5, 16  ;;  %v13269_v33 = vpop.f32.mrb[63].mxu0  ;;  %v4536_v58 = vrot.slane %v4534_v13, 7  ;;  %v9339_v35 = vpack.c.bf16 %v4226_v31, %v4226_v31  ;;  %v9124_v2 = vcombine.low %v13245_v16, %v13255_v12  ;;  %v4733_v43 = vld [vmem:[#allocation2 + $0x9c] sm:$0xf] }
 0x2f0   : > { %v6920_v34 = vor.u32 %v6919_v54, %v6916_v55  ;;  %v6929_v53 = vrot.slane %v15489_v62, 4  ;;  %v6066_v10 = vshrl.u32 %v13245_v16, 16  ;;  %v6925_v55 = vrot.slane %v6923_v3, 5 }
 0x2f1   : > { %v6935_v17 = vrot.slane %v6933_v56, 5  ;;  %v6069_v6 = vshll.u32 %v13245_v16, 16  ;;  %v4539_v54 = vor.u32 %v4537_v48, %v4536_v58  ;;  %v4540_v62 = vrot.slane %v4536_v58, 4  ;;  %v4737_v58 = vld [vmem:[#allocation2 + $0xa4] sm:$0x1] }
 0x2f2   : > { %v6921_v38 = vrot.slane %v6920_v34, 4  ;;  %v4542_v5 = vshrl.u32 %v9339_v35, 16  ;;  %v4545_v50 = vshll.u32 %v9339_v35, 16  ;;  %5611 = vrot.lane.b32.xlu1 %v9108_v26, %s9961_s21  ;;  %v6930_v31 = vor.u32 %v6929_v53, %v6925_v55 }
 0x2f3   : > { %v6068_v41 = vrot.slane %v6066_v10, 4  ;;  %v6071_v61 = vrot.slane %v6069_v6, 5  ;;  %v4734_v28 = vsel %vm10134_vm10, %v4539_v54, %v4733_v43  ;;  %v6075_v3 = vshll.u32 %v13255_v12, 16  ;;  %v13286_v10 = vpop.permute.xlu1 %5597 }
 0x2f4   : > { %v6926_v13 = vsel %vm10252_vm14, %v6921_v38, %v6925_v55  ;;  %v4544_v34 = vrot.slane %v4542_v5, 7  ;;  %v6079_v56 = vshrl.u32 %v13255_v12, 16  ;;  %4735 = vst [vmem:[#allocation2 + $0x9c] sm:$0xf] %v4734_v28  ;;  %v7475_v48 = vld [vmem:[#allocation3 + $0xd0] sm:$0xff]  ;;  %v6931_v35 = vrot.slane %v6930_v31, 4 }
 0x2f5   : > { %v6072_v44 = vor.u32 %v6071_v61, %v6068_v41  ;;  %v9442_v26 = vadd.f32 %v13071_v59, %v13062_v37  ;;  %v9445_v53 = vadd.f32 %v13086_v52, %v13081_v22  ;;  %9662 = vmatprep.mubr.msk.bf16.mxu0 %vm1077_vm15, %v7475_v48  ;;  %v13289_v55 = vrot.slane %v6075_v3, 5  ;;  %v5686_v28 = vld [vmem:[#allocation2 + $0x80] sm:$0x1] }
 0x2f6   : > { %v4547_v43 = vor.u32 %v4545_v50, %v4544_v34  ;;  %v4549_v38 = vrot.slane %v4544_v34, 4  ;;  %v6081_v6 = vrot.slane %v6079_v56, 4  ;;  %v6936_v54 = vsel %vm10252_vm14, %v6931_v35, %v6935_v17  ;;  %5803 = vrot.lane.b32.xlu1 %v9124_v2, %s9962_s27 }
 0x2f7   : > { %15490 = vst [vmem:[#allocation37_spill] sm:$0xff] %v13289_v55  ;;  %v13293_v41 = vrot.slane %v6072_v44, 4  ;;  %v4018_v37 = vadd.f32 %v13211_v9, %v9442_v26  ;;  %v4021_v59 = vadd.f32 %v13211_v9, %v9445_v53  ;;  %v9202_v61 = vcombine.low %v6926_v13, %v6936_v54  ;;  %v13318_v35 = vpop.permute.xlu1 %5789  ;;  %v13351_v44 = vld [vmem:[#allocation2 + $0x7c] sm:$0xf] }
 0x2f8   : > { %v4548_v22 = vsel %vm10123_vm9, %v4540_v62, %v4547_v43  ;;  %v4738_v50 = vsel %vm10091_vm4, %v4549_v38, %v4737_v58  ;;  %v6082_v52 = vor.u32 %v6081_v6, %v13289_v55  ;;  %v6085_v5 = vshll.u32 %v5686_v28, 16  ;;  %v13357_v38 = vld [vmem:[#allocation2 + $0x80] sm:$0x1] }
 0x2f9   : > { %15491 = vst [vmem:[#allocation38_spill] sm:$0xff] %v13293_v41  ;;  %4736 = vst.msk [vmem:[#allocation2 + $0xa0] sm:$0xf] %vm246_vm0, %v4548_v22  ;;  %v4179_v2 = vadd.f32 %v12610_v25, %v4018_v37  ;;  %v4182_v17 = vadd.f32 %v12645_v15, %v4021_v59  ;;  %7191 = vrot.lane.b32.xlu0 %v9202_v61, %s9962_s27  ;;  %v9156_v13 = vrot.slane %v13245_v16, 9  ;;  %v6394_v31 = vrot.slane %v13255_v12, 5  ;;  %v13324_v16 = vpop.permute.xlu0 %6493 }
 0x2fa   : > { %4739 = vst [vmem:[#allocation2 + $0xa4] sm:$0x1] %v4738_v50  ;;  %v13311_v62 = vrot.slane %v6082_v52, 4  ;;  %v6397_v34 = vrot.slane %v5686_v28, 5  ;;  %v13315_v48 = vrot.slane %v6085_v5, 5  ;;  %v5138_v58 = vshrl.u32 %v13214_v42, 16 }
 0x2fb   : > { %v4227_v3 = vmax.f32 %v4179_v2, 0.0  ;;  %v4228_v56 = vmax.f32 %v4182_v17, 0.0  ;;  %v6395_v25 = vsel %vm10142_vm11, %v9156_v13, %v6394_v31  ;;  %v6396_v15 = vrot.slane %v6394_v31, 4  ;;  %v4740_v2 = vld [vmem:[#allocation2 + $0xa8] sm:$0xf] }
 0x2fc   : > { %15492 = vst [vmem:[#allocation39_spill] sm:$0xff] %v13311_v62  ;;  %15493 = vst [vmem:[#allocation40_spill] sm:$0xff] %v13315_v48  ;;  %v5141_v26 = vshll.u32 %v13214_v42, 16  ;;  %v5147_v53 = vshll.u32 %v13225_v57, 16  ;;  %v5140_v6 = vrot.slane %v5138_v58, 4  ;;  %v5151_v59 = vshrl.u32 %v13225_v57, 16 }
 0x2fd   : > { %v9340_v12 = vpack.c.bf16 %v4227_v3, %v4227_v3  ;;  %v9341_v43 = vpack.c.bf16 %v4228_v56, %v4228_v56  ;;  %v6398_v28 = vsel %vm10142_vm11, %v6396_v15, %v6397_v34  ;;  %v13333_v42 = vld [vmem:[#allocation2 + $0x84] sm:$0xf]  ;;  %v5157_v31 = vshll.u32 %v13219_v19, 16  ;;  %v13336_v3 = vld [vmem:[#allocation2 + $0x88] sm:$0xf] }
 0x2fe   : > { %v5143_v54 = vrot.slane %v5141_v26, 5  ;;  %v5149_v37 = vrot.slane %v5147_v53, 5  ;;  %v9172_v17 = vcombine.low %v6395_v25, %v6398_v28  ;;  %v5153_v13 = vrot.slane %v5151_v59, 4  ;;  %v4744_v58 = vld [vmem:[#allocation2 + $0xb0] sm:$0x1]  ;;  %v13341_v26 = vpop.permute.xlu1 %5357 }
 0x2ff   : > { %v4551_v22 = vshrl.u32 %v9340_v12, 16  ;;  %v4554_v50 = vshll.u32 %v9340_v12, 16  ;;  %v4559_v61 = vshrl.u32 %v9341_v43, 16  ;;  %v4562_v52 = vshll.u32 %v9341_v43, 16  ;;  %v13345_v19 = vld [vmem:[#allocation2 + $0x78] sm:$0xf] }
 0x300   : > { %v5144_v5 = vor.u32 %v5143_v54, %v5140_v6  ;;  %v9188_v57 = vcombine.low %v13333_v42, %v13336_v3  ;;  %6507 = vrot.lane.b32.xlu0 %v9172_v17, %s9963_s8  ;;  %v5154_v25 = vor.u32 %v5153_v13, %v5149_v37  ;;  %v5159_v12 = vrot.slane %v5157_v31, 5  ;;  %v13347_v6 = vpop.permute.xlu0 %6685  ;;  %v5688_v43 = vld [vmem:[#allocation2 + $0x88] sm:$0xf]  ;;  %v5689_v48 = vld [vmem:[#allocation2 + $0x8c] sm:$0x1] }
 0x301   : > { %v4553_v56 = vrot.slane %v4551_v22, 7  ;;  %v4561_v34 = vrot.slane %v4559_v61, 7  ;;  %v13349_v61 = vld [vmem:[#allocation2 + $0x8c] sm:$0x1]  ;;  %v9220_v31 = vrot.slane %v13333_v42, 9 }
 0x302   : > { %v5145_v53 = vrot.slane %v5144_v5, 4  ;;  %v5155_v5 = vrot.slane %v5154_v25, 4  ;;  %v5505_v25 = vrot.slane %v13351_v44, 5 }
 0x303   : > { %v4556_v28 = vor.u32 %v4554_v50, %v4553_v56  ;;  %v4557_v54 = vrot.slane %v4553_v56, 4  ;;  %v4564_v59 = vor.u32 %v4562_v52, %v4561_v34  ;;  %v4566_v22 = vrot.slane %v4561_v34, 4 }
 0x304   : > { %v5150_v17 = vsel %vm10252_vm14, %v5145_v53, %v5149_v37  ;;  %v7322_v34 = vrot.slane %v13336_v3, 5  ;;  %v5160_v37 = vsel %vm10252_vm14, %v5155_v5, %v5159_v12  ;;  %v7325_v53 = vrot.slane %v13349_v61, 5  ;;  %6699 = vrot.lane.b32.xlu0 %v9188_v57, %s9961_s21 }
 0x305   : > { %v4741_v50 = vsel %vm10134_vm10, %v4556_v28, %v4740_v2  ;;  %v4565_v52 = vsel %vm10123_vm9, %v4557_v54, %v4564_v59  ;;  %v4745_v56 = vsel %vm10091_vm4, %v4566_v22, %v4744_v58  ;;  %v9093_v2 = vrot.slane %v13345_v19, 9  ;;  %v13376_v22 = vpop.permute.xlu1 %5599 }
 0x306   : > { %4742 = vst [vmem:[#allocation2 + $0xa8] sm:$0xf] %v4741_v50  ;;  %4743 = vst.msk [vmem:[#allocation2 + $0xac] sm:$0xf] %vm246_vm0, %v4565_v52  ;;  %v9076_v28 = vcombine.low %v5150_v17, %v5160_v37  ;;  %v7323_v58 = vsel %vm10142_vm11, %v9220_v31, %v7322_v34  ;;  %v7324_v54 = vrot.slane %v7322_v34, 4  ;;  %v5508_v59 = vrot.slane %v13357_v38, 5  ;;  %v13382_v52 = vpop.permute.xlu0 %7179 }
 0x307   : > { %4746 = vst [vmem:[#allocation2 + $0xb0] sm:$0x1] %v4745_v56  ;;  %v5506_v12 = vsel %vm10142_vm11, %v9093_v2, %v5505_v25  ;;  %v5507_v5 = vrot.slane %v5505_v25, 4  ;;  %v6938_v50 = vshrl.u32 %v13178_v1, 16  ;;  %v6941_v57 = vshll.u32 %v13178_v1, 16 }
 0x308   : > { %5371 = vrot.lane.b32.xlu1 %v9076_v28, %s9963_s8  ;;  %v7326_v17 = vsel %vm10142_vm11, %v7324_v54, %v7325_v53  ;;  %v6947_v31 = vshll.u32 %v13198_v7, 16  ;;  %v6951_v56 = vshrl.u32 %v13198_v7, 16  ;;  %v6957_v34 = vshll.u32 %v13200_v60, 16  ;;  %v5687_v37 = vld [vmem:[#allocation2 + $0x84] sm:$0xf] }
 0x309   : > { %v9236_v2 = vcombine.low %v7323_v58, %v7326_v17  ;;  %v5509_v25 = vsel %vm10142_vm11, %v5507_v5, %v5508_v59  ;;  %v6940_v13 = vrot.slane %v6938_v50, 4  ;;  %v6943_v1 = vrot.slane %v6941_v57, 5  ;;  %v13396_v5 = vpop.permute.xlu1 %5791 }
 0x30a   : > { %v9109_v15 = vcombine.low %v5506_v12, %v5509_v25  ;;  %v6949_v55 = vrot.slane %v6947_v31, 5  ;;  %v6953_v28 = vrot.slane %v6951_v56, 4  ;;  %v6959_v41 = vrot.slane %v6957_v34, 5  ;;  %v13398_v56 = vpop.permute.xlu0 %6495 }
 0x30b   : > { %7442 = vst.msk [vmem:[#allocation3 + $0xe8] sm:$0xff] %vm1077_vm15, %v9236_v2  ;;  %v6944_v53 = vor.u32 %v6943_v1, %v6940_v13  ;;  %v9125_v54 = vcombine.low %v5687_v37, %v5688_v43  ;;  %v6090_v7 = vshrl.u32 %v5687_v37, 16  ;;  %v6093_v62 = vshll.u32 %v5687_v37, 16 }
 0x30c   : > { %5613 = vrot.lane.b32.xlu1 %v9109_v15, %s9961_s21  ;;  %v6954_v60 = vor.u32 %v6953_v28, %v6949_v55  ;;  %v6099_v58 = vshll.u32 %v5688_v43, 16  ;;  %v6103_v17 = vshrl.u32 %v5688_v43, 16  ;;  %v9448_v59 = vadd.f32 %v13165_v24, %v13159_v30 }
 0x30d   : > { %v6945_v12 = vrot.slane %v6944_v53, 4  ;;  %v6092_v50 = vrot.slane %v6090_v7, 4  ;;  %v6095_v57 = vrot.slane %v6093_v62, 5  ;;  %v6109_v31 = vshll.u32 %v5689_v48, 16 }
 0x30e   : > { %v6955_v13 = vrot.slane %v6954_v60, 4  ;;  %v13400_v34 = vrot.slane %v6099_v58, 5  ;;  %v6105_v2 = vrot.slane %v6103_v17, 4  ;;  %v9157_v25 = vrot.slane %v5687_v37, 9  ;;  %v13415_v17 = vld [vmem:[#allocation2 + $0x90] sm:$0xf] }
 0x30f   : > { %v6950_v15 = vsel %vm10252_vm14, %v6945_v12, %v6949_v55  ;;  %v6096_v1 = vor.u32 %v6095_v57, %v6092_v50  ;;  %v13404_v28 = vrot.slane %v6109_v31, 5  ;;  %v6401_v24 = vrot.slane %v5688_v43, 5 }
 0x310   : > { %15494 = vst [vmem:[#allocation41_spill] sm:$0xff] %v13400_v34  ;;  %v6960_v30 = vsel %vm10252_vm14, %v6955_v13, %v6959_v41  ;;  %v6106_v62 = vor.u32 %v6105_v2, %v13400_v34  ;;  %5805 = vrot.lane.b32.xlu1 %v9125_v54, %s9962_s27  ;;  %v6404_v53 = vrot.slane %v5689_v48, 5  ;;  %v5162_v7 = vshrl.u32 %v13345_v19, 16  ;;  %v13421_v48 = vpop.permute.xlu1 %5359  ;;  %v13433_v2 = vld [vmem:[#allocation2 + $0x94] sm:$0xf] }
 0x311   : > { %15495 = vst [vmem:[#allocation42_spill] sm:$0xff] %v13404_v28  ;;  %v9203_v60 = vcombine.low %v6950_v15, %v6960_v30  ;;  %v13411_v58 = vrot.slane %v6096_v1, 4  ;;  %v6402_v55 = vsel %vm10142_vm11, %v9157_v25, %v6401_v24  ;;  %v6403_v37 = vrot.slane %v6401_v24, 4  ;;  %v13435_v25 = vld [vmem:[#allocation2 + $0x98] sm:$0x1]  ;;  %v13437_v15 = vpop.permute.xlu0 %6687 }
 0x312   : > { %v7478_v43 = vld [vmem:[#allocation3 + $0xe8] sm:$0xff]  ;;  %v13417_v12 = vrot.slane %v6106_v62, 4  ;;  %v5164_v41 = vrot.slane %v5162_v7, 4  ;;  %v5165_v50 = vshll.u32 %v13345_v19, 16  ;;  %v5171_v54 = vshll.u32 %v13351_v44, 16 }
 0x313   : > { %15496 = vst [vmem:[#allocation43_spill] sm:$0xff] %v13411_v58  ;;  %9663 = vmatmul.mubr.msk.bf16.gmra.mrb[80].mxu0 %vm1077_vm15, %v7478_v43  ;;  %7193 = vrot.lane.b32.xlu0 %v9203_v60, %s9962_s27  ;;  %v6405_v31 = vsel %vm10142_vm11, %v6403_v37, %v6404_v53  ;;  %v5175_v13 = vshrl.u32 %v13351_v44, 16  ;;  %v5181_v19 = vshll.u32 %v13357_v38, 16  ;;  %v9451_v44 = vadd.f32 %v13180_v29, %v13172_v8  ;;  %v13446_v60 = vld [vmem:[#allocation2 + $0x84] sm:$0xf] }
 0x314   : > { %15497 = vst [vmem:[#allocation44_spill] sm:$0xff] %v13417_v12  ;;  %v9173_v24 = vcombine.low %v6402_v55, %v6405_v31  ;;  %v5167_v30 = vrot.slane %v5165_v50, 5  ;;  %v5173_v62 = vrot.slane %v5171_v54, 5  ;;  %v4026_v38 = vadd.f32 %v13211_v9, %v9448_v59  ;;  %v13451_v1 = vld [vmem:[#allocation2 + $0x8c] sm:$0x1] }
 0x315   : > { %v5177_v7 = vrot.slane %v5175_v13, 4  ;;  %v5183_v53 = vrot.slane %v5181_v19, 5  ;;  %v9221_v43 = vrot.slane %v13415_v17, 9  ;;  %v7329_v57 = vrot.slane %v13433_v2, 5  ;;  %v13457_v29 = vld [vmem:[#allocation2 + $0x88] sm:$0xf]  ;;  %v13463_v19 = vpop.permute.xlu1 %5601 }
 0x316   : > { %v5168_v37 = vor.u32 %v5167_v30, %v5164_v41  ;;  %v7332_v34 = vrot.slane %v13435_v25, 5  ;;  %v4187_v50 = vadd.f32 %v12857_v51, %v4026_v38  ;;  %v9189_v8 = vcombine.low %v13415_v17, %v13433_v2  ;;  %15498 = vst [vmem:[#allocation45_spill] sm:$0xff] %v13463_v19  ;;  %v13467_v38 = vpop.permute.xlu0 %7181  ;;  %v13479_v12 = vpop.f32.mrb[64].mxu0 }
 0x317   : > { %6509 = vrot.lane.b32.xlu0 %v9173_v24, %s9963_s8  ;;  %v5178_v55 = vor.u32 %v5177_v7, %v5173_v62  ;;  %v9094_v59 = vrot.slane %v13446_v60, 9  ;;  %v7330_v54 = vsel %vm10142_vm11, %v9221_v43, %v7329_v57  ;;  %v7331_v31 = vrot.slane %v7329_v57, 4  ;;  %15499 = vst [vmem:[#allocation46_spill] sm:$0xff] %v13479_v12 }
 0x318   : > { %v5169_v41 = vrot.slane %v5168_v37, 4  ;;  %v5512_v13 = vrot.slane %v13457_v29, 5  ;;  %v4229_v30 = vmax.f32 %v4187_v50, 0.0  ;;  %v5515_v51 = vrot.slane %v13451_v1, 5 }
 0x319   : > { %v5179_v24 = vrot.slane %v5178_v55, 4  ;;  %v4029_v7 = vadd.f32 %v13211_v9, %v9451_v44  ;;  %v7333_v37 = vsel %vm10142_vm11, %v7331_v31, %v7332_v34  ;;  %v15500_v34 = vsel %vm10252_vm14, %v12337_v14, %v12332_v32 }
 0x31a   : > { %v5174_v58 = vsel %vm10252_vm14, %v5169_v41, %v5173_v62  ;;  %v5513_v57 = vsel %vm10142_vm11, %v9094_v59, %v5512_v13  ;;  %v5514_v43 = vrot.slane %v5512_v13, 4  ;;  %v9342_v50 = vpack.c.bf16 %v4229_v30, %v4229_v30  ;;  %v9864_v41 = vld [vmem:[#allocation2 + $0x10] sm:$0xf] }
 0x31b   : > { %v5184_v55 = vsel %vm10252_vm14, %v5179_v24, %v5183_v53  ;;  %v9237_v28 = vcombine.low %v7330_v54, %v7333_v37  ;;  %6701 = vrot.lane.b32.xlu0 %v9189_v8, %s9961_s21  ;;  %v4190_v44 = vadd.f32 %v12894_v20, %v4029_v7  ;;  %v15501_v53 = vsel %vm10252_vm14, %v12335_v4, %v12321_v36  ;;  %v9863_v8 = vld [vmem:[#allocation2 + $0xc] sm:$0xf]  ;;  %v13493_v54 = vld [vmem:[#allocation2 + $0x94] sm:$0xf]  ;;  %v13496_v30 = vld [vmem:[#allocation2 + $0x90] sm:$0xf]  ;;  %v13508_v37 = vpop.permute.xlu1 %5793 }
 0x31c   : > { %v9077_v19 = vcombine.low %v5174_v58, %v5184_v55  ;;  %v5516_v62 = vsel %vm10142_vm11, %v5514_v43, %v5515_v51  ;;  %v9132_v59 = vcombine.low %v15501_v53, %v15500_v34  ;;  %v9052_v20 = vcombine.low %v9863_v8, %v9864_v41  ;;  %v13517_v55 = vpop.permute.xlu0 %6497 }
 0x31d   : > { %v4568_v58 = vshrl.u32 %v9342_v50, 16  ;;  %v4571_v31 = vshll.u32 %v9342_v50, 16  ;;  %7443 = vst.msk [vmem:[#allocation3 + $0x100] sm:$0xff] %vm1077_vm15, %v9237_v28  ;;  %v9110_v13 = vcombine.low %v5513_v57, %v5516_v62  ;;  %v4230_v24 = vmax.f32 %v4190_v44, 0.0  ;;  %v13519_v50 = vpop.f32.mrb[65].mxu0 }
 0x31e   : > { %5373 = vrot.lane.b32.xlu1 %v9077_v19, %s9963_s8  ;;  %6298 = vst.msk [vmem:[#allocation3 + $0x20] sm:$0xff] %vm1077_vm15, %v9132_v59  ;;  %4906 = vst.msk [vmem:[#allocation3 + $0x18] sm:$0xff] %vm1077_vm15, %v9052_v20  ;;  %v15502_v36 = vshrl.u32 %v13333_v42, 16  ;;  %v15503_v4 = vshll.u32 %v13333_v42, 16  ;;  %v6971_v51 = vshll.u32 %v13336_v3, 16  ;;  %v15504_v28 = vshrl.u32 %v13336_v3, 16 }
 0x31f   : > { %v4570_v57 = vrot.slane %v4568_v58, 7  ;;  %v9343_v43 = vpack.c.bf16 %v4230_v24, %v4230_v24  ;;  %6538 = vst.msk [vmem:[#allocation3 + $0x20] sm:$0xff] %vm1577_vm1, %v12917_v11  ;;  %5402 = vst.msk [vmem:[#allocation3 + $0x18] sm:$0xff] %vm1577_vm1, %v13267_v45  ;;  %v6981_v19 = vshll.u32 %v13349_v61, 16  ;;  %v9126_v42 = vcombine.low %v13496_v30, %v13493_v54  ;;  %v4747_v3 = vld [vmem:[#allocation2 + $0xb4] sm:$0xf] }
 0x320   : > { %v6964_v32 = vrot.slane %v15502_v36, 4  ;;  %v6967_v14 = vrot.slane %v15503_v4, 5  ;;  %v6977_v7 = vrot.slane %v15504_v28, 4  ;;  %15505 = vst [vmem:[#allocation47_spill] sm:$0xff] %v13519_v50  ;;  %5642 = vst.msk [vmem:[#allocation3 + $0x18] sm:$0xff] %vm1821_vm2, %v13186_v46  ;;  %v6973_v62 = vrot.slane %v6971_v51, 5  ;;  %v13544_v28 = vpop.permute.xlu1 %5361 }
 0x321   : > { %v6114_v11 = vshrl.u32 %v13496_v30, 16  ;;  %v6117_v34 = vshll.u32 %v13496_v30, 16  ;;  %6730 = vst.msk [vmem:[#allocation3 + $0x20] sm:$0xff] %vm1821_vm2, %v12968_v39  ;;  %v13527_v45 = vpop.f32.mrb[66].mxu0  ;;  %v4573_v61 = vor.u32 %v4571_v31, %v4570_v57  ;;  %v4574_v53 = vrot.slane %v4570_v57, 4 }
 0x322   : > { %v6968_v44 = vor.u32 %v6967_v14, %v6964_v32  ;;  %15506 = vst [vmem:[#allocation48_spill] sm:$0xff] %v13527_v45  ;;  %v4576_v59 = vshrl.u32 %v9343_v43, 16  ;;  %v4579_v8 = vshll.u32 %v9343_v43, 16  ;;  %5834 = vst.msk [vmem:[#allocation3 + $0x18] sm:$0xff] %vm2014_vm3, %v13231_v47  ;;  %v13533_v46 = vpop.f32.mrb[67].mxu0  ;;  %5615 = vrot.lane.b32.xlu1 %v9110_v13, %s9961_s21  ;;  %v6978_v20 = vor.u32 %v6977_v7, %v6973_v62 }
 0x323   : > { %7226 = vst.msk [vmem:[#allocation3 + $0x20] sm:$0xff] %vm2014_vm3, %v13382_v52  ;;  %15507 = vst [vmem:[#allocation49_spill] sm:$0xff] %v13533_v46  ;;  %v6983_v58 = vrot.slane %v6981_v19, 5  ;;  %v6116_v39 = vrot.slane %v6114_v11, 4  ;;  %v4748_v31 = vsel %vm10134_vm10, %v4573_v61, %v4747_v3  ;;  %v6119_v36 = vrot.slane %v6117_v34, 5 }
 0x324   : > { %v6969_v41 = vrot.slane %v6968_v44, 4  ;;  %v4578_v24 = vrot.slane %v4576_v59, 7  ;;  %v6123_v32 = vshll.u32 %v13493_v54, 16  ;;  %4749 = vst [vmem:[#allocation2 + $0xb4] sm:$0xf] %v4748_v31  ;;  %v7481_v47 = vld [vmem:[#allocation3 + $0x100] sm:$0xff]  ;;  %v9454_v51 = vadd.f32 %v13257_v63, %v13247_v21  ;;  %v13549_v44 = vpop.permute.xlu0 %6689 }
 0x325   : > { %v4751_v4 = vld [vmem:[#allocation2 + $0xbc] sm:$0x1]  ;;  %v6979_v14 = vrot.slane %v6978_v20, 4  ;;  %v6127_v13 = vshrl.u32 %v13493_v54, 16  ;;  %9666 = vmatprep.mubr.msk.bf16.mxu0 %vm1077_vm15, %v7481_v47  ;;  %v6120_v43 = vor.u32 %v6119_v36, %v6116_v39  ;;  %v5692_v3 = vld [vmem:[#allocation2 + $0x98] sm:$0x1]  ;;  %v9457_v63 = vadd.f32 %v13269_v33, %v13260_v18 }
 0x326   : > { %v6974_v52 = vsel %vm10252_vm14, %v6969_v41, %v6973_v62  ;;  %v4581_v7 = vor.u32 %v4579_v8, %v4578_v24  ;;  %v4583_v57 = vrot.slane %v4578_v24, 4  ;;  %v13547_v19 = vrot.slane %v6123_v32, 5  ;;  %5807 = vrot.lane.b32.xlu1 %v9126_v42, %s9962_s27  ;;  %v15508_v42 = vld [vmem:[#allocation23_spill] sm:$0xff]  ;;  %v13766_v50 = vld [vmem:[#allocation2 + $0xa8] sm:$0xf] }
 0x327   : > { %v6984_v62 = vsel %vm10252_vm14, %v6979_v14, %v6983_v58  ;;  %v6129_v11 = vrot.slane %v6127_v13, 4  ;;  %v4034_v21 = vadd.f32 %v13211_v9, %v9454_v51  ;;  %v13561_v8 = vrot.slane %v6120_v43, 4  ;;  %v13579_v14 = vpop.permute.xlu1 %5603 }
 0x328   : > { %v4582_v34 = vsel %vm10123_vm9, %v4574_v53, %v4581_v7  ;;  %v4752_v61 = vsel %vm10091_vm4, %v4583_v57, %v4751_v4  ;;  %v9204_v59 = vcombine.low %v6974_v52, %v6984_v62  ;;  %v4037_v58 = vadd.f32 %v13211_v9, %v9457_v63  ;;  %v15509_v9 = vld [vmem:[#allocation24_spill] sm:$0xff]  ;;  %v13585_v7 = vpop.permute.xlu0 %7183 }
 0x329   : > { %4750 = vst.msk [vmem:[#allocation2 + $0xb8] sm:$0xf] %vm246_vm0, %v4582_v34  ;;  %4753 = vst [vmem:[#allocation2 + $0xbc] sm:$0x1] %v4752_v61  ;;  %v6130_v41 = vor.u32 %v6129_v11, %v13547_v19  ;;  %v4195_v20 = vadd.f32 %v15508_v42, %v4034_v21  ;;  %v6133_v39 = vshll.u32 %v5692_v3, 16  ;;  %v9158_v53 = vrot.slane %v13496_v30, 9 }
 0x32a   : > { %v7453_v18 = vld [vmem:[#allocation3 + $0x20] sm:$0xff]  ;;  %7195 = vrot.lane.b32.xlu0 %v9204_v59, %s9962_s27  ;;  %v6408_v31 = vrot.slane %v13493_v54, 5  ;;  %v6411_v24 = vrot.slane %v5692_v3, 5  ;;  %v7452_v36 = vld [vmem:[#allocation3 + $0x18] sm:$0xff]  ;;  %v4198_v4 = vadd.f32 %v15509_v9, %v4037_v58  ;;  %v5186_v30 = vshrl.u32 %v13446_v60, 16 }
 0x32b   : > { %7736 = vmatprep.mubr.bf16.mxu1 %v7453_v18  ;;  %v13574_v32 = vrot.slane %v6130_v41, 4  ;;  %v4231_v47 = vmax.f32 %v4195_v20, 0.0  ;;  %v13577_v52 = vrot.slane %v6133_v39, 5  ;;  %v5189_v54 = vshll.u32 %v13446_v60, 16  ;;  %v13595_v42 = vld [vmem:[#allocation2 + $0x9c] sm:$0xf] }
 0x32c   : > { %7737 = vmatmul.mubr.bf16.gmra.mrb[36].mxu1 %v7452_v36  ;;  %v6409_v13 = vsel %vm10142_vm11, %v9158_v53, %v6408_v31  ;;  %v6410_v51 = vrot.slane %v6408_v31, 4  ;;  %v4232_v43 = vmax.f32 %v4198_v4, 0.0  ;;  %v5195_v62 = vshll.u32 %v13457_v29, 16  ;;  %v4754_v20 = vld [vmem:[#allocation2 + $0xc0] sm:$0xf]  ;;  %v13605_v4 = vpop.permute.xlu1 %5795 }
 0x32d   : > { %v9344_v57 = vpack.c.bf16 %v4231_v47, %v4231_v47  ;;  %v5188_v21 = vrot.slane %v5186_v30, 4  ;;  %v5191_v63 = vrot.slane %v5189_v54, 5  ;;  %v5199_v34 = vshrl.u32 %v13457_v29, 16  ;;  %v13598_v31 = vld [vmem:[#allocation2 + $0xa0] sm:$0xf] }
 0x32e   : > { %v6412_v11 = vsel %vm10142_vm11, %v6410_v51, %v6411_v24  ;;  %v9345_v59 = vpack.c.bf16 %v4232_v43, %v4232_v43  ;;  %v5197_v39 = vrot.slane %v5195_v62, 5  ;;  %v5205_v53 = vshll.u32 %v13451_v1, 16  ;;  %v13603_v9 = vld [vmem:[#allocation2 + $0x90] sm:$0xf]  ;;  %v13608_v1 = vld [vmem:[#allocation2 + $0x94] sm:$0xf] }
 0x32f   : > { %v4585_v61 = vshrl.u32 %v9344_v57, 16  ;;  %v4588_v60 = vshll.u32 %v9344_v57, 16  ;;  %v9174_v41 = vcombine.low %v6409_v13, %v6412_v11  ;;  %v5192_v58 = vor.u32 %v5191_v63, %v5188_v21  ;;  %v13610_v57 = vpop.permute.xlu0 %6499  ;;  %v13612_v21 = vld [vmem:[#allocation2 + $0xa4] sm:$0x1]  ;;  %v5693_v3 = vld [vmem:[#allocation2 + $0x9c] sm:$0xf] }
 0x330   : > { %v5201_v18 = vrot.slane %v5199_v34, 4  ;;  %v4593_v24 = vshrl.u32 %v9345_v59, 16  ;;  %v4596_v47 = vshll.u32 %v9345_v59, 16  ;;  %v9190_v29 = vcombine.low %v13595_v42, %v13598_v31  ;;  %v4758_v34 = vld [vmem:[#allocation2 + $0xc8] sm:$0x1] }
 0x331   : > { %v4587_v36 = vrot.slane %v4585_v61, 7  ;;  %6511 = vrot.lane.b32.xlu0 %v9174_v41, %s9963_s8  ;;  %v5193_v13 = vrot.slane %v5192_v58, 4  ;;  %v5207_v30 = vrot.slane %v5205_v53, 5  ;;  %v9222_v58 = vrot.slane %v13595_v42, 9  ;;  %v9867_v63 = vld [vmem:[#allocation2 + $0x24] sm:$0xf] }
 0x332   : > { %v5202_v51 = vor.u32 %v5201_v18, %v5197_v39  ;;  %v4595_v11 = vrot.slane %v4593_v24, 7  ;;  %v13623_v24 = vld [vmem:[#allocation2 + $0x98] sm:$0x1]  ;;  %v5519_v33 = vrot.slane %v13608_v1, 5  ;;  %v9868_v54 = vld [vmem:[#allocation2 + $0x28] sm:$0xf] }
 0x333   : > { %v4590_v43 = vor.u32 %v4588_v60, %v4587_v36  ;;  %v4591_v62 = vrot.slane %v4587_v36, 4  ;;  %v5198_v61 = vsel %vm10252_vm14, %v5193_v13, %v5197_v39  ;;  %v7336_v36 = vrot.slane %v13598_v31, 5 }
 0x334   : > { %v5203_v59 = vrot.slane %v5202_v51, 4  ;;  %v4598_v53 = vor.u32 %v4596_v47, %v4595_v11  ;;  %v4600_v60 = vrot.slane %v4595_v11, 4  ;;  %v7339_v13 = vrot.slane %v13612_v21, 5 }
 0x335   : > { %v4755_v18 = vsel %vm10134_vm10, %v4590_v43, %v4754_v20  ;;  %6703 = vrot.lane.b32.xlu0 %v9190_v29, %s9961_s21  ;;  %v9095_v51 = vrot.slane %v13603_v9, 9  ;;  %v7337_v29 = vsel %vm10142_vm11, %v9222_v58, %v7336_v36  ;;  %v13636_v43 = vpop.permute.xlu1 %5363  ;;  %v5522_v23 = vrot.slane %v13623_v24, 5  ;;  %v15513_v58 = vld [vmem:[#allocation16_spill] sm:$0xff] }
 0x336   : > { %4756 = vst [vmem:[#allocation2 + $0xc0] sm:$0xf] %v4755_v18  ;;  %v5208_v39 = vsel %vm10252_vm14, %v5203_v59, %v5207_v30  ;;  %v4599_v40 = vsel %vm10123_vm9, %v4591_v62, %v4598_v53  ;;  %v4759_v20 = vsel %vm10091_vm4, %v4600_v60, %v4758_v34  ;;  %v7338_v30 = vrot.slane %v7336_v36, 4  ;;  %v13642_v62 = vpop.permute.xlu0 %6691  ;;  %v15511_v34 = vld [vmem:[#allocation15_spill] sm:$0xff]  ;;  %v15514_v18 = vld [vmem:[#allocation14_spill] sm:$0xff] }
 0x337   : > { %v9078_v47 = vcombine.low %v5198_v61, %v5208_v39  ;;  %4757 = vst.msk [vmem:[#allocation2 + $0xc4] sm:$0xf] %vm246_vm0, %v4599_v40  ;;  %4760 = vst [vmem:[#allocation2 + $0xc8] sm:$0x1] %v4759_v20  ;;  %v5520_v11 = vsel %vm10142_vm11, %v9095_v51, %v5519_v33  ;;  %v5521_v59 = vrot.slane %v5519_v33, 4  ;;  %v15512_v61 = vsel %vm10252_vm14, %v15510_v0, %v15511_v34 }
 0x338   : > { %v15515_v53 = vsel %vm10252_vm14, %v15513_v58, %v15514_v18  ;;  %v9865_v36 = vld [vmem:[#allocation2 + $0x18] sm:$0xf]  ;;  %v9866_v39 = vld [vmem:[#allocation2 + $0x1c] sm:$0xf]  ;;  %v6986_v51 = vshrl.u32 %v13415_v17, 16  ;;  %v6989_v40 = vshll.u32 %v13415_v17, 16  ;;  %v7340_v20 = vsel %vm10142_vm11, %v7338_v30, %v7339_v13 }
 0x339   : > { %5375 = vrot.lane.b32.xlu1 %v9078_v47, %s9963_s8  ;;  %v9133_v60 = vcombine.low %v15515_v53, %v15512_v61  ;;  %v9053_v33 = vcombine.low %v9865_v36, %v9866_v39  ;;  %v5523_v47 = vsel %vm10142_vm11, %v5521_v59, %v5522_v23  ;;  %v6995_v0 = vshll.u32 %v13433_v2, 16  ;;  %v5694_v58 = vld [vmem:[#allocation2 + $0xa0] sm:$0xf]  ;;  %v5695_v36 = vld [vmem:[#allocation2 + $0xa4] sm:$0x1] }
 0x33a   : > { %v6999_v34 = vshrl.u32 %v13433_v2, 16  ;;  %v9238_v61 = vcombine.low %v7337_v29, %v7340_v20  ;;  %v9111_v18 = vcombine.low %v5520_v11, %v5523_v47  ;;  %v6988_v53 = vrot.slane %v6986_v51, 4 }
 0x33b   : > { %6299 = vst.msk [vmem:[#allocation3 + $0x38] sm:$0xff] %vm1077_vm15, %v9133_v60  ;;  %4907 = vst.msk [vmem:[#allocation3 + $0x30] sm:$0xff] %vm1077_vm15, %v9053_v33  ;;  %v6991_v17 = vrot.slane %v6989_v40, 5  ;;  %v6997_v13 = vrot.slane %v6995_v0, 5  ;;  %v7005_v2 = vshll.u32 %v13435_v25, 16  ;;  %v9127_v59 = vcombine.low %v5693_v3, %v5694_v58 }
 0x33c   : > { %6539 = vst.msk [vmem:[#allocation3 + $0x38] sm:$0xff] %vm1577_vm1, %v13324_v16  ;;  %5403 = vst.msk [vmem:[#allocation3 + $0x30] sm:$0xff] %vm1577_vm1, %v13341_v26  ;;  %v7001_v30 = vrot.slane %v6999_v34, 4  ;;  %v6138_v11 = vshrl.u32 %v5693_v3, 16  ;;  %v6141_v23 = vshll.u32 %v5693_v3, 16  ;;  %v6147_v60 = vshll.u32 %v5694_v58, 16  ;;  %v13676_v16 = vpop.permute.xlu1 %5605 }
 0x33d   : > { %7444 = vst.msk [vmem:[#allocation3 + $0x118] sm:$0xff] %vm1077_vm15, %v9238_v61  ;;  %5617 = vrot.lane.b32.xlu1 %v9111_v18, %s9961_s21  ;;  %v6992_v29 = vor.u32 %v6991_v17, %v6988_v53  ;;  %v7007_v25 = vrot.slane %v7005_v2, 5  ;;  %v6151_v39 = vshrl.u32 %v5694_v58, 16  ;;  %v6157_v33 = vshll.u32 %v5695_v36, 16 }
 0x33e   : > { %5643 = vst.msk [vmem:[#allocation3 + $0x30] sm:$0xff] %vm1821_vm2, %v13286_v10  ;;  %6731 = vst.msk [vmem:[#allocation3 + $0x38] sm:$0xff] %vm1821_vm2, %v13347_v6  ;;  %v7002_v26 = vor.u32 %v7001_v30, %v6997_v13  ;;  %v13682_v10 = vpop.permute.xlu0 %7185  ;;  %v6140_v40 = vrot.slane %v6138_v11, 4  ;;  %v6143_v20 = vrot.slane %v6141_v23, 5  ;;  %v13684_v47 = vrot.slane %v6147_v60, 5 }
 0x33f   : > { %5835 = vst.msk [vmem:[#allocation3 + $0x30] sm:$0xff] %vm2014_vm3, %v13318_v35  ;;  %7227 = vst.msk [vmem:[#allocation3 + $0x38] sm:$0xff] %vm2014_vm3, %v13467_v38  ;;  %v6993_v51 = vrot.slane %v6992_v29, 4  ;;  %v6153_v0 = vrot.slane %v6151_v39, 4  ;;  %v13686_v34 = vrot.slane %v6157_v33, 5  ;;  %v9159_v61 = vrot.slane %v5693_v3, 9 }
 0x340   : > { %15516 = vst [vmem:[#allocation23_spill] sm:$0xff] %v13684_v47  ;;  %v7003_v6 = vrot.slane %v7002_v26, 4  ;;  %v6144_v18 = vor.u32 %v6143_v20, %v6140_v40  ;;  %v6415_v53 = vrot.slane %v5694_v58, 5  ;;  %v6418_v38 = vrot.slane %v5695_v36, 5  ;;  %v13700_v60 = vld [vmem:[#allocation2 + $0xa8] sm:$0xf]  ;;  %v13704_v36 = vpop.permute.xlu1 %5797 }
 0x341   : > { %v6998_v35 = vsel %vm10252_vm14, %v6993_v51, %v6997_v13  ;;  %5809 = vrot.lane.b32.xlu1 %v9127_v59, %s9962_s27  ;;  %v6154_v30 = vor.u32 %v6153_v0, %v13684_v47  ;;  %v5210_v2 = vshrl.u32 %v13603_v9, 16  ;;  %v5213_v29 = vshll.u32 %v13603_v9, 16  ;;  %v13702_v58 = vld [vmem:[#allocation2 + $0xac] sm:$0xf]  ;;  %v13721_v0 = vld [vmem:[#allocation2 + $0xb0] sm:$0x1] }
 0x342   : > { %v7008_v17 = vsel %vm10252_vm14, %v7003_v6, %v7007_v25  ;;  %v13696_v23 = vrot.slane %v6144_v18, 4  ;;  %v6416_v3 = vsel %vm10142_vm11, %v9159_v61, %v6415_v53  ;;  %v6417_v13 = vrot.slane %v6415_v53, 4  ;;  %v13709_v33 = vpop.permute.xlu0 %6501  ;;  %v15519_v51 = vld [vmem:[#allocation27_spill] sm:$0xff] }
 0x343   : > { %v9205_v11 = vcombine.low %v6998_v35, %v7008_v17  ;;  %v13706_v26 = vrot.slane %v6154_v30, 4  ;;  %v5212_v25 = vrot.slane %v5210_v2, 4  ;;  %v5215_v39 = vrot.slane %v5213_v29, 5  ;;  %v13727_v30 = vld [vmem:[#allocation2 + $0x9c] sm:$0xf] }
 0x344   : > { %v7484_v59 = vld [vmem:[#allocation3 + $0x118] sm:$0xff]  ;;  %v5219_v9 = vshll.u32 %v13608_v1, 16  ;;  %v6419_v40 = vsel %vm10142_vm11, %v6417_v13, %v6418_v38  ;;  %v5223_v20 = vshrl.u32 %v13608_v1, 16  ;;  %v5229_v6 = vshll.u32 %v13623_v24, 16  ;;  %15517 = vst [vmem:[#allocation24_spill] sm:$0xff] %v13727_v30  ;;  %v15520_v35 = vld [vmem:[#allocation19_spill] sm:$0xff] }
 0x345   : > { %9667 = vmatmul.mubr.msk.bf16.gmra.mrb[84].mxu0 %vm1077_vm15, %v7484_v59  ;;  %7197 = vrot.lane.b32.xlu0 %v9205_v11, %s9962_s27  ;;  %v9175_v18 = vcombine.low %v6416_v3, %v6419_v40  ;;  %v5216_v53 = vor.u32 %v5215_v39, %v5212_v25  ;;  %v9223_v1 = vrot.slane %v13700_v60, 9  ;;  %v7343_v24 = vrot.slane %v13702_v58, 5  ;;  %v13731_v11 = vld [vmem:[#allocation2 + $0xa4] sm:$0x1]  ;;  %v13736_v25 = vld [vmem:[#allocation2 + $0xa0] sm:$0xf] }
 0x346   : > { %v7456_v61 = vld [vmem:[#allocation3 + $0x38] sm:$0xff]  ;;  %v5221_v17 = vrot.slane %v5219_v9, 5  ;;  %v7455_v2 = vld [vmem:[#allocation3 + $0x30] sm:$0xff]  ;;  %v5225_v38 = vrot.slane %v5223_v20, 4  ;;  %v5231_v29 = vrot.slane %v5229_v6, 5  ;;  %v7346_v59 = vrot.slane %v13721_v0, 5  ;;  %v13758_v12 = vpop.permute.xlu0 %6693 }
 0x347   : > { %7744 = vmatprep.mubr.bf16.mxu1 %v7456_v61  ;;  %v5217_v13 = vrot.slane %v5216_v53, 4  ;;  %v9191_v3 = vcombine.low %v13700_v60, %v13702_v58  ;;  %15518 = vst [vmem:[#allocation17_spill] sm:$0xff] %v13736_v25  ;;  %v9096_v39 = vrot.slane %v13727_v30, 9  ;;  %v7344_v40 = vsel %vm10142_vm11, %v9223_v1, %v7343_v24  ;;  %v13743_v61 = vpop.permute.xlu1 %5365 }
 0x348   : > { %7745 = vmatmul.mubr.bf16.gmra.mrb[40].mxu1 %v7455_v2  ;;  %v5226_v9 = vor.u32 %v5225_v38, %v5221_v17  ;;  %v7345_v20 = vrot.slane %v7343_v24, 4  ;;  %v5526_v6 = vrot.slane %v13736_v25, 5  ;;  %v5529_v2 = vrot.slane %v13731_v11, 5  ;;  %v15523_v38 = vld [vmem:[#allocation11_spill] sm:$0xff] }
 0x349   : > { %6513 = vrot.lane.b32.xlu0 %v9175_v18, %s9963_s8  ;;  %v5222_v53 = vsel %vm10252_vm14, %v5217_v13, %v5221_v17  ;;  %v15521_v41 = vsel %vm10252_vm14, %v15519_v51, %v15520_v35  ;;  %v15522_v18 = vld [vmem:[#allocation28_spill] sm:$0xff]  ;;  %v9054_v45 = vcombine.low %v9867_v63, %v9868_v54  ;;  %v15527_v54 = vshrl.u32 %v13595_v42, 16 }
 0x34a   : > { %v15524_v1 = vsel %vm10252_vm14, %v15522_v18, %v15523_v38  ;;  %v13760_v46 = vpop.f32.mrb[68].mxu0  ;;  %v5227_v17 = vrot.slane %v5226_v9, 4  ;;  %v7347_v13 = vsel %vm10142_vm11, %v7345_v20, %v7346_v59  ;;  %v5527_v51 = vsel %vm10142_vm11, %v9096_v39, %v5526_v6  ;;  %v13777_v20 = vld [vmem:[#allocation2 + $0xac] sm:$0xf] }
 0x34b   : > { %v9134_v24 = vcombine.low %v15524_v1, %v15521_v41  ;;  %15525 = vst [vmem:[#allocation15_spill] sm:$0xff] %v13760_v46  ;;  %v5528_v35 = vrot.slane %v5526_v6, 4  ;;  %v13768_v47 = vpop.f32.mrb[69].mxu0  ;;  %v9239_v41 = vcombine.low %v7344_v40, %v7347_v13  ;;  %4908 = vst.msk [vmem:[#allocation3 + $0x48] sm:$0xff] %vm1077_vm15, %v9054_v45  ;;  %v7012_v63 = vrot.slane %v15527_v54, 4 }
 0x34c   : > { %15526 = vst [vmem:[#allocation16_spill] sm:$0xff] %v13768_v47  ;;  %v15528_v9 = vshll.u32 %v13595_v42, 16  ;;  %v7019_v59 = vshll.u32 %v13598_v31, 16  ;;  %v13779_v39 = vpop.f32.mrb[70].mxu0  ;;  %v5232_v6 = vsel %vm10252_vm14, %v5227_v17, %v5231_v29  ;;  %5404 = vst.msk [vmem:[#allocation3 + $0x48] sm:$0xff] %vm1577_vm1, %v13421_v48  ;;  %v15530_v42 = vshrl.u32 %v13598_v31, 16 }
 0x34d   : > { %6300 = vst.msk [vmem:[#allocation3 + $0x50] sm:$0xff] %vm1077_vm15, %v9134_v24  ;;  %15529 = vst [vmem:[#allocation14_spill] sm:$0xff] %v13779_v39  ;;  %6705 = vrot.lane.b32.xlu0 %v9191_v3, %s9961_s21  ;;  %v5530_v45 = vsel %vm10142_vm11, %v5528_v35, %v5529_v2  ;;  %v7029_v38 = vshll.u32 %v13612_v21, 16  ;;  %v13793_v1 = vpop.f32.mrb[71].mxu0  ;;  %v9079_v24 = vcombine.low %v5222_v53, %v5232_v6  ;;  %v6162_v21 = vshrl.u32 %v13766_v50, 16  ;;  %v15541_v39 = vld [vmem:[#allocation12_spill] sm:$0xff] }
 0x34e   : > { %v7015_v18 = vrot.slane %v15528_v9, 5  ;;  %6540 = vst.msk [vmem:[#allocation3 + $0x50] sm:$0xff] %vm1577_vm1, %v13398_v56  ;;  %v7025_v40 = vrot.slane %v15530_v42, 4  ;;  %15531 = vst [vmem:[#allocation27_spill] sm:$0xff] %v13793_v1  ;;  %v9112_v29 = vcombine.low %v5527_v51, %v5530_v45  ;;  %v7021_v2 = vrot.slane %v7019_v59, 5  ;;  %v13813_v51 = vpop.permute.xlu0 %7187 }
 0x34f   : > { %7445 = vst.msk [vmem:[#allocation3 + $0x130] sm:$0xff] %vm1077_vm15, %v9239_v41  ;;  %v5698_v56 = vld [vmem:[#allocation2 + $0xb0] sm:$0x1]  ;;  %v7031_v48 = vrot.slane %v7029_v38, 5  ;;  %v9128_v31 = vcombine.low %v13766_v50, %v13777_v20  ;;  %v6165_v53 = vshll.u32 %v13766_v50, 16  ;;  %5377 = vrot.lane.b32.xlu1 %v9079_v24, %s9963_s8  ;;  %v6171_v13 = vshll.u32 %v13777_v20, 16 }
 0x350   : > { %5644 = vst.msk [vmem:[#allocation3 + $0x48] sm:$0xff] %vm1821_vm2, %v13376_v22  ;;  %v7016_v3 = vor.u32 %v7015_v18, %v7012_v63  ;;  %6732 = vst.msk [vmem:[#allocation3 + $0x50] sm:$0xff] %vm1821_vm2, %v13437_v15  ;;  %v13808_v22 = vpop.permute.xlu1 %5607  ;;  %v7026_v17 = vor.u32 %v7025_v40, %v7021_v2  ;;  %v6164_v35 = vrot.slane %v6162_v21, 4  ;;  %v6181_v54 = vshll.u32 %v5698_v56, 16 }
 0x351   : > { %5836 = vst.msk [vmem:[#allocation3 + $0x48] sm:$0xff] %vm2014_vm3, %v13396_v5  ;;  %7228 = vst.msk [vmem:[#allocation3 + $0x50] sm:$0xff] %vm2014_vm3, %v13585_v7  ;;  %v6175_v5 = vshrl.u32 %v13777_v20, 16  ;;  %v6167_v41 = vrot.slane %v6165_v53, 5  ;;  %v9160_v63 = vrot.slane %v13766_v50, 9  ;;  %v13818_v18 = vrot.slane %v6171_v13, 5 }
 0x352   : > { %v7017_v15 = vrot.slane %v7016_v3, 4  ;;  %v7027_v9 = vrot.slane %v7026_v17, 4  ;;  %v13820_v45 = vrot.slane %v6181_v54, 5  ;;  %v6422_v42 = vrot.slane %v13777_v20, 5  ;;  %v13843_v54 = vpop.permute.xlu0 %6503 }
 0x353   : > { %15532 = vst [vmem:[#allocation19_spill] sm:$0xff] %v13818_v18  ;;  %v6177_v59 = vrot.slane %v6175_v5, 4  ;;  %v6168_v6 = vor.u32 %v6167_v41, %v6164_v35  ;;  %v6425_v40 = vrot.slane %v5698_v56, 5  ;;  %5619 = vrot.lane.b32.xlu1 %v9112_v29, %s9961_s21  ;;  %v5234_v24 = vshrl.u32 %v13727_v30, 16  ;;  %v13833_v56 = vld [vmem:[#allocation2 + $0xb4] sm:$0xf] }
 0x354   : > { %v7022_v7 = vsel %vm10252_vm14, %v7017_v15, %v7021_v2  ;;  %15533 = vst [vmem:[#allocation28_spill] sm:$0xff] %v13820_v45  ;;  %v7032_v38 = vsel %vm10252_vm14, %v7027_v9, %v7031_v48  ;;  %v5237_v3 = vshll.u32 %v13727_v30, 16  ;;  %v6423_v15 = vsel %vm10142_vm11, %v9160_v63, %v6422_v42  ;;  %v13835_v29 = vpop.permute.xlu1 %5799  ;;  %v13841_v35 = vld [vmem:[#allocation2 + $0xa8] sm:$0xf] }
 0x355   : > { %v6178_v50 = vor.u32 %v6177_v59, %v13818_v18  ;;  %v9206_v21 = vcombine.low %v7022_v7, %v7032_v38  ;;  %v13829_v53 = vrot.slane %v6168_v6, 4  ;;  %v6424_v20 = vrot.slane %v6422_v42, 4  ;;  %15535 = vst [vmem:[#allocation50_spill] sm:$0xff] %v13841_v35  ;;  %v13854_v6 = vld [vmem:[#allocation2 + $0xb8] sm:$0xf]  ;;  %v15537_v38 = vld [vmem:[#allocation25_spill] sm:$0xff] }
 0x356   : > { %v7487_v2 = vld [vmem:[#allocation3 + $0x130] sm:$0xff]  ;;  %v5236_v17 = vrot.slane %v5234_v24, 4  ;;  %v5239_v13 = vrot.slane %v5237_v3, 5  ;;  %v5243_v5 = vshll.u32 %v13736_v25, 16  ;;  %v5247_v9 = vshrl.u32 %v13736_v25, 16  ;;  %v13893_v47 = vpop.permute.xlu0 %6695 }
 0x357   : > { %15534 = vst [vmem:[#allocation11_spill] sm:$0xff] %v13829_v53  ;;  %9670 = vmatprep.mubr.msk.bf16.mxu0 %vm1077_vm15, %v7487_v2  ;;  %v13838_v48 = vrot.slane %v6178_v50, 4  ;;  %7199 = vrot.lane.b32.xlu0 %v9206_v21, %s9962_s27  ;;  %v6426_v7 = vsel %vm10142_vm11, %v6424_v20, %v6425_v40  ;;  %v5253_v59 = vshll.u32 %v13731_v11, 16  ;;  %v13861_v2 = vld [vmem:[#allocation2 + $0xbc] sm:$0x1]  ;;  %v9192_v20 = vcombine.low %v13833_v56, %v13854_v6 }
 0x358   : > { %v7459_v41 = vld [vmem:[#allocation3 + $0x50] sm:$0xff]  ;;  %v7458_v42 = vld [vmem:[#allocation3 + $0x48] sm:$0xff]  ;;  %5811 = vrot.lane.b32.xlu1 %v9128_v31, %s9962_s27  ;;  %v9176_v50 = vcombine.low %v6423_v15, %v6426_v7  ;;  %v5240_v24 = vor.u32 %v5239_v13, %v5236_v17  ;;  %v5245_v3 = vrot.slane %v5243_v5, 5  ;;  %v5249_v11 = vrot.slane %v5247_v9, 4  ;;  %v9869_v25 = vld [vmem:[#allocation2 + $0x30] sm:$0xf] }
 0x359   : > { %7752 = vmatprep.mubr.bf16.mxu1 %v7459_v41  ;;  %v13863_v40 = vld [vmem:[#allocation2 + $0xac] sm:$0xf]  ;;  %v5255_v21 = vrot.slane %v5253_v59, 5  ;;  %v13868_v41 = vld [vmem:[#allocation2 + $0xb0] sm:$0x1]  ;;  %v9224_v17 = vrot.slane %v13833_v56, 9  ;;  %v13877_v59 = vpop.permute.xlu1 %5367 }
 0x35a   : > { %15536 = vst [vmem:[#allocation51_spill] sm:$0xff] %v13863_v40  ;;  %7753 = vmatmul.mubr.bf16.gmra.mrb[44].mxu1 %v7458_v42  ;;  %v5241_v63 = vrot.slane %v5240_v24, 4  ;;  %v5250_v13 = vor.u32 %v5249_v11, %v5245_v3  ;;  %v7350_v5 = vrot.slane %v13854_v6, 5  ;;  %v7353_v7 = vrot.slane %v13861_v2, 5  ;;  %v15540_v31 = vld [vmem:[#allocation29_spill] sm:$0xff] }
 0x35b   : > { %6515 = vrot.lane.b32.xlu0 %v9176_v50, %s9963_s8  ;;  %v9097_v9 = vrot.slane %v13841_v35, 9  ;;  %v5533_v24 = vrot.slane %v13863_v40, 5  ;;  %v5536_v15 = vrot.slane %v13868_v41, 5  ;;  %v15538_v50 = vld [vmem:[#allocation20_spill] sm:$0xff]  ;;  %v15542_v46 = vsel %vm10252_vm14, %v15540_v31, %v15541_v39  ;;  %v9870_v18 = vld [vmem:[#allocation2 + $0x34] sm:$0xf] }
 0x35c   : > { %v5246_v42 = vsel %vm10252_vm14, %v5241_v63, %v5245_v3  ;;  %v15539_v11 = vsel %vm10252_vm14, %v15537_v38, %v15538_v50  ;;  %v5251_v30 = vrot.slane %v5250_v13, 4  ;;  %v7351_v63 = vsel %vm10142_vm11, %v9224_v17, %v7350_v5 }
 0x35d   : > { %v9135_v1 = vcombine.low %v15542_v46, %v15539_v11  ;;  %v7352_v3 = vrot.slane %v7350_v5, 4  ;;  %v9055_v53 = vcombine.low %v9869_v25, %v9870_v18  ;;  %v5534_v45 = vsel %vm10142_vm11, %v9097_v9, %v5533_v24  ;;  %v13912_v18 = vld [vmem:[#allocation2 + $0xb4] sm:$0xf] }
 0x35e   : > { %v5535_v38 = vrot.slane %v5533_v24, 4  ;;  %v7034_v50 = vshrl.u32 %v13700_v60, 16  ;;  %v7037_v46 = vshll.u32 %v13700_v60, 16  ;;  %v5256_v39 = vsel %vm10252_vm14, %v5251_v30, %v5255_v21 }
 0x35f   : > { %6301 = vst.msk [vmem:[#allocation3 + $0x68] sm:$0xff] %vm1077_vm15, %v9135_v1  ;;  %v7354_v31 = vsel %vm10142_vm11, %v7352_v3, %v7353_v7  ;;  %6707 = vrot.lane.b32.xlu0 %v9192_v20, %s9961_s21  ;;  %4909 = vst.msk [vmem:[#allocation3 + $0x60] sm:$0xff] %vm1077_vm15, %v9055_v53  ;;  %v7043_v25 = vshll.u32 %v13702_v58, 16  ;;  %v7047_v1 = vshrl.u32 %v13702_v58, 16  ;;  %v9080_v60 = vcombine.low %v5246_v42, %v5256_v39  ;;  %v5700_v20 = vld [vmem:[#allocation2 + $0xb8] sm:$0xf]  ;;  %v13934_v42 = vpop.permute.xlu0 %7189 }
 0x360   : > { %6541 = vst.msk [vmem:[#allocation3 + $0x68] sm:$0xff] %vm1577_vm1, %v13517_v55  ;;  %v9240_v17 = vcombine.low %v7351_v63, %v7354_v31  ;;  %v5537_v30 = vsel %vm10142_vm11, %v5535_v38, %v5536_v15  ;;  %5405 = vst.msk [vmem:[#allocation3 + $0x60] sm:$0xff] %vm1577_vm1, %v13544_v28  ;;  %v7036_v21 = vrot.slane %v7034_v50, 4  ;;  %v15543_v53 = vld [vmem:[#allocation45_spill] sm:$0xff]  ;;  %v7039_v58 = vrot.slane %v7037_v46, 5  ;;  %v13924_v15 = vpop.permute.xlu1 %5609 }
 0x361   : > { %6733 = vst.msk [vmem:[#allocation3 + $0x68] sm:$0xff] %vm1821_vm2, %v13549_v44  ;;  %v9113_v55 = vcombine.low %v5534_v45, %v5537_v30  ;;  %5645 = vst.msk [vmem:[#allocation3 + $0x60] sm:$0xff] %vm1821_vm2, %v15543_v53  ;;  %v7045_v13 = vrot.slane %v7043_v25, 5  ;;  %v7049_v5 = vrot.slane %v7047_v1, 4  ;;  %v5701_v7 = vld [vmem:[#allocation2 + $0xbc] sm:$0x1]  ;;  %5379 = vrot.lane.b32.xlu1 %v9080_v60, %s9963_s8  ;;  %v9129_v44 = vcombine.low %v13912_v18, %v5700_v20 }
 0x362   : > { %7229 = vst.msk [vmem:[#allocation3 + $0x68] sm:$0xff] %vm2014_vm3, %v13682_v10  ;;  %5837 = vst.msk [vmem:[#allocation3 + $0x60] sm:$0xff] %vm2014_vm3, %v13508_v37  ;;  %v7053_v28 = vshll.u32 %v13721_v0, 16  ;;  %v6186_v45 = vshrl.u32 %v13912_v18, 16  ;;  %v6189_v9 = vshll.u32 %v13912_v18, 16  ;;  %v7040_v10 = vor.u32 %v7039_v58, %v7036_v21 }
 0x363   : > { %7446 = vst.msk [vmem:[#allocation3 + $0x148] sm:$0xff] %vm1077_vm15, %v9240_v17  ;;  %v7050_v24 = vor.u32 %v7049_v5, %v7045_v13  ;;  %v6195_v11 = vshll.u32 %v5700_v20, 16  ;;  %v6199_v63 = vshrl.u32 %v5700_v20, 16  ;;  %v6205_v46 = vshll.u32 %v5701_v7, 16 }
 0x364   : > { %v7055_v3 = vrot.slane %v7053_v28, 5  ;;  %v6188_v38 = vrot.slane %v6186_v45, 4  ;;  %v6191_v50 = vrot.slane %v6189_v9, 5  ;;  %v7041_v39 = vrot.slane %v7040_v10, 4  ;;  %v13947_v5 = vpop.permute.xlu1 %5801  ;;  %v13955_v10 = vpop.permute.xlu0 %6505 }
 0x365   : > { %v7051_v37 = vrot.slane %v7050_v24, 4  ;;  %v13936_v31 = vrot.slane %v6195_v11, 5  ;;  %v6201_v0 = vrot.slane %v6199_v63, 4  ;;  %5621 = vrot.lane.b32.xlu1 %v9113_v55, %s9961_s21  ;;  %v13939_v1 = vrot.slane %v6205_v46, 5  ;;  %15546 = vst [vmem:[#allocation29_spill] sm:$0xff] %v13947_v5 }
 0x366   : > { %v6192_v25 = vor.u32 %v6191_v50, %v6188_v38  ;;  %v9161_v60 = vrot.slane %v13912_v18, 9  ;;  %v6429_v17 = vrot.slane %v5700_v20, 5  ;;  %v7046_v30 = vsel %vm10252_vm14, %v7041_v39, %v7045_v13  ;;  %v13953_v18 = vld [vmem:[#allocation2 + $0xc4] sm:$0xf]  ;;  %v13972_v39 = vld [vmem:[#allocation2 + $0xc0] sm:$0xf] }
 0x367   : > { %15544 = vst [vmem:[#allocation25_spill] sm:$0xff] %v13936_v31  ;;  %15545 = vst [vmem:[#allocation20_spill] sm:$0xff] %v13939_v1  ;;  %v7056_v21 = vsel %vm10252_vm14, %v7051_v37, %v7055_v3  ;;  %v6202_v53 = vor.u32 %v6201_v0, %v13936_v31  ;;  %v6432_v58 = vrot.slane %v5701_v7, 5  ;;  %v5258_v11 = vshrl.u32 %v13841_v35, 16  ;;  %v15554_v31 = vld [vmem:[#allocation13_spill] sm:$0xff] }
 0x368   : > { %v9207_v28 = vcombine.low %v7046_v30, %v7056_v21  ;;  %v13949_v45 = vrot.slane %v6192_v25, 4  ;;  %v6430_v55 = vsel %vm10142_vm11, %v9161_v60, %v6429_v17  ;;  %v6431_v9 = vrot.slane %v6429_v17, 4  ;;  %v13979_v30 = vld [vmem:[#allocation2 + $0xb4] sm:$0xf] }
 0x369   : > { %v7462_v20 = vld [vmem:[#allocation3 + $0x68] sm:$0xff]  ;;  %v13957_v24 = vrot.slane %v6202_v53, 4  ;;  %v5261_v7 = vshll.u32 %v13841_v35, 16  ;;  %v5267_v63 = vshll.u32 %v13863_v40, 16  ;;  %v5271_v50 = vshrl.u32 %v13863_v40, 16  ;;  %v7461_v37 = vld [vmem:[#allocation3 + $0x60] sm:$0xff]  ;;  %5813 = vrot.lane.b32.xlu1 %v9129_v44, %s9962_s27 }
 0x36a   : > { %15547 = vst [vmem:[#allocation12_spill] sm:$0xff] %v13949_v45  ;;  %v7490_v13 = vld [vmem:[#allocation3 + $0x148] sm:$0xff]  ;;  %7760 = vmatprep.mubr.bf16.mxu1 %v7462_v20  ;;  %7201 = vrot.lane.b32.xlu0 %v9207_v28, %s9962_s27  ;;  %v6433_v38 = vsel %vm10142_vm11, %v6431_v9, %v6432_v58  ;;  %v5277_v46 = vshll.u32 %v13868_v41, 16  ;;  %v5260_v60 = vrot.slane %v5258_v11, 4  ;;  %v9193_v41 = vcombine.low %v13972_v39, %v13953_v18  ;;  %v13983_v28 = vld [vmem:[#allocation2 + $0xb8] sm:$0xf] }
 0x36b   : > { %15548 = vst [vmem:[#allocation45_spill] sm:$0xff] %v13957_v24  ;;  %9671 = vmatmul.mubr.msk.bf16.gmra.mrb[88].mxu0 %vm1077_vm15, %v7490_v13  ;;  %v9177_v25 = vcombine.low %v6430_v55, %v6433_v38  ;;  %v5263_v17 = vrot.slane %v5261_v7, 5  ;;  %7761 = vmatmul.mubr.bf16.gmra.mrb[48].mxu1 %v7461_v37  ;;  %v5269_v21 = vrot.slane %v5267_v63, 5  ;;  %v5273_v53 = vrot.slane %v5271_v50, 4  ;;  %v13988_v13 = vpop.permute.xlu1 %5369  ;;  %v13994_v50 = vpop.permute.xlu0 %6697  ;;  %v13996_v37 = vld [vmem:[#allocation2 + $0xbc] sm:$0x1] }
 0x36c   : > { %v5279_v58 = vrot.slane %v5277_v46, 5  ;;  %v9225_v7 = vrot.slane %v13972_v39, 9  ;;  %v7357_v63 = vrot.slane %v13953_v18, 5  ;;  %v5282_v38 = vshrl.u32 %v13979_v30, 16  ;;  %15549 = vst [vmem:[#allocation52_spill] sm:$0xff] %v13994_v50  ;;  %v15551_v40 = vld [vmem:[#allocation21_spill] sm:$0xff] }
 0x36d   : > { %v5264_v44 = vor.u32 %v5263_v17, %v5260_v60  ;;  %v5274_v11 = vor.u32 %v5273_v53, %v5269_v21  ;;  %v5285_v60 = vshll.u32 %v13979_v30, 16  ;;  %v5291_v17 = vshll.u32 %v13983_v28, 16 }
 0x36e   : > { %6517 = vrot.lane.b32.xlu0 %v9177_v25, %s9963_s8  ;;  %v5295_v3 = vshrl.u32 %v13983_v28, 16  ;;  %v14003_v25 = vsel %vm10142_vm11, %v9225_v7, %v7357_v63  ;;  %v14005_v53 = vrot.slane %v7357_v63, 4  ;;  %v5284_v55 = vrot.slane %v5282_v38, 4  ;;  %v15550_v7 = vld [vmem:[#allocation22_spill] sm:$0xff] }
 0x36f   : > { %v5265_v46 = vrot.slane %v5264_v44, 4  ;;  %v5275_v0 = vrot.slane %v5274_v11, 4  ;;  %v5287_v44 = vrot.slane %v5285_v60, 5  ;;  %v5293_v9 = vrot.slane %v5291_v17, 5  ;;  %v15553_v38 = vld [vmem:[#allocation10_spill] sm:$0xff]  ;;  %v14025_v24 = vpop.permute.xlu1 %5611 }
 0x370   : > { %v5297_v5 = vrot.slane %v5295_v3, 4  ;;  %v5301_v11 = vshll.u32 %v13996_v37, 16  ;;  %v15552_v63 = vsel %vm10252_vm14, %v15550_v7, %v15551_v40  ;;  %v9871_v60 = vld [vmem:[#allocation2 + $0x3c] sm:$0xf]  ;;  %v9872_v3 = vld [vmem:[#allocation2 + $0x40] sm:$0xf] }
 0x371   : > { %v5270_v20 = vsel %vm10252_vm14, %v5265_v46, %v5269_v21  ;;  %v5280_v35 = vsel %vm10252_vm14, %v5275_v0, %v5279_v58  ;;  %v15555_v21 = vsel %vm10252_vm14, %v15553_v38, %v15554_v31  ;;  %v9056_v17 = vcombine.low %v9871_v60, %v9872_v3 }
 0x372   : > { %6709 = vrot.lane.b32.xlu0 %v9193_v41, %s9961_s21  ;;  %v9136_v46 = vcombine.low %v15555_v21, %v15552_v63  ;;  %v9081_v45 = vcombine.low %v5270_v20, %v5280_v35  ;;  %v5288_v0 = vor.u32 %v5287_v44, %v5284_v55  ;;  %v5298_v58 = vor.u32 %v5297_v5, %v5293_v9  ;;  %v14034_v20 = vld [vmem:[#allocation2 + $0xc0] sm:$0xf]  ;;  %v14036_v5 = vpop.permute.xlu0 %7191 }
 0x373   : > { %v15556_v41 = vshrl.u32 %v13833_v56, 16  ;;  %v5303_v50 = vrot.slane %v5301_v11, 5  ;;  %4910 = vst.msk [vmem:[#allocation3 + $0x78] sm:$0xff] %vm1077_vm15, %v9056_v17  ;;  %v15557_v40 = vshll.u32 %v13833_v56, 16  ;;  %v7067_v7 = vshll.u32 %v13854_v6, 16 }
 0x374   : > { %6302 = vst.msk [vmem:[#allocation3 + $0x80] sm:$0xff] %vm1077_vm15, %v9136_v46  ;;  %v15558_v63 = vshrl.u32 %v13854_v6, 16  ;;  %5381 = vrot.lane.b32.xlu1 %v9081_v45, %s9963_s8  ;;  %v5289_v55 = vrot.slane %v5288_v0, 4  ;;  %v5299_v44 = vrot.slane %v5298_v58, 4  ;;  %v7077_v56 = vshll.u32 %v13861_v2, 16  ;;  %v14063_v58 = vpop.permute.xlu1 %5803 }
 0x375   : > { %v7060_v1 = vrot.slane %v15556_v41, 4  ;;  %v7063_v31 = vrot.slane %v15557_v40, 5  ;;  %6542 = vst.msk [vmem:[#allocation3 + $0x80] sm:$0xff] %vm1577_vm1, %v13610_v57  ;;  %5406 = vst.msk [vmem:[#allocation3 + $0x78] sm:$0xff] %vm1577_vm1, %v13636_v43  ;;  %v9098_v11 = vrot.slane %v13979_v30, 9  ;;  %v7069_v38 = vrot.slane %v7067_v7, 5 }
 0x376   : > { %v7073_v35 = vrot.slane %v15558_v63, 4  ;;  %5646 = vst.msk [vmem:[#allocation3 + $0x78] sm:$0xff] %vm1821_vm2, %v13579_v14  ;;  %v5540_v21 = vrot.slane %v13983_v28, 5  ;;  %v5543_v45 = vrot.slane %v13996_v37, 5  ;;  %6734 = vst.msk [vmem:[#allocation3 + $0x80] sm:$0xff] %vm1821_vm2, %v13642_v62  ;;  %v5294_v43 = vsel %vm10252_vm14, %v5289_v55, %v5293_v9 }
 0x377   : > { %v7064_v6 = vor.u32 %v7063_v31, %v7060_v1  ;;  %v5703_v57 = vld [vmem:[#allocation2 + $0xc4] sm:$0xf]  ;;  %v5304_v2 = vsel %vm10252_vm14, %v5299_v44, %v5303_v50  ;;  %5838 = vst.msk [vmem:[#allocation3 + $0x78] sm:$0xff] %vm2014_vm3, %v13605_v4  ;;  %v7079_v14 = vrot.slane %v7077_v56, 5  ;;  %v5704_v1 = vld [vmem:[#allocation2 + $0xc8] sm:$0x1]  ;;  %v14068_v31 = vpop.permute.xlu0 %6507 }
 0x378   : > { %v6210_v46 = vshrl.u32 %v14034_v20, 16  ;;  %7230 = vst.msk [vmem:[#allocation3 + $0x80] sm:$0xff] %vm2014_vm3, %v13813_v51  ;;  %v9082_v37 = vcombine.low %v5294_v43, %v5304_v2  ;;  %v7074_v62 = vor.u32 %v7073_v35, %v7069_v38  ;;  %v5541_v3 = vsel %vm10142_vm11, %v9098_v11, %v5540_v21 }
 0x379   : > { %v7065_v60 = vrot.slane %v7064_v6, 4  ;;  %v5542_v9 = vrot.slane %v5540_v21, 4  ;;  %v6213_v50 = vshll.u32 %v14034_v20, 16  ;;  %v6219_v0 = vshll.u32 %v5703_v57, 16 }
 0x37a   : > { %v6212_v17 = vrot.slane %v6210_v46, 4  ;;  %5383 = vrot.lane.b32.xlu1 %v9082_v37, %s9963_s8  ;;  %v7075_v41 = vrot.slane %v7074_v62, 4  ;;  %v6223_v51 = vshrl.u32 %v5703_v57, 16  ;;  %v6229_v40 = vshll.u32 %v5704_v1, 16  ;;  %v6597_v46 = vld [vmem:[#allocation2 + $0xc8] sm:$0x1] }
 0x37b   : > { %v7070_v4 = vsel %vm10252_vm14, %v7065_v60, %v7069_v38  ;;  %v5544_v7 = vsel %vm10142_vm11, %v5542_v9, %v5543_v45  ;;  %v6215_v63 = vrot.slane %v6213_v50, 5  ;;  %v14072_v35 = vrot.slane %v6219_v0, 5 }
 0x37c   : > { %v9162_v55 = vrot.slane %v14034_v20, 9  ;;  %v7080_v44 = vsel %vm10252_vm14, %v7075_v41, %v7079_v14  ;;  %v9114_v56 = vcombine.low %v5541_v3, %v5544_v7  ;;  %v6225_v11 = vrot.slane %v6223_v51, 4  ;;  %v14098_v7 = vpop.permute.xlu0 %6699 }
 0x37d   : > { %v14077_v6 = vrot.slane %v6229_v40, 5  ;;  %v9208_v38 = vcombine.low %v7070_v4, %v7080_v44  ;;  %v6216_v21 = vor.u32 %v6215_v63, %v6212_v17  ;;  %v6436_v43 = vrot.slane %v5703_v57, 5 }
 0x37e   : > { %v6439_v2 = vrot.slane %v5704_v1, 5  ;;  %5623 = vrot.lane.b32.xlu1 %v9114_v56, %s9961_s21  ;;  %v6226_v45 = vor.u32 %v6225_v11, %v14072_v35  ;;  %v9130_v37 = vcombine.low %v14034_v20, %v5703_v57  ;;  %v15559_v60 = vshrl.u32 %v13972_v39, 16  ;;  %v7464_v4 = vld [vmem:[#allocation3 + $0x78] sm:$0xff]  ;;  %v14092_v20 = vpop.permute.xlu1 %5371  ;;  %v15562_v56 = vld [vmem:[#allocation8_spill] sm:$0xff] }
 0x37f   : > { %v15560_v14 = vshll.u32 %v13972_v39, 16  ;;  %v7465_v9 = vld [vmem:[#allocation3 + $0x80] sm:$0xff]  ;;  %7203 = vrot.lane.b32.xlu0 %v9208_v38, %s9962_s27  ;;  %v14087_v50 = vrot.slane %v6216_v21, 4  ;;  %v6437_v1 = vsel %vm10142_vm11, %v9162_v55, %v6436_v43  ;;  %v6438_v17 = vrot.slane %v6436_v43, 4  ;;  %v15563_v11 = vld [vmem:[#allocation18_spill] sm:$0xff]  ;;  %v15565_v21 = vld [vmem:[#allocation9_spill] sm:$0xff] }
 0x380   : > { %v7084_v62 = vrot.slane %v15559_v60, 4  ;;  %v7091_v0 = vshll.u32 %v13953_v18, 16  ;;  %7768 = vmatprep.mubr.bf16.mxu1 %v7465_v9  ;;  %v14094_v57 = vrot.slane %v6226_v45, 4  ;;  %v15561_v39 = vshrl.u32 %v13953_v18, 16  ;;  %v15566_v43 = vld [vmem:[#allocation26_spill] sm:$0xff] }
 0x381   : > { %v7087_v3 = vrot.slane %v15560_v14, 5  ;;  %v7101_v40 = vshll.u32 %v6597_v46, 16  ;;  %7769 = vmatmul.mubr.bf16.gmra.mrb[52].mxu1 %v7464_v4  ;;  %v6440_v63 = vsel %vm10142_vm11, %v6438_v17, %v6439_v2  ;;  %v7360_v44 = vrot.slane %v6597_v46, 5  ;;  %v9873_v9 = vld [vmem:[#allocation2 + $0x48] sm:$0xf] }
 0x382   : > { %v7097_v51 = vrot.slane %v15561_v39, 4  ;;  %v7093_v55 = vrot.slane %v7091_v0, 5  ;;  %v15564_v38 = vsel %vm10252_vm14, %v15562_v56, %v15563_v11  ;;  %v15567_v18 = vsel %vm10252_vm14, %v15565_v21, %v15566_v43  ;;  %5815 = vrot.lane.b32.xlu1 %v9130_v37, %s9962_s27  ;;  %v9874_v17 = vld [vmem:[#allocation2 + $0x4c] sm:$0xf]  ;;  %v14123_v39 = vld [vmem:[#allocation2 + $0xd0] sm:$0xf] }
 0x383   : > { %v7088_v41 = vor.u32 %v7087_v3, %v7084_v62  ;;  %v9137_v45 = vcombine.low %v15567_v18, %v15564_v38  ;;  %v6232_v60 = vsel %vm10252_vm14, %v14094_v57, %v14077_v6  ;;  %v9178_v62 = vcombine.low %v6437_v1, %v6440_v63  ;;  %v14121_v4 = vld [vmem:[#allocation2 + $0xcc] sm:$0xf]  ;;  %v15568_v11 = vld [vmem:[#allocation31_spill] sm:$0xff]  ;;  %v15569_v38 = vld [vmem:[#allocation32_spill] sm:$0xff] }
 0x384   : > { %v7103_v46 = vrot.slane %v7101_v40, 5  ;;  %v7098_v14 = vor.u32 %v7097_v51, %v7093_v55  ;;  %v7361_v3 = vsel %vm10142_vm11, %v14005_v53, %v7360_v44  ;;  %v9057_v0 = vcombine.low %v9873_v9, %v9874_v17  ;;  %v15571_v21 = vld [vmem:[#allocation30_spill] sm:$0xff]  ;;  %v15572_v43 = vld [vmem:[#allocation7_spill] sm:$0xff] }
 0x385   : > { %v7089_v2 = vrot.slane %v7088_v41, 4  ;;  %6303 = vst.msk [vmem:[#allocation3 + $0x98] sm:$0xff] %vm1077_vm15, %v9137_v45  ;;  %v9194_v1 = vcombine.low %v14121_v4, %v14123_v39  ;;  %6519 = vrot.lane.b32.xlu0 %v9178_v62, %s9963_s8  ;;  %v9241_v49 = vcombine.low %v14003_v25, %v7361_v3  ;;  %v7106_v53 = vshrl.u32 %v14121_v4, 16  ;;  %v14140_v25 = vpop.permute.xlu1 %5613  ;;  %v9878_v62 = vld [vmem:[#allocation2 + $0x54] sm:$0xf] }
 0x386   : > { %6543 = vst.msk [vmem:[#allocation3 + $0x98] sm:$0xff] %vm1577_vm1, %v13709_v33  ;;  %v7109_v41 = vshll.u32 %v14121_v4, 16  ;;  %v7099_v51 = vrot.slane %v7098_v14, 4  ;;  %v7115_v40 = vshll.u32 %v14123_v39, 16  ;;  %v7119_v63 = vshrl.u32 %v14123_v39, 16 }
 0x387   : > { %v7094_v37 = vsel %vm10252_vm14, %v7089_v2, %v7093_v55  ;;  %4911 = vst.msk [vmem:[#allocation3 + $0x90] sm:$0xff] %vm1077_vm15, %v9057_v0  ;;  %v9877_v55 = vld [vmem:[#allocation2 + $0xd4] sm:$0x1]  ;;  %7447 = vst.msk [vmem:[#allocation3 + $0x160] sm:$0xff] %vm1077_vm15, %v9241_v49  ;;  %v7108_v33 = vrot.slane %v7106_v53, 4  ;;  %v15573_v18 = vsel %vm10252_vm14, %v15571_v21, %v15572_v43  ;;  %v14167_v49 = vpop.f32.mrb[72].mxu0 }
 0x388   : > { %6735 = vst.msk [vmem:[#allocation3 + $0x98] sm:$0xff] %vm1821_vm2, %v13758_v12  ;;  %v7125_v44 = vshll.u32 %v9877_v55, 16  ;;  %v7111_v56 = vrot.slane %v7109_v41, 5  ;;  %v15570_v12 = vsel %vm10252_vm14, %v15568_v11, %v15569_v38  ;;  %v9879_v2 = vld [vmem:[#allocation2 + $0x58] sm:$0xf]  ;;  %v7104_v3 = vsel %vm10252_vm14, %v7099_v51, %v7103_v46  ;;  %v15574_v46 = vld [vmem:[#allocation36_spill] sm:$0xff] }
 0x389   : > { %5407 = vst.msk [vmem:[#allocation3 + $0x90] sm:$0xff] %vm1577_vm1, %v13743_v61  ;;  %v9138_v45 = vcombine.low %v15573_v18, %v15570_v12  ;;  %v9058_v14 = vcombine.low %v9878_v62, %v9879_v2  ;;  %v14157_v61 = vpop.permute.xlu0 %7193  ;;  %v14163_v9 = vrot.slane %v7115_v40, 5  ;;  %v7121_v17 = vrot.slane %v7119_v63, 4  ;;  %v15577_v51 = vld [vmem:[#allocation35_spill] sm:$0xff]  ;;  %v15578_v40 = vld [vmem:[#allocation33_spill] sm:$0xff]  ;;  %v15581_v38 = vld [vmem:[#allocation40_spill] sm:$0xff] }
 0x38a   : > { %7231 = vst.msk [vmem:[#allocation3 + $0x98] sm:$0xff] %vm2014_vm3, %v13934_v42  ;;  %v14165_v0 = vrot.slane %v7125_v44, 5  ;;  %v9209_v53 = vcombine.low %v7094_v37, %v7104_v3  ;;  %v7112_v42 = vor.u32 %v7111_v56, %v7108_v33  ;;  %v15579_v63 = vsel %vm10252_vm14, %v15577_v51, %v15578_v40  ;;  %v9880_v37 = vld [vmem:[#allocation2 + $0x60] sm:$0xf]  ;;  %v9881_v44 = vld [vmem:[#allocation2 + $0x64] sm:$0xf] }
 0x38b   : > { %5647 = vst.msk [vmem:[#allocation3 + $0x90] sm:$0xff] %vm1821_vm2, %v13676_v16  ;;  %v15575_v16 = vld [vmem:[#allocation34_spill] sm:$0xff]  ;;  %v9059_v11 = vcombine.low %v9880_v37, %v9881_v44  ;;  %v7122_v33 = vor.u32 %v7121_v17, %v14163_v9  ;;  %v15580_v56 = vld [vmem:[#allocation39_spill] sm:$0xff]  ;;  %v15584_v43 = vld [vmem:[#allocation37_spill] sm:$0xff]  ;;  %vm8099_vm0 = vcmask 1041409   ;;  %vm8102_vm4 = vcmask 1042434  }
 0x38c   : > { %5839 = vst.msk [vmem:[#allocation3 + $0x90] sm:$0xff] %vm2014_vm3, %v13704_v36  ;;  %v15576_v41 = vsel %vm10252_vm14, %v15574_v46, %v15575_v16  ;;  %v14183_v36 = vpop.f32.mrb[73].mxu0  ;;  %v15582_v12 = vsel %vm10252_vm14, %v15580_v56, %v15581_v38  ;;  %v15583_v21 = vld [vmem:[#allocation38_spill] sm:$0xff]  ;;  %v9882_v62 = vld [vmem:[#allocation2 + $0x6c] sm:$0xf]  ;;  %7205 = vrot.lane.b32.xlu0 %v9209_v53, %s9962_s27  ;;  %v7113_v40 = vrot.slane %v7112_v42, 4  ;;  %v15592_v53 = vsel %vm10252_vm14, %v13574_v32, %v13577_v52 }
 0x38d   : > { %6304 = vst.msk [vmem:[#allocation3 + $0xb0] sm:$0xff] %vm1077_vm15, %v9138_v45  ;;  %4912 = vst.msk [vmem:[#allocation3 + $0xa8] sm:$0xff] %vm1077_vm15, %v9058_v14  ;;  %v9139_v55 = vcombine.low %v15579_v63, %v15576_v41  ;;  %v15585_v18 = vsel %vm10252_vm14, %v15583_v21, %v15584_v43  ;;  %v9883_v2 = vld [vmem:[#allocation2 + $0x70] sm:$0xf]  ;;  %v15590_v46 = vld [vmem:[#allocation41_spill] sm:$0xff]  ;;  %v14210_v51 = vpop.f32.mrb[74].mxu0  ;;  %v6510_v63 = vpop.permute.xlu0 %6509 }
 0x38e   : > { %6544 = vst.msk [vmem:[#allocation3 + $0xb0] sm:$0xff] %vm1577_vm1, %v13843_v54  ;;  %5408 = vst.msk [vmem:[#allocation3 + $0xa8] sm:$0xff] %vm1577_vm1, %v13877_v59  ;;  %v9140_v45 = vcombine.low %v15585_v18, %v15582_v12  ;;  %v9060_v14 = vcombine.low %v9882_v62, %v9883_v2  ;;  %v15586_v54 = vld [vmem:[#allocation44_spill] sm:$0xff]  ;;  %v15587_v3 = vld [vmem:[#allocation42_spill] sm:$0xff]  ;;  %v14229_v12 = vpop.f32.mrb[75].mxu0  ;;  %vm8117_vm9 = vcmask 1047559  }
 0x38f   : > { %v15588_v17 = vsel %vm10252_vm14, %v15586_v54, %v15587_v3  ;;  %v15589_v59 = vld [vmem:[#allocation43_spill] sm:$0xff]  ;;  %5648 = vst.msk [vmem:[#allocation3 + $0xa8] sm:$0xff] %vm1821_vm2, %v13808_v22  ;;  %6736 = vst.msk [vmem:[#allocation3 + $0xb0] sm:$0xff] %vm1821_vm2, %v13893_v47  ;;  %v15593_v22 = vsel %vm10252_vm14, %v13561_v8, %v13547_v19  ;;  %v9886_v47 = vld [vmem:[#allocation2 + $0x84] sm:$0xf]  ;;  %v5806_v19 = vpop.permute.xlu1 %5805  ;;  %v15594_v8 = vsel %vm10252_vm14, %v13706_v26, %v13686_v34  ;;  %vm8651_vm10 = vcmask 523264  }
 0x390   : > { %v15591_v16 = vsel %vm10252_vm14, %v15589_v59, %v15590_v46  ;;  %6305 = vst.msk [vmem:[#allocation3 + $0xc8] sm:$0xff] %vm1077_vm15, %v9139_v55  ;;  %4913 = vst.msk [vmem:[#allocation3 + $0xc0] sm:$0xff] %vm1077_vm15, %v9059_v11  ;;  %v9884_v37 = vld [vmem:[#allocation2 + $0x78] sm:$0xf]  ;;  %v9885_v44 = vld [vmem:[#allocation2 + $0x7c] sm:$0xf]  ;;  %v9142_v42 = vcombine.low %v15593_v22, %v15592_v53  ;;  %v7118_v26 = vsel %vm10252_vm14, %v7113_v40, %v14163_v9  ;;  %6711 = vrot.lane.b32.xlu0 %v9194_v1, %s9961_s21 }
 0x391   : > { %v9141_v41 = vcombine.low %v15591_v16, %v15588_v17  ;;  %v9061_v56 = vcombine.low %v9884_v37, %v9885_v44  ;;  %v9887_v38 = vld [vmem:[#allocation2 + $0x88] sm:$0xf]  ;;  %v7123_v11 = vrot.slane %v7122_v33, 4  ;;  %5840 = vst.msk [vmem:[#allocation3 + $0xa8] sm:$0xff] %vm2014_vm3, %v13835_v29  ;;  %7232 = vst.msk [vmem:[#allocation3 + $0xb0] sm:$0xff] %vm2014_vm3, %v14036_v5  ;;  %v15595_v32 = vld [vmem:[#allocation23_spill] sm:$0xff] }
 0x392   : > { %v9062_v55 = vcombine.low %v9886_v47, %v9887_v38  ;;  %6545 = vst.msk [vmem:[#allocation3 + $0xc8] sm:$0xff] %vm1577_vm1, %v13955_v10  ;;  %5409 = vst.msk [vmem:[#allocation3 + $0xc0] sm:$0xff] %vm1577_vm1, %v13988_v13  ;;  %v15596_v52 = vsel %vm10252_vm14, %v13696_v23, %v15595_v32  ;;  %v9888_v10 = vld [vmem:[#allocation2 + $0x90] sm:$0xf]  ;;  %v9889_v13 = vld [vmem:[#allocation2 + $0x94] sm:$0xf] }
 0x393   : > { %6306 = vst.msk [vmem:[#allocation3 + $0xe0] sm:$0xff] %vm1077_vm15, %v9140_v45  ;;  %4914 = vst.msk [vmem:[#allocation3 + $0xd8] sm:$0xff] %vm1077_vm15, %v9060_v14  ;;  %v9143_v29 = vcombine.low %v15596_v52, %v15594_v8  ;;  %v9063_v5 = vcombine.low %v9888_v10, %v9889_v13  ;;  %v15597_v33 = vld [vmem:[#allocation28_spill] sm:$0xff]  ;;  %v15599_v43 = vld [vmem:[#allocation11_spill] sm:$0xff]  ;;  %v7128_v16 = vsel %vm10252_vm14, %v7123_v11, %v14165_v0  ;;  %vm8654_vm11 = vcmask 785408  }
 0x394   : > { %6307 = vst.msk [vmem:[#allocation3 + $0xf8] sm:$0xff] %vm1077_vm15, %v9141_v41  ;;  %v15598_v21 = vsel %vm10252_vm14, %v13838_v48, %v15597_v33  ;;  %v15600_v18 = vld [vmem:[#allocation19_spill] sm:$0xff]  ;;  %v15602_v23 = vld [vmem:[#allocation52_spill] sm:$0xff]  ;;  %4915 = vst.msk [vmem:[#allocation3 + $0xf0] sm:$0xff] %vm1077_vm15, %v9061_v56  ;;  %v9066_v0 = vcombine.low %v13979_v30, %v13983_v28 }
 0x395   : > { %v15601_v45 = vsel %vm10252_vm14, %v15599_v43, %v15600_v18  ;;  %5649 = vst.msk [vmem:[#allocation3 + $0xc0] sm:$0xff] %vm1821_vm2, %v13924_v15  ;;  %6737 = vst.msk [vmem:[#allocation3 + $0xc8] sm:$0xff] %vm1821_vm2, %v15602_v23  ;;  %v15603_v48 = vld [vmem:[#allocation17_spill] sm:$0xff]  ;;  %v15604_v9 = vld [vmem:[#allocation24_spill] sm:$0xff] }
 0x396   : > { %v9144_v34 = vcombine.low %v15601_v45, %v15598_v21  ;;  %6546 = vst.msk [vmem:[#allocation3 + $0xe0] sm:$0xff] %vm1577_vm1, %v14068_v31  ;;  %5410 = vst.msk [vmem:[#allocation3 + $0xd8] sm:$0xff] %vm1577_vm1, %v14092_v20  ;;  %v9064_v15 = vcombine.low %v15604_v9, %v15603_v48  ;;  %v15605_v62 = vld [vmem:[#allocation45_spill] sm:$0xff]  ;;  %v15606_v2 = vld [vmem:[#allocation20_spill] sm:$0xff] }
 0x397   : > { %6547 = vst.msk [vmem:[#allocation3 + $0xf8] sm:$0xff] %vm1577_vm1, %v6510_v63  ;;  %v15607_v14 = vsel %vm10252_vm14, %v15605_v62, %v15606_v2  ;;  %v15608_v31 = vld [vmem:[#allocation12_spill] sm:$0xff]  ;;  %v15609_v20 = vld [vmem:[#allocation25_spill] sm:$0xff]  ;;  %v15611_v17 = vld [vmem:[#allocation51_spill] sm:$0xff] }
 0x398   : > { %6308 = vst.msk [vmem:[#allocation3 + $0x110] sm:$0xff] %vm1077_vm15, %v9142_v42  ;;  %4916 = vst.msk [vmem:[#allocation3 + $0x108] sm:$0xff] %vm1077_vm15, %v9062_v55  ;;  %v15610_v54 = vsel %vm10252_vm14, %v15608_v31, %v15609_v20  ;;  %v15612_v59 = vld [vmem:[#allocation50_spill] sm:$0xff]  ;;  %v15613_v41 = vld [vmem:[#allocation29_spill] sm:$0xff] }
 0x399   : > { %v9145_v3 = vcombine.low %v15610_v54, %v15607_v14  ;;  %v9065_v46 = vcombine.low %v15612_v59, %v15611_v17  ;;  %5841 = vst.msk [vmem:[#allocation3 + $0xc0] sm:$0xff] %vm2014_vm3, %v15613_v41  ;;  %v7468_v40 = vld [vmem:[#allocation3 + $0x98] sm:$0xff]  ;;  %7233 = vst.msk [vmem:[#allocation3 + $0xc8] sm:$0xff] %vm2014_vm3, %v14157_v61  ;;  %v6702_v61 = vpop.permute.xlu0 %6701  ;;  %v7467_v28 = vld [vmem:[#allocation3 + $0x90] sm:$0xff] }
 0x39a   : > { %5650 = vst.msk [vmem:[#allocation3 + $0xd8] sm:$0xff] %vm1821_vm2, %v14025_v24  ;;  %6738 = vst.msk [vmem:[#allocation3 + $0xe0] sm:$0xff] %vm1821_vm2, %v14098_v7  ;;  %v6222_v24 = vsel %vm10252_vm14, %v14087_v50, %v14072_v35  ;;  %v9210_v7 = vcombine.low %v7118_v26, %v7128_v16  ;;  %7776 = vmatprep.mubr.bf16.mxu1 %v7468_v40  ;;  %v7471_v35 = vld [vmem:[#allocation3 + $0xb0] sm:$0xff]  ;;  %v7470_v6 = vld [vmem:[#allocation3 + $0xa8] sm:$0xff] }
 0x39b   : > { %6309 = vst.msk [vmem:[#allocation3 + $0x128] sm:$0xff] %vm1077_vm15, %v9143_v29  ;;  %4917 = vst.msk [vmem:[#allocation3 + $0x120] sm:$0xff] %vm1077_vm15, %v9063_v5  ;;  %v9146_v30 = vcombine.low %v6222_v24, %v6232_v60  ;;  %7777 = vmatmul.mubr.bf16.gmra.mrb[56].mxu1 %v7467_v28  ;;  %v14337_v39 = vld [vmem:[%s15292_s4] ss:$0 sm:$0xff]  ;;  %v15614_v42 = vld [vmem:[#allocation47_spill] sm:$0xff] }
 0x39c   : > { %6310 = vst.msk [vmem:[#allocation3 + $0x140] sm:$0xff] %vm1077_vm15, %v9144_v34  ;;  %4918 = vst.msk [vmem:[#allocation3 + $0x138] sm:$0xff] %vm1077_vm15, %v9064_v15  ;;  %7207 = vrot.lane.b32.xlu0 %v9210_v7, %s9962_s27  ;;  %7784 = vmatprep.mubr.bf16.mxu1 %v7471_v35  ;;  %v15615_v11 = vld [vmem:[#allocation49_spill] sm:$0xff] }
 0x39d   : > { %5842 = vst.msk [vmem:[#allocation3 + $0xd8] sm:$0xff] %vm2014_vm3, %v14063_v58  ;;  %v5374_v58 = vpop.permute.xlu1 %5373  ;;  %v7196_v50 = vpop.permute.xlu0 %7195 }
 0x39e   : > { %6311 = vst.msk [vmem:[#allocation3 + $0x158] sm:$0xff] %vm1077_vm15, %v9145_v3  ;;  %4919 = vst.msk [vmem:[#allocation3 + $0x150] sm:$0xff] %vm1077_vm15, %v9065_v46 }
 0x39f   : > { %6739 = vst.msk [vmem:[#allocation3 + $0xf8] sm:$0xff] %vm1821_vm2, %v6702_v61  ;;  %v9492_v57 = vpop.f32.mrb[32].mxu1 }
 0x3a0   : > { %4920 = vst.msk [vmem:[#allocation3 + $0x168] sm:$0xff] %vm1077_vm15, %v9066_v0  ;;  %6312 = vst.msk [vmem:[#allocation3 + $0x170] sm:$0xff] %vm1077_vm15, %v9146_v30  ;;  %v7474_v27 = vld [vmem:[#allocation3 + $0xc8] sm:$0xff]  ;;  %v7473_v4 = vld [vmem:[#allocation3 + $0xc0] sm:$0xff]  ;;  %v9493_v1 = vpop.f32.mrb[33].mxu1 }
 0x3a1   : > { %5411 = vst.msk [vmem:[#allocation3 + $0xf0] sm:$0xff] %vm1577_vm1, %v5374_v58  ;;  %v5616_v60 = vpop.permute.xlu1 %5615  ;;  %v9495_v63 = vpop.f32.mrb[34].mxu1 }
 0x3a2   : > { %5651 = vst.msk [vmem:[#allocation3 + $0xf0] sm:$0xff] %vm1821_vm2, %v14140_v25  ;;  %v9494_v25 = vadd.f32 %v9493_v1, %v9492_v57  ;;  %v9496_v37 = vpop.f32.mrb[35].mxu1 }
 0x3a3   : > { %5843 = vst.msk [vmem:[#allocation3 + $0xf0] sm:$0xff] %vm2014_vm3, %v5806_v19  ;;  %7785 = vmatmul.mubr.bf16.gmra.mrb[60].mxu1 %v7470_v6  ;;  %7234 = vst.msk [vmem:[#allocation3 + $0xe0] sm:$0xff] %vm2014_vm3, %v7196_v50  ;;  %v9497_v56 = vadd.f32 %v9496_v37, %v9495_v63  ;;  %v6512_v53 = vpop.permute.xlu0 %6511 }
 0x3a4   : > { %7792 = vmatprep.mubr.bf16.mxu1 %v7474_v27  ;;  %v7731_v44 = vadd.f32 %v9494_v25, %v14337_v39  ;;  %6548 = vst.msk [vmem:[#allocation3 + $0x110] sm:$0xff] %vm1577_vm1, %v6512_v53  ;;  %v7476_v32 = vld [vmem:[#allocation3 + $0xd8] sm:$0xff] }
 0x3a5   : > { %v7734_v38 = vadd.f32 %v9497_v56, %v14337_v39  ;;  %v5808_v55 = vpop.permute.xlu1 %5807 }
 0x3a6   : > { %v14342_v47 = vadd.f32 %v15614_v42, %v7731_v44  ;;  %v15616_v42 = vld [vmem:[#allocation46_spill] sm:$0xff] }
 0x3a7   : > { %v14346_v19 = vadd.f32 %v15615_v11, %v7734_v38  ;;  %v6704_v8 = vpop.permute.xlu0 %6703 }
 0x3a8   : > { %6740 = vst.msk [vmem:[#allocation3 + $0x110] sm:$0xff] %vm1821_vm2, %v6704_v8  ;;  %v15617_v8 = vld [vmem:[#allocation48_spill] sm:$0xff] }
 0x3aa   : > { %v7477_v22 = vld [vmem:[#allocation3 + $0xe0] sm:$0xff]  ;;  %v7479_v26 = vld [vmem:[#allocation3 + $0xf0] sm:$0xff] }
 0x3ab   : > { %7793 = vmatmul.mubr.bf16.gmra.mrb[64].mxu1 %v7473_v4  ;;  %v5376_v52 = vpop.permute.xlu1 %5375 }
 0x3ac   : > { %7800 = vmatprep.mubr.bf16.mxu1 %v7477_v22  ;;  %5412 = vst.msk [vmem:[#allocation3 + $0x108] sm:$0xff] %vm1577_vm1, %v5376_v52 }
 0x3ad   : > { %5652 = vst.msk [vmem:[#allocation3 + $0x108] sm:$0xff] %vm1821_vm2, %v5616_v60 }
 0x3ae   : > { %5844 = vst.msk [vmem:[#allocation3 + $0x108] sm:$0xff] %vm2014_vm3, %v5808_v55 }
 0x3af   : > { %v5618_v29 = vpop.permute.xlu1 %5617 }
 0x3b3   : > { %7801 = vmatmul.mubr.bf16.gmra.mrb[68].mxu1 %v7476_v32  ;;  %v5810_v18 = vpop.permute.xlu1 %5809 }
 0x3b5   : > { %v7482_v31 = vld [vmem:[#allocation3 + $0x108] sm:$0xff] }
 0x3b6   : > { %v14352_v13 = vpop.f32.mrb[76].mxu0 }
 0x3b7   : > { %v7198_v10 = vpop.permute.xlu0 %7197  ;;  %v14355_v5 = vpop.f32.mrb[77].mxu0 }
 0x3b8   : > { %7235 = vst.msk [vmem:[#allocation3 + $0xf8] sm:$0xff] %vm2014_vm3, %v7198_v10  ;;  %v14357_v33 = vpop.f32.mrb[78].mxu0  ;;  %v7493_v10 = vld [vmem:[#allocation3 + $0x160] sm:$0xff] }
 0x3b9   : > { %v14359_v21 = vpop.f32.mrb[79].mxu0 }
 0x3bb   : > { %v6514_v43 = vpop.permute.xlu0 %6513 }
 0x3bc   : > { %6549 = vst.msk [vmem:[#allocation3 + $0x128] sm:$0xff] %vm1577_vm1, %v6514_v43  ;;  %v7496_v43 = vld [vmem:[#allocation3 + $0x178] sm:$0xff] }
 0x3bf   : > { %v6706_v45 = vpop.permute.xlu0 %6705  ;;  %v7480_v34 = vld [vmem:[#allocation3 + $0xf8] sm:$0xff] }
 0x3c0   : > { %6741 = vst.msk [vmem:[#allocation3 + $0x128] sm:$0xff] %vm1821_vm2, %v6706_v45  ;;  %7808 = vmatprep.mubr.bf16.mxu1 %v7480_v34 }
 0x3c1   : > { %7809 = vmatmul.mubr.bf16.gmra.mrb[72].mxu1 %v7479_v26  ;;  %v5378_v23 = vpop.permute.xlu1 %5377 }
 0x3c2   : > { %5413 = vst.msk [vmem:[#allocation3 + $0x120] sm:$0xff] %vm1577_vm1, %v5378_v23 }
 0x3c3   : > { %5653 = vst.msk [vmem:[#allocation3 + $0x120] sm:$0xff] %vm1821_vm2, %v5618_v29 }
 0x3c4   : > { %5845 = vst.msk [vmem:[#allocation3 + $0x120] sm:$0xff] %vm2014_vm3, %v5810_v18 }
 0x3c5   : > { %v5620_v48 = vpop.permute.xlu1 %5619 }
 0x3c9   : > { %v7200_v9 = vpop.permute.xlu0 %7199 }
 0x3ca   : > { %7236 = vst.msk [vmem:[#allocation3 + $0x110] sm:$0xff] %vm2014_vm3, %v7200_v9  ;;  %v5812_v62 = vpop.permute.xlu1 %5811 }
 0x3cb   : > { %v7485_v41 = vld [vmem:[#allocation3 + $0x120] sm:$0xff] }
 0x3cd   : > { %v6516_v15 = vpop.permute.xlu0 %6515 }
 0x3ce   : > { %6550 = vst.msk [vmem:[#allocation3 + $0x140] sm:$0xff] %vm1577_vm1, %v6516_v15 }
 0x3d1   : > { %v6708_v2 = vpop.permute.xlu0 %6707  ;;  %v7483_v14 = vld [vmem:[#allocation3 + $0x110] sm:$0xff] }
 0x3d2   : > { %6742 = vst.msk [vmem:[#allocation3 + $0x140] sm:$0xff] %vm1821_vm2, %v6708_v2  ;;  %7816 = vmatprep.mubr.bf16.mxu1 %v7483_v14 }
 0x3d3   : > { %7817 = vmatmul.mubr.bf16.gmra.mrb[76].mxu1 %v7482_v31  ;;  %v5380_v20 = vpop.permute.xlu1 %5379  ;;  %v15618_v31 = vld [vmem:[#allocation16_spill] sm:$0xff] }
 0x3d4   : > { %5414 = vst.msk [vmem:[#allocation3 + $0x138] sm:$0xff] %vm1577_vm1, %v5380_v20 }
 0x3d5   : > { %5654 = vst.msk [vmem:[#allocation3 + $0x138] sm:$0xff] %vm1821_vm2, %v5620_v48 }
 0x3d6   : > { %5846 = vst.msk [vmem:[#allocation3 + $0x138] sm:$0xff] %vm2014_vm3, %v5812_v62 }
 0x3d7   : > { %v5622_v54 = vpop.permute.xlu1 %5621 }
 0x3db   : > { %v5814_v59 = vpop.permute.xlu1 %5813 }
 0x3dc   : > { %v7202_v3 = vpop.permute.xlu0 %7201 }
 0x3dd   : > { %7237 = vst.msk [vmem:[#allocation3 + $0x128] sm:$0xff] %vm2014_vm3, %v7202_v3  ;;  %v7488_v50 = vld [vmem:[#allocation3 + $0x138] sm:$0xff]  ;;  %v15619_v3 = vld [vmem:[#allocation27_spill] sm:$0xff] }
 0x3e0   : > { %v6518_v17 = vpop.permute.xlu0 %6517 }
 0x3e1   : > { %6551 = vst.msk [vmem:[#allocation3 + $0x158] sm:$0xff] %vm1577_vm1, %v6518_v17 }
 0x3e4   : > { %v6710_v46 = vpop.permute.xlu0 %6709  ;;  %v7486_v16 = vld [vmem:[#allocation3 + $0x128] sm:$0xff] }
 0x3e5   : > { %6743 = vst.msk [vmem:[#allocation3 + $0x158] sm:$0xff] %vm1821_vm2, %v6710_v46  ;;  %7824 = vmatprep.mubr.bf16.mxu1 %v7486_v16  ;;  %v8020_v46 = vld [vmem:[%s10080_s14 + $0x10] sm:$0xff] }
 0x3e6   : > { %7825 = vmatmul.mubr.bf16.gmra.mrb[80].mxu1 %v7485_v41  ;;  %v5382_v40 = vpop.permute.xlu1 %5381  ;;  %v14375_v0 = vpop.f32.mrb[80].mxu0  ;;  %v8022_v41 = vld [vmem:[%s10080_s14 + $0x20] sm:$0xff] }
 0x3e7   : > { %5415 = vst.msk [vmem:[#allocation3 + $0x150] sm:$0xff] %vm1577_vm1, %v5382_v40  ;;  %v14378_v24 = vpop.f32.mrb[81].mxu0 }
 0x3e8   : > { %5655 = vst.msk [vmem:[#allocation3 + $0x150] sm:$0xff] %vm1821_vm2, %v5622_v54  ;;  %v14381_v7 = vpop.f32.mrb[82].mxu0 }
 0x3e9   : > { %5847 = vst.msk [vmem:[#allocation3 + $0x150] sm:$0xff] %vm2014_vm3, %v5814_v59  ;;  %v14384_v61 = vpop.f32.mrb[83].mxu0  ;;  %v8018_v59 = vld [vmem:[%s10080_s14] sm:$0xff] }
 0x3ea   : > { %v14417_v16 = vadd.f32 %v8018_v59, %v14342_v47 }
 0x3ec   : > { %v5384_v30 = vpop.permute.xlu1 %5383  ;;  %v8267_v47 = vrot.slane %v14417_v16, 5 }
 0x3ed   : > { %5416 = vst.msk [vmem:[#allocation3 + $0x168] sm:$0xff] %vm1577_vm1, %v5384_v30 }
 0x3f0   : > { %v5624_v28 = vpop.permute.xlu1 %5623  ;;  %v7491_v11 = vld [vmem:[#allocation3 + $0x150] sm:$0xff] }
 0x3f1   : > { %v7204_v58 = vpop.permute.xlu0 %7203  ;;  %5656 = vst.msk [vmem:[#allocation3 + $0x168] sm:$0xff] %vm1821_vm2, %v5624_v28 }
 0x3f2   : > { %7238 = vst.msk [vmem:[#allocation3 + $0x140] sm:$0xff] %vm2014_vm3, %v7204_v58 }
 0x3f4   : > { %v5816_v35 = vpop.permute.xlu1 %5815 }
 0x3f5   : > { %5848 = vst.msk [vmem:[#allocation3 + $0x168] sm:$0xff] %vm2014_vm3, %v5816_v35  ;;  %v8335_v35 = vrot.slane %v14417_v16, 7 }
 0x3f7   : > { %v6520_v27 = vpop.permute.xlu0 %6519 }
 0x3f8   : > { %6552 = vst.msk [vmem:[#allocation3 + $0x170] sm:$0xff] %vm1577_vm1, %v6520_v27  ;;  %v8021_v27 = vld [vmem:[%s10080_s14 + $0x18] sm:$0xff] }
 0x3f9   : > { %v7489_v6 = vld [vmem:[#allocation3 + $0x140] sm:$0xff] }
 0x3fa   : > { %7832 = vmatprep.mubr.bf16.mxu1 %v7489_v6 }
 0x3fb   : > { %7833 = vmatmul.mubr.bf16.gmra.mrb[84].mxu1 %v7488_v50 }
 0x3fc   : > { %v7494_v29 = vld [vmem:[#allocation3 + $0x168] sm:$0xff] }
 0x3fe   : > { %v7206_v57 = vpop.permute.xlu0 %7205 }
 0x3ff   : > { %7239 = vst.msk [vmem:[#allocation3 + $0x158] sm:$0xff] %vm2014_vm3, %v7206_v57  ;;  %v9498_v60 = vpop.f32.mrb[36].mxu1  ;;  %v8135_v57 = vrot.slane %v14417_v16, 1 }
 0x400   : > { %v9499_v4 = vpop.f32.mrb[37].mxu1 }
 0x401   : > { %v9500_v25 = vadd.f32 %v9499_v4, %v9498_v60  ;;  %v9501_v63 = vpop.f32.mrb[38].mxu1  ;;  %v8169_v60 = vrot.slane %v14417_v16, 2 }
 0x402   : > { %v6712_v1 = vpop.permute.xlu0 %6711  ;;  %v9502_v37 = vpop.f32.mrb[39].mxu1 }
 0x403   : > { %6744 = vst.msk [vmem:[#allocation3 + $0x170] sm:$0xff] %vm1821_vm2, %v6712_v1  ;;  %v7739_v44 = vadd.f32 %v9500_v25, %v14337_v39  ;;  %v9503_v56 = vadd.f32 %v9502_v37, %v9501_v63  ;;  %v8301_v37 = vrot.slane %v14417_v16, 6 }
 0x405   : > { %v7900_v38 = vadd.f32 %v15616_v42, %v7739_v44  ;;  %v7742_v55 = vadd.f32 %v9503_v56, %v14337_v39 }
 0x406   : > { %v7492_v22 = vld [vmem:[#allocation3 + $0x158] sm:$0xff] }
 0x407   : > { %7840 = vmatprep.mubr.bf16.mxu1 %v7492_v22  ;;  %v7903_v32 = vadd.f32 %v15617_v8, %v7742_v55  ;;  %v14420_v40 = vadd.f32 %v8020_v46, %v7900_v38  ;;  %v8203_v22 = vrot.slane %v14417_v16, 3  ;;  %v8024_v38 = vld [vmem:[%s10080_s14 + $0x30] sm:$0xff] }
 0x408   : > { %7841 = vmatmul.mubr.bf16.gmra.mrb[88].mxu1 %v7491_v11 }
 0x409   : > { %v8336_v1 = vrot.slane %v14420_v40, 6  ;;  %v8268_v25 = vrot.slane %v14420_v40, 4  ;;  %v8170_v63 = vrot.slane %v14420_v40, 1  ;;  %v14436_v42 = vadd.f32 %v8021_v27, %v7903_v32 }
 0x40a   : > { %v8204_v8 = vrot.slane %v14420_v40, 2 }
 0x40b   : > { %v8337_v32 = vsel %vm8099_vm0, %v8336_v1, %v8335_v35 }
 0x40c   : > { %v8205_v46 = vsel %vm8099_vm0, %v8204_v8, %v8203_v22  ;;  %v8548_v22 = vrot.slane %v14436_v42, 4 }
 0x40e   : > { %v7208_v53 = vpop.permute.xlu0 %7207 }
 0x40f   : > { %7240 = vst.msk [vmem:[#allocation3 + $0x170] sm:$0xff] %vm2014_vm3, %v7208_v53  ;;  %v8302_v53 = vrot.slane %v14420_v40, 5 }
 0x416   : > { %v7495_v52 = vld [vmem:[#allocation3 + $0x170] sm:$0xff] }
 0x417   : > { %7848 = vmatprep.mubr.bf16.mxu1 %v7495_v52  ;;  %v15620_v52 = vld [vmem:[#allocation15_spill] sm:$0xff] }
 0x418   : > { %7849 = vmatmul.mubr.bf16.gmra.mrb[92].mxu1 %v7494_v29  ;;  %v14400_v18 = vpop.f32.mrb[84].mxu0 }
 0x419   : > { %9674 = vmatprep.mubr.msk.bf16.mxu1 %vm1077_vm15, %v7493_v10  ;;  %v14402_v45 = vpop.f32.mrb[85].mxu0 }
 0x41a   : > { %v14404_v34 = vpop.f32.mrb[86].mxu0 }
 0x41b   : > { %v9504_v26 = vpop.f32.mrb[40].mxu1  ;;  %v14406_v23 = vpop.f32.mrb[87].mxu0 }
 0x41c   : > { %v9505_v48 = vpop.f32.mrb[41].mxu1 }
 0x41d   : > { %v9506_v9 = vadd.f32 %v9505_v48, %v9504_v26  ;;  %v9507_v15 = vpop.f32.mrb[42].mxu1  ;;  %v8269_v48 = vsel %vm8099_vm0, %v8268_v25, %v8267_v47 }
 0x41e   : > { %v9508_v62 = vpop.f32.mrb[43].mxu1 }
 0x41f   : > { %v7747_v2 = vadd.f32 %v9506_v9, %v14337_v39  ;;  %v9509_v14 = vadd.f32 %v9508_v62, %v9507_v15  ;;  %v8171_v15 = vsel %vm8099_vm0, %v8170_v63, %v8169_v60 }
 0x420   : > { %9675 = vmatmul.mubr.msk.bf16.vlgmr.msra.gmra.mrb[96].mxu1 %vm1077_vm15, %v7496_v43  ;;  %v8136_v43 = vsel %vm8099_vm0, %v14420_v40, %v8135_v57 }
 0x421   : > { %v7908_v20 = vadd.f32 %v15618_v31, %v7747_v2  ;;  %v7750_v54 = vadd.f32 %v9509_v14, %v14337_v39  ;;  %v15621_v2 = vld [vmem:[#allocation14_spill] sm:$0xff]  ;;  %v8303_v31 = vsel %vm8099_vm0, %v8302_v53, %v8301_v37  ;;  %v8023_v37 = vld [vmem:[%s10080_s14 + $0x28] sm:$0xff] }
 0x423   : > { %v14412_v17 = vadd.f32 %v15619_v3, %v7750_v54  ;;  %v14422_v28 = vadd.f32 %v8022_v41, %v7908_v20  ;;  %v8019_v41 = vld [vmem:[%s10080_s14 + $0x8] sm:$0xff] }
 0x424   : > { %v14484_v63 = vadd.f32 %v8019_v41, %v14346_v19 }
 0x425   : > { %v8338_v55 = vrot.slane %v14422_v28, 5  ;;  %v8137_v11 = vrot.slane %v14422_v28, 7  ;;  %v8206_v26 = vrot.slane %v14422_v28, 1  ;;  %v8270_v9 = vrot.slane %v14422_v28, 3 }
 0x426   : > { %v8304_v20 = vrot.slane %v14422_v28, 4  ;;  %v8172_v59 = vsel %vm8102_vm4, %v14422_v28, %v8171_v15  ;;  %v14494_v53 = vadd.f32 %v8023_v37, %v14412_v17  ;;  %v8547_v19 = vrot.slane %v14484_v63, 5 }
 0x427   : > { %v8339_v54 = vsel %vm8102_vm4, %v8338_v55, %v8337_v32  ;;  %v8138_v3 = vsel %vm8102_vm4, %v8137_v11, %v8136_v43  ;;  %v8207_v27 = vsel %vm8102_vm4, %v8206_v26, %v8205_v46  ;;  %v8415_v55 = vrot.slane %v14484_v63, 1 }
 0x428   : > { %v8305_v25 = vsel %vm8102_vm4, %v8304_v20, %v8303_v31  ;;  %v8450_v11 = vrot.slane %v14436_v42, 1  ;;  %v8449_v43 = vrot.slane %v14484_v63, 2  ;;  %v8549_v15 = vsel %vm8099_vm0, %v8548_v22, %v8547_v19 }
 0x429   : > { %v8416_v17 = vsel %vm8099_vm0, %v14436_v42, %v8415_v55  ;;  %v8484_v46 = vrot.slane %v14436_v42, 2  ;;  %v8615_v55 = vrot.slane %v14484_v63, 7 }
 0x42d   : > { %v9510_v30 = vpop.f32.mrb[44].mxu1 }
 0x42e   : > { %v9511_v58 = vpop.f32.mrb[45].mxu1 }
 0x42f   : > { %v9512_v6 = vadd.f32 %v9511_v58, %v9510_v30  ;;  %v9513_v50 = vpop.f32.mrb[46].mxu1 }
 0x430   : > { %v9514_v4 = vpop.f32.mrb[47].mxu1 }
 0x431   : > { %v7755_v44 = vadd.f32 %v9512_v6, %v14337_v39  ;;  %v9515_v56 = vadd.f32 %v9514_v4, %v9513_v50  ;;  %v8271_v6 = vsel %vm8102_vm4, %v8270_v9, %v8269_v48  ;;  %v8417_v9 = vrot.slane %v14494_v53, 7 }
 0x433   : > { %v7916_v29 = vadd.f32 %v15620_v52, %v7755_v44  ;;  %v7758_v10 = vadd.f32 %v9515_v56, %v14337_v39  ;;  %v8582_v52 = vrot.slane %v14436_v42, 5  ;;  %v8418_v37 = vsel %vm8102_vm4, %v8417_v9, %v8416_v17 }
 0x435   : > { %v14451_v62 = vadd.f32 %v8024_v38, %v7916_v29  ;;  %v7919_v14 = vadd.f32 %v15621_v2, %v7758_v10  ;;  %v8025_v38 = vld [vmem:[%s10080_s14 + $0x38] sm:$0xff]  ;;  %v8581_v2 = vrot.slane %v14484_v63, 6 }
 0x437   : > { %v8340_v30 = vrot.slane %v14451_v62, 4  ;;  %v8139_v58 = vrot.slane %v14451_v62, 6  ;;  %v8272_v35 = vrot.slane %v14451_v62, 2  ;;  %v8173_v50 = vrot.slane %v14451_v62, 7 }
 0x438   : > { %v8306_v57 = vrot.slane %v14451_v62, 3  ;;  %v14471_v47 = vsel %vm8105_vm5, %v14451_v62, %v8207_v27  ;;  %v14511_v32 = vadd.f32 %v8025_v38, %v7919_v14  ;;  %v8583_v41 = vsel %vm8099_vm0, %v8582_v52, %v8581_v2 }
 0x439   : > { %v14474_v60 = vsel %vm8105_vm5, %v8340_v30, %v8339_v54  ;;  %v14477_v4 = vsel %vm8105_vm5, %v8139_v58, %v8138_v3  ;;  %v14480_v1 = vsel %vm8105_vm5, %v8272_v35, %v8271_v6  ;;  %v14488_v44 = vsel %vm8105_vm5, %v8173_v50, %v8172_v59 }
 0x43a   : > { %v14491_v56 = vsel %vm8105_vm5, %v8306_v57, %v8305_v25  ;;  %v8550_v3 = vrot.slane %v14494_v53, 3  ;;  %v8451_v59 = vsel %vm8099_vm0, %v8450_v11, %v8449_v43  ;;  %v8584_v30 = vrot.slane %v14494_v53, 4  ;;  %v8026_v25 = vld [vmem:[%s10080_s14 + $0x40] sm:$0xff]  ;;  %v8027_v43 = vld [vmem:[%s10080_s14 + $0x48] sm:$0xff] }
 0x43b   : > { %v8486_v58 = vrot.slane %v14494_v53, 1  ;;  %v8616_v35 = vrot.slane %v14436_v42, 6  ;;  %v8483_v50 = vrot.slane %v14484_v63, 3  ;;  %v8618_v57 = vrot.slane %v14494_v53, 5 }
 0x43c   : > { %v8419_v22 = vrot.slane %v14511_v32, 6  ;;  %v8452_v38 = vsel %vm8102_vm4, %v14494_v53, %v8451_v59  ;;  %v8551_v52 = vsel %vm8102_vm4, %v8550_v3, %v8549_v15  ;;  %v8585_v17 = vsel %vm8102_vm4, %v8584_v30, %v8583_v41 }
 0x43d   : > { %v8617_v2 = vsel %vm8099_vm0, %v8616_v35, %v8615_v55  ;;  %v8586_v3 = vrot.slane %v14511_v32, 3 }
 0x43e   : > { %v14500_v8 = vpop.f32.mrb[88].mxu0  ;;  %v9516_v10 = vpop.f32.mrb[48].mxu1  ;;  %v8619_v59 = vsel %vm8102_vm4, %v8618_v57, %v8617_v2  ;;  %v8420_v15 = vsel %vm8105_vm5, %v8419_v22, %v8418_v37 }
 0x43f   : > { %v14504_v29 = vpop.f32.mrb[89].mxu0  ;;  %v9517_v48 = vpop.f32.mrb[49].mxu1 }
 0x440   : > { %v14509_v26 = vpop.f32.mrb[90].mxu0  ;;  %v9518_v20 = vadd.f32 %v9517_v48, %v9516_v10  ;;  %v9519_v54 = vpop.f32.mrb[50].mxu1  ;;  %v8485_v10 = vsel %vm8099_vm0, %v8484_v46, %v8483_v50  ;;  %v8552_v48 = vrot.slane %v14511_v32, 2 }
 0x441   : > { %v14516_v31 = vpop.f32.mrb[91].mxu0  ;;  %v9520_v14 = vpop.f32.mrb[51].mxu1  ;;  %v8487_v9 = vsel %vm8102_vm4, %v8486_v58, %v8485_v10 }
 0x442   : > { %v7763_v27 = vadd.f32 %v9518_v20, %v14337_v39  ;;  %v9521_v6 = vadd.f32 %v9520_v14, %v9519_v54  ;;  %v8488_v46 = vsel %vm8105_vm5, %v14511_v32, %v8487_v9  ;;  %v8620_v14 = vrot.slane %v14511_v32, 4 }
 0x443   : > { %v8553_v50 = vsel %vm8105_vm5, %v8552_v48, %v8551_v52 }
 0x444   : > { %v7924_v11 = vadd.f32 %v14183_v36, %v7763_v27  ;;  %v7766_v19 = vadd.f32 %v9521_v6, %v14337_v39  ;;  %v8453_v36 = vrot.slane %v14511_v32, 7 }
 0x446   : > { %v14543_v20 = vadd.f32 %v8026_v25, %v7924_v11  ;;  %v7927_v54 = vadd.f32 %v14229_v12, %v7766_v19 }
 0x448   : > { %v14553_v41 = vadd.f32 %v8027_v43, %v7927_v54  ;;  %v8342_v30 = vrot.slane %v14543_v20, 3  ;;  %v8141_v58 = vrot.slane %v14543_v20, 5  ;;  %v8274_v12 = vrot.slane %v14543_v20, 1 }
 0x449   : > { %v8175_v35 = vrot.slane %v14543_v20, 6  ;;  %v8308_v27 = vrot.slane %v14543_v20, 2  ;;  %v8209_v6 = vrot.slane %v14543_v20, 7  ;;  %v8621_v54 = vsel %vm8105_vm5, %v8620_v14, %v8619_v59 }
 0x44a   : > { %v8343_v57 = vsel %vm8108_vm6, %v8342_v30, %v14474_v60  ;;  %v8142_v25 = vsel %vm8108_vm6, %v8141_v58, %v14477_v4  ;;  %v8275_v37 = vsel %vm8108_vm6, %v8274_v12, %v14480_v1  ;;  %v8421_v22 = vrot.slane %v14553_v41, 5 }
 0x44b   : > { %v8176_v55 = vsel %vm8108_vm6, %v8175_v35, %v14488_v44  ;;  %v8309_v11 = vsel %vm8108_vm6, %v8308_v27, %v14491_v56  ;;  %v8210_v19 = vsel %vm8108_vm6, %v8209_v6, %v14471_v47  ;;  %v8554_v52 = vrot.slane %v14553_v41, 1 }
 0x44c   : > { %v8422_v60 = vsel %vm8108_vm6, %v8421_v22, %v8420_v15  ;;  %v8455_v4 = vrot.slane %v14553_v41, 6  ;;  %v8588_v10 = vrot.slane %v14553_v41, 2  ;;  %v8489_v1 = vrot.slane %v14553_v41, 7 }
 0x44d   : > { %v8555_v43 = vsel %vm8108_vm6, %v8554_v52, %v8553_v50  ;;  %v8454_v44 = vsel %vm8105_vm5, %v8453_v36, %v8452_v38  ;;  %v8587_v56 = vsel %vm8105_vm5, %v8586_v3, %v8585_v17  ;;  %v8622_v48 = vrot.slane %v14553_v41, 3  ;;  %v8028_v3 = vld [vmem:[%s10080_s14 + $0x50] sm:$0xff]  ;;  %v8029_v50 = vld [vmem:[%s10080_s14 + $0x58] sm:$0xff] }
 0x44e   : > { %v8456_v47 = vsel %vm8108_vm6, %v8455_v4, %v8454_v44  ;;  %v8589_v9 = vsel %vm8108_vm6, %v8588_v10, %v8587_v56  ;;  %v8490_v2 = vsel %vm8108_vm6, %v8489_v1, %v8488_v46 }
 0x44f   : > { %v8623_v15 = vsel %vm8108_vm6, %v8622_v48, %v8621_v54 }
 0x454   : > { %v9522_v30 = vpop.f32.mrb[52].mxu1 }
 0x455   : > { %v9523_v58 = vpop.f32.mrb[53].mxu1 }
 0x456   : > { %v9524_v12 = vadd.f32 %v9523_v58, %v9522_v30  ;;  %v9525_v35 = vpop.f32.mrb[54].mxu1 }
 0x457   : > { %v9526_v38 = vpop.f32.mrb[55].mxu1 }
 0x458   : > { %v7771_v17 = vadd.f32 %v9524_v12, %v14337_v39  ;;  %v9527_v36 = vadd.f32 %v9526_v38, %v9525_v35 }
 0x45a   : > { %v7932_v27 = vadd.f32 %v14167_v49, %v7771_v17  ;;  %v7774_v6 = vadd.f32 %v9527_v36, %v14337_v39 }
 0x45c   : > { %v14594_v46 = vadd.f32 %v8028_v3, %v7932_v27  ;;  %v7935_v59 = vadd.f32 %v14210_v51, %v7774_v6 }
 0x45e   : > { %v14597_v14 = vadd.f32 %v8029_v50, %v7935_v59  ;;  %v8344_v22 = vrot.slane %v14594_v46, 2  ;;  %v8143_v52 = vrot.slane %v14594_v46, 4  ;;  %v14603_v4 = vsel %vm8111_vm7, %v14594_v46, %v8275_v37  ;;  %v8030_v59 = vld [vmem:[%s10080_s14 + $0x60] sm:$0xff] }
 0x45f   : > { %v8177_v49 = vrot.slane %v14594_v46, 5  ;;  %v8310_v10 = vrot.slane %v14594_v46, 1  ;;  %v8211_v1 = vrot.slane %v14594_v46, 6  ;;  %v8238_v50 = vrot.slane %v14420_v40, 3 }
 0x460   : > { %v8345_v44 = vsel %vm8111_vm7, %v8344_v22, %v8343_v57  ;;  %v8144_v51 = vsel %vm8111_vm7, %v8143_v52, %v8142_v25  ;;  %v8423_v56 = vrot.slane %v14597_v14, 4  ;;  %v14613_v48 = vsel %vm8111_vm7, %v14597_v14, %v8555_v43 }
 0x461   : > { %v8178_v54 = vsel %vm8111_vm7, %v8177_v49, %v8176_v55  ;;  %v8311_v37 = vsel %vm8111_vm7, %v8310_v10, %v8309_v11  ;;  %v8212_v30 = vsel %vm8111_vm7, %v8211_v1, %v8210_v19  ;;  %v8457_v58 = vrot.slane %v14597_v14, 5 }
 0x462   : > { %v8424_v12 = vsel %vm8111_vm7, %v8423_v56, %v8422_v60  ;;  %v8590_v57 = vrot.slane %v14597_v14, 1  ;;  %v8491_v25 = vrot.slane %v14597_v14, 6  ;;  %v8624_v35 = vrot.slane %v14597_v14, 2 }
 0x463   : > { %v14624_v43 = vsel %vm8111_vm7, %v8457_v58, %v8456_v47  ;;  %v8098_v47 = vrot.slane %v14420_v40, 7  ;;  %v8237_v22 = vrot.slane %v14417_v16, 4  ;;  %v8517_v52 = vrot.slane %v14484_v63, 4 }
 0x464   : > { %v8591_v55 = vsel %vm8111_vm7, %v8590_v57, %v8589_v9  ;;  %v14628_v11 = vsel %vm8111_vm7, %v8491_v25, %v8490_v2  ;;  %v14631_v19 = vsel %vm8111_vm7, %v8624_v35, %v8623_v15  ;;  %v8031_v15 = vld [vmem:[%s10080_s14 + $0x68] sm:$0xff]  ;;  %v8101_v58 = vrot.slane %v14422_v28, 6 }
 0x465   : > { %v14647_v40 = vsel %vm8099_vm0, %v8098_v47, %v14417_v16  ;;  %v8240_v57 = vrot.slane %v14422_v28, 2  ;;  %v8385_v25 = vrot.slane %v14436_v42, 7 }
 0x467   : > { %v8386_v28 = vsel %vm8099_vm0, %v8385_v25, %v14484_v63  ;;  %v8522_v25 = vrot.slane %v14511_v32, 1 }
 0x46e   : > { %v9528_v38 = vpop.f32.mrb[56].mxu1 }
 0x46f   : > { %v9529_v60 = vpop.f32.mrb[57].mxu1 }
 0x470   : > { %v9530_v17 = vadd.f32 %v9529_v60, %v9528_v38  ;;  %v9531_v36 = vpop.f32.mrb[58].mxu1 }
 0x471   : > { %v9532_v3 = vpop.f32.mrb[59].mxu1 }
 0x472   : > { %v7779_v27 = vadd.f32 %v9530_v17, %v14337_v39  ;;  %v9533_v6 = vadd.f32 %v9532_v3, %v9531_v36 }
 0x474   : > { %v7940_v9 = vadd.f32 %v14355_v5, %v7779_v27  ;;  %v7782_v2 = vadd.f32 %v9533_v6, %v14337_v39  ;;  %v14650_v5 = vsel %vm8099_vm0, %v8238_v50, %v8237_v22  ;;  %v8032_v22 = vld [vmem:[%s10080_s14 + $0x70] sm:$0xff] }
 0x476   : > { %v14642_v49 = vadd.f32 %v8030_v59, %v7940_v9  ;;  %v7943_v10 = vadd.f32 %v14359_v21, %v7782_v2  ;;  %v9534_v1 = vpop.f32.mrb[60].mxu1 }
 0x477   : > { %v9535_v56 = vpop.f32.mrb[61].mxu1 }
 0x478   : > { %v14656_v38 = vadd.f32 %v8031_v15, %v7943_v10  ;;  %v9536_v21 = vadd.f32 %v9535_v56, %v9534_v1  ;;  %v9537_v60 = vpop.f32.mrb[62].mxu1  ;;  %v8346_v16 = vrot.slane %v14642_v49, 1  ;;  %v8145_v17 = vrot.slane %v14642_v49, 3 }
 0x479   : > { %v9538_v36 = vpop.f32.mrb[63].mxu1  ;;  %v8277_v3 = vrot.slane %v14642_v49, 7  ;;  %v8179_v27 = vrot.slane %v14642_v49, 4  ;;  %v8312_v6 = vsel %vm8114_vm8, %v14642_v49, %v8311_v37  ;;  %v8213_v47 = vrot.slane %v14642_v49, 5 }
 0x47a   : > { %v7787_v50 = vadd.f32 %v9536_v21, %v14337_v39  ;;  %v9539_v59 = vadd.f32 %v9538_v36, %v9537_v60  ;;  %v8347_v9 = vsel %vm8114_vm8, %v8346_v16, %v8345_v44  ;;  %v8146_v2 = vsel %vm8114_vm8, %v8145_v17, %v8144_v51  ;;  %v8033_v60 = vld [vmem:[%s10080_s14 + $0x78] sm:$0xff] }
 0x47b   : > { %v8278_v15 = vsel %vm8114_vm8, %v8277_v3, %v14603_v4  ;;  %v8180_v10 = vsel %vm8114_vm8, %v8179_v27, %v8178_v54  ;;  %v8214_v1 = vsel %vm8114_vm8, %v8213_v47, %v8212_v30  ;;  %v8425_v56 = vrot.slane %v14656_v38, 3 }
 0x47c   : > { %v7948_v37 = vadd.f32 %v14352_v13, %v7787_v50  ;;  %v7790_v35 = vadd.f32 %v9539_v59, %v14337_v39  ;;  %v8557_v21 = vrot.slane %v14656_v38, 7  ;;  %v8459_v44 = vrot.slane %v14656_v38, 4 }
 0x47d   : > { %v8426_v51 = vsel %vm8114_vm8, %v8425_v56, %v8424_v12  ;;  %v8592_v4 = vsel %vm8114_vm8, %v14656_v38, %v8591_v55  ;;  %v8493_v54 = vrot.slane %v14656_v38, 5  ;;  %v8626_v30 = vrot.slane %v14656_v38, 1 }
 0x47e   : > { %v14684_v16 = vadd.f32 %v8032_v22, %v7948_v37  ;;  %v7951_v13 = vadd.f32 %v14357_v33, %v7790_v35  ;;  %v9540_v17 = vpop.f32.mrb[64].mxu1  ;;  %v8558_v36 = vsel %vm8114_vm8, %v8557_v21, %v14613_v48  ;;  %v8460_v3 = vsel %vm8114_vm8, %v8459_v44, %v14624_v43 }
 0x47f   : > { %v9541_v27 = vpop.f32.mrb[65].mxu1  ;;  %v8494_v12 = vsel %vm8114_vm8, %v8493_v54, %v14628_v11  ;;  %v8627_v55 = vsel %vm8114_vm8, %v8626_v30, %v14631_v19  ;;  %v8104_v47 = vrot.slane %v14451_v62, 5  ;;  %v8242_v50 = vrot.slane %v14451_v62, 1 }
 0x480   : > { %v14697_v59 = vadd.f32 %v8033_v60, %v7951_v13  ;;  %v8348_v33 = vsel %vm8117_vm9, %v14684_v16, %v8347_v9  ;;  %v9542_v48 = vadd.f32 %v9541_v27, %v9540_v17  ;;  %v9543_v35 = vpop.f32.mrb[66].mxu1  ;;  %v8147_v43 = vrot.slane %v14684_v16, 2 }
 0x481   : > { %8363 = vrot.lane.b32.xlu0 %v8348_v33, %s9962_s27  ;;  %v9544_v22 = vpop.f32.mrb[67].mxu1  ;;  %v8279_v11 = vrot.slane %v14684_v16, 6  ;;  %v8181_v19 = vrot.slane %v14684_v16, 3  ;;  %v8313_v56 = vrot.slane %v14684_v16, 7  ;;  %v8215_v62 = vrot.slane %v14684_v16, 4 }
 0x482   : > { %v7795_v37 = vadd.f32 %v9542_v48, %v14337_v39  ;;  %v9545_v21 = vadd.f32 %v9544_v22, %v9543_v35  ;;  %v8148_v9 = vsel %vm8117_vm9, %v8147_v43, %v8146_v2  ;;  %v8427_v44 = vrot.slane %v14697_v59, 2 }
 0x483   : > { %v8280_v60 = vsel %vm8117_vm9, %v8279_v11, %v8278_v15  ;;  %v8182_v54 = vsel %vm8117_vm9, %v8181_v19, %v8180_v10  ;;  %v14713_v30 = vsel %vm8117_vm9, %v8313_v56, %v8312_v6  ;;  %v14716_v13 = vsel %vm8117_vm9, %v8215_v62, %v8214_v1  ;;  %v8035_v56 = vld [vmem:[%s10080_s14 + $0x88] sm:$0xff] }
 0x484   : > { %v7956_v17 = vadd.f32 %v14378_v24, %v7795_v37  ;;  %v7798_v27 = vadd.f32 %v9545_v21, %v14337_v39  ;;  %v14721_v33 = vsel %vm8117_vm9, %v8427_v44, %v8426_v51  ;;  %v8559_v2 = vrot.slane %v14697_v59, 6  ;;  %v8034_v24 = vld [vmem:[%s10080_s14 + $0x80] sm:$0xff] }
 0x485   : > { %8163 = vrot.lane.b32.xlu0 %v8148_v9, %s9963_s8  ;;  %v8461_v15 = vrot.slane %v14697_v59, 3  ;;  %v8593_v6 = vrot.slane %v14697_v59, 7  ;;  %v8495_v10 = vrot.slane %v14697_v59, 4  ;;  %v14730_v1 = vsel %vm8117_vm9, %v14697_v59, %v8627_v55 }
 0x486   : > { %v7959_v48 = vadd.f32 %v14384_v61, %v7798_v27  ;;  %v9546_v51 = vpop.f32.mrb[68].mxu1  ;;  %v14735_v35 = vsel %vm8117_vm9, %v8559_v2, %v8558_v36  ;;  %v8107_v43 = vrot.slane %v14543_v20, 4  ;;  %v8103_v22 = vsel %vm8102_vm4, %v8101_v58, %v14647_v40 }
 0x487   : > { %v9547_v11 = vpop.f32.mrb[69].mxu1  ;;  %v14743_v19 = vsel %vm8117_vm9, %v8461_v15, %v8460_v3  ;;  %v14746_v55 = vsel %vm8117_vm9, %v8593_v6, %v8592_v4  ;;  %v14749_v61 = vsel %vm8117_vm9, %v8495_v10, %v8494_v12  ;;  %v8106_v36 = vsel %vm8105_vm5, %v8104_v47, %v8103_v22 }
 0x488   : > { %v9548_v62 = vadd.f32 %v9547_v11, %v9546_v51  ;;  %v9549_v37 = vpop.f32.mrb[70].mxu1  ;;  %v8241_v40 = vsel %vm8102_vm4, %v8240_v57, %v14650_v5  ;;  %v8387_v58 = vrot.slane %v14494_v53, 6  ;;  %v8520_v3 = vrot.slane %v14494_v53, 2 }
 0x489   : > { %v14759_v4 = vadd.f32 %v8034_v24, %v7956_v17  ;;  %8295 = vrot.lane.b32.xlu0 %v8280_v60, %s9963_s8  ;;  %v9550_v12 = vpop.f32.mrb[71].mxu1  ;;  %v8109_v47 = vsel %vm8108_vm6, %v8107_v43, %v8106_v36  ;;  %v8243_v21 = vsel %vm8105_vm5, %v8242_v50, %v8241_v40  ;;  %v15622_v9 = vrot.slane %v14436_v42, 3  ;;  %v8036_v50 = vld [vmem:[%s10080_s14 + $0x90] sm:$0xff]  ;;  %v8037_v42 = vld [vmem:[%s10080_s14 + $0x98] sm:$0xff] }
 0x48a   : > { %v7803_v5 = vadd.f32 %v9548_v62, %v14337_v39  ;;  %v9551_v57 = vadd.f32 %v9550_v12, %v9549_v37  ;;  %v8244_v53 = vsel %vm8108_vm6, %v14543_v20, %v8243_v21  ;;  %v14776_v60 = vadd.f32 %v8035_v56, %v7959_v48 }
 0x48b   : > { %v8519_v44 = vsel %vm8099_vm0, %v15622_v9, %v8517_v52  ;;  %v8389_v17 = vrot.slane %v14511_v32, 5  ;;  %v8391_v27 = vrot.slane %v14553_v41, 4  ;;  %v8388_v20 = vsel %vm8102_vm4, %v8387_v58, %v8386_v28 }
 0x48c   : > { %v7964_v2 = vadd.f32 %v14375_v0, %v7803_v5  ;;  %v7806_v15 = vadd.f32 %v9551_v57, %v14337_v39  ;;  %v8521_v63 = vsel %vm8102_vm4, %v8520_v3, %v8519_v44  ;;  %v8315_v52 = vrot.slane %v14759_v4, 6 }
 0x48d   : > { %8197 = vrot.lane.b32.xlu0 %v8182_v54, %s9961_s21  ;;  %v8149_v6 = vrot.slane %v14759_v4, 1  ;;  %v8390_v10 = vsel %vm8105_vm5, %v8389_v17, %v8388_v20  ;;  %v8523_v24 = vsel %vm8105_vm5, %v8522_v25, %v8521_v63  ;;  %v8281_v54 = vrot.slane %v14759_v4, 5 }
 0x48e   : > { %v14792_v32 = vadd.f32 %v8036_v50, %v7964_v2  ;;  %v7967_v0 = vadd.f32 %v14381_v7, %v7806_v15  ;;  %v8392_v39 = vsel %vm8108_vm6, %v8391_v27, %v8390_v10  ;;  %v8524_v48 = vsel %vm8108_vm6, %v14553_v41, %v8523_v24 }
 0x48f   : > { %v8183_v51 = vrot.slane %v14759_v4, 2  ;;  %v8595_v43 = vrot.slane %v14776_v60, 6  ;;  %v8217_v22 = vrot.slane %v14759_v4, 3  ;;  %v8349_v37 = vrot.slane %v14759_v4, 7 }
 0x490   : > { %v14802_v11 = vadd.f32 %v8037_v42, %v7967_v0  ;;  %v8316_v36 = vrot.slane %v14792_v32, 5  ;;  %v14807_v7 = vsel %vm8099_vm0, %v14792_v32, %v8149_v6  ;;  %v8282_v56 = vrot.slane %v14792_v32, 4 }
 0x491   : > { %8329 = vrot.lane.b32.xlu0 %v14713_v30, %s9961_s21  ;;  %v8184_v41 = vrot.slane %v14792_v32, 1  ;;  %v8218_v62 = vrot.slane %v14792_v32, 2  ;;  %v8350_v40 = vrot.slane %v14792_v32, 6  ;;  %v8110_v21 = vrot.slane %v14594_v46, 3 }
 0x492   : > { %v14817_v58 = vsel %vm8099_vm0, %v8316_v36, %v8315_v52  ;;  %v14820_v3 = vsel %vm8099_vm0, %v8282_v56, %v8281_v54  ;;  %v8596_v12 = vrot.slane %v14802_v11, 5  ;;  %v8245_v57 = vrot.slane %v14594_v46, 7 }
 0x493   : > { %v14825_v30 = vsel %vm8099_vm0, %v8184_v41, %v8183_v51  ;;  %v14828_v28 = vsel %vm8099_vm0, %v8218_v62, %v8217_v22  ;;  %v14831_v5 = vsel %vm8099_vm0, %v8350_v40, %v8349_v37  ;;  %v8113_v44 = vrot.slane %v14642_v49, 2  ;;  %v14883_v62 = vld [vmem:[%s15292_s4] ss:$0 sm:$0xff] }
 0x494   : > { %v14835_v9 = vsel %vm8099_vm0, %v8596_v12, %v8595_v43  ;;  %v8116_v50 = vrot.slane %v14684_v16, 1  ;;  %v8112_v17 = vsel %vm8111_vm7, %v8110_v21, %v8109_v47  ;;  %v8429_v27 = vrot.slane %v14776_v60, 1  ;;  %v8038_v21 = vld [vmem:[%s10080_s14 + $0xa0] sm:$0xff] }
 0x495   : > { %8231 = vrot.lane.b32.xlu0 %v14716_v13, %s9962_s27  ;;  %v8246_v25 = vsel %vm8111_vm7, %v8245_v57, %v8244_v53  ;;  %v8393_v2 = vrot.slane %v14597_v14, 3  ;;  %v8525_v46 = vrot.slane %v14597_v14, 7  ;;  %v8115_v15 = vsel %vm8114_vm8, %v8113_v44, %v8112_v17 }
 0x496   : > { %v14848_v20 = vsel %vm8117_vm9, %v8116_v50, %v8115_v15  ;;  %v14852_v63 = vsel %vm8099_vm0, %v14802_v11, %v8429_v27  ;;  %v8247_v42 = vrot.slane %v14642_v49, 6  ;;  %v8249_v53 = vrot.slane %v14684_v16, 5  ;;  %v8039_v50 = vld [vmem:[%s10080_s14 + $0xa8] sm:$0xff] }
 0x497   : > { %v8394_v47 = vsel %vm8111_vm7, %v8393_v2, %v8392_v39  ;;  %v8526_v13 = vsel %vm8111_vm7, %v8525_v46, %v8524_v48  ;;  %v8561_v52 = vrot.slane %v14776_v60, 5  ;;  %v8562_v14 = vrot.slane %v14802_v11, 4  ;;  %v9552_v39 = vpop.f32.mrb[72].mxu1 }
 0x498   : > { %v8248_v6 = vsel %vm8114_vm8, %v8247_v42, %v8246_v25  ;;  %v8463_v0 = vrot.slane %v14776_v60, 2  ;;  %v8464_v49 = vrot.slane %v14802_v11, 1  ;;  %v9553_v48 = vpop.f32.mrb[73].mxu1  ;;  %v8498_v54 = vrot.slane %v14802_v11, 2 }
 0x499   : > { %8443 = vrot.lane.b32.xlu0 %v14721_v33, %s9963_s8  ;;  %v8563_v10 = vsel %vm8099_vm0, %v8562_v14, %v8561_v52  ;;  %v14865_v24 = vsel %vm8117_vm9, %v8249_v53, %v8248_v6  ;;  %v8497_v33 = vrot.slane %v14776_v60, 3  ;;  %v8395_v51 = vrot.slane %v14656_v38, 2  ;;  %v9555_v22 = vpop.f32.mrb[74].mxu1 }
 0x49a   : > { %v8465_v16 = vsel %vm8099_vm0, %v8464_v49, %v8463_v0  ;;  %v9554_v43 = vadd.f32 %v9553_v48, %v9552_v39  ;;  %v8527_v36 = vrot.slane %v14656_v38, 6  ;;  %v8630_v38 = vrot.slane %v14802_v11, 6 }
 0x49b   : > { %v8499_v56 = vsel %vm8099_vm0, %v8498_v54, %v8497_v33  ;;  %v8396_v41 = vsel %vm8114_vm8, %v8395_v51, %v8394_v47  ;;  %v8397_v2 = vrot.slane %v14697_v59, 1  ;;  %v8529_v46 = vrot.slane %v14697_v59, 5 }
 0x49c   : > { %v7811_v37 = vadd.f32 %v14883_v62, %v9554_v43  ;;  %v8528_v12 = vsel %vm8114_vm8, %v8527_v36, %v8526_v13 }
 0x49d   : > { %8575 = vrot.lane.b32.xlu0 %v14735_v35, %s9963_s8  ;;  %v9556_v35 = vpop.f32.mrb[75].mxu1  ;;  %v14914_v59 = vsel %vm8117_vm9, %v8397_v2, %v8396_v41  ;;  %v14941_v48 = vsel %vm8117_vm9, %v8529_v46, %v8528_v12  ;;  %v8041_v41 = vld [vmem:[%s10080_s14 + $0xb8] sm:$0xff] }
 0x49e   : > { %v9557_v40 = vadd.f32 %v9556_v35, %v9555_v22  ;;  %v7972_v57 = vadd.f32 %v14402_v45, %v7811_v37  ;;  %v8040_v35 = vld [vmem:[%s10080_s14 + $0xb0] sm:$0xff] }
 0x4a0   : > { %v7814_v44 = vadd.f32 %v14883_v62, %v9557_v40  ;;  %v14896_v27 = vadd.f32 %v8038_v21, %v7972_v57 }
 0x4a1   : > { %8477 = vrot.lane.b32.xlu0 %v14743_v19, %s9961_s21  ;;  %v8629_v19 = vrot.slane %v14776_v60, 7 }
 0x4a2   : > { %v7975_v25 = vadd.f32 %v14406_v23, %v7814_v44  ;;  %v8318_v45 = vrot.slane %v14896_v27, 4  ;;  %v8284_v47 = vrot.slane %v14896_v27, 3  ;;  %v8186_v13 = vsel %vm8102_vm4, %v14896_v27, %v14825_v30 }
 0x4a3   : > { %v8631_v17 = vsel %vm8099_vm0, %v8630_v38, %v8629_v19  ;;  %v8220_v23 = vrot.slane %v14896_v27, 1  ;;  %v8352_v42 = vrot.slane %v14896_v27, 5 }
 0x4a4   : > { %v14901_v15 = vadd.f32 %v8039_v50, %v7975_v25  ;;  %v8285_v52 = vsel %vm8102_vm4, %v8284_v47, %v14820_v3 }
 0x4a5   : > { %8609 = vrot.lane.b32.xlu0 %v14746_v55, %s9961_s21  ;;  %v8151_v55 = vrot.slane %v14896_v27, 7  ;;  %v8221_v30 = vsel %vm8102_vm4, %v8220_v23, %v14828_v28  ;;  %v8353_v6 = vsel %vm8102_vm4, %v8352_v42, %v14831_v5 }
 0x4a6   : > { %v8598_v14 = vrot.slane %v14901_v15, 4  ;;  %v8431_v0 = vrot.slane %v14901_v15, 7  ;;  %v8564_v49 = vrot.slane %v14901_v15, 3  ;;  %v8500_v3 = vrot.slane %v14901_v15, 1  ;;  %v9558_v33 = vpop.f32.mrb[76].mxu1 }
 0x4a7   : > { %v8152_v53 = vsel %vm8102_vm4, %v8151_v55, %v14807_v7  ;;  %v8632_v28 = vrot.slane %v14901_v15, 5  ;;  %v9559_v54 = vpop.f32.mrb[77].mxu1 }
 0x4a8   : > { %v8599_v7 = vsel %vm8102_vm4, %v8598_v14, %v14835_v9  ;;  %v8432_v5 = vsel %vm8102_vm4, %v8431_v0, %v14852_v63  ;;  %v8565_v39 = vsel %vm8102_vm4, %v8564_v49, %v8563_v10  ;;  %v9561_v51 = vpop.f32.mrb[78].mxu1  ;;  %v8119_v14 = vrot.slane %v14792_v32, 7 }
 0x4a9   : > { %8511 = vrot.lane.b32.xlu0 %v14749_v61, %s9962_s27  ;;  %v8319_v61 = vsel %vm8102_vm4, %v8318_v45, %v14817_v58  ;;  %v8466_v58 = vsel %vm8102_vm4, %v14901_v15, %v8465_v16  ;;  %v8633_v9 = vsel %vm8102_vm4, %v8632_v28, %v8631_v17  ;;  %v9560_v16 = vadd.f32 %v9559_v54, %v9558_v33  ;;  %v9562_v43 = vpop.f32.mrb[79].mxu1 }
 0x4aa   : > { %v9563_v36 = vadd.f32 %v9562_v43, %v9561_v51  ;;  %v8531_v0 = vrot.slane %v14776_v60, 4  ;;  %v8532_v28 = vrot.slane %v14802_v11, 3  ;;  %v8042_v51 = vld [vmem:[%s10080_s14 + $0xc0] sm:$0xff] }
 0x4ab   : > { %v7819_v22 = vadd.f32 %v14883_v62, %v9560_v16 }
 0x4ac   : > { %v7822_v10 = vadd.f32 %v14883_v62, %v9563_v36 }
 0x4ad   : > { %8643 = vrot.lane.b32.xlu0 %v14730_v1, %s9962_s27  ;;  %v8501_v1 = vsel %vm8102_vm4, %v8500_v3, %v8499_v56  ;;  %v7980_v63 = vadd.f32 %v14400_v18, %v7819_v22  ;;  %v8043_v22 = vld [vmem:[%s10080_s14 + $0xc8] sm:$0xff] }
 0x4ae   : > { %v7983_v56 = vadd.f32 %v14404_v34, %v7822_v10 }
 0x4af   : > { %v14950_v37 = vadd.f32 %v8040_v35, %v7980_v63 }
 0x4b0   : > { %v14953_v40 = vadd.f32 %v8041_v41, %v7983_v56 }
 0x4b1   : > { %v8320_v12 = vrot.slane %v14950_v37, 3  ;;  %v8153_v21 = vrot.slane %v14950_v37, 6  ;;  %v8286_v19 = vrot.slane %v14950_v37, 2  ;;  %v8187_v38 = vrot.slane %v14950_v37, 7 }
 0x4b2   : > { %v8222_v18 = vsel %vm8105_vm5, %v14950_v37, %v8221_v30  ;;  %v8354_v57 = vrot.slane %v14950_v37, 4  ;;  %v8600_v17 = vrot.slane %v14953_v40, 3  ;;  %v8433_v46 = vrot.slane %v14953_v40, 6 }
 0x4b3   : > { %v8321_v44 = vsel %vm8105_vm5, %v8320_v12, %v8319_v61  ;;  %v8154_v50 = vsel %vm8105_vm5, %v8153_v21, %v8152_v53  ;;  %v8287_v34 = vsel %vm8105_vm5, %v8286_v19, %v8285_v52  ;;  %v8188_v25 = vsel %vm8105_vm5, %v8187_v38, %v8186_v13 }
 0x4b4   : > { %v8355_v2 = vsel %vm8105_vm5, %v8354_v57, %v8353_v6  ;;  %v8566_v45 = vrot.slane %v14953_v40, 2  ;;  %v8601_v55 = vsel %vm8105_vm5, %v8600_v17, %v8599_v7  ;;  %v8467_v47 = vrot.slane %v14953_v40, 7 }
 0x4b5   : > { %v8502_v23 = vsel %vm8105_vm5, %v14953_v40, %v8501_v1  ;;  %v8634_v42 = vrot.slane %v14953_v40, 4  ;;  %v8434_v61 = vsel %vm8105_vm5, %v8433_v46, %v8432_v5  ;;  %v8251_v30 = vrot.slane %v14759_v4, 4 }
 0x4b6   : > { %v8567_v53 = vsel %vm8105_vm5, %v8566_v45, %v8565_v39  ;;  %v8468_v13 = vsel %vm8105_vm5, %v8467_v47, %v8466_v58  ;;  %v8252_v6 = vrot.slane %v14792_v32, 3  ;;  %v8120_v7 = vsel %vm8099_vm0, %v8119_v14, %v14759_v4 }
 0x4b7   : > { %v8635_v52 = vsel %vm8105_vm5, %v8634_v42, %v8633_v9  ;;  %v8399_v58 = vrot.slane %v14802_v11, 7  ;;  %v8533_v32 = vsel %vm8099_vm0, %v8532_v28, %v8531_v0  ;;  %v8121_v12 = vrot.slane %v14896_v27, 6 }
 0x4b8   : > { %v8253_v3 = vsel %vm8099_vm0, %v8252_v6, %v8251_v30  ;;  %v8401_v6 = vrot.slane %v14901_v15, 6 }
 0x4b9   : > { %v9564_v49 = vpop.f32.mrb[80].mxu1  ;;  %v8400_v9 = vsel %vm8099_vm0, %v8399_v58, %v14776_v60 }
 0x4ba   : > { %v9565_v5 = vpop.f32.mrb[81].mxu1  ;;  %v8402_v58 = vsel %vm8102_vm4, %v8401_v6, %v8400_v9 }
 0x4bb   : > { %v9566_v39 = vadd.f32 %v9565_v5, %v9564_v49  ;;  %v9567_v1 = vpop.f32.mrb[82].mxu1 }
 0x4bc   : > { %v9568_v33 = vpop.f32.mrb[83].mxu1 }
 0x4bd   : > { %v7827_v54 = vadd.f32 %v14883_v62, %v9566_v39  ;;  %v9569_v16 = vadd.f32 %v9568_v33, %v9567_v1  ;;  %v8536_v1 = vrot.slane %v14953_v40, 1  ;;  %v8044_v33 = vld [vmem:[%s10080_s14 + $0xd0] sm:$0xff] }
 0x4bf   : > { %v7988_v4 = vadd.f32 %v14504_v29, %v7827_v54  ;;  %v7830_v43 = vadd.f32 %v14883_v62, %v9569_v16 }
 0x4c1   : > { %v14996_v36 = vadd.f32 %v8042_v51, %v7988_v4  ;;  %v7991_v11 = vadd.f32 %v14516_v31, %v7830_v43  ;;  %v8045_v4 = vld [vmem:[%s10080_s14 + $0xd8] sm:$0xff] }
 0x4c3   : > { %v14999_v35 = vadd.f32 %v8043_v22, %v7991_v11  ;;  %v8322_v60 = vrot.slane %v14996_v36, 2  ;;  %v8155_v63 = vrot.slane %v14996_v36, 5  ;;  %v8288_v10 = vrot.slane %v14996_v36, 1 }
 0x4c4   : > { %v8189_v41 = vrot.slane %v14996_v36, 6  ;;  %v8223_v56 = vrot.slane %v14996_v36, 7  ;;  %v8356_v29 = vrot.slane %v14996_v36, 3 }
 0x4c5   : > { %v8323_v21 = vsel %vm8108_vm6, %v8322_v60, %v8321_v44  ;;  %v8156_v31 = vsel %vm8108_vm6, %v8155_v63, %v8154_v50  ;;  %v8289_v19 = vsel %vm8108_vm6, %v8288_v10, %v8287_v34  ;;  %v8602_v38 = vrot.slane %v14999_v35, 2 }
 0x4c6   : > { %v8190_v57 = vsel %vm8108_vm6, %v8189_v41, %v8188_v25  ;;  %v8224_v17 = vsel %vm8108_vm6, %v8223_v56, %v8222_v18  ;;  %v8357_v46 = vsel %vm8108_vm6, %v8356_v29, %v8355_v2  ;;  %v8435_v45 = vrot.slane %v14999_v35, 5 }
 0x4c7   : > { %v8603_v47 = vsel %vm8108_vm6, %v8602_v38, %v8601_v55  ;;  %v8568_v42 = vrot.slane %v14999_v35, 1  ;;  %v8469_v44 = vrot.slane %v14999_v35, 6  ;;  %v8503_v50 = vrot.slane %v14999_v35, 7 }
 0x4c8   : > { %v8436_v34 = vsel %vm8108_vm6, %v8435_v45, %v8434_v61  ;;  %v8636_v14 = vrot.slane %v14999_v35, 3  ;;  %v8122_v25 = vsel %vm8102_vm4, %v8121_v12, %v8120_v7  ;;  %v8254_v18 = vrot.slane %v14896_v27, 2 }
 0x4c9   : > { %v8569_v2 = vsel %vm8108_vm6, %v8568_v42, %v8567_v53  ;;  %v8470_v30 = vsel %vm8108_vm6, %v8469_v44, %v8468_v13  ;;  %v8504_v55 = vsel %vm8108_vm6, %v8503_v50, %v8502_v23  ;;  %v8534_v61 = vrot.slane %v14901_v15, 2 }
 0x4ca   : > { %v8637_v0 = vsel %vm8108_vm6, %v8636_v14, %v8635_v52  ;;  %v8255_v49 = vsel %vm8102_vm4, %v8254_v18, %v8253_v3  ;;  %v8123_v53 = vrot.slane %v14950_v37, 5  ;;  %v8256_v23 = vrot.slane %v14950_v37, 1 }
 0x4cb   : > { %v8535_v7 = vsel %vm8102_vm4, %v8534_v61, %v8533_v32  ;;  %v8403_v15 = vrot.slane %v14953_v40, 5  ;;  %v8405_v61 = vrot.slane %v14999_v35, 4 }
 0x4cc   : > { %v8124_v52 = vsel %vm8105_vm5, %v8123_v53, %v8122_v25  ;;  %v8257_v3 = vsel %vm8105_vm5, %v8256_v23, %v8255_v49  ;;  %v8537_v16 = vsel %vm8105_vm5, %v8536_v1, %v8535_v7 }
 0x4cd   : > { %v8404_v54 = vsel %vm8105_vm5, %v8403_v15, %v8402_v58  ;;  %v8538_v7 = vsel %vm8108_vm6, %v14999_v35, %v8537_v16  ;;  %v8048_v15 = vld [vmem:[%s10080_s14 + $0xf0] sm:$0xff] }
 0x4ce   : > { %v9570_v27 = vpop.f32.mrb[84].mxu1 }
 0x4cf   : > { %v9571_v28 = vpop.f32.mrb[85].mxu1 }
 0x4d0   : > { %v9572_v13 = vadd.f32 %v9571_v28, %v9570_v27  ;;  %v9573_v5 = vpop.f32.mrb[86].mxu1  ;;  %v8406_v27 = vsel %vm8108_vm6, %v8405_v61, %v8404_v54 }
 0x4d1   : > { %v9574_v39 = vpop.f32.mrb[87].mxu1 }
 0x4d2   : > { %v7835_v9 = vadd.f32 %v14883_v62, %v9572_v13  ;;  %v9575_v32 = vadd.f32 %v9574_v39, %v9573_v5 }
 0x4d4   : > { %v7996_v37 = vadd.f32 %v14500_v8, %v7835_v9  ;;  %v7838_v51 = vadd.f32 %v14883_v62, %v9575_v32 }
 0x4d6   : > { %v8076_v43 = vadd.f32 %v8044_v33, %v7996_v37  ;;  %v7999_v22 = vadd.f32 %v14509_v26, %v7838_v51  ;;  %v8046_v37 = vld [vmem:[%s10080_s14 + $0xe0] sm:$0xff] }
 0x4d8   : > { %v15047_v11 = vadd.f32 %v8045_v4, %v7999_v22  ;;  %v8324_v60 = vrot.slane %v8076_v43, 1  ;;  %v8157_v40 = vrot.slane %v8076_v43, 4  ;;  %v15050_v63 = vsel %vm8111_vm7, %v8076_v43, %v8289_v19  ;;  %v8049_v22 = vld [vmem:[%s10080_s14 + $0xf8] sm:$0xff] }
 0x4d9   : > { %v8191_v41 = vrot.slane %v8076_v43, 5  ;;  %v8225_v56 = vrot.slane %v8076_v43, 6  ;;  %v8358_v29 = vrot.slane %v8076_v43, 2  ;;  %v8127_v13 = vrot.slane %v8076_v43, 3 }
 0x4da   : > { %v15053_v8 = vsel %vm8111_vm7, %v8324_v60, %v8323_v21  ;;  %v15056_v38 = vsel %vm8111_vm7, %v8157_v40, %v8156_v31  ;;  %v8604_v26 = vrot.slane %v15047_v11, 1  ;;  %v8437_v45 = vrot.slane %v15047_v11, 4 }
 0x4db   : > { %v9576_v10 = vpop.f32.mrb[88].mxu1  ;;  %v15061_v19 = vsel %vm8111_vm7, %v8191_v41, %v8190_v57  ;;  %v15064_v50 = vsel %vm8111_vm7, %v8225_v56, %v8224_v17  ;;  %v15067_v14 = vsel %vm8111_vm7, %v8358_v29, %v8357_v46  ;;  %v15077_v18 = vsel %vm8111_vm7, %v15047_v11, %v8569_v2  ;;  %v8047_v29 = vld [vmem:[%s10080_s14 + $0xe8] sm:$0xff]  ;;  %s9281_s14 = sshll.u32 %s15628_s22, 6 }
 0x4dc   : > { %v9577_v12 = vpop.f32.mrb[89].mxu1  ;;  %v15070_v25 = vsel %vm8111_vm7, %v8604_v26, %v8603_v47  ;;  %v15073_v31 = vsel %vm8111_vm7, %v8437_v45, %v8436_v34  ;;  %v8471_v57 = vrot.slane %v15047_v11, 5  ;;  %v8505_v17 = vrot.slane %v15047_v11, 6  ;;  %s15197_s24 = scalar_lea.vmem %s15293_s5, %s9281_s14 }
 0x4dd   : > { %v9578_v42 = vadd.f32 %v9577_v12, %v9576_v10  ;;  %v9579_v44 = vpop.f32.mrb[90].mxu1  ;;  %v8638_v49 = vrot.slane %v15047_v11, 2  ;;  %v8125_v47 = vrot.slane %v14996_v36, 4  ;;  %v8258_v34 = vsel %vm8108_vm6, %v14996_v36, %v8257_v3 }
 0x4de   : > { %v9580_v21 = vpop.f32.mrb[91].mxu1  ;;  %v15083_v46 = vsel %vm8111_vm7, %v8471_v57, %v8470_v30  ;;  %v15090_v2 = vsel %vm8111_vm7, %v8505_v17, %v8504_v55  ;;  %v8407_v32 = vrot.slane %v15047_v11, 3  ;;  %v8539_v33 = vrot.slane %v15047_v11, 7 }
 0x4df   : > { %v9581_v6 = vadd.f32 %v9580_v21, %v9579_v44  ;;  %v15093_v58 = vsel %vm8111_vm7, %v8638_v49, %v8637_v0  ;;  %v8126_v30 = vsel %vm8108_vm6, %v8125_v47, %v8124_v52  ;;  %v8259_v0 = vrot.slane %v8076_v43, 7 }
 0x4e0   : > { %v15100_v39 = vsel %vm8111_vm7, %v8127_v13, %v8126_v30  ;;  %v7843_v1 = vadd.f32 %v14883_v62, %v9578_v42  ;;  %v15117_v40 = vsel %vm8111_vm7, %v8407_v32, %v8406_v27  ;;  %v15120_v10 = vsel %vm8111_vm7, %v8539_v33, %v8538_v7 }
 0x4e1   : > { %v15108_v9 = vsel %vm8111_vm7, %v8259_v0, %v8258_v34  ;;  %v7846_v60 = vadd.f32 %v14883_v62, %v9581_v6 }
 0x4eb   : > { %v9582_v28 = vpop.f32.mrb[92].mxu1 }
 0x4ec   : > { %v9583_v53 = vpop.f32.mrb[93].mxu1 }
 0x4ed   : > { %v9584_v23 = vadd.f32 %v9583_v53, %v9582_v28  ;;  %v9585_v36 = vpop.f32.mrb[94].mxu1 }
 0x4ee   : > { %v9586_v5 = vpop.f32.mrb[95].mxu1 }
 0x4ef   : > { %v9587_v55 = vadd.f32 %v9586_v5, %v9585_v36  ;;  %v7851_v3 = vadd.f32 %v14883_v62, %v9584_v23 }
 0x4f1   : > { %v7854_v51 = vadd.f32 %v14883_v62, %v9587_v55 }
 0x4f3   : > { %v15103_v35 = vpop.permute.xlu0 %8363  ;;  %v9676_v52 = vpop.f32.mrb[96].mxu1 }
 0x4f4   : > { %v8012_v54 = vadd.f32 %v9676_v52, %v7851_v3  ;;  %v8003_v16 = vpop.f32.mrb[97].mxu1 }
 0x4f5   : > { %v8004_v4 = vadd.f32 %v8003_v16, %v7843_v1  ;;  %v9677_v43 = vpop.f32.mrb[98].mxu1 }
 0x4f6   : > { %v15122_v41 = vadd.f32 %v8048_v15, %v8012_v54  ;;  %v8015_v11 = vadd.f32 %v9677_v43, %v7854_v51  ;;  %v8006_v56 = vpop.f32.mrb[99].mxu1 }
 0x4f7   : > { %v15125_v12 = vpop.permute.xlu0 %8163  ;;  %v15127_v26 = vadd.f32 %v8046_v37, %v8004_v4  ;;  %v8007_v45 = vadd.f32 %v8006_v56, %v7846_v60 }
 0x4f8   : > { %v15130_v42 = vadd.f32 %v8049_v22, %v8015_v11  ;;  %v8327_v62 = vrot.slane %v15122_v41, 7  ;;  %v8161_v44 = vrot.slane %v15122_v41, 2  ;;  %v8293_v21 = vrot.slane %v15122_v41, 6 }
 0x4f9   : > { %v15135_v57 = vadd.f32 %v8047_v29, %v8007_v45  ;;  %v8326_v6 = vsel %vm8114_vm8, %v15127_v26, %v15053_v8  ;;  %v8159_v17 = vrot.slane %v15127_v26, 3  ;;  %v8291_v49 = vrot.slane %v15127_v26, 7 }
 0x4fa   : > { %v8328_v47 = vsel %vm8117_vm9, %v8327_v62, %v8326_v6  ;;  %v8193_v34 = vrot.slane %v15127_v26, 4  ;;  %v8195_v61 = vrot.slane %v15122_v41, 3  ;;  %v8607_v7 = vrot.slane %v15130_v42, 7 }
 0x4fb   : > { %v8296_v30 = vpop.permute.xlu0 %8295  ;;  %8331 = vrot.lane.b32.xlu1 %v8328_v47, %s9961_s21  ;;  %v8160_v27 = vsel %vm8114_vm8, %v8159_v17, %v15056_v38  ;;  %v8292_v8 = vsel %vm8114_vm8, %v8291_v49, %v15050_v63  ;;  %v8606_v28 = vsel %vm8114_vm8, %v15135_v57, %v15070_v25  ;;  %v8227_v53 = vrot.slane %v15127_v26, 5 }
 0x4fc   : > { %v8162_v23 = vsel %vm8117_vm9, %v8161_v44, %v8160_v27  ;;  %v8294_v36 = vsel %vm8117_vm9, %v8293_v21, %v8292_v8  ;;  %v8194_v13 = vsel %vm8114_vm8, %v8193_v34, %v15061_v19  ;;  %v8608_v38 = vsel %vm8117_vm9, %v8607_v7, %v8606_v28 }
 0x4fd   : > { %v8196_v63 = vsel %vm8117_vm9, %v8195_v61, %v8194_v13  ;;  %v8228_v25 = vsel %vm8114_vm8, %v8227_v53, %v15064_v50  ;;  %v8229_v5 = vrot.slane %v15122_v41, 4  ;;  %v8360_v55 = vrot.slane %v15127_v26, 1 }
 0x4fe   : > { %v8439_v0 = vrot.slane %v15135_v57, 3  ;;  %v8441_v3 = vrot.slane %v15130_v42, 2  ;;  %v8571_v52 = vrot.slane %v15135_v57, 7  ;;  %v8657_v50 = vsel %vm1077_vm15, %v14865_v24, %v8296_v30 }
 0x4ff   : > { %v8198_v15 = vpop.permute.xlu0 %8197  ;;  %8165 = vrot.lane.b32.xlu1 %v8162_v23, %s9963_s8  ;;  %v8230_v19 = vsel %vm8117_vm9, %v8229_v5, %v8228_v25  ;;  %v8361_v1 = vsel %vm8114_vm8, %v8360_v55, %v15067_v14  ;;  %v8573_v32 = vrot.slane %v15130_v42, 6  ;;  %v8473_v37 = vrot.slane %v15135_v57, 4 }
 0x500   : > { %v8362_v33 = vsel %vm8117_vm9, %v15122_v41, %v8361_v1  ;;  %v8440_v54 = vsel %vm8114_vm8, %v8439_v0, %v15073_v31  ;;  %v8572_v16 = vsel %vm8114_vm8, %v8571_v52, %v15077_v18  ;;  %v8475_v24 = vrot.slane %v15130_v42, 3 }
 0x501   : > { %v8442_v51 = vsel %vm8117_vm9, %v8441_v3, %v8440_v54  ;;  %v8574_v14 = vsel %vm8117_vm9, %v8573_v32, %v8572_v16  ;;  %v8507_v4 = vrot.slane %v15135_v57, 5  ;;  %v8474_v43 = vsel %vm8114_vm8, %v8473_v37, %v15083_v46 }
 0x502   : > { %v8509_v18 = vrot.slane %v15130_v42, 4  ;;  %v8640_v22 = vrot.slane %v15135_v57, 1  ;;  %v8129_v60 = vrot.slane %v15127_v26, 2  ;;  %v8476_v11 = vsel %vm8117_vm9, %v8475_v24, %v8474_v43 }
 0x503   : > { %v8330_v31 = vpop.permute.xlu0 %8329  ;;  %8297 = vrot.lane.b32.xlu1 %v8294_v36, %s9963_s8  ;;  %v8508_v46 = vsel %vm8114_vm8, %v8507_v4, %v15090_v2  ;;  %v8131_v29 = vrot.slane %v15122_v41, 1  ;;  %v8649_v6 = vsel %vm1077_vm15, %v14848_v20, %v15125_v12  ;;  %v8409_v12 = vrot.slane %v15135_v57, 2 }
 0x504   : > { %v8659_v56 = vsel %vm8651_vm10, %v8657_v50, %v8330_v31  ;;  %v8510_v62 = vsel %vm8117_vm9, %v8509_v18, %v8508_v46  ;;  %v8641_v44 = vsel %vm8114_vm8, %v8640_v22, %v15093_v58  ;;  %v8130_v21 = vsel %vm8114_vm8, %v8129_v60, %v15100_v39 }
 0x505   : > { %v8661_v45 = vsel %vm8654_vm11, %v8659_v56, %v15103_v35  ;;  %v8642_v2 = vsel %vm8117_vm9, %v15130_v42, %v8641_v44  ;;  %v8132_v17 = vsel %vm8117_vm9, %v8131_v29, %v8130_v21  ;;  %v8261_v35 = vrot.slane %v15127_v26, 6 }
 0x506   : > { %8676 = vst [vmem:[%s15197_s24 + $0x8] sm:$0xff] %v8661_v45  ;;  %v8652_v49 = vsel %vm8651_vm10, %v8649_v6, %v8198_v15  ;;  %v8263_v58 = vrot.slane %v15122_v41, 5  ;;  %v8541_v34 = vrot.slane %v15135_v57, 6  ;;  %v8411_v26 = vrot.slane %v15130_v42, 1 }
 0x507   : > { %v8232_v47 = vpop.permute.xlu0 %8231  ;;  %8199 = vrot.lane.b32.xlu1 %v8196_v63, %s9961_s21  ;;  %v8262_v20 = vsel %vm8114_vm8, %v8261_v35, %v15108_v9  ;;  %v8543_v7 = vrot.slane %v15130_v42, 5  ;;  %v8410_v41 = vsel %vm8114_vm8, %v8409_v12, %v15117_v40 }
 0x508   : > { %v8655_v39 = vsel %vm8654_vm11, %v8652_v49, %v8232_v47  ;;  %v8264_v61 = vsel %vm8117_vm9, %v8263_v58, %v8262_v20  ;;  %v8542_v30 = vsel %vm8114_vm8, %v8541_v34, %v15120_v10  ;;  %v8412_v9 = vsel %vm8117_vm9, %v8411_v26, %v8410_v41 }
 0x509   : > { %8675 = vst [vmem:[%s15197_s24] sm:$0xff] %v8655_v39  ;;  %v8544_v8 = vsel %vm8117_vm9, %v8543_v7, %v8542_v30 }
 0x50b   : > { %v8444_v27 = vpop.permute.xlu0 %8443  ;;  %8611 = vrot.lane.b32.xlu1 %v8608_v38, %s9961_s21 }
 0x50c   : > { %v8663_v40 = vsel %vm1077_vm15, %v14914_v59, %v8444_v27 }
 0x50f   : > { %v8576_v57 = vpop.permute.xlu0 %8575  ;;  %8233 = vrot.lane.b32.xlu1 %v8230_v19, %s9962_s27 }
 0x510   : > { %v8669_v36 = vsel %vm1077_vm15, %v14941_v48, %v8576_v57 }
 0x513   : > { %v8478_v28 = vpop.permute.xlu0 %8477  ;;  %8365 = vrot.lane.b32.xlu1 %v8362_v33, %s9962_s27 }
 0x514   : > { %v8665_v10 = vsel %vm8651_vm10, %v8663_v40, %v8478_v28 }
 0x517   : > { %v8610_v42 = vpop.permute.xlu0 %8609  ;;  %8445 = vrot.lane.b32.xlu1 %v8442_v51, %s9963_s8 }
 0x518   : > { %v8671_v13 = vsel %vm8651_vm10, %v8669_v36, %v8610_v42 }
 0x51b   : > { %v8512_v53 = vpop.permute.xlu0 %8511  ;;  %8577 = vrot.lane.b32.xlu1 %v8574_v14, %s9963_s8 }
 0x51c   : > { %v8667_v23 = vsel %vm8654_vm11, %v8665_v10, %v8512_v53 }
 0x51d   : > { %8677 = vst [vmem:[%s15197_s24 + $0x10] sm:$0xff] %v8667_v23 }
 0x51f   : > { %v8644_v38 = vpop.permute.xlu0 %8643  ;;  %8479 = vrot.lane.b32.xlu1 %v8476_v11, %s9961_s21 }
 0x520   : > { %v8673_v63 = vsel %vm8654_vm11, %v8671_v13, %v8644_v38 }
 0x521   : > { %8678 = vst [vmem:[%s15197_s24 + $0x18] sm:$0xff] %v8673_v63 }
 0x523   : > { %8513 = vrot.lane.b32.xlu1 %v8510_v62, %s9962_s27 }
 0x527   : > { %8645 = vrot.lane.b32.xlu1 %v8642_v2, %s9962_s27 }
 0x56d   : > { %v8332_v59 = vpop.permute.xlu1 %8331 }
 0x571   : > { %v8166_v25 = vpop.permute.xlu1 %8165 }
 0x572   : > { %v8650_v48 = vsel %vm1077_vm15, %v8132_v17, %v8166_v25 }
 0x575   : > { %v8298_v5 = vpop.permute.xlu1 %8297 }
 0x576   : > { %v8658_v15 = vsel %vm1077_vm15, %v8264_v61, %v8298_v5 }
 0x577   : > { %v8660_v1 = vsel %vm8651_vm10, %v8658_v15, %v8332_v59 }
 0x579   : > { %v8200_v55 = vpop.permute.xlu1 %8199 }
 0x57a   : > { %v8653_v3 = vsel %vm8651_vm10, %v8650_v48, %v8200_v55 }
 0x57d   : > { %v8612_v0 = vpop.permute.xlu1 %8611 }
 0x581   : > { %v8234_v52 = vpop.permute.xlu1 %8233 }
 0x582   : > { %v8656_v19 = vsel %vm8654_vm11, %v8653_v3, %v8234_v52 }
 0x583   : > { %8679 = vst [vmem:[%s15197_s24 + $0x20] sm:$0xff] %v8656_v19 }
 0x585   : > { %v8366_v50 = vpop.permute.xlu1 %8365 }
 0x586   : > { %v8662_v32 = vsel %vm8654_vm11, %v8660_v1, %v8366_v50 }
 0x587   : > { %8680 = vst [vmem:[%s15197_s24 + $0x28] sm:$0xff] %v8662_v32 }
 0x589   : > { %v8446_v33 = vpop.permute.xlu1 %8445 }
 0x58a   : > { %v8664_v37 = vsel %vm1077_vm15, %v8412_v9, %v8446_v33 }
 0x58d   : > { %v8578_v54 = vpop.permute.xlu1 %8577 }
 0x58e   : > { %v8670_v24 = vsel %vm1077_vm15, %v8544_v8, %v8578_v54 }
 0x58f   : > { %v8672_v43 = vsel %vm8651_vm10, %v8670_v24, %v8612_v0 }
 0x591   : > { %v8480_v16 = vpop.permute.xlu1 %8479 }
 0x592   : > { %v8666_v51 = vsel %vm8651_vm10, %v8664_v37, %v8480_v16 }
 0x595   : > { %v8514_v14 = vpop.permute.xlu1 %8513 }
 0x596   : > { %v8668_v4 = vsel %vm8654_vm11, %v8666_v51, %v8514_v14 }
 0x597   : > { %8681 = vst [vmem:[%s15197_s24 + $0x30] sm:$0xff] %v8668_v4 }
 0x599   : > { %v8646_v31 = vpop.permute.xlu1 %8645 }
 0x59a   : > { %v8674_v18 = vsel %vm8654_vm11, %v8672_v43, %v8646_v31 }
 0x59b   : > { %8682 = vst [vmem:[%s15197_s24 + $0x38] sm:$0xff] %v8674_v18 }
 0x59c PF: > { %p15_p8 = scmp.ge.s32.totalorder %s10016_s23, 4   ;;  %s15623_s18 = smov %s9947_s19 }
 0x59d   : > { %s15624_s19 = smov %s9951_s20  ;;  %s15625_s20 = smov %s10026_s26 }
 0x59e   : > { %s15626_s21 = smov %s10016_s23  ;;  %17 = sbr.rel (!%p15_p8) target bundleno = 3 (0x3), region = 83 }
 0x5a5   :  { %8704 = vsyncpa [#allocation5], 1 }
 0x5a6   :  { %8706 = vsyncpa [#allocation5 + $0x1], 1 }

</bundles_post_ra>
